<compile_context>
chip_gen: v6e
topology: v6e:2x2x1
jax: 0.10.0
libtpu: 0.0.40
codegen_flags: <defaults>
</compile_context>

<pallas_src>
import math

import jax
import jax.numpy as jnp
from jax.experimental import pallas as pl
from jax.experimental.pallas import tpu as pltpu  # noqa: F401  (TPU backend)

# ----------------------------- small config ---------------------------------
B = 2            # batch
L = 512          # raw-audio samples
D = 32           # feature_dim (stand-in for 768)
H = 4            # attention heads
DH = D // H      # head dim
FFN = 128        # feed-forward hidden dim
N_LAYERS = 2     # transformer encoder layers (stand-in for 12)
NUM_CLASSES = 10
LN_EPS = 1e-5

# (kernel, stride, c_in) for the conv feature extractor (stand-in for the
# 7-layer wav2vec2 extractor).
CONV_SPECS = [(10, 5, 1), (3, 2, D), (2, 2, D)]
# TODO(synk): real s3prl wav2vec2 upstream (pretrained weights, GroupNorm in
# conv layer 0, positional conv embedding, 7 conv / 12 encoder layers) is not
# reproducible without the checkpoint; a reduced synthetic upstream is used.
# TODO(synk): at real scale (D=768, FFN=3072, T~500) the fused kernels below
# need a tiled grid (M/N "parallel", K "arbitrary", f32 VMEM accumulator via
# pl.when init/finalize) with the VMEM budget sized for v7x's 64 MiB; at these
# toy sizes a single full-array VMEM block per kernel is the right choice.


# --------------------------- in-kernel helpers -------------------------------
def _ln(x, g, b):
    """LayerNorm over the last dim, f32 math."""
    mu = jnp.mean(x, axis=-1, keepdims=True)
    var = jnp.mean(jnp.square(x - mu), axis=-1, keepdims=True)
    return (x - mu) * jax.lax.rsqrt(var + LN_EPS) * g + b


def _gelu(x):
    # TODO(synk): PyTorch nn.GELU defaults to the exact erf form; tanh
    # approximation used here to stay on guaranteed Mosaic lowerings.
    return jax.nn.gelu(x, approximate=True)


# ----------------------------- Pallas kernels --------------------------------
def _conv_gelu_kernel(x_ref, w_ref, b_ref, o_ref):
    """o = gelu(x @ w + b).  x:(M,K) f32, w:(K,D) bf16, b:(1,D) f32."""
    x = x_ref[...].astype(jnp.bfloat16)
    acc = jnp.dot(x, w_ref[...], preferred_element_type=jnp.float32) + b_ref[...]
    o_ref[...] = _gelu(acc)


def _conv_gelu_ln_kernel(x_ref, w_ref, b_ref, g_ref, bb_ref, o_ref):
    """Last conv layer: matmul + bias + GELU + feature-extractor LayerNorm."""
    x = x_ref[...].astype(jnp.bfloat16)
    acc = jnp.dot(x, w_ref[...], preferred_element_type=jnp.float32) + b_ref[...]
    o_ref[...] = _ln(_gelu(acc), g_ref[...], bb_ref[...])


def conv_block(x2d, w, b, ln=None):
    M = x2d.shape[0]
    out_shape = jax.ShapeDtypeStruct((M, D), jnp.float32)
    if ln is None:
        return pl.pallas_call(_conv_gelu_kernel, out_shape=out_shape)(x2d, w, b)
    g, bb = ln
    return pl.pallas_call(_conv_gelu_ln_kernel, out_shape=out_shape)(
        x2d, w, b, g, bb)


def _encoder_layer_kernel(x_ref, wqkv_ref, bqkv_ref, wo_ref, bo_ref,
                          ln1g_ref, ln1b_ref, w1_ref, b1_ref,
                          w2_ref, b2_ref, ln2g_ref, ln2b_ref, o_ref):
    """Whole post-LN transformer encoder layer fused in one kernel (VMEM)."""
    Bc, Tc, Dc = x_ref.shape
    x = x_ref[...]                                           # (B, T, D) f32
    x2 = x.reshape(Bc * Tc, Dc)                              # (B*T, D)

    # Fused QKV projection: one MXU pass, lane width 3D.
    # (the 1/sqrt(dh) attention scale is folded into wq at init time)
    qkv = jnp.dot(x2.astype(jnp.bfloat16), wqkv_ref[...],
                  preferred_element_type=jnp.float32) + bqkv_ref[...]
    qkv3 = qkv.reshape(Bc, Tc, 3 * Dc)                       # (B, T, 3D)
    wo = wo_ref[...]                                         # (D, D) bf16

    # Multi-head attention; the out-projection is accumulated per head, so no
    # head-merge transpose / concatenation (and no HBM relayout) is needed.
    attn = jnp.zeros((Bc * Tc, Dc), jnp.float32)
    for h in range(H):
        qh = qkv3[:, :, h * DH:(h + 1) * DH].astype(jnp.bfloat16)
        kh = qkv3[:, :, Dc + h * DH:Dc + (h + 1) * DH].astype(jnp.bfloat16)
        vh = qkv3[:, :, 2 * Dc + h * DH:2 * Dc + (h + 1) * DH].astype(jnp.bfloat16)

        s = jnp.einsum('bqd,bkd->bqk', qh, kh,
                       preferred_element_type=jnp.float32)   # (B, T, T) f32
        s = s - jnp.max(s, axis=-1, keepdims=True)
        p = jnp.exp(s)
        p = p * pl.reciprocal(jnp.sum(p, axis=-1, keepdims=True), approx=True)

        oh = jnp.einsum('bqk,bkd->bqd', p.astype(jnp.bfloat16), vh,
                        preferred_element_type=jnp.float32)  # (B, T, DH)
        attn = attn + jnp.dot(oh.reshape(Bc * Tc, DH).astype(jnp.bfloat16),
                              wo[h * DH:(h + 1) * DH, :],
                              preferred_element_type=jnp.float32)
    attn = attn + bo_ref[...]

    x1 = _ln(x2 + attn, ln1g_ref[...], ln1b_ref[...])        # residual + LN (f32)

    f = jnp.dot(x1.astype(jnp.bfloat16), w1_ref[...],
                preferred_element_type=jnp.float32) + b1_ref[...]
    f = _gelu(f)
    f = jnp.dot(f.astype(jnp.bfloat16), w2_ref[...],
                preferred_element_type=jnp.float32) + b2_ref[...]

    y = _ln(x1 + f, ln2g_ref[...], ln2b_ref[...])            # residual + LN (f32)
    o_ref[...] = y.reshape(Bc, Tc, Dc)


def encoder_layer(params, l, x):
    p = lambda n: params[f"enc{l}_{n}"]
    return pl.pallas_call(
        _encoder_layer_kernel,
        out_shape=jax.ShapeDtypeStruct(x.shape, jnp.float32),
    )(x, p("wqkv"), p("bqkv"), p("wo"), p("bo"),
      p("ln1_g"), p("ln1_b"), p("w1"), p("b1"), p("w2"), p("b2"),
      p("ln2_g"), p("ln2_b"))


def _head_kernel(h_ref, w_ref, b_ref, o_ref):
    """mean over time -> linear -> softmax.  h:(B,T,D) w:(D,C) b:(1,C)."""
    hidden = h_ref[...]                                      # (B, T, D) f32
    pooled = jnp.mean(hidden, axis=1)                        # (B, D)
    logits = jnp.dot(pooled.astype(jnp.bfloat16), w_ref[...],
                     preferred_element_type=jnp.float32) + b_ref[...]
    logits = logits - jnp.max(logits, axis=-1, keepdims=True)
    e = jnp.exp(logits)
    # exact divide here so output rows sum to 1 (this runs exactly once)
    o_ref[...] = e / jnp.sum(e, axis=-1, keepdims=True)


def head(h, w, b):
    return pl.pallas_call(
        _head_kernel,
        out_shape=jax.ShapeDtypeStruct((h.shape[0], w.shape[1]), jnp.float32),
    )(h, w, b)


# ------------------------------ glue (plain JAX) -----------------------------
def _frames(x, k, s):
    """im2col for a 1-D conv via k strided slices (no gather).
    x:(B, L, C) -> (B, T, k*C)."""
    Bb, Ll, C = x.shape
    T = (Ll - k) // s + 1
    cols = [x[:, j:j + (T - 1) * s + 1:s, :] for j in range(k)]  # k x (B, T, C)
    fr = jnp.stack(cols, axis=2)                                 # (B, T, k, C)
    return fr.reshape(Bb, T, k * C), T


def init_params(key):
    params = {}
    keys = iter(jax.random.split(key, 64))

    def dense_f32(k_in, k_out):
        return jax.random.normal(next(keys), (k_in, k_out), jnp.float32) * 0.02

    for i, (kz, st, c_in) in enumerate(CONV_SPECS):
        params[f"conv{i}_w"] = dense_f32(kz * c_in, D).astype(jnp.bfloat16)
        params[f"conv{i}_b"] = jnp.zeros((1, D), jnp.float32)

    params["fe_ln_g"] = jnp.ones((1, D), jnp.float32)
    params["fe_ln_b"] = jnp.zeros((1, D), jnp.float32)

    scale = 1.0 / math.sqrt(DH)
    for l in range(N_LAYERS):
        p = f"enc{l}_"
        wq = dense_f32(D, D) * scale         # fold 1/sqrt(dh) into wq (bq is 0)
        wk = dense_f32(D, D)
        wv = dense_f32(D, D)
        params[p + "wqkv"] = jnp.concatenate([wq, wk, wv], axis=1).astype(jnp.bfloat16)
        params[p + "bqkv"] = jnp.zeros((1, 3 * D), jnp.float32)
        params[p + "wo"] = dense_f32(D, D).astype(jnp.bfloat16)
        params[p + "bo"] = jnp.zeros((1, D), jnp.float32)
        params[p + "w1"] = dense_f32(D, FFN).astype(jnp.bfloat16)
        params[p + "b1"] = jnp.zeros((1, FFN), jnp.float32)
        params[p + "w2"] = dense_f32(FFN, D).astype(jnp.bfloat16)
        params[p + "b2"] = jnp.zeros((1, D), jnp.float32)
        for n in ("ln1", "ln2"):
            params[p + n + "_g"] = jnp.ones((1, D), jnp.float32)
            params[p + n + "_b"] = jnp.zeros((1, D), jnp.float32)

    params["fc_w"] = dense_f32(D, NUM_CLASSES).astype(jnp.bfloat16)
    params["fc_b"] = jnp.zeros((1, NUM_CLASSES), jnp.float32)
    return params


def wav2vec2_forward(params, x):
    """x: (B, L) raw waveform -> (B, NUM_CLASSES) class probabilities."""
    Bb = x.shape[0]
    h = x[:, :, None]                                   # (B, L, 1) channels-last

    # conv feature extractor: strided-slice im2col (glue) + fused Pallas
    # matmul+GELU kernel (the last conv also applies the feature LayerNorm).
    n_convs = len(CONV_SPECS)
    for i, (kz, st, _c_in) in enumerate(CONV_SPECS):
        fr, T = _frames(h, kz, st)                      # (B, T, k*C)
        flat = fr.reshape(Bb * T, -1)
        ln = ((params["fe_ln_g"], params["fe_ln_b"])
              if i == n_convs - 1 else None)
        h = conv_block(flat, params[f"conv{i}_w"], params[f"conv{i}_b"], ln=ln)
        h = h.reshape(Bb, T, D)

    # transformer encoder: one fused Pallas kernel per layer.
    for l in range(N_LAYERS):
        h = encoder_layer(params, l, h)

    # module head: mean over time, fc, softmax (fused Pallas kernel)
    return head(h, params["fc_w"], params["fc_b"])


# ---------------------------------- main -------------------------------------
if __name__ == "__main__":
    key = jax.random.PRNGKey(0)
    k_param, k_data = jax.random.split(key)
    params = init_params(k_param)
    x = jax.random.normal(k_data, (B, L), jnp.float32)

    probs = jax.jit(wav2vec2_forward)(params, x)
    probs = jax.block_until_ready(probs)

    assert probs.shape == (B, NUM_CLASSES)
    row_sums = jnp.sum(probs, axis=-1)
    assert bool(jnp.all(jnp.abs(row_sums - 1.0) < 1e-4))
    print("KERNEL_OK")
</pallas_src>

<mosaic_0001>
module attributes {stable_mosaic.version = 11 : i64} {
  func.func @_conv_gelu_kernel(%arg0: memref<202x10xf32, #tpu.memory_space<vmem>>, %arg1: memref<10x32xbf16, #tpu.memory_space<vmem>>, %arg2: memref<1x32xf32, #tpu.memory_space<vmem>>, %arg3: memref<202x32xf32, #tpu.memory_space<vmem>>) attributes {dimension_semantics = [], scalar_prefetch = 0 : i64, scratch_operands = 0 : i64, tpu.core_type = #tpu.core_type<tc>} {
    %c0 = arith.constant 0 : index
    %c0_0 = arith.constant 0 : index
    %0 = vector.load %arg0[%c0, %c0_0] : memref<202x10xf32, #tpu.memory_space<vmem>>, vector<202x10xf32>
    %1 = arith.truncf %0 : vector<202x10xf32> to vector<202x10xbf16>
    %c0_1 = arith.constant 0 : index
    %c0_2 = arith.constant 0 : index
    %2 = vector.load %arg1[%c0_1, %c0_2] : memref<10x32xbf16, #tpu.memory_space<vmem>>, vector<10x32xbf16>
    %cst = arith.constant dense<0.000000e+00> : vector<202x32xf32>
    %3 = tpu.matmul %1, %2, %cst {dimension_numbers = #tpu.dot_dimension_numbers<[1], [0], [0], [1], [0, 0, 1, 1], [], []>} : vector<202x10xbf16>, vector<10x32xbf16>, vector<202x32xf32> -> vector<202x32xf32>
    %c0_3 = arith.constant 0 : index
    %c0_4 = arith.constant 0 : index
    %4 = vector.load %arg2[%c0_3, %c0_4] : memref<1x32xf32, #tpu.memory_space<vmem>>, vector<1x32xf32>
    %5 = vector.broadcast %4 : vector<1x32xf32> to vector<202x32xf32>
    %6 = arith.addf %3, %5 : vector<202x32xf32>
    %7 = arith.mulf %6, %6 : vector<202x32xf32>
    %8 = arith.mulf %6, %7 : vector<202x32xf32>
    %cst_5 = arith.constant 4.471500e-02 : f32
    %9 = vector.broadcast %cst_5 : f32 to vector<202x32xf32>
    %10 = arith.mulf %9, %8 : vector<202x32xf32>
    %11 = arith.addf %6, %10 : vector<202x32xf32>
    %cst_6 = arith.constant 0.797884583 : f32
    %12 = vector.broadcast %cst_6 : f32 to vector<202x32xf32>
    %13 = arith.mulf %12, %11 : vector<202x32xf32>
    %14 = math.tanh %13 : vector<202x32xf32>
    %cst_7 = arith.constant 1.000000e+00 : f32
    %15 = vector.broadcast %cst_7 : f32 to vector<202x32xf32>
    %16 = arith.addf %15, %14 : vector<202x32xf32>
    %cst_8 = arith.constant 5.000000e-01 : f32
    %17 = vector.broadcast %cst_8 : f32 to vector<202x32xf32>
    %18 = arith.mulf %17, %16 : vector<202x32xf32>
    %19 = arith.mulf %6, %18 : vector<202x32xf32>
    %c0_9 = arith.constant 0 : index
    %c0_10 = arith.constant 0 : index
    %20 = vector.load %arg3[%c0_9, %c0_10] : memref<202x32xf32, #tpu.memory_space<vmem>>, vector<202x32xf32>
    tpu.vector_store %arg3[%c0_9, %c0_10], %19 {strides = array<i32>} : memref<202x32xf32, #tpu.memory_space<vmem>>, vector<202x32xf32>,
    return
  }
}

module attributes {stable_mosaic.version = 11 : i64} {
  func.func @_conv_gelu_kernel(%arg0: memref<100x96xf32, #tpu.memory_space<vmem>>, %arg1: memref<96x32xbf16, #tpu.memory_space<vmem>>, %arg2: memref<1x32xf32, #tpu.memory_space<vmem>>, %arg3: memref<100x32xf32, #tpu.memory_space<vmem>>) attributes {dimension_semantics = [], scalar_prefetch = 0 : i64, scratch_operands = 0 : i64, tpu.core_type = #tpu.core_type<tc>} {
    %c0 = arith.constant 0 : index
    %c0_0 = arith.constant 0 : index
    %0 = vector.load %arg0[%c0, %c0_0] : memref<100x96xf32, #tpu.memory_space<vmem>>, vector<100x96xf32>
    %1 = arith.truncf %0 : vector<100x96xf32> to vector<100x96xbf16>
    %c0_1 = arith.constant 0 : index
    %c0_2 = arith.constant 0 : index
    %2 = vector.load %arg1[%c0_1, %c0_2] : memref<96x32xbf16, #tpu.memory_space<vmem>>, vector<96x32xbf16>
    %cst = arith.constant dense<0.000000e+00> : vector<100x32xf32>
    %3 = tpu.matmul %1, %2, %cst {dimension_numbers = #tpu.dot_dimension_numbers<[1], [0], [0], [1], [0, 0, 1, 1], [], []>} : vector<100x96xbf16>, vector<96x32xbf16>, vector<100x32xf32> -> vector<100x32xf32>
    %c0_3 = arith.constant 0 : index
    %c0_4 = arith.constant 0 : index
    %4 = vector.load %arg2[%c0_3, %c0_4] : memref<1x32xf32, #tpu.memory_space<vmem>>, vector<1x32xf32>
    %5 = vector.broadcast %4 : vector<1x32xf32> to vector<100x32xf32>
    %6 = arith.addf %3, %5 : vector<100x32xf32>
    %7 = arith.mulf %6, %6 : vector<100x32xf32>
    %8 = arith.mulf %6, %7 : vector<100x32xf32>
    %cst_5 = arith.constant 4.471500e-02 : f32
    %9 = vector.broadcast %cst_5 : f32 to vector<100x32xf32>
    %10 = arith.mulf %9, %8 : vector<100x32xf32>
    %11 = arith.addf %6, %10 : vector<100x32xf32>
    %cst_6 = arith.constant 0.797884583 : f32
    %12 = vector.broadcast %cst_6 : f32 to vector<100x32xf32>
    %13 = arith.mulf %12, %11 : vector<100x32xf32>
    %14 = math.tanh %13 : vector<100x32xf32>
    %cst_7 = arith.constant 1.000000e+00 : f32
    %15 = vector.broadcast %cst_7 : f32 to vector<100x32xf32>
    %16 = arith.addf %15, %14 : vector<100x32xf32>
    %cst_8 = arith.constant 5.000000e-01 : f32
    %17 = vector.broadcast %cst_8 : f32 to vector<100x32xf32>
    %18 = arith.mulf %17, %16 : vector<100x32xf32>
    %19 = arith.mulf %6, %18 : vector<100x32xf32>
    %c0_9 = arith.constant 0 : index
    %c0_10 = arith.constant 0 : index
    %20 = vector.load %arg3[%c0_9, %c0_10] : memref<100x32xf32, #tpu.memory_space<vmem>>, vector<100x32xf32>
    tpu.vector_store %arg3[%c0_9, %c0_10], %19 {strides = array<i32>} : memref<100x32xf32, #tpu.memory_space<vmem>>, vector<100x32xf32>,
    return
  }
}

module attributes {stable_mosaic.version = 11 : i64} {
  func.func @_conv_gelu_ln_kernel(%arg0: memref<50x64xf32, #tpu.memory_space<vmem>>, %arg1: memref<64x32xbf16, #tpu.memory_space<vmem>>, %arg2: memref<1x32xf32, #tpu.memory_space<vmem>>, %arg3: memref<1x32xf32, #tpu.memory_space<vmem>>, %arg4: memref<1x32xf32, #tpu.memory_space<vmem>>, %arg5: memref<50x32xf32, #tpu.memory_space<vmem>>) attributes {dimension_semantics = [], scalar_prefetch = 0 : i64, scratch_operands = 0 : i64, tpu.core_type = #tpu.core_type<tc>} {
    %c0 = arith.constant 0 : index
    %c0_0 = arith.constant 0 : index
    %0 = vector.load %arg0[%c0, %c0_0] : memref<50x64xf32, #tpu.memory_space<vmem>>, vector<50x64xf32>
    %1 = arith.truncf %0 : vector<50x64xf32> to vector<50x64xbf16>
    %c0_1 = arith.constant 0 : index
    %c0_2 = arith.constant 0 : index
    %2 = vector.load %arg1[%c0_1, %c0_2] : memref<64x32xbf16, #tpu.memory_space<vmem>>, vector<64x32xbf16>
    %cst = arith.constant dense<0.000000e+00> : vector<50x32xf32>
    %3 = tpu.matmul %1, %2, %cst {dimension_numbers = #tpu.dot_dimension_numbers<[1], [0], [0], [1], [0, 0, 1, 1], [], []>} : vector<50x64xbf16>, vector<64x32xbf16>, vector<50x32xf32> -> vector<50x32xf32>
    %c0_3 = arith.constant 0 : index
    %c0_4 = arith.constant 0 : index
    %4 = vector.load %arg2[%c0_3, %c0_4] : memref<1x32xf32, #tpu.memory_space<vmem>>, vector<1x32xf32>
    %5 = vector.broadcast %4 : vector<1x32xf32> to vector<50x32xf32>
    %6 = arith.addf %3, %5 : vector<50x32xf32>
    %7 = arith.mulf %6, %6 : vector<50x32xf32>
    %8 = arith.mulf %6, %7 : vector<50x32xf32>
    %cst_5 = arith.constant 4.471500e-02 : f32
    %9 = vector.broadcast %cst_5 : f32 to vector<50x32xf32>
    %10 = arith.mulf %9, %8 : vector<50x32xf32>
    %11 = arith.addf %6, %10 : vector<50x32xf32>
    %cst_6 = arith.constant 0.797884583 : f32
    %12 = vector.broadcast %cst_6 : f32 to vector<50x32xf32>
    %13 = arith.mulf %12, %11 : vector<50x32xf32>
    %14 = math.tanh %13 : vector<50x32xf32>
    %cst_7 = arith.constant 1.000000e+00 : f32
    %15 = vector.broadcast %cst_7 : f32 to vector<50x32xf32>
    %16 = arith.addf %15, %14 : vector<50x32xf32>
    %cst_8 = arith.constant 5.000000e-01 : f32
    %17 = vector.broadcast %cst_8 : f32 to vector<50x32xf32>
    %18 = arith.mulf %17, %16 : vector<50x32xf32>
    %19 = arith.mulf %6, %18 : vector<50x32xf32>
    %c0_9 = arith.constant 0 : index
    %c0_10 = arith.constant 0 : index
    %20 = vector.load %arg3[%c0_9, %c0_10] : memref<1x32xf32, #tpu.memory_space<vmem>>, vector<1x32xf32>
    %c0_11 = arith.constant 0 : index
    %c0_12 = arith.constant 0 : index
    %21 = vector.load %arg4[%c0_11, %c0_12] : memref<1x32xf32, #tpu.memory_space<vmem>>, vector<1x32xf32>
    %cst_13 = arith.constant dense<0.000000e+00> : vector<50xf32>
    %22 = vector.multi_reduction <add>, %19, %cst_13 [1] : vector<50x32xf32> to vector<50xf32>
    %23 = vector.shape_cast %22 : vector<50xf32> to vector<50x1xf32>
    %cst_14 = arith.constant 3.200000e+01 : f32
    %24 = vector.broadcast %cst_14 : f32 to vector<50x1xf32>
    %25 = arith.divf %23, %24 : vector<50x1xf32>
    %26 = vector.broadcast %25 : vector<50x1xf32> to vector<50x32xf32>
    %27 = arith.subf %19, %26 : vector<50x32xf32>
    %28 = arith.mulf %27, %27 : vector<50x32xf32>
    %cst_15 = arith.constant dense<0.000000e+00> : vector<50xf32>
    %29 = vector.multi_reduction <add>, %28, %cst_15 [1] : vector<50x32xf32> to vector<50xf32>
    %30 = vector.shape_cast %29 : vector<50xf32> to vector<50x1xf32>
    %cst_16 = arith.constant 3.200000e+01 : f32
    %31 = vector.broadcast %cst_16 : f32 to vector<50x1xf32>
    %32 = arith.divf %30, %31 : vector<50x1xf32>
    %33 = vector.broadcast %25 : vector<50x1xf32> to vector<50x32xf32>
    %34 = arith.subf %19, %33 : vector<50x32xf32>
    %cst_17 = arith.constant 9.99999974E-6 : f32
    %35 = vector.broadcast %cst_17 : f32 to vector<50x1xf32>
    %36 = arith.addf %32, %35 : vector<50x1xf32>
    %37 = math.rsqrt %36 : vector<50x1xf32>
    %38 = vector.broadcast %37 : vector<50x1xf32> to vector<50x32xf32>
    %39 = arith.mulf %34, %38 : vector<50x32xf32>
    %40 = vector.broadcast %20 : vector<1x32xf32> to vector<50x32xf32>
    %41 = arith.mulf %39, %40 : vector<50x32xf32>
    %42 = vector.broadcast %21 : vector<1x32xf32> to vector<50x32xf32>
    %43 = arith.addf %41, %42 : vector<50x32xf32>
    %c0_18 = arith.constant 0 : index
    %c0_19 = arith.constant 0 : index
    %44 = vector.load %arg5[%c0_18, %c0_19] : memref<50x32xf32, #tpu.memory_space<vmem>>, vector<50x32xf32>
    tpu.vector_store %arg5[%c0_18, %c0_19], %43 {strides = array<i32>} : memref<50x32xf32, #tpu.memory_space<vmem>>, vector<50x32xf32>,
    return
  }
}

module attributes {stable_mosaic.version = 11 : i64} {
  func.func @_encoder_layer_kernel(%arg0: memref<2x25x32xf32, #tpu.memory_space<vmem>>, %arg1: memref<32x96xbf16, #tpu.memory_space<vmem>>, %arg2: memref<1x96xf32, #tpu.memory_space<vmem>>, %arg3: memref<32x32xbf16, #tpu.memory_space<vmem>>, %arg4: memref<1x32xf32, #tpu.memory_space<vmem>>, %arg5: memref<1x32xf32, #tpu.memory_space<vmem>>, %arg6: memref<1x32xf32, #tpu.memory_space<vmem>>, %arg7: memref<32x128xbf16, #tpu.memory_space<vmem>>, %arg8: memref<1x128xf32, #tpu.memory_space<vmem>>, %arg9: memref<128x32xbf16, #tpu.memory_space<vmem>>, %arg10: memref<1x32xf32, #tpu.memory_space<vmem>>, %arg11: memref<1x32xf32, #tpu.memory_space<vmem>>, %arg12: memref<1x32xf32, #tpu.memory_space<vmem>>, %arg13: memref<2x25x32xf32, #tpu.memory_space<vmem>>) attributes {dimension_semantics = [], scalar_prefetch = 0 : i64, scratch_operands = 0 : i64, tpu.core_type = #tpu.core_type<tc>} {
    %c0 = arith.constant 0 : index
    %c0_0 = arith.constant 0 : index
    %c0_1 = arith.constant 0 : index
    %0 = vector.load %arg0[%c0, %c0_0, %c0_1] : memref<2x25x32xf32, #tpu.memory_space<vmem>>, vector<2x25x32xf32>
    %1 = vector.shape_cast %0 : vector<2x25x32xf32> to vector<50x32xf32>
    %2 = arith.truncf %1 : vector<50x32xf32> to vector<50x32xbf16>
    %c0_2 = arith.constant 0 : index
    %c0_3 = arith.constant 0 : index
    %3 = vector.load %arg1[%c0_2, %c0_3] : memref<32x96xbf16, #tpu.memory_space<vmem>>, vector<32x96xbf16>
    %cst = arith.constant dense<0.000000e+00> : vector<50x96xf32>
    %4 = tpu.matmul %2, %3, %cst {dimension_numbers = #tpu.dot_dimension_numbers<[1], [0], [0], [1], [0, 0, 1, 1], [], []>} : vector<50x32xbf16>, vector<32x96xbf16>, vector<50x96xf32> -> vector<50x96xf32>
    %c0_4 = arith.constant 0 : index
    %c0_5 = arith.constant 0 : index
    %5 = vector.load %arg2[%c0_4, %c0_5] : memref<1x96xf32, #tpu.memory_space<vmem>>, vector<1x96xf32>
    %6 = vector.broadcast %5 : vector<1x96xf32> to vector<50x96xf32>
    %7 = arith.addf %4, %6 : vector<50x96xf32>
    %8 = vector.shape_cast %7 : vector<50x96xf32> to vector<2x25x96xf32>
    %c0_6 = arith.constant 0 : index
    %c0_7 = arith.constant 0 : index
    %9 = vector.load %arg3[%c0_6, %c0_7] : memref<32x32xbf16, #tpu.memory_space<vmem>>, vector<32x32xbf16>
    %cst_8 = arith.constant 0.000000e+00 : f32
    %10 = vector.broadcast %cst_8 : f32 to vector<50x32xf32>
    %11 = vector.extract_strided_slice %8 {offsets = [0, 0, 0], sizes = [2, 25, 8], strides = [1, 1, 1]} : vector<2x25x96xf32> to vector<2x25x8xf32>
    %12 = arith.truncf %11 : vector<2x25x8xf32> to vector<2x25x8xbf16>
    %13 = vector.extract_strided_slice %8 {offsets = [0, 0, 32], sizes = [2, 25, 8], strides = [1, 1, 1]} : vector<2x25x96xf32> to vector<2x25x8xf32>
    %14 = arith.truncf %13 : vector<2x25x8xf32> to vector<2x25x8xbf16>
    %15 = vector.extract_strided_slice %8 {offsets = [0, 0, 64], sizes = [2, 25, 8], strides = [1, 1, 1]} : vector<2x25x96xf32> to vector<2x25x8xf32>
    %16 = arith.truncf %15 : vector<2x25x8xf32> to vector<2x25x8xbf16>
    "tpu.trace_start"() <{level = 10 : i32, message = "bqd,bkd->bqk"}> : () -> ()
    %cst_9 = arith.constant dense<0.000000e+00> : vector<2x25x25xf32>
    %17 = tpu.matmul %12, %14, %cst_9 {dimension_numbers = #tpu.dot_dimension_numbers<[2], [2], [1], [1], [0, 0, 0, 1, 1, 1], [0], [0]>} : vector<2x25x8xbf16>, vector<2x25x8xbf16>, vector<2x25x25xf32> -> vector<2x25x25xf32>
    "tpu.trace_stop"() : () -> ()
    %cst_10 = arith.constant dense<0xFF800000> : vector<2x25xf32>
    %18 = vector.multi_reduction <maximumf>, %17, %cst_10 [2] : vector<2x25x25xf32> to vector<2x25xf32>
    %19 = vector.shape_cast %18 : vector<2x25xf32> to vector<2x25x1xf32>
    %20 = vector.broadcast %19 : vector<2x25x1xf32> to vector<2x25x25xf32>
    %21 = arith.subf %17, %20 : vector<2x25x25xf32>
    %22 = math.exp %21 : vector<2x25x25xf32>
    %cst_11 = arith.constant dense<0.000000e+00> : vector<2x25xf32>
    %23 = vector.multi_reduction <add>, %22, %cst_11 [2] : vector<2x25x25xf32> to vector<2x25xf32>
    %24 = vector.shape_cast %23 : vector<2x25xf32> to vector<2x25x1xf32>
    %25 = tpu.reciprocal %24 {approx = true} : vector<2x25x1xf32> -> vector<2x25x1xf32>
    %26 = vector.broadcast %25 : vector<2x25x1xf32> to vector<2x25x25xf32>
    %27 = arith.mulf %22, %26 : vector<2x25x25xf32>
    %28 = arith.truncf %27 : vector<2x25x25xf32> to vector<2x25x25xbf16>
    "tpu.trace_start"() <{level = 10 : i32, message = "bqk,bkd->bqd"}> : () -> ()
    %cst_12 = arith.constant dense<0.000000e+00> : vector<2x25x8xf32>
    %29 = tpu.matmul %28, %16, %cst_12 {dimension_numbers = #tpu.dot_dimension_numbers<[2], [1], [1], [2], [0, 0, 0, 1, 1, 2], [0], [0]>} : vector<2x25x25xbf16>, vector<2x25x8xbf16>, vector<2x25x8xf32> -> vector<2x25x8xf32>
    "tpu.trace_stop"() : () -> ()
    %30 = vector.shape_cast %29 : vector<2x25x8xf32> to vector<50x8xf32>
    %31 = arith.truncf %30 : vector<50x8xf32> to vector<50x8xbf16>
    %32 = vector.extract_strided_slice %9 {offsets = [0, 0], sizes = [8, 32], strides = [1, 1]} : vector<32x32xbf16> to vector<8x32xbf16>
    %cst_13 = arith.constant dense<0.000000e+00> : vector<50x32xf32>
    %33 = tpu.matmul %31, %32, %cst_13 {dimension_numbers = #tpu.dot_dimension_numbers<[1], [0], [0], [1], [0, 0, 1, 1], [], []>} : vector<50x8xbf16>, vector<8x32xbf16>, vector<50x32xf32> -> vector<50x32xf32>
    %34 = arith.addf %10, %33 : vector<50x32xf32>
    %35 = vector.extract_strided_slice %8 {offsets = [0, 0, 8], sizes = [2, 25, 8], strides = [1, 1, 1]} : vector<2x25x96xf32> to vector<2x25x8xf32>
    %36 = arith.truncf %35 : vector<2x25x8xf32> to vector<2x25x8xbf16>
    %37 = vector.extract_strided_slice %8 {offsets = [0, 0, 40], sizes = [2, 25, 8], strides = [1, 1, 1]} : vector<2x25x96xf32> to vector<2x25x8xf32>
    %38 = arith.truncf %37 : vector<2x25x8xf32> to vector<2x25x8xbf16>
    %39 = vector.extract_strided_slice %8 {offsets = [0, 0, 72], sizes = [2, 25, 8], strides = [1, 1, 1]} : vector<2x25x96xf32> to vector<2x25x8xf32>
    %40 = arith.truncf %39 : vector<2x25x8xf32> to vector<2x25x8xbf16>
    "tpu.trace_start"() <{level = 10 : i32, message = "bqd,bkd->bqk"}> : () -> ()
    %cst_14 = arith.constant dense<0.000000e+00> : vector<2x25x25xf32>
    %41 = tpu.matmul %36, %38, %cst_14 {dimension_numbers = #tpu.dot_dimension_numbers<[2], [2], [1], [1], [0, 0, 0, 1, 1, 1], [0], [0]>} : vector<2x25x8xbf16>, vector<2x25x8xbf16>, vector<2x25x25xf32> -> vector<2x25x25xf32>
    "tpu.trace_stop"() : () -> ()
    %cst_15 = arith.constant dense<0xFF800000> : vector<2x25xf32>
    %42 = vector.multi_reduction <maximumf>, %41, %cst_15 [2] : vector<2x25x25xf32> to vector<2x25xf32>
    %43 = vector.shape_cast %42 : vector<2x25xf32> to vector<2x25x1xf32>
    %44 = vector.broadcast %43 : vector<2x25x1xf32> to vector<2x25x25xf32>
    %45 = arith.subf %41, %44 : vector<2x25x25xf32>
    %46 = math.exp %45 : vector<2x25x25xf32>
    %cst_16 = arith.constant dense<0.000000e+00> : vector<2x25xf32>
    %47 = vector.multi_reduction <add>, %46, %cst_16 [2] : vector<2x25x25xf32> to vector<2x25xf32>
    %48 = vector.shape_cast %47 : vector<2x25xf32> to vector<2x25x1xf32>
    %49 = tpu.reciprocal %48 {approx = true} : vector<2x25x1xf32> -> vector<2x25x1xf32>
    %50 = vector.broadcast %49 : vector<2x25x1xf32> to vector<2x25x25xf32>
    %51 = arith.mulf %46, %50 : vector<2x25x25xf32>
    %52 = arith.truncf %51 : vector<2x25x25xf32> to vector<2x25x25xbf16>
    "tpu.trace_start"() <{level = 10 : i32, message = "bqk,bkd->bqd"}> : () -> ()
    %cst_17 = arith.constant dense<0.000000e+00> : vector<2x25x8xf32>
    %53 = tpu.matmul %52, %40, %cst_17 {dimension_numbers = #tpu.dot_dimension_numbers<[2], [1], [1], [2], [0, 0, 0, 1, 1, 2], [0], [0]>} : vector<2x25x25xbf16>, vector<2x25x8xbf16>, vector<2x25x8xf32> -> vector<2x25x8xf32>
    "tpu.trace_stop"() : () -> ()
    %54 = vector.shape_cast %53 : vector<2x25x8xf32> to vector<50x8xf32>
    %55 = arith.truncf %54 : vector<50x8xf32> to vector<50x8xbf16>
    %56 = vector.extract_strided_slice %9 {offsets = [8, 0], sizes = [8, 32], strides = [1, 1]} : vector<32x32xbf16> to vector<8x32xbf16>
    %cst_18 = arith.constant dense<0.000000e+00> : vector<50x32xf32>
    %57 = tpu.matmul %55, %56, %cst_18 {dimension_numbers = #tpu.dot_dimension_numbers<[1], [0], [0], [1], [0, 0, 1, 1], [], []>} : vector<50x8xbf16>, vector<8x32xbf16>, vector<50x32xf32> -> vector<50x32xf32>
    %58 = arith.addf %34, %57 : vector<50x32xf32>
    %59 = vector.extract_strided_slice %8 {offsets = [0, 0, 16], sizes = [2, 25, 8], strides = [1, 1, 1]} : vector<2x25x96xf32> to vector<2x25x8xf32>
    %60 = arith.truncf %59 : vector<2x25x8xf32> to vector<2x25x8xbf16>
    %61 = vector.extract_strided_slice %8 {offsets = [0, 0, 48], sizes = [2, 25, 8], strides = [1, 1, 1]} : vector<2x25x96xf32> to vector<2x25x8xf32>
    %62 = arith.truncf %61 : vector<2x25x8xf32> to vector<2x25x8xbf16>
    %63 = vector.extract_strided_slice %8 {offsets = [0, 0, 80], sizes = [2, 25, 8], strides = [1, 1, 1]} : vector<2x25x96xf32> to vector<2x25x8xf32>
    %64 = arith.truncf %63 : vector<2x25x8xf32> to vector<2x25x8xbf16>
    "tpu.trace_start"() <{level = 10 : i32, message = "bqd,bkd->bqk"}> : () -> ()
    %cst_19 = arith.constant dense<0.000000e+00> : vector<2x25x25xf32>
    %65 = tpu.matmul %60, %62, %cst_19 {dimension_numbers = #tpu.dot_dimension_numbers<[2], [2], [1], [1], [0, 0, 0, 1, 1, 1], [0], [0]>} : vector<2x25x8xbf16>, vector<2x25x8xbf16>, vector<2x25x25xf32> -> vector<2x25x25xf32>
    "tpu.trace_stop"() : () -> ()
    %cst_20 = arith.constant dense<0xFF800000> : vector<2x25xf32>
    %66 = vector.multi_reduction <maximumf>, %65, %cst_20 [2] : vector<2x25x25xf32> to vector<2x25xf32>
    %67 = vector.shape_cast %66 : vector<2x25xf32> to vector<2x25x1xf32>
    %68 = vector.broadcast %67 : vector<2x25x1xf32> to vector<2x25x25xf32>
    %69 = arith.subf %65, %68 : vector<2x25x25xf32>
    %70 = math.exp %69 : vector<2x25x25xf32>
    %cst_21 = arith.constant dense<0.000000e+00> : vector<2x25xf32>
    %71 = vector.multi_reduction <add>, %70, %cst_21 [2] : vector<2x25x25xf32> to vector<2x25xf32>
    %72 = vector.shape_cast %71 : vector<2x25xf32> to vector<2x25x1xf32>
    %73 = tpu.reciprocal %72 {approx = true} : vector<2x25x1xf32> -> vector<2x25x1xf32>
    %74 = vector.broadcast %73 : vector<2x25x1xf32> to vector<2x25x25xf32>
    %75 = arith.mulf %70, %74 : vector<2x25x25xf32>
    %76 = arith.truncf %75 : vector<2x25x25xf32> to vector<2x25x25xbf16>
    "tpu.trace_start"() <{level = 10 : i32, message = "bqk,bkd->bqd"}> : () -> ()
    %cst_22 = arith.constant dense<0.000000e+00> : vector<2x25x8xf32>
    %77 = tpu.matmul %76, %64, %cst_22 {dimension_numbers = #tpu.dot_dimension_numbers<[2], [1], [1], [2], [0, 0, 0, 1, 1, 2], [0], [0]>} : vector<2x25x25xbf16>, vector<2x25x8xbf16>, vector<2x25x8xf32> -> vector<2x25x8xf32>
    "tpu.trace_stop"() : () -> ()
    %78 = vector.shape_cast %77 : vector<2x25x8xf32> to vector<50x8xf32>
    %79 = arith.truncf %78 : vector<50x8xf32> to vector<50x8xbf16>
    %80 = vector.extract_strided_slice %9 {offsets = [16, 0], sizes = [8, 32], strides = [1, 1]} : vector<32x32xbf16> to vector<8x32xbf16>
    %cst_23 = arith.constant dense<0.000000e+00> : vector<50x32xf32>
    %81 = tpu.matmul %79, %80, %cst_23 {dimension_numbers = #tpu.dot_dimension_numbers<[1], [0], [0], [1], [0, 0, 1, 1], [], []>} : vector<50x8xbf16>, vector<8x32xbf16>, vector<50x32xf32> -> vector<50x32xf32>
    %82 = arith.addf %58, %81 : vector<50x32xf32>
    %83 = vector.extract_strided_slice %8 {offsets = [0, 0, 24], sizes = [2, 25, 8], strides = [1, 1, 1]} : vector<2x25x96xf32> to vector<2x25x8xf32>
    %84 = arith.truncf %83 : vector<2x25x8xf32> to vector<2x25x8xbf16>
    %85 = vector.extract_strided_slice %8 {offsets = [0, 0, 56], sizes = [2, 25, 8], strides = [1, 1, 1]} : vector<2x25x96xf32> to vector<2x25x8xf32>
    %86 = arith.truncf %85 : vector<2x25x8xf32> to vector<2x25x8xbf16>
    %87 = vector.extract_strided_slice %8 {offsets = [0, 0, 88], sizes = [2, 25, 8], strides = [1, 1, 1]} : vector<2x25x96xf32> to vector<2x25x8xf32>
    %88 = arith.truncf %87 : vector<2x25x8xf32> to vector<2x25x8xbf16>
    "tpu.trace_start"() <{level = 10 : i32, message = "bqd,bkd->bqk"}> : () -> ()
    %cst_24 = arith.constant dense<0.000000e+00> : vector<2x25x25xf32>
    %89 = tpu.matmul %84, %86, %cst_24 {dimension_numbers = #tpu.dot_dimension_numbers<[2], [2], [1], [1], [0, 0, 0, 1, 1, 1], [0], [0]>} : vector<2x25x8xbf16>, vector<2x25x8xbf16>, vector<2x25x25xf32> -> vector<2x25x25xf32>
    "tpu.trace_stop"() : () -> ()
    %cst_25 = arith.constant dense<0xFF800000> : vector<2x25xf32>
    %90 = vector.multi_reduction <maximumf>, %89, %cst_25 [2] : vector<2x25x25xf32> to vector<2x25xf32>
    %91 = vector.shape_cast %90 : vector<2x25xf32> to vector<2x25x1xf32>
    %92 = vector.broadcast %91 : vector<2x25x1xf32> to vector<2x25x25xf32>
    %93 = arith.subf %89, %92 : vector<2x25x25xf32>
    %94 = math.exp %93 : vector<2x25x25xf32>
    %cst_26 = arith.constant dense<0.000000e+00> : vector<2x25xf32>
    %95 = vector.multi_reduction <add>, %94, %cst_26 [2] : vector<2x25x25xf32> to vector<2x25xf32>
    %96 = vector.shape_cast %95 : vector<2x25xf32> to vector<2x25x1xf32>
    %97 = tpu.reciprocal %96 {approx = true} : vector<2x25x1xf32> -> vector<2x25x1xf32>
    %98 = vector.broadcast %97 : vector<2x25x1xf32> to vector<2x25x25xf32>
    %99 = arith.mulf %94, %98 : vector<2x25x25xf32>
    %100 = arith.truncf %99 : vector<2x25x25xf32> to vector<2x25x25xbf16>
    "tpu.trace_start"() <{level = 10 : i32, message = "bqk,bkd->bqd"}> : () -> ()
    %cst_27 = arith.constant dense<0.000000e+00> : vector<2x25x8xf32>
    %101 = tpu.matmul %100, %88, %cst_27 {dimension_numbers = #tpu.dot_dimension_numbers<[2], [1], [1], [2], [0, 0, 0, 1, 1, 2], [0], [0]>} : vector<2x25x25xbf16>, vector<2x25x8xbf16>, vector<2x25x8xf32> -> vector<2x25x8xf32>
    "tpu.trace_stop"() : () -> ()
    %102 = vector.shape_cast %101 : vector<2x25x8xf32> to vector<50x8xf32>
    %103 = arith.truncf %102 : vector<50x8xf32> to vector<50x8xbf16>
    %104 = vector.extract_strided_slice %9 {offsets = [24, 0], sizes = [8, 32], strides = [1, 1]} : vector<32x32xbf16> to vector<8x32xbf16>
    %cst_28 = arith.constant dense<0.000000e+00> : vector<50x32xf32>
    %105 = tpu.matmul %103, %104, %cst_28 {dimension_numbers = #tpu.dot_dimension_numbers<[1], [0], [0], [1], [0, 0, 1, 1], [], []>} : vector<50x8xbf16>, vector<8x32xbf16>, vector<50x32xf32> -> vector<50x32xf32>
    %106 = arith.addf %82, %105 : vector<50x32xf32>
    %c0_29 = arith.constant 0 : index
    %c0_30 = arith.constant 0 : index
    %107 = vector.load %arg4[%c0_29, %c0_30] : memref<1x32xf32, #tpu.memory_space<vmem>>, vector<1x32xf32>
    %108 = vector.broadcast %107 : vector<1x32xf32> to vector<50x32xf32>
    %109 = arith.addf %106, %108 : vector<50x32xf32>
    %110 = arith.addf %1, %109 : vector<50x32xf32>
    %c0_31 = arith.constant 0 : index
    %c0_32 = arith.constant 0 : index
    %111 = vector.load %arg5[%c0_31, %c0_32] : memref<1x32xf32, #tpu.memory_space<vmem>>, vector<1x32xf32>
    %c0_33 = arith.constant 0 : index
    %c0_34 = arith.constant 0 : index
    %112 = vector.load %arg6[%c0_33, %c0_34] : memref<1x32xf32, #tpu.memory_space<vmem>>, vector<1x32xf32>
    %cst_35 = arith.constant dense<0.000000e+00> : vector<50xf32>
    %113 = vector.multi_reduction <add>, %110, %cst_35 [1] : vector<50x32xf32> to vector<50xf32>
    %114 = vector.shape_cast %113 : vector<50xf32> to vector<50x1xf32>
    %cst_36 = arith.constant 3.200000e+01 : f32
    %115 = vector.broadcast %cst_36 : f32 to vector<50x1xf32>
    %116 = arith.divf %114, %115 : vector<50x1xf32>
    %117 = vector.broadcast %116 : vector<50x1xf32> to vector<50x32xf32>
    %118 = arith.subf %110, %117 : vector<50x32xf32>
    %119 = arith.mulf %118, %118 : vector<50x32xf32>
    %cst_37 = arith.constant dense<0.000000e+00> : vector<50xf32>
    %120 = vector.multi_reduction <add>, %119, %cst_37 [1] : vector<50x32xf32> to vector<50xf32>
    %121 = vector.shape_cast %120 : vector<50xf32> to vector<50x1xf32>
    %cst_38 = arith.constant 3.200000e+01 : f32
    %122 = vector.broadcast %cst_38 : f32 to vector<50x1xf32>
    %123 = arith.divf %121, %122 : vector<50x1xf32>
    %124 = vector.broadcast %116 : vector<50x1xf32> to vector<50x32xf32>
    %125 = arith.subf %110, %124 : vector<50x32xf32>
    %cst_39 = arith.constant 9.99999974E-6 : f32
    %126 = vector.broadcast %cst_39 : f32 to vector<50x1xf32>
    %127 = arith.addf %123, %126 : vector<50x1xf32>
    %128 = math.rsqrt %127 : vector<50x1xf32>
    %129 = vector.broadcast %128 : vector<50x1xf32> to vector<50x32xf32>
    %130 = arith.mulf %125, %129 : vector<50x32xf32>
    %131 = vector.broadcast %111 : vector<1x32xf32> to vector<50x32xf32>
    %132 = arith.mulf %130, %131 : vector<50x32xf32>
    %133 = vector.broadcast %112 : vector<1x32xf32> to vector<50x32xf32>
    %134 = arith.addf %132, %133 : vector<50x32xf32>
    %135 = arith.truncf %134 : vector<50x32xf32> to vector<50x32xbf16>
    %c0_40 = arith.constant 0 : index
    %c0_41 = arith.constant 0 : index
    %136 = vector.load %arg7[%c0_40, %c0_41] : memref<32x128xbf16, #tpu.memory_space<vmem>>, vector<32x128xbf16>
    %cst_42 = arith.constant dense<0.000000e+00> : vector<50x128xf32>
    %137 = tpu.matmul %135, %136, %cst_42 {dimension_numbers = #tpu.dot_dimension_numbers<[1], [0], [0], [1], [0, 0, 1, 1], [], []>} : vector<50x32xbf16>, vector<32x128xbf16>, vector<50x128xf32> -> vector<50x128xf32>
    %c0_43 = arith.constant 0 : index
    %c0_44 = arith.constant 0 : index
    %138 = vector.load %arg8[%c0_43, %c0_44] : memref<1x128xf32, #tpu.memory_space<vmem>>, vector<1x128xf32>
    %139 = vector.broadcast %138 : vector<1x128xf32> to vector<50x128xf32>
    %140 = arith.addf %137, %139 : vector<50x128xf32>
    %141 = arith.mulf %140, %140 : vector<50x128xf32>
    %142 = arith.mulf %140, %141 : vector<50x128xf32>
    %cst_45 = arith.constant 4.471500e-02 : f32
    %143 = vector.broadcast %cst_45 : f32 to vector<50x128xf32>
    %144 = arith.mulf %143, %142 : vector<50x128xf32>
    %145 = arith.addf %140, %144 : vector<50x128xf32>
    %cst_46 = arith.constant 0.797884583 : f32
    %146 = vector.broadcast %cst_46 : f32 to vector<50x128xf32>
    %147 = arith.mulf %146, %145 : vector<50x128xf32>
    %148 = math.tanh %147 : vector<50x128xf32>
    %cst_47 = arith.constant 1.000000e+00 : f32
    %149 = vector.broadcast %cst_47 : f32 to vector<50x128xf32>
    %150 = arith.addf %149, %148 : vector<50x128xf32>
    %cst_48 = arith.constant 5.000000e-01 : f32
    %151 = vector.broadcast %cst_48 : f32 to vector<50x128xf32>
    %152 = arith.mulf %151, %150 : vector<50x128xf32>
    %153 = arith.mulf %140, %152 : vector<50x128xf32>
    %154 = arith.truncf %153 : vector<50x128xf32> to vector<50x128xbf16>
    %c0_49 = arith.constant 0 : index
    %c0_50 = arith.constant 0 : index
    %155 = vector.load %arg9[%c0_49, %c0_50] : memref<128x32xbf16, #tpu.memory_space<vmem>>, vector<128x32xbf16>
    %cst_51 = arith.constant dense<0.000000e+00> : vector<50x32xf32>
    %156 = tpu.matmul %154, %155, %cst_51 {dimension_numbers = #tpu.dot_dimension_numbers<[1], [0], [0], [1], [0, 0, 1, 1], [], []>} : vector<50x128xbf16>, vector<128x32xbf16>, vector<50x32xf32> -> vector<50x32xf32>
    %c0_52 = arith.constant 0 : index
    %c0_53 = arith.constant 0 : index
    %157 = vector.load %arg10[%c0_52, %c0_53] : memref<1x32xf32, #tpu.memory_space<vmem>>, vector<1x32xf32>
    %158 = vector.broadcast %157 : vector<1x32xf32> to vector<50x32xf32>
    %159 = arith.addf %156, %158 : vector<50x32xf32>
    %160 = arith.addf %134, %159 : vector<50x32xf32>
    %c0_54 = arith.constant 0 : index
    %c0_55 = arith.constant 0 : index
    %161 = vector.load %arg11[%c0_54, %c0_55] : memref<1x32xf32, #tpu.memory_space<vmem>>, vector<1x32xf32>
    %c0_56 = arith.constant 0 : index
    %c0_57 = arith.constant 0 : index
    %162 = vector.load %arg12[%c0_56, %c0_57] : memref<1x32xf32, #tpu.memory_space<vmem>>, vector<1x32xf32>
    %cst_58 = arith.constant dense<0.000000e+00> : vector<50xf32>
    %163 = vector.multi_reduction <add>, %160, %cst_58 [1] : vector<50x32xf32> to vector<50xf32>
    %164 = vector.shape_cast %163 : vector<50xf32> to vector<50x1xf32>
    %cst_59 = arith.constant 3.200000e+01 : f32
    %165 = vector.broadcast %cst_59 : f32 to vector<50x1xf32>
    %166 = arith.divf %164, %165 : vector<50x1xf32>
    %167 = vector.broadcast %166 : vector<50x1xf32> to vector<50x32xf32>
    %168 = arith.subf %160, %167 : vector<50x32xf32>
    %169 = arith.mulf %168, %168 : vector<50x32xf32>
    %cst_60 = arith.constant dense<0.000000e+00> : vector<50xf32>
    %170 = vector.multi_reduction <add>, %169, %cst_60 [1] : vector<50x32xf32> to vector<50xf32>
    %171 = vector.shape_cast %170 : vector<50xf32> to vector<50x1xf32>
    %cst_61 = arith.constant 3.200000e+01 : f32
    %172 = vector.broadcast %cst_61 : f32 to vector<50x1xf32>
    %173 = arith.divf %171, %172 : vector<50x1xf32>
    %174 = vector.broadcast %166 : vector<50x1xf32> to vector<50x32xf32>
    %175 = arith.subf %160, %174 : vector<50x32xf32>
    %cst_62 = arith.constant 9.99999974E-6 : f32
    %176 = vector.broadcast %cst_62 : f32 to vector<50x1xf32>
    %177 = arith.addf %173, %176 : vector<50x1xf32>
    %178 = math.rsqrt %177 : vector<50x1xf32>
    %179 = vector.broadcast %178 : vector<50x1xf32> to vector<50x32xf32>
    %180 = arith.mulf %175, %179 : vector<50x32xf32>
    %181 = vector.broadcast %161 : vector<1x32xf32> to vector<50x32xf32>
    %182 = arith.mulf %180, %181 : vector<50x32xf32>
    %183 = vector.broadcast %162 : vector<1x32xf32> to vector<50x32xf32>
    %184 = arith.addf %182, %183 : vector<50x32xf32>
    %185 = vector.shape_cast %184 : vector<50x32xf32> to vector<2x25x32xf32>
    %c0_63 = arith.constant 0 : index
    %c0_64 = arith.constant 0 : index
    %c0_65 = arith.constant 0 : index
    %186 = vector.load %arg13[%c0_63, %c0_64, %c0_65] : memref<2x25x32xf32, #tpu.memory_space<vmem>>, vector<2x25x32xf32>
    tpu.vector_store %arg13[%c0_63, %c0_64, %c0_65], %185 {strides = array<i32>} : memref<2x25x32xf32, #tpu.memory_space<vmem>>, vector<2x25x32xf32>,
    return
  }
}

module attributes {stable_mosaic.version = 11 : i64} {
  func.func @_head_kernel(%arg0: memref<2x25x32xf32, #tpu.memory_space<vmem>>, %arg1: memref<32x10xbf16, #tpu.memory_space<vmem>>, %arg2: memref<1x10xf32, #tpu.memory_space<vmem>>, %arg3: memref<2x10xf32, #tpu.memory_space<vmem>>) attributes {dimension_semantics = [], scalar_prefetch = 0 : i64, scratch_operands = 0 : i64, tpu.core_type = #tpu.core_type<tc>} {
    %c0 = arith.constant 0 : index
    %c0_0 = arith.constant 0 : index
    %c0_1 = arith.constant 0 : index
    %0 = vector.load %arg0[%c0, %c0_0, %c0_1] : memref<2x25x32xf32, #tpu.memory_space<vmem>>, vector<2x25x32xf32>
    %cst = arith.constant dense<0.000000e+00> : vector<2x32xf32>
    %1 = vector.multi_reduction <add>, %0, %cst [1] : vector<2x25x32xf32> to vector<2x32xf32>
    %cst_2 = arith.constant 2.500000e+01 : f32
    %2 = vector.broadcast %cst_2 : f32 to vector<2x32xf32>
    %3 = arith.divf %1, %2 : vector<2x32xf32>
    %4 = arith.truncf %3 : vector<2x32xf32> to vector<2x32xbf16>
    %c0_3 = arith.constant 0 : index
    %c0_4 = arith.constant 0 : index
    %5 = vector.load %arg1[%c0_3, %c0_4] : memref<32x10xbf16, #tpu.memory_space<vmem>>, vector<32x10xbf16>
    %cst_5 = arith.constant dense<0.000000e+00> : vector<2x10xf32>
    %6 = tpu.matmul %4, %5, %cst_5 {dimension_numbers = #tpu.dot_dimension_numbers<[1], [0], [0], [1], [0, 0, 1, 1], [], []>} : vector<2x32xbf16>, vector<32x10xbf16>, vector<2x10xf32> -> vector<2x10xf32>
    %c0_6 = arith.constant 0 : index
    %c0_7 = arith.constant 0 : index
    %7 = vector.load %arg2[%c0_6, %c0_7] : memref<1x10xf32, #tpu.memory_space<vmem>>, vector<1x10xf32>
    %8 = vector.broadcast %7 : vector<1x10xf32> to vector<2x10xf32>
    %9 = arith.addf %6, %8 : vector<2x10xf32>
    %cst_8 = arith.constant dense<0xFF800000> : vector<2xf32>
    %10 = vector.multi_reduction <maximumf>, %9, %cst_8 [1] : vector<2x10xf32> to vector<2xf32>
    %11 = vector.shape_cast %10 : vector<2xf32> to vector<2x1xf32>
    %12 = vector.broadcast %11 : vector<2x1xf32> to vector<2x10xf32>
    %13 = arith.subf %9, %12 : vector<2x10xf32>
    %14 = math.exp %13 : vector<2x10xf32>
    %cst_9 = arith.constant dense<0.000000e+00> : vector<2xf32>
    %15 = vector.multi_reduction <add>, %14, %cst_9 [1] : vector<2x10xf32> to vector<2xf32>
    %16 = vector.shape_cast %15 : vector<2xf32> to vector<2x1xf32>
    %17 = vector.broadcast %16 : vector<2x1xf32> to vector<2x10xf32>
    %18 = arith.divf %14, %17 : vector<2x10xf32>
    %c0_10 = arith.constant 0 : index
    %c0_11 = arith.constant 0 : index
    %19 = vector.load %arg3[%c0_10, %c0_11] : memref<2x10xf32, #tpu.memory_space<vmem>>, vector<2x10xf32>
    tpu.vector_store %arg3[%c0_10, %c0_11], %18 {strides = array<i32>} : memref<2x10xf32, #tpu.memory_space<vmem>>, vector<2x10xf32>,
    return
  }
}

</mosaic_0001>

<bundles_post_ra>
// kernel: wav2vec2_forward.6
= control target key start
LH: loop header
LB: loop body
LE: loop exit
PB: predicated region body
PF: predicated region fallthrough
CT: control target
= control target key end

     0   :  { %vm108_vm0 = vcmask 1044480   ;;  %v655_v0 = vmov 0.0   ;;  %vm656_vm1 = vmmov 0   ;;  %vm68_vm2 = vcmask 80896   ;;  %s1115_s1 = inlined_call_operand.vmem [shape: bf16[10,32], index: 1, kind: input, shape index: {}]   ;;  %s1116_s0 = inlined_call_operand.vmem [shape: f32[202,10], index: 0, kind: input, shape index: {}]   ;;  %s1117_s2 = inlined_call_operand.vmem [shape: f32[1,32], index: 2, kind: input, shape index: {}]   ;;  %s1118_s3 = inlined_call_operand.vmem [shape: f32[202,32], index: 3, kind: output, shape index: {}]  }
   0x1   :  { %544 = vmatprep.subr.bf16.mxu0 %v655_v0  ;;  %598 = vmatprep.subr.bf16.mxu1 %v655_v0  ;;  %v602_v1 = vld [vmem:[%s1115_s1] sm:$0x1f]   ;;  %v16_v3 = vld [vmem:[%s1116_s0 + $0x8] sm:$0xff]  ;;  %v29_v4 = vld [vmem:[%s1116_s0 + $0x70] sm:$0xff]  ;;  %vm483_vm3 = vcmask 261120   ;;  %vm509_vm4 = vcmask 254976  }
   0x2   :  { %546 = vmatprep.mubr.msk.bf16.mxu0 %vm656_vm1, %v655_v0  ;;  %574 = vmatprep.mubr.msk.bf16.mxu1 %vm656_vm1, %v655_v0  ;;  %v15_v2 = vld [vmem:[%s1116_s0] sm:$0xff]  ;;  %v110_v5 = vsel %vm108_vm0, %v602_v1, 0  ;;  %v30_v7 = vld [vmem:[%s1116_s0 + $0x78] sm:$0xff]  ;;  %v17_v9 = vld [vmem:[%s1116_s0 + $0x10] sm:$0xff] }
   0x3   :  { %v41_v6 = vpack.c.bf16 %v16_v3, %v15_v2  ;;  %545 = vmatpush3.bf16.msra.mxu0 %v110_v5  ;;  %599 = vmatpush3.bf16.msra.mxu1 %v110_v5  ;;  %v48_v8 = vpack.c.bf16 %v30_v7, %v29_v4  ;;  %v18_v10 = vld [vmem:[%s1116_s0 + $0x18] sm:$0xff]  ;;  %v31_v11 = vld [vmem:[%s1116_s0 + $0x80] sm:$0xff]  ;;  %v32_v12 = vld [vmem:[%s1116_s0 + $0x88] sm:$0xff] }
   0x4   :  { %v42_v13 = vpack.c.bf16 %v18_v10, %v17_v9  ;;  %v49_v14 = vpack.c.bf16 %v32_v12, %v31_v11  ;;  %v19_v15 = vld [vmem:[%s1116_s0 + $0x20] sm:$0xff]  ;;  %v20_v16 = vld [vmem:[%s1116_s0 + $0x28] sm:$0xff]  ;;  %v33_v17 = vld [vmem:[%s1116_s0 + $0x90] sm:$0xff] }
   0x5   :  { %v34_v18 = vld [vmem:[%s1116_s0 + $0x98] sm:$0xff]  ;;  %v43_v19 = vpack.c.bf16 %v20_v16, %v19_v15  ;;  %v21_v21 = vld [vmem:[%s1116_s0 + $0x30] sm:$0xff]  ;;  %v35_v23 = vld [vmem:[%s1116_s0 + $0xa0] sm:$0xff] }
   0x6   :  { %547 = vmatmul.mubr.msk.bf16.vlgmr.msra.gmra.mxu0 %vm68_vm2, %v41_v6  ;;  %575 = vmatmul.mubr.msk.bf16.vlgmr.msra.gmra.mxu1 %vm68_vm2, %v48_v8  ;;  %v50_v20 = vpack.c.bf16 %v34_v18, %v33_v17  ;;  %v22_v22 = vld [vmem:[%s1116_s0 + $0x38] sm:$0xff]  ;;  %v36_v24 = vld [vmem:[%s1116_s0 + $0xa8] sm:$0xff]  ;;  %v23_v27 = vld [vmem:[%s1116_s0 + $0x40] sm:$0xff] }
   0x7   :  { %550 = vmatprep.mubr.msk.bf16.mxu0 %vm656_vm1, %v655_v0  ;;  %578 = vmatprep.mubr.msk.bf16.mxu1 %vm656_vm1, %v655_v0  ;;  %v44_v25 = vpack.c.bf16 %v22_v22, %v21_v21  ;;  %v51_v26 = vpack.c.bf16 %v36_v24, %v35_v23  ;;  %v24_v28 = vld [vmem:[%s1116_s0 + $0x48] sm:$0xff]  ;;  %v37_v29 = vld [vmem:[%s1116_s0 + $0xb0] sm:$0xff]  ;;  %v38_v30 = vld [vmem:[%s1116_s0 + $0xb8] sm:$0xff] }
   0x8   :  { %v45_v31 = vpack.c.bf16 %v24_v28, %v23_v27  ;;  %v52_v32 = vpack.c.bf16 %v38_v30, %v37_v29  ;;  %v25_v33 = vld [vmem:[%s1116_s0 + $0x50] sm:$0xff]  ;;  %v26_v34 = vld [vmem:[%s1116_s0 + $0x58] sm:$0xff]  ;;  %v39_v35 = vld [vmem:[%s1116_s0 + $0xc0] sm:$0xff] }
   0x9   :  { %v40_v36 = vld [vmem:[%s1116_s0 + $0xc8] sm:$0x3]  ;;  %v46_v37 = vpack.c.bf16 %v26_v34, %v25_v33  ;;  %v27_v39 = vld [vmem:[%s1116_s0 + $0x60] sm:$0xff] }
   0xa   :  { %v53_v38 = vpack.c.bf16 %v40_v36, %v39_v35  ;;  %v28_v40 = vld [vmem:[%s1116_s0 + $0x68] sm:$0xff]  ;;  %v802_v42 = vld [vmem:[%s1117_s2] ss:$0 sm:$0xff] }
   0xb   :  { %v47_v41 = vpack.c.bf16 %v28_v40, %v27_v39 }
   0xe   :  { %551 = vmatmul.mubr.msk.bf16.gmra.mxu0 %vm68_vm2, %v42_v13  ;;  %579 = vmatmul.mubr.msk.bf16.gmra.mxu1 %vm68_vm2, %v49_v14 }
   0xf   :  { %554 = vmatprep.mubr.msk.bf16.mxu0 %vm656_vm1, %v655_v0  ;;  %582 = vmatprep.mubr.msk.bf16.mxu1 %vm656_vm1, %v655_v0 }
  0x16   :  { %555 = vmatmul.mubr.msk.bf16.gmra.mxu0 %vm68_vm2, %v43_v19  ;;  %583 = vmatmul.mubr.msk.bf16.gmra.mxu1 %vm68_vm2, %v50_v20 }
  0x17   :  { %558 = vmatprep.mubr.msk.bf16.mxu0 %vm656_vm1, %v655_v0  ;;  %586 = vmatprep.mubr.msk.bf16.mxu1 %vm656_vm1, %v655_v0 }
  0x1e   :  { %559 = vmatmul.mubr.msk.bf16.gmra.mxu0 %vm68_vm2, %v44_v25  ;;  %587 = vmatmul.mubr.msk.bf16.gmra.mxu1 %vm68_vm2, %v51_v26 }
  0x1f   :  { %562 = vmatprep.mubr.msk.bf16.mxu0 %vm656_vm1, %v655_v0  ;;  %590 = vmatprep.mubr.msk.bf16.mxu1 %vm656_vm1, %v655_v0 }
  0x26   :  { %563 = vmatmul.mubr.msk.bf16.gmra.mxu0 %vm68_vm2, %v45_v31  ;;  %591 = vmatmul.mubr.msk.bf16.gmra.mxu1 %vm68_vm2, %v52_v32 }
  0x27   :  { %566 = vmatprep.mubr.msk.bf16.mxu0 %vm656_vm1, %v655_v0  ;;  %594 = vmatprep.mubr.msk.bf16.mxu1 %vm656_vm1, %v655_v0 }
  0x2e   :  { %567 = vmatmul.mubr.msk.bf16.gmra.mxu0 %vm68_vm2, %v46_v37  ;;  %595 = vmatmul.mubr.msk.bf16.gmra.mxu1 %vm68_vm2, %v53_v38 }
  0x2f   :  { %570 = vmatprep.mubr.msk.bf16.mxu0 %vm656_vm1, %v655_v0 }
  0x36   :  { %571 = vmatmul.mubr.msk.bf16.gmra.mxu0 %vm68_vm2, %v47_v41 }
  0xc6   :  { %v146_v43 = vpop.f32.mrf.mxu0  ;;  %v202_v44 = vpop.f32.mrf.mxu1 }
  0xc7   :  { %v805_v45 = vadd.f32 %v802_v42, %v146_v43  ;;  %v808_v46 = vadd.f32 %v802_v42, %v202_v44 }
  0xc8   :  { %v548_v47 = vpop.f32.mrf.mxu0  ;;  %v576_v48 = vpop.f32.mrf.mxu1 }
  0xc9   :  { %v249_v49 = vmul.f32 %v805_v45, %v805_v45  ;;  %v263_v50 = vmul.f32 %v808_v46, %v808_v46 }
  0xca   :  { %v149_v51 = vpop.f32.mrf.mxu0  ;;  %v205_v52 = vpop.f32.mrf.mxu1 }
  0xcb   :  { %v275_v53 = vmul.f32 %v249_v49, %v805_v45  ;;  %v289_v54 = vmul.f32 %v263_v50, %v808_v46  ;;  %v817_v55 = vadd.f32 %v802_v42, %v149_v51  ;;  %v820_v56 = vadd.f32 %v802_v42, %v205_v52 }
  0xcc   :  { %v549_v57 = vpop.f32.mrf.mxu0  ;;  %v577_v58 = vpop.f32.mrf.mxu1 }
  0xcd   :  { %v301_v59 = vmul.f32 0.044715, %v275_v53  ;;  %v315_v60 = vmul.f32 0.044715, %v289_v54  ;;  %v250_v61 = vmul.f32 %v817_v55, %v817_v55  ;;  %v264_v62 = vmul.f32 %v820_v56, %v820_v56 }
  0xce   :  { %v154_v63 = vpop.f32.mrf.mxu0  ;;  %v210_v0 = vpop.f32.mrf.mxu1 }
  0xcf   :  { %v327_v1 = vadd.f32 %v301_v59, %v805_v45  ;;  %v341_v2 = vadd.f32 %v315_v60, %v808_v46  ;;  %v276_v3 = vmul.f32 %v250_v61, %v817_v55  ;;  %v290_v4 = vmul.f32 %v264_v62, %v820_v56 }
  0xd0   :  { %v831_v5 = vadd.f32 %v802_v42, %v154_v63  ;;  %v834_v6 = vadd.f32 %v802_v42, %v210_v0  ;;  %v552_v7 = vpop.f32.mrf.mxu0  ;;  %v580_v8 = vpop.f32.mrf.mxu1 }
  0xd1   :  { %v353_v9 = vmul.f32 0.7978846, %v327_v1  ;;  %v367_v10 = vmul.f32 0.7978846, %v341_v2  ;;  %v302_v11 = vmul.f32 0.044715, %v276_v3 }
  0xd2   :  { %v316_v12 = vmul.f32 0.044715, %v290_v4  ;;  %v251_v13 = vmul.f32 %v831_v5, %v831_v5  ;;  %v265_v14 = vmul.f32 %v834_v6, %v834_v6  ;;  %v157_v15 = vpop.f32.mrf.mxu0  ;;  %v213_v16 = vpop.f32.mrf.mxu1 }
  0xd3   :  { %603 = vtanh.f32 %v353_v9  ;;  %v328_v17 = vadd.f32 %v302_v11, %v817_v55  ;;  %v842_v18 = vadd.f32 %v802_v42, %v157_v15  ;;  %v845_v19 = vadd.f32 %v802_v42, %v213_v16 }
  0xd4   :  { %605 = vtanh.f32 %v367_v10  ;;  %v342_v20 = vadd.f32 %v316_v12, %v820_v56  ;;  %v277_v21 = vmul.f32 %v251_v13, %v831_v5  ;;  %v291_v22 = vmul.f32 %v265_v14, %v834_v6  ;;  %v553_v23 = vpop.f32.mrf.mxu0  ;;  %v581_v24 = vpop.f32.mrf.mxu1 }
  0xd5   :  { %v354_v25 = vmul.f32 0.7978846, %v328_v17  ;;  %v252_v26 = vmul.f32 %v842_v18, %v842_v18  ;;  %v266_v27 = vmul.f32 %v845_v19, %v845_v19 }
  0xd6   :  { %v368_v28 = vmul.f32 0.7978846, %v342_v20  ;;  %v303_v29 = vmul.f32 0.044715, %v277_v21  ;;  %v317_v30 = vmul.f32 0.044715, %v291_v22  ;;  %v162_v31 = vpop.f32.mrf.mxu0  ;;  %v218_v32 = vpop.f32.mrf.mxu1 }
  0xd7   :  { %607 = vtanh.f32 %v354_v25  ;;  %v278_v33 = vmul.f32 %v252_v26, %v842_v18  ;;  %v292_v34 = vmul.f32 %v266_v27, %v845_v19  ;;  %v857_v35 = vadd.f32 %v802_v42, %v162_v31 }
  0xd8   :  { %609 = vtanh.f32 %v368_v28  ;;  %v329_v36 = vadd.f32 %v303_v29, %v831_v5  ;;  %v343_v37 = vadd.f32 %v317_v30, %v834_v6  ;;  %v862_v38 = vadd.f32 %v802_v42, %v218_v32  ;;  %v556_v39 = vpop.f32.mrf.mxu0  ;;  %v584_v40 = vpop.f32.mrf.mxu1 }
  0xd9   :  { %v304_v41 = vmul.f32 0.044715, %v278_v33  ;;  %v318_v43 = vmul.f32 0.044715, %v292_v34  ;;  %v253_v44 = vmul.f32 %v857_v35, %v857_v35 }
  0xda   :  { %v355_v47 = vmul.f32 0.7978846, %v329_v36  ;;  %v369_v48 = vmul.f32 0.7978846, %v343_v37  ;;  %v267_v49 = vmul.f32 %v862_v38, %v862_v38  ;;  %v165_v50 = vpop.f32.mrf.mxu0  ;;  %v221_v51 = vpop.f32.mrf.mxu1 }
  0xdb   :  { %v330_v52 = vadd.f32 %v304_v41, %v842_v18  ;;  %v344_v53 = vadd.f32 %v318_v43, %v845_v19  ;;  %v279_v54 = vmul.f32 %v253_v44, %v857_v35  ;;  %v872_v57 = vadd.f32 %v802_v42, %v165_v50 }
  0xdc   :  { %611 = vtanh.f32 %v355_v47  ;;  %v293_v58 = vmul.f32 %v267_v49, %v862_v38  ;;  %v876_v59 = vadd.f32 %v802_v42, %v221_v51  ;;  %v557_v60 = vpop.f32.mrf.mxu0  ;;  %v585_v61 = vpop.f32.mrf.mxu1 }
  0xdd   :  { %613 = vtanh.f32 %v369_v48  ;;  %v356_v62 = vmul.f32 0.7978846, %v330_v52  ;;  %v370_v63 = vmul.f32 0.7978846, %v344_v53  ;;  %v305_v0 = vmul.f32 0.044715, %v279_v54 }
  0xde   :  { %v319_v1 = vmul.f32 0.044715, %v293_v58  ;;  %v254_v2 = vmul.f32 %v872_v57, %v872_v57  ;;  %v268_v3 = vmul.f32 %v876_v59, %v876_v59  ;;  %v170_v4 = vpop.f32.mrf.mxu0  ;;  %v226_v7 = vpop.f32.mrf.mxu1 }
  0xdf   :  { %615 = vtanh.f32 %v356_v62  ;;  %v331_v8 = vadd.f32 %v305_v0, %v857_v35  ;;  %v884_v9 = vadd.f32 %v802_v42, %v170_v4  ;;  %v887_v10 = vadd.f32 %v802_v42, %v226_v7 }
  0xe0   :  { %v604_v11 = vpop.eup %603  ;;  %617 = vtanh.f32 %v370_v63  ;;  %v345_v12 = vadd.f32 %v319_v1, %v862_v38  ;;  %v280_v13 = vmul.f32 %v254_v2, %v872_v57  ;;  %v294_v14 = vmul.f32 %v268_v3, %v876_v59  ;;  %v560_v15 = vpop.f32.mrf.mxu0 }
  0xe1   :  { %v588_v16 = vpop.f32.mrf.mxu1  ;;  %v606_v17 = vpop.eup %605  ;;  %v405_v20 = vadd.f32 1.0, %v604_v11  ;;  %v357_v21 = vmul.f32 0.7978846, %v331_v8  ;;  %v255_v22 = vmul.f32 %v884_v9, %v884_v9  ;;  %v269_v23 = vmul.f32 %v887_v10, %v887_v10 }
  0xe2   :  { %v419_v24 = vadd.f32 1.0, %v606_v17  ;;  %v371_v25 = vmul.f32 0.7978846, %v345_v12  ;;  %v306_v26 = vmul.f32 0.044715, %v280_v13  ;;  %v173_v27 = vpop.f32.mrf.mxu0 }
  0xe3   :  { %v229_v28 = vpop.f32.mrf.mxu1  ;;  %v431_v29 = vmul.f32 0.5, %v405_v20  ;;  %619 = vtanh.f32 %v357_v21  ;;  %v320_v30 = vmul.f32 0.044715, %v294_v14  ;;  %v281_v31 = vmul.f32 %v255_v22, %v884_v9 }
  0xe4   :  { %v608_v32 = vpop.eup %607  ;;  %v445_v33 = vmul.f32 0.5, %v419_v24  ;;  %621 = vtanh.f32 %v371_v25  ;;  %v332_v34 = vadd.f32 %v306_v26, %v872_v57  ;;  %v295_v36 = vmul.f32 %v269_v23, %v887_v10  ;;  %v561_v37 = vpop.f32.mrf.mxu0 }
  0xe5   :  { %v589_v39 = vpop.f32.mrf.mxu1  ;;  %v610_v40 = vpop.eup %609  ;;  %v457_v41 = vmul.f32 %v431_v29, %v805_v45  ;;  %v406_v43 = vadd.f32 1.0, %v608_v32  ;;  %v346_v44 = vadd.f32 %v320_v30, %v876_v59  ;;  %v307_v47 = vmul.f32 0.044715, %v281_v31 }
  0xe6   :  { %v471_v48 = vmul.f32 %v445_v33, %v808_v46  ;;  %v420_v49 = vadd.f32 1.0, %v610_v40  ;;  %v358_v50 = vmul.f32 0.7978846, %v332_v34  ;;  %v321_v51 = vmul.f32 0.044715, %v295_v36  ;;  %v178_v52 = vpop.f32.mrf.mxu0 }
  0xe7   :  { %v234_v53 = vpop.f32.mrf.mxu1  ;;  %484 = vst.msk [vmem:[%s1118_s3] sm:$0xff] %vm483_vm3, %v457_v41  ;;  %v432_v54 = vmul.f32 0.5, %v406_v43  ;;  %v372_v58 = vmul.f32 0.7978846, %v346_v44  ;;  %v333_v45 = vadd.f32 %v307_v47, %v884_v9  ;;  %v908_v60 = vadd.f32 %v802_v42, %v173_v27 }
  0xe8   :  { %498 = vst.msk [vmem:[%s1118_s3 + $0x70] sm:$0xff] %vm483_vm3, %v471_v48  ;;  %v446_v46 = vmul.f32 0.5, %v420_v49  ;;  %623 = vtanh.f32 %v358_v50  ;;  %v347_v61 = vadd.f32 %v321_v51, %v887_v10  ;;  %v916_v62 = vadd.f32 %v802_v42, %v229_v28  ;;  %v564_v63 = vpop.f32.mrf.mxu0 }
  0xe9   :  { %v592_v0 = vpop.f32.mrf.mxu1  ;;  %v612_v1 = vpop.eup %611  ;;  %v458_v2 = vmul.f32 %v432_v54, %v817_v55  ;;  %625 = vtanh.f32 %v372_v58  ;;  %v359_v3 = vmul.f32 0.7978846, %v333_v45  ;;  %v256_v4 = vmul.f32 %v908_v60, %v908_v60 }
  0xea   :  { %v614_v7 = vpop.eup %613  ;;  %v472_v8 = vmul.f32 %v446_v46, %v820_v56  ;;  %v407_v11 = vadd.f32 1.0, %v612_v1  ;;  %v373_v12 = vmul.f32 0.7978846, %v347_v61  ;;  %v270_v13 = vmul.f32 %v916_v62, %v916_v62  ;;  %v181_v14 = vpop.f32.mrf.mxu0 }
  0xeb   :  { %v237_v15 = vpop.f32.mrf.mxu1  ;;  %485 = vst.msk [vmem:[%s1118_s3 + $0x8] sm:$0xff] %vm483_vm3, %v458_v2  ;;  %v421_v55 = vadd.f32 1.0, %v614_v7  ;;  %627 = vtanh.f32 %v359_v3  ;;  %v282_v16 = vmul.f32 %v256_v4, %v908_v60  ;;  %v930_v17 = vadd.f32 %v802_v42, %v178_v52 }
  0xec   :  { %v616_v56 = vpop.eup %615  ;;  %499 = vst.msk [vmem:[%s1118_s3 + $0x78] sm:$0xff] %vm483_vm3, %v472_v8  ;;  %v433_v20 = vmul.f32 0.5, %v407_v11  ;;  %629 = vtanh.f32 %v373_v12  ;;  %v296_v21 = vmul.f32 %v270_v13, %v916_v62  ;;  %v938_v22 = vadd.f32 %v802_v42, %v234_v53  ;;  %v565_v23 = vpop.f32.mrf.mxu0 }
  0xed   :  { %v593_v24 = vpop.f32.mrf.mxu1  ;;  %v618_v25 = vpop.eup %617  ;;  %v447_v26 = vmul.f32 0.5, %v421_v55  ;;  %v408_v27 = vadd.f32 1.0, %v616_v56  ;;  %v308_v28 = vmul.f32 0.044715, %v282_v16  ;;  %v257_v29 = vmul.f32 %v930_v17, %v930_v17 }
  0xee   :  { %v459_v30 = vmul.f32 %v433_v20, %v831_v5  ;;  %v422_v31 = vadd.f32 1.0, %v618_v25  ;;  %v322_v32 = vmul.f32 0.044715, %v296_v21  ;;  %v271_v33 = vmul.f32 %v938_v22, %v938_v22  ;;  %v186_v34 = vpop.f32.mrf.mxu0 }
  0xef   :  { %v242_v36 = vpop.f32.mrf.mxu1  ;;  %v473_v37 = vmul.f32 %v447_v26, %v834_v6  ;;  %v434_v39 = vmul.f32 0.5, %v408_v27  ;;  %v334_v40 = vadd.f32 %v308_v28, %v908_v60  ;;  %v283_v41 = vmul.f32 %v257_v29, %v930_v17 }
  0xf0   :  { %v620_v43 = vpop.eup %619  ;;  %486 = vst.msk [vmem:[%s1118_s3 + $0x10] sm:$0xff] %vm483_vm3, %v459_v30  ;;  %v448_v5 = vmul.f32 0.5, %v422_v31  ;;  %v348_v44 = vadd.f32 %v322_v32, %v916_v62  ;;  %v297_v47 = vmul.f32 %v271_v33, %v938_v22  ;;  %v955_v48 = vadd.f32 %v802_v42, %v181_v14  ;;  %v568_v6 = vpop.f32.mrf.mxu0 }
  0xf1   :  { %v596_v49 = vpop.f32.mrf.mxu1  ;;  %v622_v50 = vpop.eup %621  ;;  %500 = vst.msk [vmem:[%s1118_s3 + $0x80] sm:$0xff] %vm483_vm3, %v473_v37  ;;  %v460_v51 = vmul.f32 %v434_v39, %v842_v18  ;;  %v409_v52 = vadd.f32 1.0, %v620_v43  ;;  %v360_v53 = vmul.f32 0.7978846, %v334_v40  ;;  %v309_v54 = vmul.f32 0.044715, %v283_v41 }
  0xf2   :  { %v474_v58 = vmul.f32 %v448_v5, %v845_v19  ;;  %v423_v45 = vadd.f32 1.0, %v622_v50  ;;  %v374_v46 = vmul.f32 0.7978846, %v348_v44  ;;  %v323_v61 = vmul.f32 0.044715, %v297_v47  ;;  %v189_v63 = vpop.f32.mrf.mxu0 }
  0xf3   :  { %v245_v0 = vpop.f32.mrf.mxu1  ;;  %487 = vst.msk [vmem:[%s1118_s3 + $0x18] sm:$0xff] %vm483_vm3, %v460_v51  ;;  %v435_v1 = vmul.f32 0.5, %v409_v52  ;;  %631 = vtanh.f32 %v360_v53  ;;  %v335_v2 = vadd.f32 %v309_v54, %v930_v17  ;;  %v258_v18 = vmul.f32 %v955_v48, %v955_v48 }
  0xf4   :  { %501 = vst.msk [vmem:[%s1118_s3 + $0x88] sm:$0xff] %vm483_vm3, %v474_v58  ;;  %v449_v19 = vmul.f32 0.5, %v423_v45  ;;  %633 = vtanh.f32 %v374_v46  ;;  %v349_v3 = vadd.f32 %v323_v61, %v938_v22  ;;  %v976_v4 = vadd.f32 %v802_v42, %v237_v15  ;;  %v569_v7 = vpop.f32.mrf.mxu0 }
  0xf5   :  { %v597_v8 = vpop.f32.mrf.mxu1  ;;  %v624_v11 = vpop.eup %623  ;;  %v461_v12 = vmul.f32 %v435_v1, %v857_v35  ;;  %v361_v13 = vmul.f32 0.7978846, %v335_v2  ;;  %v284_v14 = vmul.f32 %v258_v18, %v955_v48  ;;  %v981_v55 = vadd.f32 %v802_v42, %v186_v34 }
  0xf6   :  { %v626_v16 = vpop.eup %625  ;;  %v475_v56 = vmul.f32 %v449_v19, %v862_v38  ;;  %v410_v20 = vadd.f32 1.0, %v624_v11  ;;  %v375_v21 = vmul.f32 0.7978846, %v349_v3  ;;  %v272_v15 = vmul.f32 %v976_v4, %v976_v4  ;;  %v194_v23 = vpop.f32.mrf.mxu0 }
  0xf7   :  { %488 = vst.msk [vmem:[%s1118_s3 + $0x20] sm:$0xff] %vm483_vm3, %v461_v12  ;;  %v424_v35 = vadd.f32 1.0, %v626_v16  ;;  %635 = vtanh.f32 %v361_v13  ;;  %v310_v24 = vmul.f32 0.044715, %v284_v14  ;;  %v259_v25 = vmul.f32 %v981_v55, %v981_v55 }
  0xf8   :  { %v628_v26 = vpop.eup %627  ;;  %502 = vst.msk [vmem:[%s1118_s3 + $0x90] sm:$0xff] %vm483_vm3, %v475_v56  ;;  %v436_v38 = vmul.f32 0.5, %v410_v20  ;;  %637 = vtanh.f32 %v375_v21  ;;  %v298_v27 = vmul.f32 %v272_v15, %v976_v4  ;;  %v998_v28 = vadd.f32 %v802_v42, %v242_v36  ;;  %v572_v29 = vpop.f32.mrf.mxu0 }
  0xf9   :  { %v630_v30 = vpop.eup %629  ;;  %v450_v31 = vmul.f32 0.5, %v424_v35  ;;  %v411_v32 = vadd.f32 1.0, %v628_v26  ;;  %v336_v33 = vadd.f32 %v310_v24, %v955_v48  ;;  %v285_v34 = vmul.f32 %v259_v25, %v981_v55 }
  0xfa   :  { %v462_v37 = vmul.f32 %v436_v38, %v872_v57  ;;  %v425_v39 = vadd.f32 1.0, %v630_v30  ;;  %v324_v40 = vmul.f32 0.044715, %v298_v27  ;;  %v273_v41 = vmul.f32 %v998_v28, %v998_v28  ;;  %v197_v43 = vpop.f32.mrf.mxu0 }
  0xfb   :  { %v476_v5 = vmul.f32 %v450_v31, %v876_v59  ;;  %v437_v36 = vmul.f32 0.5, %v411_v32  ;;  %v362_v44 = vmul.f32 0.7978846, %v336_v33  ;;  %v311_v47 = vmul.f32 0.044715, %v285_v34 }
  0xfc   :  { %489 = vst.msk [vmem:[%s1118_s3 + $0x28] sm:$0xff] %vm483_vm3, %v462_v37  ;;  %v451_v6 = vmul.f32 0.5, %v425_v39  ;;  %v350_v49 = vadd.f32 %v324_v40, %v976_v4  ;;  %v299_v57 = vmul.f32 %v273_v41, %v998_v28  ;;  %v1013_v50 = vadd.f32 %v802_v42, %v189_v63  ;;  %v573_v51 = vpop.f32.mrf.mxu0 }
  0xfd   :  { %503 = vst.msk [vmem:[%s1118_s3 + $0x98] sm:$0xff] %vm483_vm3, %v476_v5  ;;  %v463_v59 = vmul.f32 %v437_v36, %v884_v9  ;;  %639 = vtanh.f32 %v362_v44  ;;  %v337_v52 = vadd.f32 %v311_v47, %v981_v55  ;;  %v1022_v53 = vadd.f32 %v802_v42, %v245_v0 }
  0xfe   :  { %v477_v54 = vmul.f32 %v451_v6, %v887_v10  ;;  %v376_v58 = vmul.f32 0.7978846, %v350_v49  ;;  %v325_v45 = vmul.f32 0.044715, %v299_v57  ;;  %v260_v46 = vmul.f32 %v1013_v50, %v1013_v50 }
  0xff   :  { %490 = vst.msk [vmem:[%s1118_s3 + $0x30] sm:$0xff] %vm483_vm3, %v463_v59  ;;  %v363_v61 = vmul.f32 0.7978846, %v337_v52  ;;  %v274_v9 = vmul.f32 %v1022_v53, %v1022_v53  ;;  %v1034_v63 = vadd.f32 %v802_v42, %v194_v23  ;;  %v1037_v0 = vadd.f32 %v802_v42, %v197_v43 }
 0x100   :  { %v632_v10 = vpop.eup %631  ;;  %504 = vst.msk [vmem:[%s1118_s3 + $0xa0] sm:$0xff] %vm483_vm3, %v477_v54  ;;  %641 = vtanh.f32 %v376_v58  ;;  %v351_v1 = vadd.f32 %v325_v45, %v998_v28  ;;  %v286_v2 = vmul.f32 %v260_v46, %v1013_v50 }
 0x101   :  { %v634_v18 = vpop.eup %633  ;;  %v412_v19 = vadd.f32 1.0, %v632_v10  ;;  %643 = vtanh.f32 %v363_v61  ;;  %v300_v3 = vmul.f32 %v274_v9, %v1022_v53  ;;  %v261_v42 = vmul.f32 %v1034_v63, %v1034_v63 }
 0x102   :  { %v426_v7 = vadd.f32 1.0, %v634_v18  ;;  %v377_v8 = vmul.f32 0.7978846, %v351_v1  ;;  %v312_v11 = vmul.f32 0.044715, %v286_v2  ;;  %v262_v12 = vmul.f32 %v1037_v0, %v1037_v0 }
 0x103   :  { %v438_v13 = vmul.f32 0.5, %v412_v19  ;;  %v326_v14 = vmul.f32 0.044715, %v300_v3  ;;  %v287_v16 = vmul.f32 %v261_v42, %v1034_v63 }
 0x104   :  { %v636_v56 = vpop.eup %635  ;;  %v452_v20 = vmul.f32 0.5, %v426_v7  ;;  %645 = vtanh.f32 %v377_v8  ;;  %v338_v21 = vadd.f32 %v312_v11, %v1013_v50  ;;  %v288_v15 = vmul.f32 %v262_v12, %v1037_v0 }
 0x105   :  { %v638_v23 = vpop.eup %637  ;;  %v464_v35 = vmul.f32 %v438_v13, %v908_v60  ;;  %v413_v24 = vadd.f32 1.0, %v636_v56  ;;  %v352_v25 = vadd.f32 %v326_v14, %v1022_v53  ;;  %v313_v26 = vmul.f32 0.044715, %v287_v16 }
 0x106   :  { %v478_v38 = vmul.f32 %v452_v20, %v916_v62  ;;  %v427_v27 = vadd.f32 1.0, %v638_v23  ;;  %v364_v29 = vmul.f32 0.7978846, %v338_v21  ;;  %v314_v30 = vmul.f32 0.044715, %v288_v15 }
 0x107   :  { %491 = vst.msk [vmem:[%s1118_s3 + $0x38] sm:$0xff] %vm483_vm3, %v464_v35  ;;  %v439_v31 = vmul.f32 0.5, %v413_v24  ;;  %v378_v32 = vmul.f32 0.7978846, %v352_v25  ;;  %v339_v33 = vadd.f32 %v313_v26, %v1034_v63 }
 0x108   :  { %505 = vst.msk [vmem:[%s1118_s3 + $0xa8] sm:$0xff] %vm483_vm3, %v478_v38  ;;  %v453_v60 = vmul.f32 0.5, %v427_v27  ;;  %647 = vtanh.f32 %v364_v29  ;;  %v340_v62 = vadd.f32 %v314_v30, %v1037_v0 }
 0x109   :  { %v465_v34 = vmul.f32 %v439_v31, %v930_v17  ;;  %649 = vtanh.f32 %v378_v32  ;;  %v365_v37 = vmul.f32 0.7978846, %v339_v33 }
 0x10a   :  { %v640_v39 = vpop.eup %639  ;;  %v479_v40 = vmul.f32 %v453_v60, %v938_v22  ;;  %v366_v41 = vmul.f32 0.7978846, %v340_v62 }
 0x10b   :  { %492 = vst.msk [vmem:[%s1118_s3 + $0x40] sm:$0xff] %vm483_vm3, %v465_v34  ;;  %v414_v43 = vadd.f32 1.0, %v640_v39  ;;  %651 = vtanh.f32 %v365_v37 }
 0x10c   :  { %506 = vst.msk [vmem:[%s1118_s3 + $0xb0] sm:$0xff] %vm483_vm3, %v479_v40  ;;  %653 = vtanh.f32 %v366_v41 }
 0x10d   :  { %v642_v17 = vpop.eup %641  ;;  %v440_v5 = vmul.f32 0.5, %v414_v43 }
 0x10e   :  { %v644_v36 = vpop.eup %643  ;;  %v428_v44 = vadd.f32 1.0, %v642_v17 }
 0x10f   :  { %v466_v22 = vmul.f32 %v440_v5, %v955_v48  ;;  %v415_v47 = vadd.f32 1.0, %v644_v36 }
 0x110   :  { %v454_v6 = vmul.f32 0.5, %v428_v44 }
 0x111   :  { %v646_v49 = vpop.eup %645  ;;  %493 = vst.msk [vmem:[%s1118_s3 + $0x48] sm:$0xff] %vm483_vm3, %v466_v22  ;;  %v441_v57 = vmul.f32 0.5, %v415_v47 }
 0x112   :  { %v480_v51 = vmul.f32 %v454_v6, %v976_v4  ;;  %v429_v59 = vadd.f32 1.0, %v646_v49 }
 0x113   :  { %v467_v52 = vmul.f32 %v441_v57, %v981_v55 }
 0x114   :  { %507 = vst.msk [vmem:[%s1118_s3 + $0xb8] sm:$0xff] %vm483_vm3, %v480_v51  ;;  %v455_v48 = vmul.f32 0.5, %v429_v59 }
 0x115   :  { %v648_v54 = vpop.eup %647  ;;  %494 = vst.msk [vmem:[%s1118_s3 + $0x50] sm:$0xff] %vm483_vm3, %v467_v52 }
 0x116   :  { %v650_v58 = vpop.eup %649  ;;  %v481_v45 = vmul.f32 %v455_v48, %v998_v28  ;;  %v416_v46 = vadd.f32 1.0, %v648_v54 }
 0x117   :  { %v430_v4 = vadd.f32 1.0, %v650_v58 }
 0x118   :  { %v652_v61 = vpop.eup %651  ;;  %508 = vst.msk [vmem:[%s1118_s3 + $0xc0] sm:$0xff] %vm483_vm3, %v481_v45  ;;  %v442_v55 = vmul.f32 0.5, %v416_v46 }
 0x119   :  { %v654_v9 = vpop.eup %653  ;;  %v456_v10 = vmul.f32 0.5, %v430_v4  ;;  %v417_v1 = vadd.f32 1.0, %v652_v61 }
 0x11a   :  { %v468_v2 = vmul.f32 %v442_v55, %v1013_v50  ;;  %v418_v18 = vadd.f32 1.0, %v654_v9 }
 0x11b   :  { %v482_v19 = vmul.f32 %v456_v10, %v1022_v53  ;;  %v443_v3 = vmul.f32 0.5, %v417_v1 }
 0x11c   :  { %495 = vst.msk [vmem:[%s1118_s3 + $0x58] sm:$0xff] %vm483_vm3, %v468_v2  ;;  %v444_v28 = vmul.f32 0.5, %v418_v18 }
 0x11d   :  { %510 = vst.msk [vmem:[%s1118_s3 + $0xc8] sm:$0x3] %vm509_vm4, %v482_v19  ;;  %v469_v42 = vmul.f32 %v443_v3, %v1034_v63 }
 0x11e   :  { %v470_v7 = vmul.f32 %v444_v28, %v1037_v0 }
 0x11f   :  { %496 = vst.msk [vmem:[%s1118_s3 + $0x60] sm:$0xff] %vm483_vm3, %v469_v42 }
 0x120   :  { %497 = vst.msk [vmem:[%s1118_s3 + $0x68] sm:$0xff] %vm483_vm3, %v470_v7 }

// kernel: wav2vec2_forward.7
= control target key start
LH: loop header
LB: loop body
LE: loop exit
PB: predicated region body
PF: predicated region fallthrough
CT: control target
= control target key end

     0   :  { %v449_v0 = vmov 0.0   ;;  %vm450_vm0 = vmmov 0   ;;  %vm90_vm1 = vcmask 785408   ;;  %vm317_vm2 = vcmask 261120   ;;  %s721_s1 = inlined_call_operand.vmem [shape: bf16[96,32], index: 1, kind: input, shape index: {}]   ;;  %s722_s0 = inlined_call_operand.vmem [shape: f32[100,96], index: 0, kind: input, shape index: {}]   ;;  %s723_s2 = inlined_call_operand.vmem [shape: f32[1,32], index: 2, kind: input, shape index: {}]   ;;  %s724_s3 = inlined_call_operand.vmem [shape: f32[100,32], index: 3, kind: output, shape index: {}]  }
   0x1   :  { %363 = vmatprep.subr.bf16.mxu0 %v449_v0  ;;  %403 = vmatprep.subr.bf16.mxu1 %v449_v0  ;;  %v417_v1 = vld [vmem:[%s721_s1 + $0x28] sm:$0xff]   ;;  %v418_v2 = vld [vmem:[%s721_s1 + $0x20] sm:$0xff]   ;;  %v419_v3 = vld [vmem:[%s721_s1 + $0x18] sm:$0xff]   ;;  %vm330_vm3 = vcmask 257024  }
   0x2   :  { %375 = vmatprep.mubr.msk.bf16.mxu0 %vm450_vm0, %v449_v0  ;;  %391 = vmatprep.mubr.msk.bf16.mxu1 %vm450_vm0, %v449_v0  ;;  %v420_v4 = vld [vmem:[%s721_s1 + $0x10] sm:$0xff]   ;;  %v421_v5 = vld [vmem:[%s721_s1 + $0x8] sm:$0xff]   ;;  %v422_v6 = vld [vmem:[%s721_s1] sm:$0xff]  }
   0x3   :  { %364 = vmatpush3.bf16.msra.mxu0 %v417_v1  ;;  %409 = vmatpush3.bf16.msra.mxu1 %v417_v1  ;;  %v15_v7 = vld [vmem:[%s722_s0] sm:$0xff]  ;;  %v16_v8 = vld [vmem:[%s722_s0 + $0x8] sm:$0xff]  ;;  %v17_v13 = vld [vmem:[%s722_s0 + $0x10] sm:$0xff] }
   0x4   :  { %365 = vmatprep.subr.bf16.mxu0 %v449_v0  ;;  %404 = vmatprep.subr.bf16.mxu1 %v449_v0  ;;  %v23_v9 = vld [vmem:[%s722_s0 + $0x40] sm:$0xff]  ;;  %v24_v10 = vld [vmem:[%s722_s0 + $0x48] sm:$0xff]  ;;  %v28_v11 = vpack.c.bf16 %v16_v8, %v15_v7  ;;  %v18_v14 = vld [vmem:[%s722_s0 + $0x18] sm:$0xff] }
   0x5   :  { %v32_v12 = vpack.c.bf16 %v24_v10, %v23_v9  ;;  %v25_v15 = vld [vmem:[%s722_s0 + $0x50] sm:$0xff]  ;;  %v26_v16 = vld [vmem:[%s722_s0 + $0x58] sm:$0xff]  ;;  %v29_v17 = vpack.c.bf16 %v18_v14, %v17_v13  ;;  %v19_v19 = vld [vmem:[%s722_s0 + $0x20] sm:$0xff] }
   0x6   :  { %v33_v18 = vpack.c.bf16 %v26_v16, %v25_v15  ;;  %v20_v20 = vld [vmem:[%s722_s0 + $0x28] sm:$0xff]  ;;  %v27_v21 = vld [vmem:[%s722_s0 + $0x60] sm:$0xf]  ;;  %v21_v24 = vld [vmem:[%s722_s0 + $0x30] sm:$0xff] }
   0x7   :  { %366 = vmatpush3.bf16.msra.mxu0 %v418_v2  ;;  %410 = vmatpush3.bf16.msra.mxu1 %v418_v2  ;;  %v30_v22 = vpack.c.bf16 %v20_v20, %v19_v19  ;;  %v34_v23 = vpack.c.bf16 %v27_v21, %v27_v21  ;;  %v22_v25 = vld [vmem:[%s722_s0 + $0x38] sm:$0xff]  ;;  %v564_v27 = vld [vmem:[%s723_s2] ss:$0 sm:$0xff] }
   0x8   :  { %367 = vmatprep.subr.bf16.mxu0 %v449_v0  ;;  %405 = vmatprep.subr.bf16.mxu1 %v449_v0  ;;  %v31_v26 = vpack.c.bf16 %v22_v25, %v21_v24 }
   0xb   :  { %368 = vmatpush3.bf16.msra.mxu0 %v419_v3  ;;  %411 = vmatpush3.bf16.msra.mxu1 %v419_v3 }
   0xc   :  { %369 = vmatprep.subr.bf16.mxu0 %v449_v0  ;;  %406 = vmatprep.subr.bf16.mxu1 %v449_v0 }
   0xf   :  { %370 = vmatpush3.bf16.msra.mxu0 %v420_v4  ;;  %412 = vmatpush3.bf16.msra.mxu1 %v420_v4 }
  0x10   :  { %371 = vmatprep.subr.bf16.mxu0 %v449_v0  ;;  %407 = vmatprep.subr.bf16.mxu1 %v449_v0 }
  0x13   :  { %372 = vmatpush3.bf16.msra.mxu0 %v421_v5  ;;  %413 = vmatpush3.bf16.msra.mxu1 %v421_v5 }
  0x14   :  { %373 = vmatprep.subr.bf16.mxu0 %v449_v0  ;;  %408 = vmatprep.subr.bf16.mxu1 %v449_v0 }
  0x17   :  { %374 = vmatpush3.bf16.msra.mxu0 %v422_v6  ;;  %414 = vmatpush3.bf16.msra.mxu1 %v422_v6 }
  0x1a   :  { %376 = vmatmul.mubr.msk.bf16.vlgmr.msra.gmra.mxu0 %vm90_vm1, %v28_v11  ;;  %392 = vmatmul.mubr.msk.bf16.vlgmr.msra.gmra.mxu1 %vm90_vm1, %v32_v12 }
  0x1b   :  { %379 = vmatprep.mubr.msk.bf16.mxu0 %vm450_vm0, %v449_v0  ;;  %395 = vmatprep.mubr.msk.bf16.mxu1 %vm450_vm0, %v449_v0 }
  0x22   :  { %380 = vmatmul.mubr.msk.bf16.gmra.mxu0 %vm90_vm1, %v29_v17  ;;  %396 = vmatmul.mubr.msk.bf16.gmra.mxu1 %vm90_vm1, %v33_v18 }
  0x23   :  { %383 = vmatprep.mubr.msk.bf16.mxu0 %vm450_vm0, %v449_v0  ;;  %399 = vmatprep.mubr.msk.bf16.mxu1 %vm450_vm0, %v449_v0 }
  0x2a   :  { %384 = vmatmul.mubr.msk.bf16.gmra.mxu0 %vm90_vm1, %v30_v22  ;;  %400 = vmatmul.mubr.msk.bf16.gmra.mxu1 %vm90_vm1, %v34_v23 }
  0x2b   :  { %387 = vmatprep.mubr.msk.bf16.mxu0 %vm450_vm0, %v449_v0 }
  0x32   :  { %388 = vmatmul.mubr.msk.bf16.gmra.mxu0 %vm90_vm1, %v31_v26 }
  0xda   :  { %v146_v28 = vpop.f32.mrf.mxu0  ;;  %v178_v29 = vpop.f32.mrf.mxu1 }
  0xdb   :  { %v567_v30 = vadd.f32 %v564_v27, %v146_v28  ;;  %v570_v31 = vadd.f32 %v564_v27, %v178_v29 }
  0xdc   :  { %v377_v32 = vpop.f32.mrf.mxu0  ;;  %v393_v33 = vpop.f32.mrf.mxu1 }
  0xdd   :  { %v200_v34 = vmul.f32 %v567_v30, %v567_v30  ;;  %v208_v35 = vmul.f32 %v570_v31, %v570_v31 }
  0xde   :  { %v149_v36 = vpop.f32.mrf.mxu0  ;;  %v181_v37 = vpop.f32.mrf.mxu1 }
  0xdf   :  { %v213_v38 = vmul.f32 %v200_v34, %v567_v30  ;;  %v221_v39 = vmul.f32 %v208_v35, %v570_v31  ;;  %v579_v40 = vadd.f32 %v564_v27, %v149_v36  ;;  %v582_v41 = vadd.f32 %v564_v27, %v181_v37 }
  0xe0   :  { %v378_v42 = vpop.f32.mrf.mxu0  ;;  %v394_v43 = vpop.f32.mrf.mxu1 }
  0xe1   :  { %v226_v44 = vmul.f32 0.044715, %v213_v38  ;;  %v234_v45 = vmul.f32 0.044715, %v221_v39  ;;  %v201_v46 = vmul.f32 %v579_v40, %v579_v40  ;;  %v209_v47 = vmul.f32 %v582_v41, %v582_v41 }
  0xe2   :  { %v154_v48 = vpop.f32.mrf.mxu0  ;;  %v186_v49 = vpop.f32.mrf.mxu1 }
  0xe3   :  { %v239_v50 = vadd.f32 %v226_v44, %v567_v30  ;;  %v247_v51 = vadd.f32 %v234_v45, %v570_v31  ;;  %v214_v52 = vmul.f32 %v201_v46, %v579_v40  ;;  %v222_v53 = vmul.f32 %v209_v47, %v582_v41 }
  0xe4   :  { %v593_v54 = vadd.f32 %v564_v27, %v154_v48  ;;  %v596_v55 = vadd.f32 %v564_v27, %v186_v49  ;;  %v381_v56 = vpop.f32.mrf.mxu0  ;;  %v397_v57 = vpop.f32.mrf.mxu1 }
  0xe5   :  { %v252_v58 = vmul.f32 0.7978846, %v239_v50  ;;  %v260_v59 = vmul.f32 0.7978846, %v247_v51  ;;  %v227_v60 = vmul.f32 0.044715, %v214_v52 }
  0xe6   :  { %v235_v61 = vmul.f32 0.044715, %v222_v53  ;;  %v202_v62 = vmul.f32 %v593_v54, %v593_v54  ;;  %v210_v63 = vmul.f32 %v596_v55, %v596_v55  ;;  %v157_v0 = vpop.f32.mrf.mxu0  ;;  %v189_v1 = vpop.f32.mrf.mxu1 }
  0xe7   :  { %423 = vtanh.f32 %v252_v58  ;;  %v240_v2 = vadd.f32 %v227_v60, %v579_v40  ;;  %v604_v3 = vadd.f32 %v564_v27, %v157_v0  ;;  %v607_v4 = vadd.f32 %v564_v27, %v189_v1 }
  0xe8   :  { %425 = vtanh.f32 %v260_v59  ;;  %v248_v5 = vadd.f32 %v235_v61, %v582_v41  ;;  %v215_v6 = vmul.f32 %v202_v62, %v593_v54  ;;  %v223_v7 = vmul.f32 %v210_v63, %v596_v55  ;;  %v382_v8 = vpop.f32.mrf.mxu0  ;;  %v398_v9 = vpop.f32.mrf.mxu1 }
  0xe9   :  { %v253_v10 = vmul.f32 0.7978846, %v240_v2  ;;  %v203_v11 = vmul.f32 %v604_v3, %v604_v3  ;;  %v211_v12 = vmul.f32 %v607_v4, %v607_v4 }
  0xea   :  { %v261_v13 = vmul.f32 0.7978846, %v248_v5  ;;  %v228_v14 = vmul.f32 0.044715, %v215_v6  ;;  %v236_v15 = vmul.f32 0.044715, %v223_v7  ;;  %v162_v16 = vpop.f32.mrf.mxu0  ;;  %v194_v17 = vpop.f32.mrf.mxu1 }
  0xeb   :  { %427 = vtanh.f32 %v253_v10  ;;  %v216_v18 = vmul.f32 %v203_v11, %v604_v3  ;;  %v224_v19 = vmul.f32 %v211_v12, %v607_v4  ;;  %v619_v20 = vadd.f32 %v564_v27, %v162_v16 }
  0xec   :  { %429 = vtanh.f32 %v261_v13  ;;  %v241_v21 = vadd.f32 %v228_v14, %v593_v54  ;;  %v249_v22 = vadd.f32 %v236_v15, %v596_v55  ;;  %v624_v23 = vadd.f32 %v564_v27, %v194_v17  ;;  %v385_v24 = vpop.f32.mrf.mxu0  ;;  %v401_v25 = vpop.f32.mrf.mxu1 }
  0xed   :  { %v229_v26 = vmul.f32 0.044715, %v216_v18  ;;  %v237_v28 = vmul.f32 0.044715, %v224_v19  ;;  %v204_v29 = vmul.f32 %v619_v20, %v619_v20 }
  0xee   :  { %v254_v32 = vmul.f32 0.7978846, %v241_v21  ;;  %v262_v33 = vmul.f32 0.7978846, %v249_v22  ;;  %v212_v34 = vmul.f32 %v624_v23, %v624_v23  ;;  %v165_v35 = vpop.f32.mrf.mxu0  ;;  %v197_v36 = vpop.f32.mrf.mxu1 }
  0xef   :  { %v242_v37 = vadd.f32 %v229_v26, %v604_v3  ;;  %v250_v38 = vadd.f32 %v237_v28, %v607_v4  ;;  %v217_v39 = vmul.f32 %v204_v29, %v619_v20  ;;  %v634_v42 = vadd.f32 %v564_v27, %v165_v35 }
  0xf0   :  { %431 = vtanh.f32 %v254_v32  ;;  %v225_v43 = vmul.f32 %v212_v34, %v624_v23  ;;  %v386_v44 = vpop.f32.mrf.mxu0  ;;  %v402_v45 = vpop.f32.mrf.mxu1 }
  0xf1   :  { %433 = vtanh.f32 %v262_v33  ;;  %v255_v46 = vmul.f32 0.7978846, %v242_v37  ;;  %v263_v47 = vmul.f32 0.7978846, %v250_v38  ;;  %v230_v48 = vmul.f32 0.044715, %v217_v39 }
  0xf2   :  { %v238_v49 = vmul.f32 0.044715, %v225_v43  ;;  %v205_v50 = vmul.f32 %v634_v42, %v634_v42  ;;  %v170_v51 = vpop.f32.mrf.mxu0 }
  0xf3   :  { %435 = vtanh.f32 %v255_v46  ;;  %v243_v52 = vadd.f32 %v230_v48, %v619_v20  ;;  %v641_v53 = vadd.f32 %v564_v27, %v170_v51 }
  0xf4   :  { %v424_v56 = vpop.eup %423  ;;  %437 = vtanh.f32 %v263_v47  ;;  %v251_v57 = vadd.f32 %v238_v49, %v624_v23  ;;  %v218_v58 = vmul.f32 %v205_v50, %v634_v42  ;;  %v389_v59 = vpop.f32.mrf.mxu0 }
  0xf5   :  { %v426_v60 = vpop.eup %425  ;;  %v278_v61 = vadd.f32 1.0, %v424_v56  ;;  %v256_v62 = vmul.f32 0.7978846, %v243_v52  ;;  %v206_v63 = vmul.f32 %v641_v53, %v641_v53 }
  0xf6   :  { %v286_v0 = vadd.f32 1.0, %v426_v60  ;;  %v264_v1 = vmul.f32 0.7978846, %v251_v57  ;;  %v231_v2 = vmul.f32 0.044715, %v218_v58  ;;  %v173_v5 = vpop.f32.mrf.mxu0 }
  0xf7   :  { %v291_v6 = vmul.f32 0.5, %v278_v61  ;;  %439 = vtanh.f32 %v256_v62  ;;  %v219_v7 = vmul.f32 %v206_v63, %v641_v53  ;;  %v649_v8 = vadd.f32 %v564_v27, %v173_v5 }
  0xf8   :  { %v428_v9 = vpop.eup %427  ;;  %v299_v10 = vmul.f32 0.5, %v286_v0  ;;  %441 = vtanh.f32 %v264_v1  ;;  %v244_v11 = vadd.f32 %v231_v2, %v634_v42  ;;  %v390_v12 = vpop.f32.mrf.mxu0 }
  0xf9   :  { %v430_v13 = vpop.eup %429  ;;  %v304_v14 = vmul.f32 %v291_v6, %v567_v30  ;;  %v279_v15 = vadd.f32 1.0, %v428_v9  ;;  %v232_v16 = vmul.f32 0.044715, %v219_v7  ;;  %v207_v17 = vmul.f32 %v649_v8, %v649_v8 }
  0xfa   :  { %v312_v18 = vmul.f32 %v299_v10, %v570_v31  ;;  %v287_v19 = vadd.f32 1.0, %v430_v13  ;;  %v257_v27 = vmul.f32 0.7978846, %v244_v11 }
  0xfb   :  { %318 = vst.msk [vmem:[%s724_s3] sm:$0xff] %vm317_vm2, %v304_v14  ;;  %v292_v21 = vmul.f32 0.5, %v279_v15  ;;  %v245_v22 = vadd.f32 %v232_v16, %v641_v53  ;;  %v220_v24 = vmul.f32 %v207_v17, %v649_v8 }
  0xfc   :  { %326 = vst.msk [vmem:[%s724_s3 + $0x40] sm:$0xff] %vm317_vm2, %v312_v18  ;;  %v300_v30 = vmul.f32 0.5, %v287_v19  ;;  %443 = vtanh.f32 %v257_v27 }
  0xfd   :  { %v432_v31 = vpop.eup %431  ;;  %v305_v25 = vmul.f32 %v292_v21, %v579_v40  ;;  %v258_v26 = vmul.f32 0.7978846, %v245_v22  ;;  %v233_v28 = vmul.f32 0.044715, %v220_v24 }
  0xfe   :  { %v434_v29 = vpop.eup %433  ;;  %v313_v32 = vmul.f32 %v300_v30, %v582_v41  ;;  %v280_v33 = vadd.f32 1.0, %v432_v31 }
  0xff   :  { %319 = vst.msk [vmem:[%s724_s3 + $0x8] sm:$0xff] %vm317_vm2, %v305_v25  ;;  %v288_v34 = vadd.f32 1.0, %v434_v29  ;;  %445 = vtanh.f32 %v258_v26  ;;  %v246_v35 = vadd.f32 %v233_v28, %v649_v8 }
 0x100   :  { %v436_v36 = vpop.eup %435  ;;  %327 = vst.msk [vmem:[%s724_s3 + $0x48] sm:$0xff] %vm317_vm2, %v313_v32  ;;  %v293_v40 = vmul.f32 0.5, %v280_v33 }
 0x101   :  { %v438_v37 = vpop.eup %437  ;;  %v301_v38 = vmul.f32 0.5, %v288_v34  ;;  %v281_v41 = vadd.f32 1.0, %v436_v36  ;;  %v259_v39 = vmul.f32 0.7978846, %v246_v35 }
 0x102   :  { %v306_v43 = vmul.f32 %v293_v40, %v593_v54  ;;  %v289_v44 = vadd.f32 1.0, %v438_v37 }
 0x103   :  { %v314_v45 = vmul.f32 %v301_v38, %v596_v55  ;;  %v294_v46 = vmul.f32 0.5, %v281_v41  ;;  %447 = vtanh.f32 %v259_v39 }
 0x104   :  { %v440_v47 = vpop.eup %439  ;;  %320 = vst.msk [vmem:[%s724_s3 + $0x10] sm:$0xff] %vm317_vm2, %v306_v43  ;;  %v302_v48 = vmul.f32 0.5, %v289_v44 }
 0x105   :  { %v442_v49 = vpop.eup %441  ;;  %328 = vst.msk [vmem:[%s724_s3 + $0x50] sm:$0xff] %vm317_vm2, %v314_v45  ;;  %v307_v54 = vmul.f32 %v294_v46, %v604_v3  ;;  %v282_v50 = vadd.f32 1.0, %v440_v47 }
 0x106   :  { %v315_v55 = vmul.f32 %v302_v48, %v607_v4  ;;  %v290_v51 = vadd.f32 1.0, %v442_v49 }
 0x107   :  { %321 = vst.msk [vmem:[%s724_s3 + $0x18] sm:$0xff] %vm317_vm2, %v307_v54  ;;  %v295_v52 = vmul.f32 0.5, %v282_v50 }
 0x108   :  { %329 = vst.msk [vmem:[%s724_s3 + $0x58] sm:$0xff] %vm317_vm2, %v315_v55  ;;  %v303_v56 = vmul.f32 0.5, %v290_v51 }
 0x109   :  { %v444_v57 = vpop.eup %443  ;;  %v308_v58 = vmul.f32 %v295_v52, %v619_v20 }
 0x10a   :  { %v316_v3 = vmul.f32 %v303_v56, %v624_v23  ;;  %v283_v4 = vadd.f32 1.0, %v444_v57 }
 0x10b   :  { %322 = vst.msk [vmem:[%s724_s3 + $0x20] sm:$0xff] %vm317_vm2, %v308_v58 }
 0x10c   :  { %v446_v59 = vpop.eup %445  ;;  %331 = vst.msk [vmem:[%s724_s3 + $0x60] sm:$0xf] %vm330_vm3, %v316_v3  ;;  %v296_v60 = vmul.f32 0.5, %v283_v4 }
 0x10d   :  { %v284_v61 = vadd.f32 1.0, %v446_v59 }
 0x10e   :  { %v309_v62 = vmul.f32 %v296_v60, %v634_v42 }
 0x10f   :  { %v297_v63 = vmul.f32 0.5, %v284_v61 }
 0x110   :  { %v448_v20 = vpop.eup %447  ;;  %323 = vst.msk [vmem:[%s724_s3 + $0x28] sm:$0xff] %vm317_vm2, %v309_v62 }
 0x111   :  { %v310_v23 = vmul.f32 %v297_v63, %v641_v53  ;;  %v285_v0 = vadd.f32 1.0, %v448_v20 }
 0x113   :  { %324 = vst.msk [vmem:[%s724_s3 + $0x30] sm:$0xff] %vm317_vm2, %v310_v23  ;;  %v298_v1 = vmul.f32 0.5, %v285_v0 }
 0x115   :  { %v311_v2 = vmul.f32 %v298_v1, %v649_v8 }
 0x117   :  { %325 = vst.msk [vmem:[%s724_s3 + $0x38] sm:$0xff] %vm317_vm2, %v311_v2 }

// kernel: wav2vec2_forward.8
= control target key start
LH: loop header
LB: loop body
LE: loop exit
PB: predicated region body
PF: predicated region fallthrough
CT: control target
= control target key end

     0   :  { %vm71_vm0 = vcmask 523264   ;;  %vm213_vm1 = vcmask 261120   ;;  %vm232_vm2 = vcmask 254976   ;;  %s614_s1 = inlined_call_operand.vmem [shape: bf16[64,32], index: 1, kind: input, shape index: {}]   ;;  %s615_s0 = inlined_call_operand.vmem [shape: f32[50,64], index: 0, kind: input, shape index: {}]   ;;  %s616_s2 = inlined_call_operand.vmem [shape: f32[1,32], index: 2, kind: input, shape index: {}]   ;;  %s617_s3 = inlined_call_operand.vmem [shape: f32[1,32], index: 3, kind: input, shape index: {}]   ;;  %s618_s4 = inlined_call_operand.vmem [shape: f32[1,32], index: 4, kind: input, shape index: {}]   ;;  %s619_s5 = inlined_call_operand.vmem [shape: f32[50,32], index: 5, kind: output, shape index: {}]  }
   0x1   :  { %v387_v0 = vld [vmem:[%s614_s1 + $0x18] sm:$0xff]   ;;  %v388_v1 = vld [vmem:[%s614_s1 + $0x10] sm:$0xff]   ;;  %v389_v2 = vld [vmem:[%s614_s1 + $0x8] sm:$0xff]  }
   0x2   :  { %363 = vmatprep.subr.bf16.mxu0 %v387_v0  ;;  %379 = vmatprep.subr.bf16.mxu1 %v387_v0  ;;  %v21_v3 = vld [vmem:[%s615_s0] sm:$0xff]  ;;  %v22_v4 = vld [vmem:[%s615_s0 + $0x8] sm:$0xff]  ;;  %v23_v10 = vld [vmem:[%s615_s0 + $0x10] sm:$0xff] }
   0x3   :  { %364 = vmatpush3.bf16.msra.mxu0 %v387_v0  ;;  %383 = vmatpush3.bf16.msra.mxu1 %v387_v0  ;;  %v25_v5 = vld [vmem:[%s615_s0 + $0x20] sm:$0xff]  ;;  %v28_v6 = vpack.c.bf16 %v22_v4, %v21_v3  ;;  %v26_v7 = vld [vmem:[%s615_s0 + $0x28] sm:$0xff]  ;;  %v24_v11 = vld [vmem:[%s615_s0 + $0x18] sm:$0xff] }
   0x4   :  { %365 = vmatprep.subr.bf16.mxu0 %v388_v1  ;;  %380 = vmatprep.subr.bf16.mxu1 %v388_v1  ;;  %v30_v8 = vpack.c.bf16 %v26_v7, %v25_v5  ;;  %v390_v9 = vld [vmem:[%s614_s1] sm:$0xff]   ;;  %v27_v12 = vld [vmem:[%s615_s0 + $0x30] sm:$0x3]  ;;  %v29_v13 = vpack.c.bf16 %v24_v11, %v23_v10 }
   0x5   :  { %371 = vmatprep.mubr.msk.bf16.mxu0 %vm71_vm0, %v28_v6  ;;  %v31_v14 = vpack.c.bf16 %v27_v12, %v27_v12  ;;  %v344_v15 = vld [vmem:[%s616_s2] ss:$0 sm:$0xff] }
   0x6   :  { %375 = vmatprep.mubr.msk.bf16.mxu1 %vm71_vm0, %v30_v8 }
   0x7   :  { %366 = vmatpush3.bf16.msra.mxu0 %v388_v1  ;;  %384 = vmatpush3.bf16.msra.mxu1 %v388_v1 }
   0x8   :  { %367 = vmatprep.subr.bf16.mxu0 %v389_v2  ;;  %381 = vmatprep.subr.bf16.mxu1 %v389_v2 }
   0xb   :  { %368 = vmatpush3.bf16.msra.mxu0 %v389_v2  ;;  %385 = vmatpush3.bf16.msra.mxu1 %v389_v2 }
   0xc   :  { %369 = vmatprep.subr.bf16.mxu0 %v390_v9  ;;  %382 = vmatprep.subr.bf16.mxu1 %v390_v9 }
   0xf   :  { %370 = vmatpush3.bf16.msra.mxu0 %v390_v9  ;;  %386 = vmatpush3.bf16.msra.mxu1 %v390_v9 }
  0x12   :  { %372 = vmatmul.mubr.msk.bf16.vlgmr.msra.gmra.mxu0 %vm71_vm0, %v29_v13  ;;  %376 = vmatmul.mubr.msk.bf16.vlgmr.msra.gmra.mxu1 %vm71_vm0, %v31_v14 }
  0xd2   :  { %v373_v16 = vpop.f32.mrf.mxu0  ;;  %v377_v17 = vpop.f32.mrf.mxu1 }
  0xd3   :  { %v489_v18 = vadd.f32 %v373_v16, %v344_v15  ;;  %v491_v19 = vadd.f32 %v377_v17, %v344_v15 }
  0xd4   :  { %v118_v20 = vpop.f32.mrf.mxu0  ;;  %v134_v21 = vpop.f32.mrf.mxu1 }
  0xd5   :  { %v150_v22 = vmul.f32 %v489_v18, %v489_v18  ;;  %v154_v23 = vmul.f32 %v491_v19, %v491_v19  ;;  %v497_v24 = vadd.f32 %v344_v15, %v118_v20  ;;  %v499_v25 = vadd.f32 %v344_v15, %v134_v21 }
  0xd6   :  { %v374_v26 = vpop.f32.mrf.mxu0  ;;  %v378_v27 = vpop.f32.mrf.mxu1 }
  0xd7   :  { %v157_v28 = vmul.f32 %v150_v22, %v489_v18  ;;  %v161_v29 = vmul.f32 %v154_v23, %v491_v19  ;;  %v148_v30 = vmul.f32 %v497_v24, %v497_v24  ;;  %v152_v31 = vmul.f32 %v499_v25, %v499_v25 }
  0xd8   :  { %v507_v32 = vadd.f32 %v374_v26, %v344_v15  ;;  %v121_v33 = vpop.f32.mrf.mxu0  ;;  %v137_v34 = vpop.f32.mrf.mxu1 }
  0xd9   :  { %v164_v35 = vmul.f32 0.044715, %v157_v28  ;;  %v168_v36 = vmul.f32 0.044715, %v161_v29  ;;  %v155_v37 = vmul.f32 %v148_v30, %v497_v24  ;;  %v159_v38 = vmul.f32 %v152_v31, %v499_v25 }
  0xda   :  { %v151_v39 = vmul.f32 %v507_v32, %v507_v32  ;;  %v513_v40 = vadd.f32 %v344_v15, %v121_v33  ;;  %v138_v41 = vadd.f32 %v344_v15, %v137_v34 }
  0xdb   :  { %v171_v42 = vadd.f32 %v164_v35, %v489_v18  ;;  %v162_v43 = vmul.f32 0.044715, %v155_v37  ;;  %v166_v44 = vmul.f32 0.044715, %v159_v38  ;;  %v175_v48 = vadd.f32 %v168_v36, %v491_v19 }
  0xdc   :  { %v158_v45 = vmul.f32 %v151_v39, %v507_v32  ;;  %v149_v46 = vmul.f32 %v513_v40, %v513_v40  ;;  %v153_v47 = vmul.f32 %v138_v41, %v138_v41 }
  0xdd   :  { %v169_v49 = vadd.f32 %v162_v43, %v497_v24  ;;  %v173_v50 = vadd.f32 %v166_v44, %v499_v25  ;;  %v178_v51 = vmul.f32 0.7978846, %v171_v42  ;;  %v182_v60 = vmul.f32 0.7978846, %v175_v48 }
  0xde   :  { %v165_v52 = vmul.f32 0.044715, %v158_v45  ;;  %v156_v53 = vmul.f32 %v149_v46, %v513_v40  ;;  %v160_v54 = vmul.f32 %v153_v47, %v138_v41 }
  0xdf   :  { %391 = vtanh.f32 %v178_v51  ;;  %v176_v55 = vmul.f32 0.7978846, %v169_v49  ;;  %v180_v56 = vmul.f32 0.7978846, %v173_v50 }
  0xe0   :  { %v172_v57 = vadd.f32 %v165_v52, %v507_v32  ;;  %v163_v58 = vmul.f32 0.044715, %v156_v53  ;;  %v167_v59 = vmul.f32 0.044715, %v160_v54 }
  0xe1   :  { %393 = vtanh.f32 %v176_v55 }
  0xe2   :  { %v170_v61 = vadd.f32 %v163_v58, %v513_v40  ;;  %v174_v62 = vadd.f32 %v167_v59, %v138_v41  ;;  %v179_v63 = vmul.f32 0.7978846, %v172_v57  ;;  %395 = vtanh.f32 %v180_v56 }
  0xe4   :  { %397 = vtanh.f32 %v179_v63  ;;  %v181_v0 = vmul.f32 0.7978846, %v174_v62  ;;  %v177_v1 = vmul.f32 0.7978846, %v170_v61 }
  0xe5   :  { %399 = vtanh.f32 %v182_v60 }
  0xe6   :  { %401 = vtanh.f32 %v181_v0 }
  0xe7   :  { %403 = vtanh.f32 %v177_v1 }
  0xec   :  { %v392_v2 = vpop.eup %391 }
  0xed   :  { %v192_v3 = vadd.f32 1.0, %v392_v2 }
  0xee   :  { %v394_v4 = vpop.eup %393 }
  0xef   :  { %v396_v5 = vpop.eup %395  ;;  %v199_v6 = vmul.f32 0.5, %v192_v3  ;;  %v190_v7 = vadd.f32 1.0, %v394_v4 }
  0xf0   :  { %v194_v8 = vadd.f32 1.0, %v396_v5 }
  0xf1   :  { %v398_v9 = vpop.eup %397  ;;  %v206_v10 = vmul.f32 %v199_v6, %v489_v18  ;;  %v197_v11 = vmul.f32 0.5, %v190_v7 }
  0xf2   :  { %v400_v12 = vpop.eup %399  ;;  %v193_v13 = vadd.f32 1.0, %v398_v9  ;;  %v201_v14 = vmul.f32 0.5, %v194_v8 }
  0xf3   :  { %v402_v15 = vpop.eup %401  ;;  %v220_v16 = vsel %vm213_vm1, %v206_v10, 0.0  ;;  %v204_v17 = vmul.f32 %v197_v11, %v497_v24  ;;  %v196_v28 = vadd.f32 1.0, %v400_v12 }
  0xf4   :  { %v404_v20 = vpop.eup %403  ;;  %221 = vadd.xlane.f32.xlu1 %v220_v16  ;;  %v200_v21 = vmul.f32 0.5, %v193_v13  ;;  %v195_v22 = vadd.f32 1.0, %v402_v15  ;;  %v208_v26 = vmul.f32 %v201_v14, %v499_v25 }
  0xf5   :  { %v214_v23 = vsel %vm213_vm1, %v204_v17, 0.0  ;;  %v191_v27 = vadd.f32 1.0, %v404_v20  ;;  %v203_v35 = vmul.f32 0.5, %v196_v28 }
  0xf6   :  { %215 = vadd.xlane.f32.xlu0 %v214_v23  ;;  %v207_v18 = vmul.f32 %v200_v21, %v507_v32  ;;  %v202_v29 = vmul.f32 0.5, %v195_v22  ;;  %v226_v24 = vsel %vm213_vm1, %v208_v26, 0.0 }
  0xf7   :  { %v198_v30 = vmul.f32 0.5, %v191_v27  ;;  %v210_v37 = vmul.f32 %v203_v35, %v491_v19  ;;  %v354_v35 = vld [vmem:[%s618_s4] ss:$0 sm:$0xff] }
  0xf8   :  { %v223_v31 = vsel %vm213_vm1, %v207_v18, 0.0  ;;  %v209_v33 = vmul.f32 %v202_v29, %v138_v41 }
  0xf9   :  { %224 = vadd.xlane.f32.xlu1 %v223_v31  ;;  %v205_v34 = vmul.f32 %v198_v30, %v513_v40  ;;  %v233_v32 = vsel %vm232_vm2, %v210_v37, 0.0 }
  0xfa   :  { %227 = vadd.xlane.f32.xlu0 %v226_v24  ;;  %v229_v36 = vsel %vm213_vm1, %v209_v33, 0.0  ;;  %v353_v24 = vld [vmem:[%s617_s3] ss:$0 sm:$0xff] }
  0xfb   :  { %v217_v25 = vsel %vm213_vm1, %v205_v34, 0.0 }
  0xfd   :  { %230 = vadd.xlane.f32.xlu1 %v229_v36 }
  0xfe   :  { %218 = vadd.xlane.f32.xlu0 %v217_v25 }
 0x102   :  { %234 = vadd.xlane.f32.xlu0 %v233_v32 }
 0x17d   :  { %v222_v38 = vpop.xlane.xlu1 %221 }
 0x17e   :  { %v239_v39 = vmul.f32 0.03125, %v222_v38 }
 0x17f   :  { %v216_v41 = vpop.xlane.xlu0 %215 }
 0x180   :  { %v538_v42 = vsub.f32 %v206_v10, %v239_v39  ;;  %v237_v40 = vmul.f32 0.03125, %v216_v41 }
 0x182   :  { %v540_v43 = vsub.f32 %v204_v17, %v237_v40  ;;  %v225_v44 = vpop.xlane.xlu1 %224  ;;  %v253_v45 = vmul.f32 %v538_v42, %v538_v42 }
 0x183   :  { %v240_v46 = vmul.f32 0.03125, %v225_v44  ;;  %v228_v47 = vpop.xlane.xlu0 %227 }
 0x184   :  { %v241_v19 = vmul.f32 0.03125, %v228_v47  ;;  %v264_v48 = vsel %vm213_vm1, %v253_v45, 0.0  ;;  %v251_v49 = vmul.f32 %v540_v43, %v540_v43 }
 0x185   :  { %v547_v50 = vsub.f32 %v207_v18, %v240_v46  ;;  %265 = vadd.xlane.f32.xlu1 %v264_v48 }
 0x186   :  { %v549_v51 = vsub.f32 %v208_v26, %v241_v19  ;;  %v231_v52 = vpop.xlane.xlu1 %230  ;;  %v258_v57 = vsel %vm213_vm1, %v251_v49, 0.0 }
 0x187   :  { %v242_v53 = vmul.f32 0.03125, %v231_v52  ;;  %v219_v54 = vpop.xlane.xlu0 %218  ;;  %v254_v55 = vmul.f32 %v547_v50, %v547_v50 }
 0x188   :  { %v238_v56 = vmul.f32 0.03125, %v219_v54  ;;  %v255_v58 = vmul.f32 %v549_v51, %v549_v51 }
 0x189   :  { %v267_v59 = vsel %vm213_vm1, %v254_v55, 0.0  ;;  %259 = vadd.xlane.f32.xlu1 %v258_v57  ;;  %v557_v60 = vsub.f32 %v209_v33, %v242_v53 }
 0x18a   :  { %v559_v61 = vsub.f32 %v205_v34, %v238_v56  ;;  %268 = vadd.xlane.f32.xlu0 %v267_v59  ;;  %v270_v0 = vsel %vm213_vm1, %v255_v58, 0.0 }
 0x18b   :  { %v235_v62 = vpop.xlane.xlu0 %234  ;;  %v256_v4 = vmul.f32 %v557_v60, %v557_v60 }
 0x18c   :  { %v243_v63 = vmul.f32 0.03125, %v235_v62  ;;  %v252_v1 = vmul.f32 %v559_v61, %v559_v61 }
 0x18d   :  { %271 = vadd.xlane.f32.xlu1 %v270_v0  ;;  %v273_v6 = vsel %vm213_vm1, %v256_v4, 0.0 }
 0x18e   :  { %v564_v2 = vsub.f32 %v210_v37, %v243_v63  ;;  %v261_v3 = vsel %vm213_vm1, %v252_v1, 0.0 }
 0x18f   :  { %262 = vadd.xlane.f32.xlu0 %v261_v3 }
 0x190   :  { %v257_v5 = vmul.f32 %v564_v2, %v564_v2 }
 0x192   :  { %v276_v7 = vsel %vm232_vm2, %v257_v5, 0.0 }
 0x193   :  { %274 = vadd.xlane.f32.xlu0 %v273_v6  ;;  %277 = vadd.xlane.f32.xlu1 %v276_v7 }
 0x20e   :  { %v266_v8 = vpop.xlane.xlu1 %265 }
 0x20f   :  { %v281_v9 = vmul.f32 0.03125, %v266_v8 }
 0x211   :  { %v288_v10 = vadd.f32 1e-05, %v281_v9 }
 0x212   :  { %v260_v11 = vpop.xlane.xlu1 %259 }
 0x213   :  { %405 = vrsqrt.f32 %v288_v10  ;;  %v279_v12 = vmul.f32 0.03125, %v260_v11  ;;  %v269_v13 = vpop.xlane.xlu0 %268 }
 0x214   :  { %v282_v14 = vmul.f32 0.03125, %v269_v13 }
 0x215   :  { %v286_v15 = vadd.f32 1e-05, %v279_v12 }
 0x216   :  { %v289_v16 = vadd.f32 1e-05, %v282_v14  ;;  %v272_v17 = vpop.xlane.xlu1 %271 }
 0x217   :  { %407 = vrsqrt.f32 %v286_v15  ;;  %v283_v20 = vmul.f32 0.03125, %v272_v17 }
 0x218   :  { %409 = vrsqrt.f32 %v289_v16  ;;  %v263_v21 = vpop.xlane.xlu0 %262 }
 0x219   :  { %v290_v22 = vadd.f32 1e-05, %v283_v20  ;;  %v280_v23 = vmul.f32 0.03125, %v263_v21 }
 0x21b   :  { %411 = vrsqrt.f32 %v290_v22  ;;  %v287_v26 = vadd.f32 1e-05, %v280_v23 }
 0x21c   :  { %v278_v27 = vpop.xlane.xlu1 %277  ;;  %v275_v28 = vpop.xlane.xlu0 %274 }
 0x21d   :  { %413 = vrsqrt.f32 %v287_v26  ;;  %v285_v18 = vmul.f32 0.03125, %v278_v27  ;;  %v284_v29 = vmul.f32 0.03125, %v275_v28 }
 0x21f   :  { %v292_v30 = vadd.f32 1e-05, %v285_v18  ;;  %v291_v31 = vadd.f32 1e-05, %v284_v29 }
 0x220   :  { %v406_v33 = vpop.eup %405 }
 0x221   :  { %v302_v34 = vmul.f32 %v406_v33, %v538_v42  ;;  %415 = vrsqrt.f32 %v292_v30 }
 0x222   :  { %417 = vrsqrt.f32 %v291_v31 }
 0x223   :  { %v315_v36 = vmul.f32 %v353_v24, %v302_v34 }
 0x224   :  { %v408_v25 = vpop.eup %407 }
 0x225   :  { %v410_v37 = vpop.eup %409  ;;  %v328_v32 = vadd.f32 %v354_v35, %v315_v36  ;;  %v300_v38 = vmul.f32 %v408_v25, %v540_v43 }
 0x226   :  { %v303_v39 = vmul.f32 %v410_v37, %v547_v50 }
 0x227   :  { %335 = vst.msk [vmem:[%s619_s5 + $0x10] sm:$0xff] %vm213_vm1, %v328_v32  ;;  %v313_v41 = vmul.f32 %v353_v24, %v300_v38 }
 0x228   :  { %v412_v42 = vpop.eup %411  ;;  %v316_v40 = vmul.f32 %v353_v24, %v303_v39 }
 0x229   :  { %v326_v44 = vadd.f32 %v354_v35, %v313_v41  ;;  %v304_v45 = vmul.f32 %v412_v42, %v549_v51 }
 0x22a   :  { %v414_v46 = vpop.eup %413  ;;  %v329_v47 = vadd.f32 %v354_v35, %v316_v40 }
 0x22b   :  { %333 = vst.msk [vmem:[%s619_s5] sm:$0xff] %vm213_vm1, %v326_v44  ;;  %v317_v43 = vmul.f32 %v353_v24, %v304_v45  ;;  %v301_v19 = vmul.f32 %v414_v46, %v559_v61 }
 0x22c   :  { %336 = vst.msk [vmem:[%s619_s5 + $0x18] sm:$0xff] %vm213_vm1, %v329_v47 }
 0x22d   :  { %v330_v48 = vadd.f32 %v354_v35, %v317_v43  ;;  %v314_v49 = vmul.f32 %v353_v24, %v301_v19 }
 0x22e   :  { %v416_v50 = vpop.eup %415 }
 0x22f   :  { %v418_v52 = vpop.eup %417  ;;  %337 = vst.msk [vmem:[%s619_s5 + $0x20] sm:$0xff] %vm213_vm1, %v330_v48  ;;  %v327_v51 = vadd.f32 %v354_v35, %v314_v49  ;;  %v306_v53 = vmul.f32 %v416_v50, %v564_v2 }
 0x230   :  { %v305_v54 = vmul.f32 %v418_v52, %v557_v60 }
 0x231   :  { %334 = vst.msk [vmem:[%s619_s5 + $0x8] sm:$0xff] %vm213_vm1, %v327_v51  ;;  %v319_v55 = vmul.f32 %v353_v24, %v306_v53 }
 0x232   :  { %v318_v56 = vmul.f32 %v353_v24, %v305_v54 }
 0x233   :  { %v332_v57 = vadd.f32 %v354_v35, %v319_v55 }
 0x234   :  { %v331_v58 = vadd.f32 %v354_v35, %v318_v56 }
 0x235   :  { %339 = vst.msk [vmem:[%s619_s5 + $0x30] sm:$0x3] %vm232_vm2, %v332_v57 }
 0x236   :  { %338 = vst.msk [vmem:[%s619_s5 + $0x28] sm:$0xff] %vm213_vm1, %v331_v58 }

// kernel: wav2vec2_forward.11
= control target key start
LH: loop header
LB: loop body
LE: loop exit
PB: predicated region body
PF: predicated region fallthrough
CT: control target
= control target key end

     0   :  { %v203_v1 = vmov 0.0   ;;  %vm204_vm0 = vmmov 0   ;;  %vm24_vm1 = vcmask 261120   ;;  %vm30_vm2 = vcmask 253952   ;;  %s274_s0 = inlined_call_operand.vmem [shape: f32[2,25,32], index: 0, kind: input, shape index: {}]   ;;  %s275_s1 = inlined_call_operand.vmem [shape: bf16[32,10], index: 1, kind: input, shape index: {}]   ;;  %s276_s2 = inlined_call_operand.vmem [shape: f32[1,10], index: 2, kind: input, shape index: {}]   ;;  %s277_s3 = inlined_call_operand.hbm [shape: f32[2,10], index: 3, kind: output, shape index: {}]  }
   0x1   :  { %v175_v0 = vld [vmem:[%s275_s1 + $0x8] sm:$0xff]   ;;  %164 = vmatprep.subr.bf16.mxu0 %v203_v1  ;;  %v176_v2 = vld [vmem:[%s275_s1] sm:$0xff]   ;;  %168 = vmatprep.mubr.msk.bf16.mxu0 %vm204_vm0, %v203_v1  ;;  %v18_v5 = vld [vmem:[%s274_s0 + $0x10] sm:$0xff] }
   0x2   :  { %165 = vmatpush3.bf16.msra.mxu0 %v175_v0  ;;  %v16_v3 = vld [vmem:[%s274_s0] sm:$0xff]  ;;  %v17_v4 = vld [vmem:[%s274_s0 + $0x8] sm:$0xff]  ;;  %v19_v6 = vld [vmem:[%s274_s0 + $0x18] sm:$0x1]  ;;  %v28_v14 = vsel %vm24_vm1, %v18_v5, 0.0 }
   0x3   :  { %166 = vmatprep.subr.bf16.mxu0 %v203_v1  ;;  %v20_v7 = vld [vmem:[%s274_s0 + $0x20] sm:$0xff]  ;;  %v21_v8 = vld [vmem:[%s274_s0 + $0x28] sm:$0xff]  ;;  %v25_v9 = vsel %vm24_vm1, %v16_v3, 0.0  ;;  %v26_v10 = vsel %vm24_vm1, %v17_v4, 0.0  ;;  %v22_v11 = vld [vmem:[%s274_s0 + $0x30] sm:$0xff]  ;;  %v31_v16 = vsel %vm30_vm2, %v19_v6, 0.0 }
   0x4   :  { %v23_v12 = vld [vmem:[%s274_s0 + $0x38] sm:$0x1]  ;;  %v27_v13 = vadd.f32 %v26_v10, %v25_v9  ;;  %v39_v15 = vsel %vm24_vm1, %v20_v7, 0.0  ;;  %v40_v17 = vsel %vm24_vm1, %v21_v8, 0.0  ;;  %v42_v18 = vsel %vm24_vm1, %v22_v11, 0.0 }
   0x5   :  { %v41_v20 = vadd.f32 %v40_v17, %v39_v15 }
   0x6   :  { %167 = vmatpush3.bf16.msra.mxu0 %v176_v2  ;;  %v29_v19 = vadd.f32 %v28_v14, %v27_v13 }
   0x7   :  { %8 = vsyncpa [#allocation3], 0  ;;  %v44_v21 = vsel %vm30_vm2, %v23_v12, 0.0  ;;  %v43_v23 = vadd.f32 %v42_v18, %v41_v20  ;;  %vm72_vm3 = vcmask 1041409   ;;  %v157_v45 = vld [vmem:[%s276_s2] ss:$0 sm:$0xff] }
   0x8   :  { %v32_v22 = vadd.f32 %v31_v16, %v29_v19  ;;  %vm130_vm4 = vcmask 74752   ;;  %s205_s2 = smov [#allocation2]  }
   0x9   :  { %v45_v25 = vadd.f32 %v44_v21, %v43_v23  ;;  %s149_s5 = sshll.u32 %s205_s2, 4  ;;  %s150_s5 = int_to_ptr.vmem [resolvable:$true] %s149_s5 }
   0xa   :  { %v33_v24 = vrot.slane %v32_v22, 4  ;;  %s181_s6 = scalar_lea.vmem %s150_s5, 32  ;;  %p186_p1 = scmp.lt.s32.totalorder %s150_s5, %s150_s5 }
   0xb   :  { %v46_v27 = vrot.slane %v45_v25, 4  ;;  %p182_p0 = scmp.ne.s32.totalorder %s150_s5, %s181_s6  ;;  %p187_p2 = scmp.lt.s32.totalorder %s181_s6, %s181_s6 }
   0xc   :  { %v34_v26 = vadd.f32 %v33_v24, %v32_v22 }
   0xd   :  { %v47_v29 = vadd.f32 %v46_v27, %v45_v25  ;;  %p188_p3 = por %p187_p2, %p186_p1 }
   0xe   :  { %v35_v28 = vrot.slane %v34_v26, 2 }
   0xf   :  { %v48_v31 = vrot.slane %v47_v29, 2  ;;  %p189_p4 = pnand %p188_p3, %p182_p0 }
  0x10   :  { %v36_v30 = vadd.f32 %v35_v28, %v34_v26 }
  0x11   :  { %v49_v33 = vadd.f32 %v48_v31, %v47_v29 }
  0x12   :  { %v37_v32 = vrot.slane %v36_v30, 1 }
  0x13   :  { %v50_v35 = vrot.slane %v49_v33, 1 }
  0x14   :  { %v38_v34 = vadd.f32 %v37_v32, %v36_v30 }
  0x15   :  { %v51_v36 = vadd.f32 %v50_v35, %v49_v33 }
  0x16   :  { %v53_v37 = vmul.f32 0.04, %v38_v34 }
  0x17   :  { %v54_v38 = vmul.f32 0.04, %v51_v36 }
  0x18   :  { %v55_v39 = vpack.c.bf16 %v53_v37, %v53_v37 }
  0x19   :  { %v56_v40 = vpack.c.bf16 %v54_v38, %v54_v38 }
  0x1a   :  { %v70_v41 = vunpack.c.l.b16 %v55_v39 }
  0x1b   :  { %v71_v42 = vunpack.c.l.b16 %v56_v40 }
  0x1d   :  { %v73_v43 = vsel %vm72_vm3, %v71_v42, %v70_v41 }
  0x1e   :  { %v74_v44 = vpack.c.b16 %v73_v43, %v73_v43 }
  0x20   :  { %169 = vmatmul.mubr.msk.bf16.vlgmr.msra.gmra.mxu0 %vm24_vm1, %v74_v44 }
  0xe0   :  { %v124_v46 = vpop.f32.mrf.mxu0 }
  0xe1   :  { %v125_v47 = vadd.f32 %v157_v45, %v124_v46 }
  0xe2   :  { %v170_v48 = vpop.f32.mrf.mxu0 }
  0xe3   :  { %v131_v49 = vsel %vm130_vm4, %v125_v47, -inf }
  0xe4   :  { %132 = vmax.xlane.f32.xlu0 %v131_v49  ;;  %v127_v50 = vpop.f32.mrf.mxu0 }
  0xe6   :  { %v171_v51 = vpop.f32.mrf.mxu0 }
 0x16d   :  { %v133_v52 = vpop.xlane.xlu0 %132 }
 0x16e   :  { %v134_v53 = vsub.f32 %v125_v47, %v133_v52 }
 0x170   :  { %v135_v54 = vmul.f32 1.442695, %v134_v53 }
 0x172   :  { %177 = vpow2.f32 %v135_v54 }
 0x17f   :  { %v178_v55 = vpop.eup %177 }
 0x180   :  { %v137_v56 = vsel %vm130_vm4, %v178_v55, 0.0 }
 0x181   :  { %138 = vadd.xlane.f32.xlu0 %v137_v56 }
 0x20a   :  { %v139_v57 = vpop.xlane.xlu0 %138 }
 0x20b   :  { %179 = vrcp.f32 %v139_v57 }
 0x218   :  { %v180_v58 = vpop.eup %179 }
 0x219   :  { %v141_v59 = vmul.f32 %v180_v58, %v178_v55 }
 0x21b   :  { %142 = vst.msk [vmem:[#allocation2] sm:$0x3] %vm130_vm4, %v141_v59 }
 0x21c   :  { %192 = shalt.err (!%p189_p4)
}
 0x21d   :  { %152 = dma.vmem_to_hbm [thread:$0]  %s150_s5, 32, %s277_s3, [#allocation3]  }
 0x21e   :  { %201 = dma.done.wait [#allocation3], 32  }
 0x21f   :  { %202 = vsyncadd [#allocation3], 4294967264 }
 0x220   :  { %156 = vsyncpa [#allocation3], 1 }

// kernel: wav2vec2_forward.9
= control target key start
LH: loop header
LB: loop body
LE: loop exit
PB: predicated region body
PF: predicated region fallthrough
CT: control target
= control target key end

     0   :  { %v65_v0 = vlaneseq  ;;  %v11840_v2 = vmov 1966171168   ;;  %vm776_vm0 = vcmask 261120   ;;  %vm1520_vm1 = vcmask 64512   ;;  %s11842_s28 = smov 64   ;;  %s11843_s29 = smov 120   ;;  %s15691_s1 = inlined_call_operand.vmem [shape: bf16[32,96], index: 1, kind: input, shape index: {}]   ;;  %s15692_s0 = inlined_call_operand.vmem [shape: f32[2,25,32], index: 0, kind: input, shape index: {}]   ;;  %s15693_s2 = inlined_call_operand.vmem [shape: f32[1,96], index: 2, kind: input, shape index: {}]   ;;  %s15694_s3 = inlined_call_operand.vmem [shape: bf16[32,32], index: 3, kind: input, shape index: {}]   ;;  %s15695_s4 = inlined_call_operand.vmem [shape: f32[1,32], index: 4, kind: input, shape index: {}]   ;;  %s15696_s7 = inlined_call_operand.vmem [shape: bf16[32,128], index: 7, kind: input, shape index: {}]   ;;  %s15697_s5 = inlined_call_operand.vmem [shape: f32[1,32], index: 5, kind: input, shape index: {}]   ;;  %s15698_s6 = inlined_call_operand.vmem [shape: f32[1,32], index: 6, kind: input, shape index: {}]   ;;  %s15699_s9 = inlined_call_operand.vmem [shape: bf16[128,32], index: 9, kind: input, shape index: {}]   ;;  %s15700_s8 = inlined_call_operand.vmem [shape: f32[1,128], index: 8, kind: input, shape index: {}]   ;;  %s15701_s10 = inlined_call_operand.vmem [shape: f32[1,32], index: 10, kind: input, shape index: {}]   ;;  %s15702_s11 = inlined_call_operand.vmem [shape: f32[1,32], index: 11, kind: input, shape index: {}]   ;;  %s15703_s12 = inlined_call_operand.vmem [shape: f32[1,32], index: 12, kind: input, shape index: {}]   ;;  %s15704_s13 = inlined_call_operand.vmem [shape: f32[2,25,32], index: 13, kind: output, shape index: {}]  }
   0x1   :  { %v11652_v1 = vld [vmem:[%s15691_s1 + $0x8] sm:$0xff]   ;;  %v63_v3 = vunpack.c.l.s4 %v11840_v2  ;;  %v11653_v4 = vld [vmem:[%s15691_s1] sm:$0xff]   ;;  %v47_v9 = vld [vmem:[%s15692_s0 + $0x10] sm:$0xff]  ;;  %vm1649_vm2 = vcmask 203776   ;;  %vm1659_vm3 = vcmask 196608   ;;  %s11844_s30 = smov 88  }
   0x2   :  { %v11929_v5 = vshrl.u32 %v65_v0, 7  ;;  %11403 = vmatprep.subr.bf16.mxu0 %v11652_v1  ;;  %v45_v6 = vld [vmem:[%s15692_s0] sm:$0xff]  ;;  %v46_v7 = vld [vmem:[%s15692_s0 + $0x8] sm:$0xff]  ;;  %v159_v13 = vcombine.high %v47_v9, %v47_v9  ;;  %v11957_v17 = vld [vmem:[%s15692_s0 + $0x30] sm:$0xff]  ;;  %vm1754_vm4 = vcmask 1043456   ;;  %vm1755_vm5 = vcmask 1044480  }
   0x3   :  { %v64_v8 = vunpack.c.0.s8 %v63_v3  ;;  %11404 = vmatpush3.bf16.msra.mxu0 %v11652_v1  ;;  %v61_v10 = vcombine.high %v45_v6, %v45_v6  ;;  %v110_v11 = vcombine.high %v46_v7, %v46_v7  ;;  %v49_v12 = vld [vmem:[%s15692_s0 + $0x20] sm:$0xff]  ;;  %v11946_v14 = vld [vmem:[%s15692_s0 + $0x28] sm:$0xff]  ;;  %v11181_v16 = vld.sshfl [vmem:[%s15692_s0 + $0x18] sm:$0x1 pattern:$0x75316420]  ;;  %v320_v20 = vcombine.high %v11957_v17, %v11957_v17 }
   0x4   :  { %15918 = vst [vmem:[#allocation2_spill] sm:$0xff] %v11929_v5  ;;  %11405 = vmatprep.subr.bf16.mxu0 %v11653_v4  ;;  %v222_v18 = vcombine.high %v49_v12, %v49_v12  ;;  %v271_v19 = vcombine.high %v11946_v14, %v11946_v14  ;;  %s11846_s14 = smov 56   ;;  %s11847_s15 = smov 80   ;;  %vm6694_vm6 = vcmask 254976   ;;  %vm11171_vm7 = vcmask 253952  }
   0x5   :  { %v11949_v15 = vsub.s32 %v64_v8, %v11929_v5  ;;  %s11848_s16 = smov 112   ;;  %s11849_s20 = smov 48  }
   0x6   :  { %s11850_s21 = smov 72   ;;  %s11851_s22 = smov 104  }
   0x7   :  { %v68_v21 = vrot.slane %v45_v6, %v11949_v15  ;;  %v75_v22 = vrot.slane %v61_v10, %v11949_v15  ;;  %v117_v23 = vrot.slane %v46_v7, %v11949_v15  ;;  %v124_v24 = vrot.slane %v110_v11, %v11949_v15  ;;  %11406 = vmatpush3.bf16.msra.mxu0 %v11653_v4  ;;  %s11852_s25 = smov 40  }
   0x8   :  { %v166_v25 = vrot.slane %v47_v9, %v11949_v15  ;;  %v173_v26 = vrot.slane %v159_v13, %v11949_v15  ;;  %v11970_v27 = vrot.slane %v11181_v16, %v11949_v15  ;;  %v229_v28 = vrot.slane %v49_v12, %v11949_v15 }
   0x9   :  { %v76_v29 = vcombine.high %v68_v21, %v68_v21  ;;  %v77_v30 = vcombine.high %v75_v22, %v75_v22  ;;  %v11974_v31 = vrot.slane %v68_v21, %v11949_v15  ;;  %v11977_v32 = vrot.slane %v75_v22, %v11949_v15 }
   0xa   :  { %15919 = vst [vmem:[#allocation3_spill] sm:$0xff] %v11970_v27  ;;  %v125_v33 = vcombine.high %v117_v23, %v117_v23  ;;  %v126_v34 = vcombine.high %v124_v24, %v124_v24  ;;  %v11980_v35 = vrot.slane %v117_v23, %v11949_v15  ;;  %v11983_v36 = vrot.slane %v124_v24, %v11949_v15 }
   0xb   :  { %15920 = vst [vmem:[#allocation4_spill] sm:$0xff] %v11974_v31  ;;  %15921 = vst [vmem:[#allocation5_spill] sm:$0xff] %v11977_v32  ;;  %v11986_v37 = vrot.slane %v76_v29, %v11949_v15  ;;  %v11989_v38 = vrot.slane %v77_v30, %v11949_v15  ;;  %v174_v39 = vcombine.high %v166_v25, %v166_v25 }
   0xc   :  { %15922 = vst [vmem:[#allocation6_spill] sm:$0xff] %v11980_v35  ;;  %15923 = vst [vmem:[#allocation7_spill] sm:$0xff] %v11983_v36  ;;  %v175_v40 = vcombine.high %v173_v26, %v173_v26  ;;  %v11992_v41 = vrot.slane %v125_v33, %v11949_v15  ;;  %v11995_v42 = vrot.slane %v126_v34, %v11949_v15 }
   0xd   :  { %15924 = vst [vmem:[#allocation8_spill] sm:$0xff] %v11986_v37  ;;  %15925 = vst [vmem:[#allocation9_spill] sm:$0xff] %v11989_v38  ;;  %v11998_v43 = vrot.slane %v166_v25, %v11949_v15  ;;  %v12001_v44 = vrot.slane %v173_v26, %v11949_v15  ;;  %v433_v45 = vcombine.low %v11974_v31, %v11986_v37 }
   0xe   :  { %15926 = vst [vmem:[#allocation10_spill] sm:$0xff] %v11992_v41  ;;  %15927 = vst [vmem:[#allocation11_spill] sm:$0xff] %v11995_v42  ;;  %v11183_v46 = vcombine.high %v11974_v31, %v11986_v37  ;;  %v435_v47 = vcombine.low %v11977_v32, %v11989_v38  ;;  %v11184_v48 = vcombine.high %v11977_v32, %v11989_v38 }
   0xf   :  { %15928 = vst [vmem:[#allocation12_spill] sm:$0xff] %v11998_v43  ;;  %15929 = vst [vmem:[#allocation13_spill] sm:$0xff] %v12001_v44  ;;  %v482_v49 = vcombine.low %v11980_v35, %v11992_v41  ;;  %v11185_v50 = vcombine.high %v11980_v35, %v11992_v41  ;;  %v484_v51 = vcombine.low %v11983_v36, %v11995_v42 }
  0x10   :  { %v11186_v52 = vcombine.high %v11983_v36, %v11995_v42  ;;  %v443_v53 = vrot.slane %v433_v45, %v11949_v15  ;;  %v450_v54 = vrot.slane %v11183_v46, %v11949_v15  ;;  %v457_v55 = vrot.slane %v435_v47, %v11949_v15 }
  0x11   :  { %v464_v56 = vrot.slane %v11184_v48, %v11949_v15  ;;  %v492_v57 = vrot.slane %v482_v49, %v11949_v15  ;;  %v499_v58 = vrot.slane %v11185_v50, %v11949_v15  ;;  %v506_v59 = vrot.slane %v484_v51, %v11949_v15 }
  0x12   :  { %v513_v60 = vrot.slane %v11186_v52, %v11949_v15  ;;  %v465_v61 = vcombine.low %v443_v53, %v450_v54  ;;  %v12028_v63 = vrot.slane %v174_v39, %v11949_v15  ;;  %v12031_v0 = vrot.slane %v175_v40, %v11949_v15 }
  0x13   :  { %v466_v62 = vcombine.low %v457_v55, %v464_v56  ;;  %v514_v1 = vcombine.low %v492_v57, %v499_v58  ;;  %v236_v3 = vrot.slane %v222_v18, %v11949_v15  ;;  %v237_v4 = vcombine.high %v229_v28, %v229_v28 }
  0x14   :  { %15930 = vst [vmem:[#allocation14_spill] sm:$0xff] %v12028_v63  ;;  %15931 = vst [vmem:[#allocation15_spill] sm:$0xff] %v12031_v0  ;;  %v515_v2 = vcombine.low %v506_v59, %v513_v60  ;;  %v473_v6 = vrot.slane %v465_v61, %v11949_v15  ;;  %v12037_v8 = vrot.slane %v229_v28, %v11949_v15 }
  0x15   :  { %v480_v7 = vrot.slane %v466_v62, %v11949_v15  ;;  %v531_v9 = vcombine.low %v11998_v43, %v12028_v63  ;;  %v522_v10 = vrot.slane %v514_v1, %v11949_v15  ;;  %v238_v12 = vcombine.high %v236_v3, %v236_v3 }
  0x16   :  { %15932 = vst [vmem:[#allocation16_spill] sm:$0xff] %v12037_v8  ;;  %v529_v11 = vrot.slane %v515_v2, %v11949_v15  ;;  %v12044_v13 = vrot.slane %v236_v3, %v11949_v15  ;;  %v12047_v18 = vrot.slane %v237_v4, %v11949_v15  ;;  %v12051_v21 = vcombine.high %v12037_v8, %v12037_v8 }
  0x17   :  { %v481_v16 = vcombine.low %v473_v6, %v480_v7  ;;  %v11187_v22 = vcombine.high %v11998_v43, %v12028_v63  ;;  %v12056_v24 = vrot.slane %v238_v12, %v11949_v15  ;;  %v533_v26 = vcombine.low %v12001_v44, %v12031_v0 }
  0x18   :  { %15933 = vst [vmem:[#allocation17_spill] sm:$0xff] %v12044_v13  ;;  %15934 = vst [vmem:[#allocation18_spill] sm:$0xff] %v12047_v18  ;;  %v530_v23 = vcombine.low %v522_v10, %v529_v11  ;;  %v12060_v25 = vcombine.high %v12044_v13, %v12044_v13  ;;  %v12066_v28 = vcombine.high %v12047_v18, %v12047_v18 }
  0x19   :  { %15935 = vst [vmem:[#allocation19_spill] sm:$0xff] %v12051_v21  ;;  %15936 = vst [vmem:[#allocation20_spill] sm:$0xff] %v12056_v24  ;;  %v11188_v29 = vcombine.high %v12001_v44, %v12031_v0  ;;  %v541_v30 = vrot.slane %v531_v9, %v11949_v15  ;;  %v548_v33 = vrot.slane %v11187_v22, %v11949_v15 }
  0x1a   :  { %15937 = vst [vmem:[#allocation21_spill] sm:$0xff] %v12060_v25  ;;  %15938 = vst [vmem:[#allocation22_spill] sm:$0xff] %v12066_v28  ;;  %v749_v34 = vpack.c.bf16 %v530_v23, %v481_v16  ;;  %v555_v39 = vrot.slane %v533_v26, %v11949_v15  ;;  %v580_v40 = vcombine.low %v11970_v27, %v12037_v8 }
  0x1b   :  { %v581_v45 = vcombine.low %v12047_v18, %v12051_v21  ;;  %v562_v46 = vrot.slane %v11188_v29, %v11949_v15  ;;  %v563_v47 = vcombine.low %v541_v30, %v548_v33  ;;  %v582_v48 = vcombine.low %v12066_v28, %v12044_v13 }
  0x1c   :  { %v583_v49 = vcombine.low %v12056_v24, %v12060_v25  ;;  %11407 = vmatprep.mubr.msk.bf16.mxu0 %vm776_vm0, %v749_v34  ;;  %v590_v50 = vrot.slane %v580_v40, %v11949_v15  ;;  %v12087_v52 = vcombine.high %v12056_v24, %v12056_v24  ;;  %v278_v53 = vrot.slane %v11946_v14, %v11949_v15 }
  0x1d   :  { %v597_v51 = vrot.slane %v581_v45, %v11949_v15  ;;  %v564_v54 = vcombine.low %v555_v39, %v562_v46  ;;  %v571_v55 = vrot.slane %v563_v47, %v11949_v15  ;;  %v604_v56 = vrot.slane %v582_v48, %v11949_v15 }
  0x1e   :  { %15939 = vst [vmem:[#allocation23_spill] sm:$0xff] %v12087_v52  ;;  %v611_v57 = vrot.slane %v583_v49, %v11949_v15  ;;  %v285_v59 = vrot.slane %v271_v19, %v11949_v15  ;;  %v286_v60 = vcombine.high %v278_v53, %v278_v53  ;;  %v12099_v61 = vrot.slane %v278_v53, %v11949_v15 }
  0x1f   :  { %v612_v58 = vcombine.low %v590_v50, %v597_v51  ;;  %v578_v62 = vrot.slane %v564_v54, %v11949_v15  ;;  %v327_v2 = vrot.slane %v11957_v17, %v11949_v15  ;;  %v334_v3 = vrot.slane %v320_v20, %v11949_v15 }
  0x20   :  { %15940 = vst [vmem:[#allocation24_spill] sm:$0xff] %v12099_v61  ;;  %v613_v1 = vcombine.low %v604_v56, %v611_v57  ;;  %v287_v6 = vcombine.high %v285_v59, %v285_v59  ;;  %v12110_v14 = vrot.slane %v285_v59, %v11949_v15  ;;  %v12113_v19 = vrot.slane %v286_v60, %v11949_v15  ;;  %v11182_v57 = vld.sshfl [vmem:[%s15692_s0 + $0x38] sm:$0x1 pattern:$0x75316420] }
  0x21   :  { %v620_v4 = vrot.slane %v612_v58, %v11949_v15  ;;  %v579_v7 = vcombine.low %v571_v55, %v578_v62  ;;  %v12118_v10 = vcombine.high %v12099_v61, %v12099_v61  ;;  %v335_v11 = vcombine.high %v327_v2, %v327_v2 }
  0x22   :  { %15941 = vst [vmem:[#allocation25_spill] sm:$0xff] %v12110_v14  ;;  %15942 = vst [vmem:[#allocation26_spill] sm:$0xff] %v12113_v19  ;;  %v627_v9 = vrot.slane %v613_v1, %v11949_v15  ;;  %v12121_v17 = vrot.slane %v287_v6, %v11949_v15  ;;  %v12125_v20 = vcombine.high %v12110_v14, %v12110_v14 }
  0x23   :  { %15943 = vst [vmem:[#allocation27_spill] sm:$0xff] %v12118_v10  ;;  %v12129_v12 = vcombine.high %v12113_v19, %v12113_v19  ;;  %v336_v16 = vcombine.high %v334_v3, %v334_v3  ;;  %v12132_v23 = vrot.slane %v327_v2, %v11949_v15  ;;  %v12135_v26 = vrot.slane %v334_v3, %v11949_v15 }
  0x24   :  { %15944 = vst [vmem:[#allocation28_spill] sm:$0xff] %v12121_v17  ;;  %15945 = vst [vmem:[#allocation29_spill] sm:$0xff] %v12125_v20  ;;  %v628_v22 = vcombine.low %v620_v4, %v627_v9  ;;  %v12138_v29 = vrot.slane %v335_v11, %v11949_v15  ;;  %v12142_v30 = vcombine.high %v12121_v17, %v12121_v17 }
  0x25   :  { %15946 = vst [vmem:[#allocation30_spill] sm:$0xff] %v12129_v12  ;;  %15947 = vst [vmem:[#allocation31_spill] sm:$0xff] %v12132_v23  ;;  %v12145_v33 = vrot.slane %v336_v16, %v11949_v15  ;;  %v629_v34 = vcombine.low %v12087_v52, %v12099_v61  ;;  %v630_v39 = vcombine.low %v12113_v19, %v12118_v10 }
  0x26   :  { %15948 = vst [vmem:[#allocation32_spill] sm:$0xff] %v12135_v26  ;;  %15949 = vst [vmem:[#allocation33_spill] sm:$0xff] %v12138_v29  ;;  %v750_v40 = vpack.c.bf16 %v628_v22, %v579_v7  ;;  %v12153_v45 = vcombine.high %v12132_v23, %v12132_v23  ;;  %v12157_v46 = vcombine.high %v12135_v26, %v12135_v26 }
  0x27   :  { %15950 = vst [vmem:[#allocation34_spill] sm:$0xff] %v12142_v30  ;;  %15951 = vst [vmem:[#allocation35_spill] sm:$0xff] %v12145_v33  ;;  %v12161_v47 = vcombine.high %v12138_v29, %v12138_v29  ;;  %v631_v48 = vcombine.low %v12129_v12, %v12110_v14  ;;  %v632_v49 = vcombine.low %v12121_v17, %v12125_v20 }
  0x28   :  { %15952 = vst [vmem:[#allocation36_spill] sm:$0xff] %v12153_v45  ;;  %15953 = vst [vmem:[#allocation37_spill] sm:$0xff] %v12157_v46  ;;  %v639_v50 = vrot.slane %v629_v34, %v11949_v15  ;;  %v646_v51 = vrot.slane %v630_v39, %v11949_v15  ;;  %11408 = vmatmul.mubr.msk.bf16.vlgmr.msra.gmra.mxu0 %vm776_vm0, %v750_v40  ;;  %v678_v53 = vcombine.low %v12142_v30, %v12132_v23 }
  0x29   :  { %15954 = vst [vmem:[#allocation38_spill] sm:$0xff] %v12161_v47  ;;  %v679_v54 = vcombine.low %v12138_v29, %v12153_v45  ;;  %v680_v55 = vcombine.low %v12161_v47, %v12135_v26  ;;  %v681_v56 = vcombine.low %v12145_v33, %v12157_v46  ;;  %v653_v58 = vrot.slane %v631_v48, %v11949_v15 }
  0x2a   :  { %v660_v59 = vrot.slane %v632_v49, %v11949_v15  ;;  %v661_v60 = vcombine.low %v639_v50, %v646_v51  ;;  %v12185_v62 = vcombine.high %v12145_v33, %v12145_v33  ;;  %v688_v1 = vrot.slane %v678_v53, %v11949_v15 }
  0x2b   :  { %v695_v2 = vrot.slane %v679_v54, %v11949_v15  ;;  %v702_v3 = vrot.slane %v680_v55, %v11949_v15  ;;  %v709_v4 = vrot.slane %v681_v56, %v11949_v15  ;;  %v12193_v9 = vrot.slane %v11182_v57, %v11949_v15  ;;  %v12207_v55 = vld [vmem:[%s15693_s2] ss:$0 sm:$0xff]  ;;  %s11841_s2 = smov 96  }
  0x2c   :  { %15955 = vst [vmem:[#allocation39_spill] sm:$0xff] %v12185_v62  ;;  %v662_v6 = vcombine.low %v653_v58, %v660_v59  ;;  %v669_v7 = vrot.slane %v661_v60, %v11949_v15 }
  0x2d   :  { %15956 = vst [vmem:[#allocation40_spill] sm:$0xff] %v12193_v9  ;;  %v710_v11 = vcombine.low %v688_v1, %v695_v2  ;;  %v711_v16 = vcombine.low %v702_v3, %v709_v4  ;;  %v727_v34 = vcombine.low %v12185_v62, %v12193_v9 }
  0x2e   :  { %v676_v22 = vrot.slane %v662_v6, %v11949_v15 }
  0x2f   :  { %v718_v39 = vrot.slane %v710_v11, %v11949_v15  ;;  %v725_v40 = vrot.slane %v711_v16, %v11949_v15  ;;  %v734_v49 = vrot.slane %v727_v34, %v11949_v15 }
  0x30   :  { %v677_v48 = vcombine.low %v669_v7, %v676_v22 }
  0x31   :  { %v726_v50 = vcombine.low %v718_v39, %v725_v40  ;;  %v741_v51 = vrot.slane %v734_v49, %v11949_v15 }
  0x33   :  { %v751_v53 = vpack.c.bf16 %v726_v50, %v677_v48  ;;  %v752_v54 = vpack.c.bf16 %v741_v51, %v741_v51 }
  0x35   :  { %11411 = vmatprep.mubr.msk.bf16.mxu0 %vm776_vm0, %v751_v53 }
  0x36   :  { %11412 = vmatmul.mubr.msk.bf16.gmra.mxu0 %vm776_vm0, %v752_v54 }
  0xe8   :  { %v11409_v56 = vpop.f32.mrf.mxu0 }
  0xe9   :  { %v832_v57 = vadd.f32 %v11409_v56, %v12207_v55 }
  0xea   :  { %v823_v58 = vpop.f32.mrf.mxu0 }
  0xeb   :  { %v958_v59 = vcombine.high %v832_v57, %v832_v57  ;;  %v965_v60 = vrot.slane %v832_v57, %v11949_v15  ;;  %v824_v1 = vadd.f32 %v12207_v55, %v823_v58 }
  0xec   :  { %v11410_v2 = vpop.f32.mrf.mxu0 }
  0xed   :  { %v972_v3 = vrot.slane %v958_v59, %v11949_v15  ;;  %v973_v4 = vcombine.high %v965_v60, %v965_v60  ;;  %v860_v6 = vcombine.high %v824_v1, %v824_v1  ;;  %v867_v7 = vrot.slane %v824_v1, %v11949_v15 }
  0xee   :  { %v835_v11 = vadd.f32 %v11410_v2, %v12207_v55  ;;  %v981_v22 = vrot.slane %v965_v60, %v11949_v15  ;;  %v826_v54 = vpop.f32.mrf.mxu0 }
  0xef   :  { %v974_v16 = vcombine.high %v972_v3, %v972_v3  ;;  %v995_v34 = vrot.slane %v973_v4, %v11949_v15  ;;  %v874_v39 = vrot.slane %v860_v6, %v11949_v15  ;;  %v988_v40 = vrot.slane %v972_v3, %v11949_v15 }
  0xf0   :  { %v875_v48 = vcombine.high %v867_v7, %v867_v7  ;;  %v1007_v57 = vcombine.high %v835_v11, %v835_v11  ;;  %v1014_v58 = vrot.slane %v835_v11, %v11949_v15  ;;  %v883_v3 = vrot.slane %v867_v7, %v11949_v15 }
  0xf1   :  { %v1002_v49 = vrot.slane %v974_v16, %v11949_v15  ;;  %v1278_v50 = vcombine.low %v981_v22, %v995_v34  ;;  %v11200_v51 = vcombine.high %v981_v22, %v995_v34  ;;  %v876_v53 = vcombine.high %v874_v39, %v874_v39 }
  0xf2   :  { %v897_v56 = vrot.slane %v875_v48, %v11949_v15  ;;  %v1021_v48 = vrot.slane %v1007_v57, %v11949_v15  ;;  %v1030_v11 = vrot.slane %v1014_v58, %v11949_v15  ;;  %v1022_v46 = vcombine.high %v1014_v58, %v1014_v58 }
  0xf3   :  { %v1280_v59 = vcombine.low %v988_v40, %v1002_v49  ;;  %v11201_v60 = vcombine.high %v988_v40, %v1002_v49  ;;  %v1288_v1 = vrot.slane %v1278_v50, %v11949_v15  ;;  %v1295_v2 = vrot.slane %v11200_v51, %v11949_v15 }
  0xf4   :  { %v904_v22 = vrot.slane %v876_v53, %v11949_v15  ;;  %v890_v40 = vrot.slane %v874_v39, %v11949_v15  ;;  %v1180_v49 = vcombine.low %v883_v3, %v897_v56  ;;  %v11196_v50 = vcombine.high %v883_v3, %v897_v56 }
  0xf5   :  { %v1302_v4 = vrot.slane %v1280_v59, %v11949_v15  ;;  %v1309_v6 = vrot.slane %v11201_v60, %v11949_v15  ;;  %v1310_v16 = vcombine.low %v1288_v1, %v1295_v2  ;;  %v1023_v53 = vcombine.high %v1021_v48, %v1021_v48 }
  0xf6   :  { %v11413_v34 = vpop.f32.mrf.mxu0  ;;  %v1182_v59 = vcombine.low %v890_v40, %v904_v22  ;;  %v11197_v9 = vcombine.high %v890_v40, %v904_v22  ;;  %v1333_v2 = vrot.slane %v1030_v11, %v11949_v15  ;;  %v827_v57 = vadd.f32 %v12207_v55, %v826_v54 }
  0xf7   :  { %v1311_v5 = vcombine.low %v1302_v4, %v1309_v6  ;;  %v1318_v7 = vrot.slane %v1310_v16, %v11949_v15  ;;  %v1190_v4 = vrot.slane %v1180_v49, %v11949_v15  ;;  %v1197_v39 = vrot.slane %v11196_v50, %v11949_v15 }
  0xf8   :  { %v839_v51 = vpop.f32.mrf.mxu0  ;;  %v1037_v56 = vrot.slane %v1021_v48, %v11949_v15  ;;  %v1044_v58 = vrot.slane %v1022_v46, %v11949_v15  ;;  %v1340_v6 = vrot.slane %v1333_v2, %v11949_v15  ;;  %v909_v16 = vcombine.high %v827_v57, %v827_v57 }
  0xf9   :  { %v1325_v60 = vrot.slane %v1311_v5, %v11949_v15  ;;  %v916_v5 = vrot.slane %v827_v57, %v11949_v15  ;;  %v1204_v22 = vrot.slane %v1182_v59, %v11949_v15  ;;  %v1211_v40 = vrot.slane %v11197_v9, %v11949_v15 }
  0xfa   :  { %v11414_v1 = vpop.f32.mrf.mxu0  ;;  %v848_v54 = vadd.f32 %v11413_v34, %v12207_v55  ;;  %v840_v49 = vadd.f32 %v12207_v55, %v839_v51  ;;  %v923_v48 = vrot.slane %v909_v16, %v11949_v15  ;;  %v1051_v46 = vrot.slane %v1023_v53, %v11949_v15 }
  0xfb   :  { %v1326_v3 = vcombine.low %v1318_v7, %v1325_v60  ;;  %v924_v50 = vcombine.high %v916_v5, %v916_v5  ;;  %v1212_v7 = vcombine.low %v1190_v4, %v1197_v39  ;;  %v1052_v60 = vcombine.high %v1030_v11, %v1030_v11 }
  0xfc   :  { %v1053_v2 = vcombine.high %v1037_v56, %v1037_v56  ;;  %v925_v25 = vcombine.high %v923_v48, %v923_v48  ;;  %v932_v57 = vrot.slane %v916_v5, %v11949_v15  ;;  %v1056_v9 = vcombine.high %v840_v49, %v840_v49 }
  0xfd   :  { %v12245_v1 = vpack.c.bf16 %v1340_v6, %v1326_v3  ;;  %v946_v59 = vrot.slane %v924_v50, %v11949_v15  ;;  %v1213_v34 = vcombine.low %v1204_v22, %v1211_v40  ;;  %v1054_v51 = vcombine.high %v1044_v58, %v1044_v58 }
  0xfe   :  { %v939_v3 = vrot.slane %v923_v48, %v11949_v15  ;;  %v1063_v4 = vrot.slane %v840_v49, %v11949_v15  ;;  %v953_v53 = vrot.slane %v925_v25, %v11949_v15  ;;  %v1070_v6 = vrot.slane %v1056_v9, %v11949_v15 }
  0xff   :  { %1518 = vrot.lane.b32.xlu0 %v12245_v1, %s11841_s2  ;;  %v1229_v11 = vcombine.low %v932_v57, %v946_v59  ;;  %v11198_v39 = vcombine.high %v932_v57, %v946_v59  ;;  %v12257_v16 = vcombine.low %v1044_v58, %v1052_v60  ;;  %v1055_v5 = vcombine.high %v1051_v46, %v1051_v46 }
 0x100   :  { %v1071_v50 = vcombine.high %v1063_v4, %v1063_v4  ;;  %v1079_v20 = vrot.slane %v1063_v4, %v11949_v15  ;;  %v1231_v45 = vcombine.low %v939_v3, %v953_v53  ;;  %v11199_v33 = vcombine.high %v939_v3, %v953_v53  ;;  %v842_v4 = vpop.f32.mrf.mxu0 }
 0x101   :  { %v1239_v22 = vrot.slane %v1229_v11, %v11949_v15  ;;  %v1246_v40 = vrot.slane %v11198_v39, %v11949_v15  ;;  %v1227_v49 = vrot.slane %v1213_v34, %v11949_v15  ;;  %v1072_v48 = vcombine.high %v1070_v6, %v1070_v6 }
 0x102   :  { %v1086_v25 = vrot.slane %v1070_v6, %v11949_v15  ;;  %v1093_v57 = vrot.slane %v1071_v50, %v11949_v15  ;;  %v1253_v58 = vrot.slane %v1231_v45, %v11949_v15  ;;  %v1260_v60 = vrot.slane %v11199_v33, %v11949_v15 }
 0x103   :  { %v1261_v59 = vcombine.low %v1239_v22, %v1246_v40  ;;  %v1101_v9 = vcombine.high %v1079_v20, %v1079_v20  ;;  %v1220_v3 = vrot.slane %v1212_v7, %v11949_v15  ;;  %v1342_v53 = vcombine.low %v1054_v51, %v1037_v56 }
 0x104   :  { %v1102_v11 = vcombine.high %v1086_v25, %v1086_v25  ;;  %v1103_v39 = vcombine.high %v1093_v57, %v1093_v57  ;;  %v1262_v26 = vcombine.low %v1253_v58, %v1260_v60  ;;  %v1100_v34 = vrot.slane %v1072_v48, %v11949_v15 }
 0x105   :  { %v1344_v29 = vcombine.low %v1055_v5, %v1079_v20  ;;  %v1390_v6 = vcombine.low %v1093_v57, %v1101_v9  ;;  %v1343_v23 = vcombine.low %v1051_v46, %v1053_v2  ;;  %v1351_v50 = vrot.slane %v12257_v16, %v11949_v15 }
 0x106   :  { %v1391_v45 = vcombine.low %v1103_v39, %v1086_v25  ;;  %v843_v33 = vadd.f32 %v12207_v55, %v842_v4  ;;  %v1228_v22 = vcombine.low %v1220_v3, %v1227_v49  ;;  %v1269_v40 = vrot.slane %v1261_v59, %v11949_v15 }
 0x107   :  { %v1276_v7 = vrot.slane %v1262_v26, %v11949_v15  ;;  %v1392_v56 = vcombine.low %v1100_v34, %v1102_v11  ;;  %v1160_v51 = vrot.slane %v848_v54, %v11949_v15  ;;  %v1372_v58 = vrot.slane %v1344_v29, %v11949_v15 }
 0x108   :  { %v1105_v48 = vcombine.high %v843_v33, %v843_v33  ;;  %v1112_v20 = vrot.slane %v843_v33, %v11949_v15  ;;  %v1400_v2 = vrot.slane %v1390_v6, %v11949_v15  ;;  %v1407_v16 = vrot.slane %v1391_v45, %v11949_v15 }
 0x109   :  { %v1277_v46 = vcombine.low %v1269_v40, %v1276_v7  ;;  %v1104_v5 = vcombine.high %v1100_v34, %v1100_v34  ;;  %v1365_v55 = vrot.slane %v1343_v23, %v11949_v15  ;;  %v1358_v54 = vrot.slane %v1342_v53, %v11949_v15 }
 0x10a   :  { %v1119_v49 = vrot.slane %v1105_v48, %v11949_v15  ;;  %v1120_v25 = vcombine.high %v1112_v20, %v1112_v20  ;;  %v1128_v26 = vrot.slane %v1112_v20, %v11949_v15  ;;  %v1161_v29 = vcombine.high %v1160_v51, %v1160_v51 }
 0x10b   :  { %v12283_v57 = vpack.c.bf16 %v1277_v46, %v1228_v22  ;;  %v1414_v60 = vrot.slane %v1392_v56, %v11949_v15  ;;  %v1374_v59 = vcombine.low %v1365_v55, %v1372_v58  ;;  %v1422_v11 = vcombine.low %v1400_v2, %v1407_v16 }
 0x10c   :  { %v1121_v9 = vcombine.high %v1119_v49, %v1119_v49  ;;  %v1135_v4 = vrot.slane %v1119_v49, %v11949_v15  ;;  %v1142_v3 = vrot.slane %v1120_v25, %v11949_v15  ;;  %v1150_v23 = vcombine.high %v1128_v26, %v1128_v26 }
 0x10d   :  { %v1393_v39 = vcombine.low %v1104_v5, %v1128_v26  ;;  %1516 = vrot.lane.b32.xlu0 %v12283_v57, %s11841_s2  ;;  %11419 = vmatprep.mubr.msk.bf16.mxu1 %vm1520_vm1, %v12283_v57  ;;  %v1168_v53 = vrot.slane %v1160_v51, %v11949_v15  ;;  %v1373_v33 = vcombine.low %v1351_v50, %v1358_v54 }
 0x10e   :  { %v1149_v34 = vrot.slane %v1121_v9, %v11949_v15  ;;  %v1151_v6 = vcombine.high %v1135_v4, %v1135_v4  ;;  %v1152_v45 = vcombine.high %v1142_v3, %v1142_v3  ;;  %v1439_v40 = vcombine.low %v1142_v3, %v1150_v23 }
 0x10f   :  { %v1421_v22 = vrot.slane %v1393_v39, %v11949_v15  ;;  %v1175_v7 = vrot.slane %v1161_v29, %v11949_v15  ;;  %v1388_v20 = vrot.slane %v1374_v59, %v11949_v15  ;;  %v1430_v46 = vrot.slane %v1422_v11, %v11949_v15 }
 0x110   :  { %v1153_v56 = vcombine.high %v1149_v34, %v1149_v34  ;;  %v1440_v58 = vcombine.low %v1152_v45, %v1135_v4  ;;  %v1441_v48 = vcombine.low %v1149_v34, %v1151_v6  ;;  %v1449_v51 = vrot.slane %v1439_v40, %v11949_v15 }
 0x111   :  { %v1423_v2 = vcombine.low %v1414_v60, %v1421_v22  ;;  %v1381_v55 = vrot.slane %v1373_v33, %v11949_v15  ;;  %v1494_v25 = vrot.slane %v1175_v7, %v11949_v15 }
 0x112   :  { %v1442_v16 = vcombine.low %v1153_v56, %v1168_v53  ;;  %v1456_v5 = vrot.slane %v1440_v58, %v11949_v15  ;;  %v1463_v50 = vrot.slane %v1441_v48, %v11949_v15 }
 0x113   :  { %v1437_v49 = vrot.slane %v1423_v2, %v11949_v15  ;;  %v1389_v29 = vcombine.low %v1381_v55, %v1388_v20  ;;  %v1501_v3 = vrot.slane %v1494_v25, %v11949_v15  ;;  %v11845_v25 = vmov 65535  }
 0x114   :  { %v1470_v26 = vrot.slane %v1442_v16, %v11949_v15  ;;  %v1471_v54 = vcombine.low %v1449_v51, %v1456_v5 }
 0x115   :  { %v1438_v59 = vcombine.low %v1430_v46, %v1437_v49 }
 0x116   :  { %v1472_v9 = vcombine.low %v1463_v50, %v1470_v26  ;;  %v1479_v60 = vrot.slane %v1471_v54, %v11949_v15  ;;  %v1756_v26 = vsel %vm1754_vm4, 4294967295, %v11845_v25 }
 0x117   :  { %v12306_v4 = vpack.c.bf16 %v1438_v59, %v1389_v29  ;;  %v12337_v59 = vsel %vm1755_vm5, %v1756_v26, 0 }
 0x118   :  { %v1486_v11 = vrot.slane %v1472_v9, %v11949_v15 }
 0x119   :  { %11427 = vmatprep.mubr.msk.bf16.mxu0 %vm1520_vm1, %v12306_v4 }
 0x11a   :  { %v1487_v23 = vcombine.low %v1479_v60, %v1486_v11 }
 0x11c   :  { %v12312_v39 = vpack.c.bf16 %v1501_v3, %v1487_v23 }
 0x11e   :  { %15957 = vst [vmem:[#allocation41_spill] sm:$0xff] %v12312_v39 }
 0x171   :  { %v1519_v53 = vpop.permute.xlu0 %1518 }
 0x172   :  { %11619 = vmatprep.subr.msk.bf16.mxu1 %vm1520_vm1, %v1519_v53  ;;  %v1531_v34 = vsel %vm1520_vm1, %v1519_v53, 0 }
 0x173   :  { %11416 = vmatpush3.bf16.xpose.msra.mxu1 %v1531_v34 }
 0x17f   :  { %v1517_v6 = vpop.permute.xlu0 %1516 }
 0x180   :  { %11620 = vmatprep.subr.msk.bf16.mxu1 %vm1520_vm1, %v1517_v6  ;;  %v1528_v45 = vsel %vm1520_vm1, %v1517_v6, 0 }
 0x181   :  { %11418 = vmatpush3.bf16.xpose.msra.mxu1 %v1528_v45 }
 0x188   :  { %11420 = vmatmul.mubr.msk.bf16.vlgmr.msra.gmra.mxu1 %vm1520_vm1, %v12245_v1 }
 0x248   :  { %v11421_v33 = vpop.f32.mrf.mxu1 }
 0x249   :  { %v1656_v22 = vsel %vm1649_vm2, %v11421_v33, -inf }
 0x24a   :  { %1657 = vmax.xlane.f32.xlu0 %v1656_v22  ;;  %v1567_v40 = vpop.f32.mrf.mxu1 }
 0x24b   :  { %v1650_v7 = vsel %vm1649_vm2, %v1567_v40, -inf }
 0x24c   :  { %1651 = vmax.xlane.f32.xlu1 %v1650_v7  ;;  %v11422_v56 = vpop.f32.mrf.mxu1 }
 0x24d   :  { %v1660_v20 = vsel %vm1659_vm3, %v11422_v56, -inf }
 0x24e   :  { %v1570_v58 = vpop.f32.mrf.mxu1 }
 0x24f   :  { %v1653_v48 = vsel %vm1649_vm2, %v1570_v58, -inf }
 0x250   :  { %1654 = vmax.xlane.f32.xlu1 %v1653_v48 }
 0x254   :  { %1661 = vmax.xlane.f32.xlu1 %v1660_v20 }
 0x260   :  { %1743 = vrot.lane.b32.xlu0 %v12283_v57, %s11842_s28 }
 0x264   :  { %2523 = vrot.lane.b32.xlu0 %v12283_v57, %s11843_s29 }
 0x265   :  { %1745 = vrot.lane.b32.xlu1 %v12245_v1, %s11842_s28 }
 0x268   :  { %2525 = vrot.lane.b32.xlu0 %v12245_v1, %s11843_s29 }
 0x269   :  { %2529 = vrot.lane.b32.xlu1 %v12245_v1, %s11844_s30 }
 0x26c   :  { %2592 = vrot.lane.b32.xlu0 %v12306_v4, %s11843_s29 }
 0x2d3   :  { %v1658_v46 = vpop.xlane.xlu0 %1657 }
 0x2d4   :  { %v1677_v2 = vsub.f32 %v11421_v33, %v1658_v46 }
 0x2d5   :  { %v1652_v51 = vpop.xlane.xlu1 %1651 }
 0x2d6   :  { %v1687_v16 = vmul.f32 1.442695, %v1677_v2  ;;  %v1675_v5 = vsub.f32 %v1567_v40, %v1652_v51 }
 0x2d7   :  { %v1744_v53 = vpop.permute.xlu0 %1743 }
 0x2d8   :  { %11670 = vpow2.f32 %v1687_v16  ;;  %v1683_v50 = vmul.f32 1.442695, %v1675_v5 }
 0x2d9   :  { %v1655_v55 = vpop.xlane.xlu1 %1654 }
 0x2da   :  { %11672 = vpow2.f32 %v1683_v50  ;;  %v1676_v49 = vsub.f32 %v1570_v58, %v1655_v55 }
 0x2dc   :  { %v1685_v9 = vmul.f32 1.442695, %v1676_v49 }
 0x2dd   :  { %v1662_v54 = vpop.xlane.xlu1 %1661 }
 0x2de   :  { %v1678_v29 = vsub.f32 %v11422_v56, %v1662_v54 }
 0x2e0   :  { %v1689_v60 = vmul.f32 1.442695, %v1678_v29 }
 0x2e1   :  { %v1746_v3 = vpop.permute.xlu1 %1745 }
 0x2e2   :  { %11674 = vpow2.f32 %v1689_v60  ;;  %v1759_v11 = vand.u32 %v12337_v59, %v1746_v3 }
 0x2e3   :  { %11676 = vpow2.f32 %v1685_v9 }
 0x2e4   :  { %11431 = vmatprep.subr.bf16.mxu1 %v1759_v11 }
 0x2e5   :  { %v11671_v23 = vpop.eup %11670  ;;  %11432 = vmatpush3.bf16.msra.mxu1 %v1759_v11  ;;  %v2530_v45 = vpop.permute.xlu1 %2529 }
 0x2e6   :  { %11433 = vmatprep.subr.bf16.mxu1 %v1744_v53  ;;  %v1705_v34 = vsel %vm1649_vm2, %v11671_v23, 0.0 }
 0x2e7   :  { %v11673_v6 = vpop.eup %11672  ;;  %1706 = vadd.xlane.f32.xlu1 %v1705_v34  ;;  %v2524_v34 = vpop.permute.xlu0 %2523 }
 0x2e8   :  { %v1699_v33 = vsel %vm1649_vm2, %v11673_v6, 0.0 }
 0x2e9   :  { %11434 = vmatpush3.bf16.msra.mxu1 %v1744_v53  ;;  %v2541_v53 = vsel %vm1520_vm1, %v2530_v45, 0 }
 0x2ea   :  { %11623 = vmatprep.subr.msk.bf16.mxu1 %vm1520_vm1, %v2530_v45 }
 0x2eb   :  { %1700 = vadd.xlane.f32.xlu1 %v1699_v33  ;;  %v2526_v33 = vpop.permute.xlu0 %2525 }
 0x2ef   :  { %v11675_v22 = vpop.eup %11674 }
 0x2f0   :  { %v1708_v40 = vsel %vm1659_vm3, %v11675_v22, 0.0  ;;  %v11677_v7 = vpop.eup %11676 }
 0x2f1   :  { %1709 = vadd.xlane.f32.xlu1 %v1708_v40  ;;  %v1702_v56 = vsel %vm1649_vm2, %v11677_v7, 0.0 }
 0x2f5   :  { %1703 = vadd.xlane.f32.xlu1 %v1702_v56 }
 0x306   :  { %1586 = vrot.lane.b32.xlu1 %v12312_v39, %s11841_s2 }
 0x30a   :  { %2527 = vrot.lane.b32.xlu1 %v12283_v57, %s11844_s30 }
 0x30e   :  { %1584 = vrot.lane.b32.xlu1 %v12306_v4, %s11841_s2 }
 0x312   :  { %2598 = vrot.lane.b32.xlu1 %v12312_v39, %s11844_s30 }
 0x316   :  { %2596 = vrot.lane.b32.xlu1 %v12306_v4, %s11844_s30 }
 0x31a   :  { %2594 = vrot.lane.b32.xlu1 %v12312_v39, %s11843_s29 }
 0x370   :  { %v1707_v58 = vpop.xlane.xlu1 %1706 }
 0x374   :  { %v1701_v48 = vpop.xlane.xlu1 %1700 }
 0x37a   :  { %v1710_v20 = vpop.xlane.xlu1 %1709 }
 0x37b   :  { %11678 = vrcp.f32 %v1710_v20 }
 0x37c   :  { %11680 = vrcp.f32 %v1701_v48 }
 0x37d   :  { %11682 = vrcp.f32 %v1707_v58 }
 0x37e   :  { %v1704_v46 = vpop.xlane.xlu1 %1703 }
 0x37f   :  { %11684 = vrcp.f32 %v1704_v46 }
 0x382   :  { %v1587_v2 = vpop.permute.xlu1 %1586 }
 0x383   :  { %11621 = vmatprep.subr.msk.bf16.mxu0 %vm1520_vm1, %v1587_v2  ;;  %v1598_v51 = vsel %vm1520_vm1, %v1587_v2, 0 }
 0x384   :  { %11424 = vmatpush3.bf16.xpose.msra.mxu0 %v1598_v51 }
 0x386   :  { %v2528_v16 = vpop.permute.xlu1 %2527 }
 0x388   :  { %v11679_v5 = vpop.eup %11678 }
 0x389   :  { %v11681_v50 = vpop.eup %11680  ;;  %v1734_v54 = vmul.f32 %v11679_v5, %v11675_v22  ;;  %v2593_v22 = vpop.permute.xlu0 %2592 }
 0x38a   :  { %v1585_v55 = vpop.permute.xlu1 %1584  ;;  %v11683_v49 = vpop.eup %11682  ;;  %v1731_v29 = vmul.f32 %v11681_v50, %v11673_v6  ;;  %v2538_v6 = vsel %vm1520_vm1, %v2528_v16, 0 }
 0x38b   :  { %11622 = vmatprep.subr.msk.bf16.mxu0 %vm1520_vm1, %v1585_v55  ;;  %v1595_v25 = vsel %vm1520_vm1, %v1585_v55, 0  ;;  %v1733_v60 = vmul.f32 %v11683_v49, %v11671_v23 }
 0x38c   :  { %v11685_v26 = vpop.eup %11684  ;;  %11426 = vmatpush3.bf16.xpose.msra.mxu0 %v1595_v25 }
 0x38d   :  { %v1732_v9 = vmul.f32 %v11685_v26, %v11677_v7  ;;  %v1740_v11 = vpack.c.bf16 %v1734_v54, %v1733_v60 }
 0x38e   :  { %v2599_v23 = vpop.permute.xlu1 %2598 }
 0x38f   :  { %v1739_v3 = vpack.c.bf16 %v1732_v9, %v1731_v29  ;;  %v2610_v45 = vsel %vm1520_vm1, %v2599_v23, 0 }
 0x391   :  { %11435 = vmatprep.mubr.msk.bf16.mxu1 %vm1649_vm2, %v1739_v3 }
 0x392   :  { %11436 = vmatmul.mubr.msk.bf16.vlgmr.msra.gmra.mxu1 %vm1649_vm2, %v1740_v11  ;;  %v2597_v40 = vpop.permute.xlu1 %2596 }
 0x393   :  { %11448 = vmatpush3.bf16.xpose.msra.mxu1 %v2541_v53  ;;  %11428 = vmatmul.mubr.msk.bf16.vlgmr.msra.gmra.mxu0 %vm1520_vm1, %v12312_v39  ;;  %v2607_v7 = vsel %vm1520_vm1, %v2597_v40, 0 }
 0x394   :  { %11624 = vmatprep.subr.msk.bf16.mxu1 %vm1520_vm1, %v2528_v16  ;;  %11451 = vmatprep.mubr.msk.bf16.mxu1 %vm1520_vm1, %v2524_v34 }
 0x396   :  { %v2595_v56 = vpop.permute.xlu1 %2594 }
 0x39b   :  { %11450 = vmatpush3.bf16.xpose.msra.mxu1 %v2538_v6 }
 0x39c   :  { %11625 = vmatprep.subr.msk.bf16.mxu1 %vm1520_vm1, %v2599_v23 }
 0x3a2   :  { %11452 = vmatmul.mubr.msk.bf16.vlgmr.msra.gmra.mxu1 %vm1520_vm1, %v2526_v33 }
 0x3a3   :  { %11456 = vmatpush3.bf16.xpose.msra.mxu1 %v2610_v45  ;;  %11459 = vmatprep.mubr.msk.bf16.mxu1 %vm1520_vm1, %v2593_v22 }
 0x3a4   :  { %11626 = vmatprep.subr.msk.bf16.mxu1 %vm1520_vm1, %v2597_v40 }
 0x3ab   :  { %11458 = vmatpush3.bf16.xpose.msra.mxu1 %v2607_v7 }
 0x3b2   :  { %11460 = vmatmul.mubr.msk.bf16.vlgmr.msra.gmra.mxu1 %vm1520_vm1, %v2595_v56 }
 0x452   :  { %v12376_v58 = vpop.f32.mrf.mxu1 }
 0x453   :  { %v12378_v48 = vpop.f32.mrf.mxu0 }
 0x454   :  { %v1795_v20 = vpop.f32.mrf.mxu1  ;;  %v1669_v9 = vsel %vm1649_vm2, %v12378_v48, -inf }
 0x455   :  { %v1881_v46 = vcombine.high %v1795_v20, %v1795_v20  ;;  %v12380_v2 = vpop.f32.mrf.mxu0  ;;  %v1888_v51 = vrot.slane %v1795_v20, %v11949_v15 }
 0x456   :  { %v12383_v16 = vpop.f32.mrf.mxu1  ;;  %v1663_v5 = vsel %vm1649_vm2, %v12380_v2, -inf }
 0x457   :  { %v1895_v50 = vrot.slane %v1881_v46, %v11949_v15  ;;  %1664 = vmax.xlane.f32.xlu0 %v1663_v5  ;;  %v1896_v55 = vcombine.high %v1888_v51, %v1888_v51  ;;  %v12389_v54 = vpop.f32.mrf.mxu0  ;;  %v1904_v60 = vrot.slane %v1888_v51, %v11949_v15 }
 0x458   :  { %v1798_v49 = vpop.f32.mrf.mxu1  ;;  %v1672_v6 = vsel %vm1659_vm3, %v12389_v54, -inf }
 0x459   :  { %v1897_v25 = vcombine.high %v1895_v50, %v1895_v50  ;;  %v1918_v26 = vrot.slane %v1896_v55, %v11949_v15  ;;  %v1930_v29 = vcombine.high %v1798_v49, %v1798_v49  ;;  %v1911_v3 = vrot.slane %v1895_v50, %v11949_v15  ;;  %v12400_v56 = vpop.f32.mrf.mxu0 }
 0x45a   :  { %v1937_v53 = vrot.slane %v1798_v49, %v11949_v15 }
 0x45b   :  { %1670 = vmax.xlane.f32.xlu0 %v1669_v9  ;;  %v1925_v11 = vrot.slane %v1897_v25, %v11949_v15  ;;  %v1944_v34 = vrot.slane %v1930_v29, %v11949_v15  ;;  %v2203_v23 = vcombine.low %v1904_v60, %v1918_v26  ;;  %v11210_v33 = vcombine.high %v1904_v60, %v1918_v26 }
 0x45c   :  { %v1945_v40 = vcombine.high %v1937_v53, %v1937_v53  ;;  %v1953_v51 = vrot.slane %v1937_v53, %v11949_v15  ;;  %v1666_v26 = vsel %vm1649_vm2, %v12400_v56, -inf }
 0x45d   :  { %v2205_v22 = vcombine.low %v1911_v3, %v1925_v11  ;;  %v11211_v45 = vcombine.high %v1911_v3, %v1925_v11  ;;  %v1946_v7 = vcombine.high %v1944_v34, %v1944_v34  ;;  %v1960_v5 = vrot.slane %v1944_v34, %v11949_v15  ;;  %1667 = vmax.xlane.f32.xlu1 %v1666_v26 }
 0x45e   :  { %v1967_v50 = vrot.slane %v1945_v40, %v11949_v15  ;;  %v2213_v49 = vrot.slane %v2203_v23, %v11949_v15  ;;  %v2220_v25 = vrot.slane %v11210_v33, %v11949_v15 }
 0x45f   :  { %1673 = vmax.xlane.f32.xlu0 %v1672_v6  ;;  %v2227_v20 = vrot.slane %v2205_v22, %v11949_v15  ;;  %v2234_v46 = vrot.slane %v11211_v45, %v11949_v15  ;;  %v1974_v55 = vrot.slane %v1946_v7, %v11949_v15 }
 0x460   :  { %v2252_v9 = vcombine.low %v1953_v51, %v1967_v50  ;;  %v11212_v60 = vcombine.high %v1953_v51, %v1967_v50  ;;  %v2235_v45 = vcombine.low %v2213_v49, %v2220_v25 }
 0x461   :  { %v2254_v3 = vcombine.low %v1960_v5, %v1974_v55  ;;  %v2236_v11 = vcombine.low %v2227_v20, %v2234_v46  ;;  %v11213_v53 = vcombine.high %v1960_v5, %v1974_v55 }
 0x462   :  { %v12412_v29 = vpop.f32.mrf.mxu1  ;;  %v2262_v23 = vrot.slane %v2252_v9, %v11949_v15  ;;  %v2269_v33 = vrot.slane %v11212_v60, %v11949_v15  ;;  %v2243_v49 = vrot.slane %v2235_v45, %v11949_v15 }
 0x463   :  { %v2667_v6 = vsel %vm1649_vm2, %v12412_v29, -inf  ;;  %v2276_v22 = vrot.slane %v2254_v3, %v11949_v15  ;;  %v2283_v40 = vrot.slane %v11213_v53, %v11949_v15  ;;  %v2250_v50 = vrot.slane %v2236_v11, %v11949_v15 }
 0x464   :  { %v12414_v34 = vpop.f32.mrf.mxu1  ;;  %v2284_v51 = vcombine.low %v2262_v23, %v2269_v33  ;;  %2668 = vmax.xlane.f32.xlu1 %v2667_v6 }
 0x465   :  { %v2285_v46 = vcombine.low %v2276_v22, %v2283_v40  ;;  %v2661_v55 = vsel %vm1649_vm2, %v12414_v34, -inf  ;;  %v2251_v60 = vcombine.low %v2243_v49, %v2250_v50 }
 0x466   :  { %v12422_v7 = vpop.f32.mrf.mxu1  ;;  %v2292_v25 = vrot.slane %v2284_v51, %v11949_v15 }
 0x467   :  { %v2670_v20 = vsel %vm1659_vm3, %v12422_v7, -inf  ;;  %v2299_v26 = vrot.slane %v2285_v46, %v11949_v15 }
 0x468   :  { %v12426_v5 = vpop.f32.mrf.mxu1  ;;  %2671 = vmax.xlane.f32.xlu0 %v2670_v20  ;;  %2662 = vmax.xlane.f32.xlu1 %v2661_v55 }
 0x469   :  { %v2664_v9 = vsel %vm1649_vm2, %v12426_v5, -inf  ;;  %v2300_v3 = vcombine.low %v2292_v25, %v2299_v26 }
 0x46b   :  { %v12436_v53 = vpack.c.bf16 %v2300_v3, %v2251_v60 }
 0x46c   :  { %2665 = vmax.xlane.f32.xlu0 %v2664_v9 }
 0x472   :  { %v12438_v6 = vpop.f32.mrf.mxu1 }
 0x473   :  { %v2679_v11 = vsel %vm1649_vm2, %v12438_v6, -inf }
 0x474   :  { %2680 = vmax.xlane.f32.xlu1 %v2679_v11  ;;  %v12442_v23 = vpop.f32.mrf.mxu1 }
 0x475   :  { %v2673_v22 = vsel %vm1649_vm2, %v12442_v23, -inf }
 0x476   :  { %v12444_v33 = vpop.f32.mrf.mxu1 }
 0x477   :  { %v2682_v51 = vsel %vm1659_vm3, %v12444_v33, -inf }
 0x478   :  { %2674 = vmax.xlane.f32.xlu1 %v2673_v22  ;;  %v12448_v45 = vpop.f32.mrf.mxu1 }
 0x479   :  { %v2676_v40 = vsel %vm1649_vm2, %v12448_v45, -inf }
 0x47a   :  { %2677 = vmax.xlane.f32.xlu0 %v2676_v40 }
 0x47e   :  { %2683 = vmax.xlane.f32.xlu0 %v2682_v51 }
 0x4e0   :  { %v1665_v20 = vpop.xlane.xlu0 %1664 }
 0x4e1   :  { %v1679_v46 = vsub.f32 %v12380_v2, %v1665_v20 }
 0x4e3   :  { %v1691_v50 = vmul.f32 1.442695, %v1679_v46 }
 0x4e4   :  { %v1671_v55 = vpop.xlane.xlu0 %1670 }
 0x4e5   :  { %11686 = vpow2.f32 %v1691_v50  ;;  %v1681_v49 = vsub.f32 %v12378_v48, %v1671_v55 }
 0x4e6   :  { %v1668_v60 = vpop.xlane.xlu1 %1667 }
 0x4e7   :  { %v1695_v25 = vmul.f32 1.442695, %v1681_v49  ;;  %v1680_v11 = vsub.f32 %v12400_v56, %v1668_v60 }
 0x4e8   :  { %v1674_v26 = vpop.xlane.xlu0 %1673 }
 0x4e9   :  { %11688 = vpow2.f32 %v1695_v25  ;;  %v1682_v9 = vsub.f32 %v12389_v54, %v1674_v26  ;;  %v1693_v22 = vmul.f32 1.442695, %v1680_v11 }
 0x4eb   :  { %v1697_v3 = vmul.f32 1.442695, %v1682_v9 }
 0x4ed   :  { %11690 = vpow2.f32 %v1697_v3  ;;  %v2669_v50 = vpop.xlane.xlu1 %2668 }
 0x4ee   :  { %11692 = vpow2.f32 %v1693_v22  ;;  %v2687_v26 = vsub.f32 %v12412_v29, %v2669_v50 }
 0x4f0   :  { %v2697_v11 = vmul.f32 1.442695, %v2687_v26 }
 0x4f1   :  { %v2672_v55 = vpop.xlane.xlu0 %2671  ;;  %v2663_v49 = vpop.xlane.xlu1 %2662 }
 0x4f2   :  { %v12458_v40 = vpop.eup %11686  ;;  %v2688_v60 = vsub.f32 %v12422_v7, %v2672_v55  ;;  %v2685_v22 = vsub.f32 %v12414_v34, %v2663_v49  ;;  %11694 = vpow2.f32 %v2697_v11 }
 0x4f3   :  { %v1711_v2 = vsel %vm1649_vm2, %v12458_v40, 0.0 }
 0x4f4   :  { %1712 = vadd.xlane.f32.xlu1 %v1711_v2  ;;  %v2699_v2 = vmul.f32 1.442695, %v2688_v60 }
 0x4f5   :  { %v2666_v25 = vpop.xlane.xlu0 %2665 }
 0x4f6   :  { %v12462_v51 = vpop.eup %11688  ;;  %11696 = vpow2.f32 %v2699_v2 }
 0x4f7   :  { %v1717_v48 = vsel %vm1649_vm2, %v12462_v51, 0.0 }
 0x4f8   :  { %1718 = vadd.xlane.f32.xlu1 %v1717_v48  ;;  %v2686_v48 = vsub.f32 %v12426_v5, %v2666_v25 }
 0x4fa   :  { %v12466_v54 = vpop.eup %11690  ;;  %v2695_v17 = vmul.f32 1.442695, %v2686_v48 }
 0x4fb   :  { %v12468_v20 = vpop.eup %11692  ;;  %v1720_v46 = vsel %vm1659_vm3, %v12466_v54, 0.0 }
 0x4fc   :  { %v1714_v56 = vsel %vm1649_vm2, %v12468_v20, 0.0 }
 0x4fd   :  { %1715 = vadd.xlane.f32.xlu0 %v1714_v56  ;;  %v2681_v9 = vpop.xlane.xlu1 %2680  ;;  %v2693_v56 = vmul.f32 1.442695, %v2685_v22 }
 0x4ff   :  { %11698 = vpow2.f32 %v2693_v56 }
 0x500   :  { %11700 = vpow2.f32 %v2695_v17 }
 0x501   :  { %1721 = vadd.xlane.f32.xlu0 %v1720_v46  ;;  %v2691_v46 = vsub.f32 %v12438_v6, %v2681_v9  ;;  %v2675_v47 = vpop.xlane.xlu1 %2674  ;;  %v12490_v6 = vpop.eup %11694 }
 0x502   :  { %v2689_v29 = vsub.f32 %v12442_v23, %v2675_v47  ;;  %v2715_v47 = vsel %vm1649_vm2, %v12490_v6, 0.0 }
 0x503   :  { %v2678_v3 = vpop.xlane.xlu0 %2677  ;;  %v2705_v50 = vmul.f32 1.442695, %v2691_v46  ;;  %v12492_v25 = vpop.eup %11696 }
 0x504   :  { %v2701_v55 = vmul.f32 1.442695, %v2689_v29  ;;  %v2690_v34 = vsub.f32 %v12448_v45, %v2678_v3 }
 0x505   :  { %11702 = vpow2.f32 %v2705_v50 }
 0x506   :  { %11704 = vpow2.f32 %v2701_v55  ;;  %v2703_v49 = vmul.f32 1.442695, %v2690_v34 }
 0x507   :  { %v2684_v30 = vpop.xlane.xlu0 %2683 }
 0x508   :  { %v2692_v7 = vsub.f32 %v12444_v33, %v2684_v30  ;;  %v2718_v30 = vsel %vm1659_vm3, %v12492_v25, 0.0 }
 0x509   :  { %1812 = vrot.lane.b32.xlu1 %v12312_v39, %s11842_s28 }
 0x50a   :  { %v2707_v5 = vmul.f32 1.442695, %v2692_v7 }
 0x50c   :  { %11706 = vpow2.f32 %v2707_v5  ;;  %v12496_v23 = vpop.eup %11698 }
 0x50d   :  { %1810 = vrot.lane.b32.xlu1 %v12306_v4, %s11842_s28  ;;  %11708 = vpow2.f32 %v2703_v49  ;;  %v12498_v17 = vpop.eup %11700  ;;  %v2709_v33 = vsel %vm1649_vm2, %v12496_v23, 0.0 }
 0x50e   :  { %v2712_v9 = vsel %vm1649_vm2, %v12498_v17, 0.0 }
 0x511   :  { %2818 = vrot.lane.b32.xlu1 %v12312_v39, %s11846_s14 }
 0x512   :  { %v12504_v45 = vpop.eup %11702 }
 0x513   :  { %v12506_v26 = vpop.eup %11704  ;;  %v2727_v60 = vsel %vm1649_vm2, %v12504_v45, 0.0 }
 0x514   :  { %v2721_v22 = vsel %vm1649_vm2, %v12506_v26, 0.0 }
 0x517   :  { %2755 = vrot.lane.b32.xlu0 %v12245_v1, %s11846_s14 }
 0x519   :  { %v12512_v3 = vpop.eup %11706 }
 0x51a   :  { %v2730_v11 = vsel %vm1659_vm3, %v12512_v3, 0.0  ;;  %v12518_v2 = vpop.eup %11708 }
 0x51b   :  { %v2724_v48 = vsel %vm1649_vm2, %v12518_v2, 0.0 }
 0x535   :  { %2716 = vadd.xlane.f32.xlu1 %v2715_v47 }
 0x536   :  { %2719 = vadd.xlane.f32.xlu0 %v2718_v30 }
 0x539   :  { %2710 = vadd.xlane.f32.xlu1 %v2709_v33 }
 0x53a   :  { %2713 = vadd.xlane.f32.xlu0 %v2712_v9 }
 0x53d   :  { %2728 = vadd.xlane.f32.xlu1 %v2727_v60 }
 0x53e   :  { %2731 = vadd.xlane.f32.xlu0 %v2730_v11 }
 0x541   :  { %2722 = vadd.xlane.f32.xlu1 %v2721_v22 }
 0x542   :  { %2725 = vadd.xlane.f32.xlu0 %v2724_v48 }
 0x552   :  { %2816 = vrot.lane.b32.xlu1 %v12306_v4, %s11846_s14 }
 0x556   :  { %3762 = vrot.lane.b32.xlu1 %v12312_v39, %s11847_s15 }
 0x558   :  { %2753 = vrot.lane.b32.xlu0 %v12283_v57, %s11846_s14 }
 0x55a   :  { %3760 = vrot.lane.b32.xlu1 %v12306_v4, %s11847_s15 }
 0x55c   :  { %3693 = vrot.lane.b32.xlu0 %v12245_v1, %s11847_s15 }
 0x55e   :  { %3689 = vrot.lane.b32.xlu1 %v12245_v1, %s11848_s16 }
 0x560   :  { %3691 = vrot.lane.b32.xlu0 %v12283_v57, %s11847_s15 }
 0x562   :  { %3758 = vrot.lane.b32.xlu1 %v12312_v39, %s11848_s16 }
 0x564   :  { %3687 = vrot.lane.b32.xlu0 %v12283_v57, %s11848_s16 }
 0x568   :  { %3756 = vrot.lane.b32.xlu0 %v12306_v4, %s11848_s16 }
 0x57d   :  { %v1713_v56 = vpop.xlane.xlu1 %1712 }
 0x57e   :  { %11710 = vrcp.f32 %v1713_v56 }
 0x581   :  { %v1719_v46 = vpop.xlane.xlu1 %1718 }
 0x585   :  { %v1813_v29 = vpop.permute.xlu1 %1812 }
 0x586   :  { %v1822_v50 = vand.u32 %v1813_v29, %v12337_v59  ;;  %v1716_v7 = vpop.xlane.xlu0 %1715 }
 0x587   :  { %11712 = vrcp.f32 %v1716_v7 }
 0x588   :  { %11439 = vmatprep.subr.bf16.mxu0 %v1822_v50  ;;  %11714 = vrcp.f32 %v1719_v46 }
 0x589   :  { %11440 = vmatpush3.bf16.msra.mxu0 %v1822_v50  ;;  %v1811_v55 = vpop.permute.xlu1 %1810 }
 0x58a   :  { %11441 = vmatprep.subr.bf16.mxu0 %v1811_v55  ;;  %v1722_v34 = vpop.xlane.xlu0 %1721 }
 0x58b   :  { %11716 = vrcp.f32 %v1722_v34  ;;  %v11711_v33 = vpop.eup %11710 }
 0x58c   :  { %v1735_v60 = vmul.f32 %v11711_v33, %v12458_v40 }
 0x58d   :  { %11442 = vmatpush3.bf16.msra.mxu0 %v1811_v55  ;;  %v2819_v5 = vpop.permute.xlu1 %2818 }
 0x58e   :  { %v2828_v49 = vand.u32 %v2819_v5, %v12337_v59  ;;  %v2756_v47 = vpop.permute.xlu0 %2755 }
 0x58f   :  { %v2765_v30 = vand.u32 %v2756_v47, %v12337_v59 }
 0x590   :  { %11471 = vmatprep.subr.bf16.mxu0 %v2828_v49 }
 0x591   :  { %11463 = vmatprep.subr.bf16.mxu1 %v2765_v30 }
 0x592   :  { %11464 = vmatpush3.bf16.msra.mxu1 %v2765_v30 }
 0x594   :  { %v11713_v9 = vpop.eup %11712 }
 0x595   :  { %v1736_v11 = vmul.f32 %v11713_v9, %v12468_v20  ;;  %v11715_v22 = vpop.eup %11714 }
 0x596   :  { %v1737_v46 = vmul.f32 %v11715_v22, %v12462_v51 }
 0x597   :  { %v1741_v48 = vpack.c.bf16 %v1736_v11, %v1735_v60  ;;  %v1177_v60 = vld [vmem:[%s15694_s3 + $0x4] sm:$0xf] }
 0x598   :  { %v11717_v56 = vpop.eup %11716 }
 0x599   :  { %11443 = vmatprep.mubr.msk.bf16.mxu0 %vm1649_vm2, %v1741_v48  ;;  %v1738_v29 = vmul.f32 %v11717_v56, %v12466_v54 }
 0x59b   :  { %v1742_v50 = vpack.c.bf16 %v1738_v29, %v1737_v46 }
 0x59d   :  { %11444 = vmatmul.mubr.msk.bf16.vlgmr.msra.gmra.mxu0 %vm1649_vm2, %v1742_v50 }
 0x59e   :  { %11472 = vmatpush3.bf16.msra.mxu0 %v2828_v49  ;;  %v1176_v49 = vld [vmem:[%s15694_s3] sm:$0xf] }
 0x5be   :  { %v2717_v7 = vpop.xlane.xlu1 %2716 }
 0x5bf   :  { %v2720_v55 = vpop.xlane.xlu0 %2719  ;;  %11718 = vrcp.f32 %v2717_v7 }
 0x5c2   :  { %v2711_v34 = vpop.xlane.xlu1 %2710 }
 0x5c3   :  { %11720 = vrcp.f32 %v2711_v34  ;;  %v2714_v40 = vpop.xlane.xlu0 %2713  ;;  %v3542_v34 = vsel %vm1754_vm4, %v1177_v60, 0 }
 0x5c4   :  { %11722 = vrcp.f32 %v2720_v55 }
 0x5c5   :  { %11724 = vrcp.f32 %v2714_v40 }
 0x5c6   :  { %v2729_v20 = vpop.xlane.xlu1 %2728 }
 0x5c7   :  { %v2732_v5 = vpop.xlane.xlu0 %2731  ;;  %11726 = vrcp.f32 %v2729_v20 }
 0x5ca   :  { %v2723_v47 = vpop.xlane.xlu1 %2722 }
 0x5cb   :  { %11728 = vrcp.f32 %v2723_v47  ;;  %v2726_v51 = vpop.xlane.xlu0 %2725 }
 0x5cc   :  { %11730 = vrcp.f32 %v2732_v5  ;;  %v11719_v30 = vpop.eup %11718 }
 0x5cd   :  { %11732 = vrcp.f32 %v2726_v51  ;;  %v2743_v56 = vmul.f32 %v11719_v30, %v12490_v6  ;;  %v3621_v30 = vsel %vm1754_vm4, %v1176_v49, 0 }
 0x5ce   :  { %v2817_v54 = vpop.permute.xlu1 %2816 }
 0x5cf   :  { %11473 = vmatprep.subr.bf16.mxu0 %v2817_v54  ;;  %v2754_v9 = vpop.permute.xlu0 %2753 }
 0x5d0   :  { %11474 = vmatpush3.bf16.msra.mxu0 %v2817_v54  ;;  %v11721_v33 = vpop.eup %11720  ;;  %11465 = vmatprep.subr.bf16.mxu1 %v2754_v9 }
 0x5d1   :  { %11628 = vmatprep.subr.msk.bf16.mxu0 %vm1754_vm4, %v1176_v49  ;;  %v11723_v11 = vpop.eup %11722  ;;  %v2741_v22 = vmul.f32 %v11721_v33, %v12496_v23  ;;  %11466 = vmatpush3.bf16.msra.mxu1 %v2754_v9 }
 0x5d2   :  { %v11725_v48 = vpop.eup %11724  ;;  %11627 = vmatprep.subr.msk.bf16.mxu1 %vm1754_vm4, %v1177_v60  ;;  %v2744_v29 = vmul.f32 %v11723_v11, %v12492_v25  ;;  %v12569_v33 = vpop.permute.xlu1 %3762 }
 0x5d3   :  { %v2742_v46 = vmul.f32 %v11725_v48, %v12498_v17  ;;  %v12558_v20 = vpop.permute.xlu0 %3693 }
 0x5d4   :  { %v11727_v7 = vpop.eup %11726  ;;  %v2750_v55 = vpack.c.bf16 %v2744_v29, %v2743_v56 }
 0x5d5   :  { %v2749_v50 = vpack.c.bf16 %v2742_v46, %v2741_v22  ;;  %v2747_v25 = vmul.f32 %v11727_v7, %v12504_v45  ;;  %v1979_v45 = vcombine.high %v12376_v58, %v12376_v58 }
 0x5d7   :  { %11467 = vmatprep.mubr.msk.bf16.mxu1 %vm1649_vm2, %v2749_v50 }
 0x5d8   :  { %v11729_v40 = vpop.eup %11728  ;;  %11468 = vmatmul.mubr.msk.bf16.vlgmr.msra.gmra.mxu1 %vm1649_vm2, %v2750_v55 }
 0x5d9   :  { %v11731_v23 = vpop.eup %11730  ;;  %11480 = vmatpush3.bf16.msra.mxu1 %v3542_v34  ;;  %v2745_v6 = vmul.f32 %v11729_v40, %v12506_v26  ;;  %v1986_v26 = vrot.slane %v12376_v58, %v11949_v15 }
 0x5da   :  { %v11733_v17 = vpop.eup %11732  ;;  %11629 = vmatprep.subr.msk.bf16.mxu1 %vm1520_vm1, %v12558_v20  ;;  %v2748_v47 = vmul.f32 %v11731_v23, %v12512_v3  ;;  %v1993_v3 = vrot.slane %v1979_v45, %v11949_v15  ;;  %v2034_v23 = vrot.slane %v12383_v16, %v11949_v15 }
 0x5db   :  { %v2746_v5 = vmul.f32 %v11733_v17, %v12518_v2  ;;  %v1994_v2 = vcombine.high %v1986_v26, %v1986_v26  ;;  %v2002_v11 = vrot.slane %v1986_v26, %v11949_v15 }
 0x5dc   :  { %v2752_v54 = vpack.c.bf16 %v2748_v47, %v2747_v25  ;;  %v1995_v49 = vcombine.high %v1993_v3, %v1993_v3  ;;  %v2041_v45 = vrot.slane %v2034_v23, %v11949_v15 }
 0x5dd   :  { %v2751_v51 = vpack.c.bf16 %v2746_v5, %v2745_v6  ;;  %v2016_v9 = vrot.slane %v1994_v2, %v11949_v15 }
 0x5de   :  { %v2023_v60 = vrot.slane %v1995_v49, %v11949_v15 }
 0x5df   :  { %11475 = vmatprep.mubr.msk.bf16.mxu0 %vm1649_vm2, %v2751_v51  ;;  %v2301_v22 = vcombine.low %v2002_v11, %v2016_v9  ;;  %v11214_v48 = vcombine.high %v2002_v11, %v2016_v9 }
 0x5e0   :  { %11476 = vmatmul.mubr.msk.bf16.vlgmr.msra.gmra.mxu0 %vm1649_vm2, %v2752_v54 }
 0x5e1   :  { %11490 = vmatpush3.bf16.msra.mxu0 %v3621_v30  ;;  %11491 = vmatprep.mubr.msk.bf16.mxu0 %vm1520_vm1, %v12436_v53  ;;  %v2009_v53 = vrot.slane %v1993_v3, %v11949_v15  ;;  %v2311_v29 = vrot.slane %v2301_v22, %v11949_v15  ;;  %v2318_v58 = vrot.slane %v11214_v48, %v11949_v15 }
 0x5e2   :  { %11631 = vmatprep.subr.msk.bf16.mxu0 %vm1520_vm1, %v12569_v33 }
 0x5e3   :  { %v2303_v56 = vcombine.low %v2009_v53, %v2023_v60  ;;  %v11215_v46 = vcombine.high %v2009_v53, %v2023_v60  ;;  %v2333_v51 = vcombine.low %v2311_v29, %v2318_v58 }
 0x5e5   :  { %v2325_v7 = vrot.slane %v2303_v56, %v11949_v15  ;;  %v2332_v55 = vrot.slane %v11215_v46, %v11949_v15  ;;  %v2341_v46 = vrot.slane %v2333_v51, %v11949_v15 }
 0x5e7   :  { %v2334_v54 = vcombine.low %v2325_v7, %v2332_v55 }
 0x5e9   :  { %v2348_v29 = vrot.slane %v2334_v54, %v11949_v15 }
 0x65d   :  { %v11445_v50 = vpop.f32.mrf.mxu0 }
 0x65e   :  { %v2140_v34 = vcombine.high %v11445_v50, %v11445_v50  ;;  %v2147_v40 = vrot.slane %v11445_v50, %v11949_v15 }
 0x65f   :  { %v1858_v6 = vpop.f32.mrf.mxu0 }
 0x660   :  { %v2154_v17 = vrot.slane %v2140_v34, %v11949_v15  ;;  %v2155_v25 = vcombine.high %v2147_v40, %v2147_v40  ;;  %v2042_v5 = vcombine.high %v1858_v6, %v1858_v6  ;;  %v2049_v47 = vrot.slane %v1858_v6, %v11949_v15 }
 0x661   :  { %v11446_v49 = vpop.f32.mrf.mxu0  ;;  %v2163_v9 = vrot.slane %v2147_v40, %v11949_v15 }
 0x662   :  { %v2177_v30 = vrot.slane %v2155_v25, %v11949_v15  ;;  %v2056_v26 = vrot.slane %v2042_v5, %v11949_v15  ;;  %v2057_v3 = vcombine.high %v2049_v47, %v2049_v47  ;;  %v2065_v2 = vrot.slane %v2049_v47, %v11949_v15 }
 0x663   :  { %v2156_v16 = vcombine.high %v2154_v17, %v2154_v17  ;;  %v2170_v60 = vrot.slane %v2154_v17, %v11949_v15  ;;  %v1861_v40 = vpop.f32.mrf.mxu0  ;;  %v2185_v6 = vcombine.high %v2163_v9, %v2163_v9 }
 0x664   :  { %v2187_v11 = vcombine.high %v2177_v30, %v2177_v30  ;;  %v2058_v53 = vcombine.high %v2056_v26, %v2056_v26  ;;  %v2072_v22 = vrot.slane %v2056_v26, %v11949_v15  ;;  %v2079_v48 = vrot.slane %v2057_v3, %v11949_v15 }
 0x665   :  { %v2087_v56 = vcombine.high %v2065_v2, %v2065_v2  ;;  %v2350_v58 = vcombine.low %v2041_v45, %v2065_v2  ;;  %v2184_v23 = vrot.slane %v2156_v16, %v11949_v15  ;;  %v2186_v17 = vcombine.high %v2170_v60, %v2170_v60 }
 0x666   :  { %v2086_v50 = vrot.slane %v2058_v53, %v11949_v15  ;;  %v2088_v7 = vcombine.high %v2072_v22, %v2072_v22  ;;  %v2089_v55 = vcombine.high %v2079_v48, %v2079_v48  ;;  %v2450_v25 = vcombine.low %v2187_v11, %v2170_v60 }
 0x667   :  { %v2351_v34 = vcombine.low %v2079_v48, %v2087_v56  ;;  %v2360_v26 = vrot.slane %v2350_v58, %v11949_v15  ;;  %v2349_v3 = vcombine.low %v2341_v46, %v2348_v29  ;;  %v2091_v54 = vcombine.high %v1861_v40, %v1861_v40 }
 0x668   :  { %v2352_v5 = vcombine.low %v2089_v55, %v2072_v22  ;;  %v2353_v47 = vcombine.low %v2086_v50, %v2088_v7  ;;  %v2098_v45 = vrot.slane %v1861_v40, %v11949_v15  ;;  %v2090_v56 = vcombine.high %v2086_v50, %v2086_v50 }
 0x669   :  { %v2367_v51 = vrot.slane %v2351_v34, %v11949_v15  ;;  %v2195_v16 = vrot.slane %v11446_v49, %v11949_v15  ;;  %v2105_v60 = vrot.slane %v2091_v54, %v11949_v15  ;;  %v2449_v58 = vcombine.low %v2177_v30, %v2185_v6 }
 0x66a   :  { %v2374_v2 = vrot.slane %v2352_v5, %v11949_v15  ;;  %v2381_v53 = vrot.slane %v2353_v47, %v11949_v15  ;;  %v2106_v11 = vcombine.high %v2098_v45, %v2098_v45  ;;  %v2114_v22 = vrot.slane %v2098_v45, %v11949_v15 }
 0x66b   :  { %v2382_v48 = vcombine.low %v2360_v26, %v2367_v51  ;;  %v2451_v7 = vcombine.low %v2184_v23, %v2186_v17  ;;  %v2472_v46 = vrot.slane %v2450_v25, %v11949_v15  ;;  %v2107_v55 = vcombine.high %v2105_v60, %v2105_v60 }
 0x66c   :  { %v2383_v29 = vcombine.low %v2374_v2, %v2381_v53  ;;  %v2121_v34 = vrot.slane %v2105_v60, %v11949_v15  ;;  %v2128_v40 = vrot.slane %v2106_v11, %v11949_v15  ;;  %v2136_v5 = vcombine.high %v2114_v22, %v2114_v22 }
 0x66d   :  { %v2390_v50 = vrot.slane %v2382_v48, %v11949_v15  ;;  %v2188_v47 = vcombine.high %v2184_v23, %v2184_v23  ;;  %v2399_v26 = vcombine.low %v2090_v56, %v2114_v22  ;;  %v2135_v51 = vrot.slane %v2107_v55, %v11949_v15 }
 0x66e   :  { %v2397_v49 = vrot.slane %v2383_v29, %v11949_v15  ;;  %v2137_v54 = vcombine.high %v2121_v34, %v2121_v34  ;;  %v2138_v30 = vcombine.high %v2128_v40, %v2128_v40  ;;  %v2400_v6 = vcombine.low %v2128_v40, %v2136_v5  ;;  %v12625_v40 = vpop.permute.xlu0 %3691 }
 0x66f   :  { %v2479_v17 = vrot.slane %v2451_v7, %v11949_v15  ;;  %v2202_v45 = vrot.slane %v2195_v16, %v11949_v15  ;;  %v2409_v2 = vrot.slane %v2399_v26, %v11949_v15  ;;  %v2139_v53 = vcombine.high %v2135_v51, %v2135_v51 }
 0x670   :  { %v2398_v25 = vcombine.low %v2390_v50, %v2397_v49  ;;  %v2401_v60 = vcombine.low %v2138_v30, %v2121_v34  ;;  %v2402_v11 = vcombine.low %v2135_v51, %v2137_v54  ;;  %v2416_v48 = vrot.slane %v2400_v6, %v11949_v15  ;;  %v3761_v34 = vpop.permute.xlu1 %3760 }
 0x671   :  { %v2497_v29 = vcombine.low %v2188_v47, %v2202_v45  ;;  %v2448_v55 = vcombine.low %v2139_v53, %v2163_v9  ;;  %v3774_v7 = vsel %vm1520_vm1, %v12569_v33, 0  ;;  %v2465_v16 = vrot.slane %v2449_v58, %v11949_v15 }
 0x672   :  { %v2520_v23 = vpack.c.bf16 %v2398_v25, %v2349_v3  ;;  %v2423_v56 = vrot.slane %v2401_v60, %v11949_v15  ;;  %v2430_v22 = vrot.slane %v2402_v11, %v11949_v15  ;;  %v2481_v5 = vcombine.low %v2472_v46, %v2479_v17  ;;  %v12638_v54 = vpop.permute.xlu0 %3687 }
 0x673   :  { %v2431_v50 = vcombine.low %v2409_v2, %v2416_v48  ;;  %v2458_v3 = vrot.slane %v2448_v55, %v11949_v15  ;;  %v2504_v47 = vrot.slane %v2497_v29, %v11949_v15  ;;  %v3771_v17 = vsel %vm1520_vm1, %v3761_v34, 0 }
 0x674   :  { %11492 = vmatmul.mubr.msk.bf16.vlgmr.msra.gmra.mxu0 %vm1520_vm1, %v2520_v23  ;;  %v2432_v49 = vcombine.low %v2423_v56, %v2430_v22  ;;  %v2495_v51 = vrot.slane %v2481_v5, %v11949_v15  ;;  %v12644_v53 = vpop.permute.xlu1 %3689 }
 0x675   :  { %11508 = vmatpush3.bf16.xpose.msra.mxu0 %v3774_v7  ;;  %v2480_v26 = vcombine.low %v2458_v3, %v2465_v16  ;;  %v2439_v33 = vrot.slane %v2431_v50, %v11949_v15  ;;  %v2511_v46 = vrot.slane %v2504_v47, %v11949_v15 }
 0x676   :  { %11632 = vmatprep.subr.msk.bf16.mxu0 %vm1520_vm1, %v3761_v34  ;;  %v2446_v9 = vrot.slane %v2432_v49, %v11949_v15  ;;  %v3757_v2 = vpop.permute.xlu0 %3756 }
 0x677   :  { %v2488_v58 = vrot.slane %v2480_v26, %v11949_v15  ;;  %v2522_v45 = vpack.c.bf16 %v2511_v46, %v2511_v46 }
 0x678   :  { %v2447_v30 = vcombine.low %v2439_v33, %v2446_v9  ;;  %v3759_v60 = vpop.permute.xlu1 %3758 }
 0x679   :  { %v2496_v6 = vcombine.low %v2488_v58, %v2495_v51 }
 0x67b   :  { %v2521_v25 = vpack.c.bf16 %v2496_v6, %v2447_v30 }
 0x67d   :  { %11510 = vmatpush3.bf16.xpose.msra.mxu0 %v3771_v17  ;;  %11495 = vmatprep.mubr.msk.bf16.mxu0 %vm1520_vm1, %v2521_v25 }
 0x67e   :  { %11496 = vmatmul.mubr.msk.bf16.gmra.mxu0 %vm1520_vm1, %v2522_v45 }
 0x67f   :  { %11511 = vmatprep.mubr.msk.bf16.mxu0 %vm1520_vm1, %v3757_v2 }
 0x686   :  { %11512 = vmatmul.mubr.msk.bf16.vlgmr.msra.gmra.mxu0 %vm1520_vm1, %v3759_v60 }
 0x698   :  { %v11469_v11 = vpop.f32.mrf.mxu1 }
 0x699   :  { %v2985_v48 = vcombine.high %v11469_v11, %v11469_v11  ;;  %v2992_v29 = vrot.slane %v11469_v11, %v11949_v15 }
 0x69a   :  { %v2801_v23 = vpop.f32.mrf.mxu1 }
 0x69b   :  { %v2999_v56 = vrot.slane %v2985_v48, %v11949_v15  ;;  %v3000_v22 = vcombine.high %v2992_v29, %v2992_v29  ;;  %v2887_v55 = vcombine.high %v2801_v23, %v2801_v23  ;;  %v2894_v7 = vrot.slane %v2801_v23, %v11949_v15 }
 0x69c   :  { %v11470_v16 = vpop.f32.mrf.mxu1  ;;  %v3008_v5 = vrot.slane %v2992_v29, %v11949_v15 }
 0x69d   :  { %v3001_v34 = vcombine.high %v2999_v56, %v2999_v56  ;;  %v3022_v50 = vrot.slane %v3000_v22, %v11949_v15  ;;  %v2901_v49 = vrot.slane %v2887_v55, %v11949_v15  ;;  %v3015_v3 = vrot.slane %v2999_v56, %v11949_v15 }
 0x69e   :  { %v2902_v47 = vcombine.high %v2894_v7, %v2894_v7  ;;  %v2910_v9 = vrot.slane %v2894_v7, %v11949_v15  ;;  %v2804_v26 = vpop.f32.mrf.mxu1  ;;  %v3040_v17 = vrot.slane %v11470_v16, %v11949_v15 }
 0x69f   :  { %v3029_v33 = vrot.slane %v3001_v34, %v11949_v15  ;;  %v3307_v58 = vcombine.low %v3008_v5, %v3022_v50  ;;  %v11228_v51 = vcombine.high %v3008_v5, %v3022_v50  ;;  %v2903_v46 = vcombine.high %v2901_v49, %v2901_v49 }
 0x6a0   :  { %v2917_v30 = vrot.slane %v2901_v49, %v11949_v15  ;;  %v2924_v6 = vrot.slane %v2902_v47, %v11949_v15  ;;  %v2936_v25 = vcombine.high %v2804_v26, %v2804_v26  ;;  %v2943_v56 = vrot.slane %v2804_v26, %v11949_v15  ;;  %v11477_v22 = vpop.f32.mrf.mxu0 }
 0x6a1   :  { %v3309_v45 = vcombine.low %v3015_v3, %v3029_v33  ;;  %v11229_v2 = vcombine.high %v3015_v3, %v3029_v33  ;;  %v3317_v60 = vrot.slane %v3307_v58, %v11949_v15  ;;  %v3324_v11 = vrot.slane %v11228_v51, %v11949_v15 }
 0x6a2   :  { %v2931_v48 = vrot.slane %v2903_v46, %v11949_v15  ;;  %v3209_v29 = vcombine.low %v2910_v9, %v2924_v6  ;;  %v11224_v23 = vcombine.high %v2910_v9, %v2924_v6  ;;  %v2950_v16 = vrot.slane %v2936_v25, %v11949_v15  ;;  %v2864_v51 = vpop.f32.mrf.mxu0 }
 0x6a3   :  { %v3331_v55 = vrot.slane %v3309_v45, %v11949_v15  ;;  %v3338_v7 = vrot.slane %v11229_v2, %v11949_v15  ;;  %v3339_v34 = vcombine.low %v3317_v60, %v3324_v11  ;;  %v12668_v49 = vrot.slane %v3040_v17, %v11949_v15 }
 0x6a4   :  { %v3211_v5 = vcombine.low %v2917_v30, %v2931_v48  ;;  %v11225_v50 = vcombine.high %v2917_v30, %v2931_v48  ;;  %v2951_v3 = vcombine.high %v2943_v56, %v2943_v56  ;;  %v2952_v47 = vcombine.high %v2950_v16, %v2950_v16 }
 0x6a5   :  { %v3340_v33 = vcombine.low %v3331_v55, %v3338_v7  ;;  %v12671_v9 = vrot.slane %v3339_v34, %v11949_v15  ;;  %v12674_v26 = vrot.slane %v3209_v29, %v11949_v15  ;;  %v12677_v58 = vrot.slane %v11224_v23, %v11949_v15 }
 0x6a6   :  { %v2959_v46 = vrot.slane %v2943_v56, %v11949_v15  ;;  %v2966_v30 = vrot.slane %v2950_v16, %v11949_v15  ;;  %v2973_v6 = vrot.slane %v2951_v3, %v11949_v15  ;;  %v2980_v17 = vrot.slane %v2952_v47, %v11949_v15 }
 0x6a7   :  { %v12684_v25 = vrot.slane %v3211_v5, %v11949_v15  ;;  %v12687_v45 = vrot.slane %v11225_v50, %v11949_v15  ;;  %v3146_v2 = vcombine.high %v11477_v22, %v11477_v22  ;;  %v3153_v60 = vrot.slane %v11477_v22, %v11949_v15 }
 0x6a8   :  { %v3258_v11 = vcombine.low %v2959_v46, %v2973_v6  ;;  %v11226_v48 = vcombine.high %v2959_v46, %v2973_v6  ;;  %v3260_v29 = vcombine.low %v2966_v30, %v2980_v17  ;;  %v3048_v23 = vcombine.high %v2864_v51, %v2864_v51 }
 0x6a9   :  { %v11227_v56 = vcombine.high %v2966_v30, %v2980_v17  ;;  %v3160_v55 = vrot.slane %v3146_v2, %v11949_v15  ;;  %v3161_v7 = vcombine.high %v3153_v60, %v3153_v60  ;;  %v12692_v34 = vrot.slane %v3153_v60, %v11949_v15 }
 0x6aa   :  { %v12695_v16 = vrot.slane %v3340_v33, %v11949_v15  ;;  %v3241_v5 = vcombine.low %v12674_v26, %v12677_v58  ;;  %v12700_v50 = vrot.slane %v3258_v11, %v11949_v15  ;;  %v3055_v22 = vrot.slane %v2864_v51, %v11949_v15  ;;  %v11478_v58 = vpop.f32.mrf.mxu0 }
 0x6ab   :  { %v12704_v3 = vrot.slane %v11226_v48, %v11949_v15  ;;  %v3162_v47 = vcombine.high %v3160_v55, %v3160_v55  ;;  %v3176_v46 = vrot.slane %v3160_v55, %v11949_v15  ;;  %v3183_v30 = vrot.slane %v3161_v7, %v11949_v15 }
 0x6ac   :  { %v3282_v6 = vrot.slane %v3260_v29, %v11949_v15  ;;  %v3289_v33 = vrot.slane %v11227_v56, %v11949_v15  ;;  %v3062_v17 = vrot.slane %v3048_v23, %v11949_v15  ;;  %v3063_v26 = vcombine.high %v3055_v22, %v3055_v22 }
 0x6ad   :  { %v3190_v2 = vrot.slane %v3162_v47, %v11949_v15  ;;  %v3191_v51 = vcombine.high %v12692_v34, %v12692_v34  ;;  %v3192_v60 = vcombine.high %v3176_v46, %v3176_v46  ;;  %v3193_v11 = vcombine.high %v3183_v30, %v3183_v30 }
 0x6ae   :  { %v3242_v48 = vcombine.low %v12684_v25, %v12687_v45  ;;  %v3064_v55 = vcombine.high %v3062_v17, %v3062_v17  ;;  %v3071_v7 = vrot.slane %v3055_v22, %v11949_v15  ;;  %v3078_v29 = vrot.slane %v3062_v17, %v11949_v15  ;;  %v2867_v45 = vpop.f32.mrf.mxu0 }
 0x6af   :  { %v3355_v23 = vcombine.low %v12671_v9, %v12695_v16  ;;  %v12720_v56 = vcombine.low %v3193_v11, %v3176_v46  ;;  %v3457_v14 = vcombine.low %v3190_v2, %v3192_v60  ;;  %v3085_v47 = vrot.slane %v3063_v26, %v11949_v15 }
 0x6b0   :  { %v3290_v10 = vcombine.low %v12700_v50, %v12704_v3  ;;  %v3092_v12 = vrot.slane %v3064_v55, %v11949_v15  ;;  %v3093_v19 = vcombine.high %v3071_v7, %v3071_v7  ;;  %v3094_v25 = vcombine.high %v3078_v29, %v3078_v29 }
 0x6b1   :  { %v3291_v61 = vcombine.low %v3282_v6, %v3289_v33  ;;  %v3455_v22 = vcombine.low %v3183_v30, %v3191_v51  ;;  %v3095_v52 = vcombine.high %v3085_v47, %v3085_v47  ;;  %v3356_v17 = vcombine.low %v12668_v49, %v3071_v7 }
 0x6b2   :  { %v3357_v62 = vcombine.low %v3085_v47, %v3093_v19  ;;  %v3359_v9 = vcombine.low %v3092_v12, %v3094_v25  ;;  %v3194_v16 = vcombine.high %v3190_v2, %v3190_v2  ;;  %v3201_v46 = vrot.slane %v11478_v58, %v11949_v15 }
 0x6b3   :  { %v3478_v26 = vrot.slane %v12720_v56, %v11949_v15  ;;  %v3485_v50 = vrot.slane %v3457_v14, %v11949_v15  ;;  %v3358_v3 = vcombine.low %v3095_v52, %v3078_v29  ;;  %v3097_v60 = vcombine.high %v2867_v45, %v2867_v45 }
 0x6b4   :  { %v3366_v11 = vrot.slane %v3356_v17, %v11949_v15  ;;  %v3373_v6 = vrot.slane %v3357_v62, %v11949_v15  ;;  %v3387_v30 = vrot.slane %v3359_v9, %v11949_v15  ;;  %v3104_v49 = vrot.slane %v2867_v45, %v11949_v15 }
 0x6b5   :  { %v3380_v19 = vrot.slane %v3358_v3, %v11949_v15  ;;  %v3208_v33 = vrot.slane %v3201_v46, %v11949_v15  ;;  %v3096_v58 = vcombine.high %v3092_v12, %v3092_v12  ;;  %v3111_v2 = vrot.slane %v3097_v60, %v11949_v15 }
 0x6b6   :  { %v3388_v51 = vcombine.low %v3366_v11, %v3373_v6  ;;  %v3112_v55 = vcombine.high %v3104_v49, %v3104_v49  ;;  %v3120_v52 = vrot.slane %v3104_v49, %v11949_v15  ;;  %v3249_v14 = vrot.slane %v3241_v5, %v11949_v15 }
 0x6b7   :  { %v3389_v7 = vcombine.low %v3380_v19, %v3387_v30  ;;  %v3113_v29 = vcombine.high %v3111_v2, %v3111_v2  ;;  %v3127_v62 = vrot.slane %v3111_v2, %v11949_v15  ;;  %v3256_v56 = vrot.slane %v3242_v48, %v11949_v15 }
 0x6b8   :  { %v3396_v47 = vrot.slane %v3388_v51, %v11949_v15  ;;  %v3503_v25 = vcombine.low %v3194_v16, %v3208_v33  ;;  %v3134_v45 = vrot.slane %v3112_v55, %v11949_v15  ;;  %v3142_v12 = vcombine.high %v3120_v52, %v3120_v52 }
 0x6b9   :  { %v3403_v17 = vrot.slane %v3389_v7, %v11949_v15  ;;  %v3141_v9 = vrot.slane %v3113_v29, %v11949_v15  ;;  %v3143_v46 = vcombine.high %v3127_v62, %v3127_v62  ;;  %v3405_v3 = vcombine.low %v3096_v58, %v3120_v52 }
 0x6ba   :  { %v3144_v60 = vcombine.high %v3134_v45, %v3134_v45  ;;  %v3406_v5 = vcombine.low %v3134_v45, %v3142_v12  ;;  %v3298_v11 = vrot.slane %v3290_v10, %v11949_v15  ;;  %v3305_v6 = vrot.slane %v3291_v61, %v11949_v15 }
 0x6bb   :  { %v3404_v30 = vcombine.low %v3396_v47, %v3403_v17  ;;  %v3145_v48 = vcombine.high %v3141_v9, %v3141_v9  ;;  %v3408_v49 = vcombine.low %v3141_v9, %v3143_v46  ;;  %v3415_v16 = vrot.slane %v3405_v3, %v11949_v15 }
 0x6bc   :  { %v3407_v19 = vcombine.low %v3144_v60, %v3127_v62  ;;  %v3422_v33 = vrot.slane %v3406_v5, %v11949_v15  ;;  %v3257_v2 = vcombine.low %v3249_v14, %v3256_v56  ;;  %v3306_v51 = vcombine.low %v3298_v11, %v3305_v6 }
 0x6bd   :  { %v3436_v55 = vrot.slane %v3408_v49, %v11949_v15  ;;  %v3454_v58 = vcombine.low %v3145_v48, %v12692_v34  ;;  %v3526_v52 = vpack.c.bf16 %v3404_v30, %v3355_v23  ;;  %v3471_v61 = vrot.slane %v3455_v22, %v11949_v15 }
 0x6be   :  { %v3429_v7 = vrot.slane %v3407_v19, %v11949_v15  ;;  %v3525_v10 = vpack.c.bf16 %v3306_v51, %v3257_v2  ;;  %v3487_v29 = vcombine.low %v3478_v26, %v3485_v50  ;;  %v3437_v47 = vcombine.low %v3415_v16, %v3422_v33 }
 0x6bf   :  { %v3464_v45 = vrot.slane %v3454_v58, %v11949_v15  ;;  %v3510_v62 = vrot.slane %v3503_v25, %v11949_v15  ;;  %v3705_v14 = vsel %vm1520_vm1, %v12558_v20, 0  ;;  %v3702_v46 = vsel %vm1520_vm1, %v12625_v40, 0 }
 0x6c0   :  { %v3438_v12 = vcombine.low %v3429_v7, %v3436_v55  ;;  %11481 = vmatprep.mubr.msk.bf16.mxu1 %vm1520_vm1, %v3525_v10  ;;  %v3445_v22 = vrot.slane %v3437_v47, %v11949_v15  ;;  %v3501_v50 = vrot.slane %v3487_v29, %v11949_v15 }
 0x6c1   :  { %11482 = vmatmul.mubr.msk.bf16.vlgmr.msra.gmra.mxu1 %vm1520_vm1, %v3526_v52  ;;  %v3486_v34 = vcombine.low %v3464_v45, %v3471_v61  ;;  %v3517_v56 = vrot.slane %v3510_v62, %v11949_v15 }
 0x6c2   :  { %11500 = vmatpush3.bf16.xpose.msra.mxu1 %v3705_v14  ;;  %v3452_v23 = vrot.slane %v3438_v12, %v11949_v15 }
 0x6c3   :  { %11630 = vmatprep.subr.msk.bf16.mxu1 %vm1520_vm1, %v12625_v40  ;;  %v3494_v26 = vrot.slane %v3486_v34, %v11949_v15  ;;  %v3528_v9 = vpack.c.bf16 %v3517_v56, %v3517_v56 }
 0x6c4   :  { %v3453_v25 = vcombine.low %v3445_v22, %v3452_v23 }
 0x6c5   :  { %v3502_v17 = vcombine.low %v3494_v26, %v3501_v50 }
 0x6c7   :  { %v3527_v20 = vpack.c.bf16 %v3502_v17, %v3453_v25 }
 0x6c9   :  { %11485 = vmatprep.mubr.msk.bf16.mxu1 %vm1520_vm1, %v3527_v20 }
 0x6ca   :  { %11486 = vmatmul.mubr.msk.bf16.gmra.mxu1 %vm1520_vm1, %v3528_v9 }
 0x6cb   :  { %11502 = vmatpush3.bf16.xpose.msra.mxu1 %v3702_v46  ;;  %11503 = vmatprep.mubr.msk.bf16.mxu1 %vm1520_vm1, %v12638_v54 }
 0x6d2   :  { %11504 = vmatmul.mubr.msk.bf16.vlgmr.msra.gmra.mxu1 %vm1520_vm1, %v12644_v53 }
 0x734   :  { %v12775_v3 = vpop.f32.mrf.mxu0 }
 0x736   :  { %v12777_v60 = vpop.f32.mrf.mxu0 }
 0x738   :  { %v12779_v5 = vpop.f32.mrf.mxu0 }
 0x73a   :  { %v12781_v11 = vpop.f32.mrf.mxu0 }
 0x73e   :  { %v12783_v6 = vpop.f32.mrf.mxu0 }
 0x740   :  { %v12785_v40 = vpop.f32.mrf.mxu0 }
 0x742   :  { %v11498_v30 = vpop.f32.mrf.mxu0 }
 0x744   :  { %v12797_v19 = vpop.f32.mrf.mxu0 }
 0x746   :  { %v11513_v51 = vpop.f32.mrf.mxu0 }
 0x747   :  { %v3843_v22 = vsel %vm1649_vm2, %v11513_v51, -inf }
 0x748   :  { %v3810_v7 = vpop.f32.mrf.mxu0 }
 0x749   :  { %v3837_v34 = vsel %vm1649_vm2, %v3810_v7, -inf }
 0x74a   :  { %v11514_v47 = vpop.f32.mrf.mxu0 }
 0x74b   :  { %v3846_v26 = vsel %vm1659_vm3, %v11514_v47, -inf }
 0x74c   :  { %v3813_v14 = vpop.f32.mrf.mxu0 }
 0x74d   :  { %v3840_v23 = vsel %vm1649_vm2, %v3813_v14, -inf }
 0x781   :  { %v12787_v48 = vpop.f32.mrf.mxu1 }
 0x783   :  { %v12789_v49 = vpop.f32.mrf.mxu1 }
 0x785   :  { %v12791_v54 = vpop.f32.mrf.mxu1 }
 0x787   :  { %v12793_v53 = vpop.f32.mrf.mxu1 }
 0x78a   :  { %v12795_v16 = vpop.f32.mrf.mxu1 }
 0x78c   :  { %v12799_v33 = vpop.f32.mrf.mxu1 }
 0x78e   :  { %v11488_v2 = vpop.f32.mrf.mxu1 }
 0x790   :  { %v12801_v55 = vpop.f32.mrf.mxu1 }
 0x792   :  { %v12803_v58 = vpop.f32.mrf.mxu1 }
 0x793   :  { %v3831_v52 = vsel %vm1649_vm2, %v12803_v58, -inf }
 0x794   :  { %3832 = vmax.xlane.f32.xlu0 %v3831_v52  ;;  %v12807_v10 = vpop.f32.mrf.mxu1 }
 0x795   :  { %v3825_v29 = vsel %vm1649_vm2, %v12807_v10, -inf }
 0x796   :  { %v11506_v61 = vpop.f32.mrf.mxu1 }
 0x797   :  { %v3834_v12 = vsel %vm1659_vm3, %v11506_v61, -inf }
 0x798   :  { %3826 = vmax.xlane.f32.xlu0 %v3825_v29  ;;  %v3744_v45 = vpop.f32.mrf.mxu1 }
 0x799   :  { %v3828_v62 = vsel %vm1649_vm2, %v3744_v45, -inf }
 0x79a   :  { %3829 = vmax.xlane.f32.xlu1 %v3828_v62 }
 0x79c   :  { %3835 = vmax.xlane.f32.xlu0 %v3834_v12 }
 0x79e   :  { %3838 = vmax.xlane.f32.xlu1 %v3837_v34 }
 0x7a0   :  { %3841 = vmax.xlane.f32.xlu0 %v3840_v23 }
 0x7a2   :  { %3844 = vmax.xlane.f32.xlu1 %v3843_v22 }
 0x7a4   :  { %3847 = vmax.xlane.f32.xlu0 %v3846_v26 }
 0x81d   :  { %v3833_v50 = vpop.xlane.xlu0 %3832 }
 0x821   :  { %v3827_v56 = vpop.xlane.xlu0 %3826 }
 0x823   :  { %v3830_v25 = vpop.xlane.xlu1 %3829 }
 0x824   :  { %v3850_v21 = vsub.f32 %v3744_v45, %v3830_v25 }
 0x825   :  { %v3836_v17 = vpop.xlane.xlu0 %3835 }
 0x826   :  { %v3852_v29 = vsub.f32 %v11506_v61, %v3836_v17  ;;  %v3859_v13 = vmul.f32 1.442695, %v3850_v21 }
 0x827   :  { %v3839_v20 = vpop.xlane.xlu1 %3838 }
 0x828   :  { %v3853_v9 = vsub.f32 %v3810_v7, %v3839_v20  ;;  %v3863_v26 = vmul.f32 1.442695, %v3852_v29 }
 0x829   :  { %v3842_v46 = vpop.xlane.xlu0 %3841 }
 0x82a   :  { %v3865_v30 = vmul.f32 1.442695, %v3853_v9  ;;  %v3854_v2 = vsub.f32 %v3813_v14, %v3842_v46  ;;  %v3851_v9 = vsub.f32 %v12803_v58, %v3833_v50 }
 0x82b   :  { %v3845_v52 = vpop.xlane.xlu1 %3844 }
 0x82c   :  { %11734 = vpow2.f32 %v3865_v30  ;;  %v3867_v62 = vmul.f32 1.442695, %v3854_v2  ;;  %v3855_v12 = vsub.f32 %v11513_v51, %v3845_v52  ;;  %v3861_v46 = vmul.f32 1.442695, %v3851_v9 }
 0x82d   :  { %v3848_v34 = vpop.xlane.xlu0 %3847  ;;  %v3849_v30 = vsub.f32 %v12807_v10, %v3827_v56 }
 0x82e   :  { %11736 = vpow2.f32 %v3867_v62  ;;  %v3869_v23 = vmul.f32 1.442695, %v3855_v12  ;;  %v3856_v22 = vsub.f32 %v11514_v47, %v3848_v34 }
 0x82f   :  { %v3857_v2 = vmul.f32 1.442695, %v3849_v30 }
 0x830   :  { %11738 = vpow2.f32 %v3869_v23  ;;  %v3871_v24 = vmul.f32 1.442695, %v3856_v22 }
 0x832   :  { %11740 = vpow2.f32 %v3871_v24 }
 0x833   :  { %11742 = vpow2.f32 %v3863_v26 }
 0x834   :  { %11744 = vpow2.f32 %v3859_v13 }
 0x835   :  { %11746 = vpow2.f32 %v3861_v46 }
 0x836   :  { %11748 = vpow2.f32 %v3857_v2 }
 0x839   :  { %v11735_v7 = vpop.eup %11734 }
 0x83a   :  { %v3885_v14 = vsel %vm1649_vm2, %v11735_v7, 0.0 }
 0x83b   :  { %v11737_v20 = vpop.eup %11736  ;;  %3886 = vadd.xlane.f32.xlu1 %v3885_v14 }
 0x83c   :  { %v3888_v61 = vsel %vm1649_vm2, %v11737_v20, 0.0 }
 0x83d   :  { %v12819_v51 = vpop.eup %11738  ;;  %3889 = vadd.xlane.f32.xlu0 %v3888_v61 }
 0x83e   :  { %v3891_v47 = vsel %vm1649_vm2, %v12819_v51, 0.0 }
 0x83f   :  { %v12823_v45 = vpop.eup %11740  ;;  %3892 = vadd.xlane.f32.xlu1 %v3891_v47 }
 0x840   :  { %v3894_v21 = vsel %vm1659_vm3, %v12823_v45, 0.0  ;;  %v12827_v13 = vpop.eup %11742 }
 0x841   :  { %3895 = vadd.xlane.f32.xlu0 %v3894_v21  ;;  %v3882_v24 = vsel %vm1659_vm3, %v12827_v13, 0.0  ;;  %v12831_v25 = vpop.eup %11744 }
 0x842   :  { %v3876_v17 = vsel %vm1649_vm2, %v12831_v25, 0.0  ;;  %v12843_v52 = vpop.eup %11746 }
 0x843   :  { %v3879_v58 = vsel %vm1649_vm2, %v12843_v52, 0.0  ;;  %v12847_v10 = vpop.eup %11748 }
 0x844   :  { %v3873_v50 = vsel %vm1649_vm2, %v12847_v10, 0.0 }
 0x845   :  { %3883 = vadd.xlane.f32.xlu0 %v3882_v24 }
 0x849   :  { %3877 = vadd.xlane.f32.xlu0 %v3876_v17 }
 0x850   :  { %3919 = vrot.lane.b32.xlu1 %v12245_v1, %s11849_s20 }
 0x85f   :  { %3982 = vrot.lane.b32.xlu0 %v12312_v39, %s11849_s20 }
 0x863   :  { %4785 = vrot.lane.b32.xlu0 %v12245_v1, %s11850_s21 }
 0x867   :  { %4783 = vrot.lane.b32.xlu0 %v12283_v57, %s11850_s21 }
 0x86b   :  { %4779 = vrot.lane.b32.xlu0 %v12283_v57, %s11851_s22 }
 0x86f   :  { %4848 = vrot.lane.b32.xlu0 %v12306_v4, %s11851_s22 }
 0x874   :  { %3880 = vadd.xlane.f32.xlu1 %v3879_v58 }
 0x878   :  { %3874 = vadd.xlane.f32.xlu1 %v3873_v50 }
 0x889   :  { %3917 = vrot.lane.b32.xlu1 %v12283_v57, %s11849_s20 }
 0x88d   :  { %3980 = vrot.lane.b32.xlu1 %v12306_v4, %s11849_s20 }
 0x891   :  { %4854 = vrot.lane.b32.xlu1 %v12312_v39, %s11850_s21 }
 0x895   :  { %4852 = vrot.lane.b32.xlu1 %v12306_v4, %s11850_s21 }
 0x899   :  { %4781 = vrot.lane.b32.xlu1 %v12245_v1, %s11851_s22 }
 0x89d   :  { %4850 = vrot.lane.b32.xlu1 %v12312_v39, %s11851_s22 }
 0x8c4   :  { %v3887_v56 = vpop.xlane.xlu1 %3886 }
 0x8c5   :  { %11750 = vrcp.f32 %v3887_v56 }
 0x8c6   :  { %v3890_v29 = vpop.xlane.xlu0 %3889 }
 0x8c7   :  { %11752 = vrcp.f32 %v3890_v29 }
 0x8c8   :  { %v3893_v62 = vpop.xlane.xlu1 %3892 }
 0x8ca   :  { %v3896_v12 = vpop.xlane.xlu0 %3895 }
 0x8cb   :  { %11754 = vrcp.f32 %v3896_v12 }
 0x8cc   :  { %v3920_v34 = vpop.permute.xlu1 %3919  ;;  %11756 = vrcp.f32 %v3893_v62 }
 0x8cd   :  { %v3929_v23 = vand.u32 %v3920_v34, %v12337_v59 }
 0x8ce   :  { %v3884_v22 = vpop.xlane.xlu0 %3883 }
 0x8cf   :  { %11515 = vmatprep.subr.bf16.mxu1 %v3929_v23 }
 0x8d0   :  { %11516 = vmatpush3.bf16.msra.mxu1 %v3929_v23 }
 0x8d2   :  { %v11751_v26 = vpop.eup %11750  ;;  %v3878_v14 = vpop.xlane.xlu0 %3877 }
 0x8d3   :  { %v3909_v47 = vmul.f32 %v11751_v26, %v11735_v7 }
 0x8d4   :  { %v11753_v61 = vpop.eup %11752 }
 0x8d5   :  { %v3910_v21 = vmul.f32 %v11753_v61, %v11737_v20  ;;  %v1178_v20 = vld [vmem:[%s15694_s3 + $0x8] sm:$0xf] }
 0x8d6   :  { %v3983_v24 = vpop.permute.xlu0 %3982 }
 0x8d7   :  { %v3992_v17 = vand.u32 %v3983_v24, %v12337_v59  ;;  %v3915_v9 = vpack.c.bf16 %v3910_v21, %v3909_v47 }
 0x8d8   :  { %v11755_v58 = vpop.eup %11754 }
 0x8d9   :  { %11523 = vmatprep.subr.bf16.mxu0 %v3992_v17  ;;  %11527 = vmatprep.mubr.msk.bf16.mxu0 %vm1649_vm2, %v3915_v9  ;;  %v11757_v50 = vpop.eup %11756  ;;  %v3912_v29 = vmul.f32 %v11755_v58, %v12823_v45 }
 0x8da   :  { %11524 = vmatpush3.bf16.msra.mxu0 %v3992_v17  ;;  %v4786_v2 = vpop.permute.xlu0 %4785  ;;  %v3911_v12 = vmul.f32 %v11757_v50, %v12819_v51 }
 0x8dc   :  { %v3916_v23 = vpack.c.bf16 %v3912_v29, %v3911_v12 }
 0x8de   :  { %v4784_v56 = vpop.permute.xlu0 %4783 }
 0x8e2   :  { %v4780_v61 = vpop.permute.xlu0 %4779 }
 0x8fd   :  { %v3881_v46 = vpop.xlane.xlu1 %3880 }
 0x8fe   :  { %11758 = vrcp.f32 %v3881_v46 }
 0x8ff   :  { %11760 = vrcp.f32 %v3878_v14  ;;  %v4797_v14 = vsel %vm1520_vm1, %v4786_v2, 0 }
 0x900   :  { %11762 = vrcp.f32 %v3884_v22 }
 0x901   :  { %v3875_v30 = vpop.xlane.xlu1 %3874 }
 0x902   :  { %11764 = vrcp.f32 %v3875_v30  ;;  %v4706_v30 = vsel %vm1754_vm4, %v1178_v20, 0 }
 0x905   :  { %v3918_v7 = vpop.permute.xlu1 %3917 }
 0x906   :  { %11517 = vmatprep.subr.bf16.mxu1 %v3918_v7 }
 0x907   :  { %11518 = vmatpush3.bf16.msra.mxu1 %v3918_v7 }
 0x908   :  { %11633 = vmatprep.subr.msk.bf16.mxu1 %vm1754_vm4, %v1178_v20 }
 0x909   :  { %v3981_v62 = vpop.permute.xlu1 %3980 }
 0x90a   :  { %11525 = vmatprep.subr.bf16.mxu0 %v3981_v62 }
 0x90b   :  { %11526 = vmatpush3.bf16.msra.mxu0 %v3981_v62  ;;  %v11759_v34 = vpop.eup %11758 }
 0x90c   :  { %11634 = vmatprep.subr.msk.bf16.mxu0 %vm1520_vm1, %v4786_v2  ;;  %v11761_v22 = vpop.eup %11760  ;;  %v3907_v45 = vmul.f32 %v11759_v34, %v12843_v52  ;;  %v4794_v52 = vsel %vm1520_vm1, %v4784_v56, 0 }
 0x90d   :  { %v11763_v26 = vpop.eup %11762  ;;  %v3906_v21 = vmul.f32 %v11761_v22, %v12831_v25  ;;  %v12874_v24 = vpop.permute.xlu1 %4854 }
 0x90e   :  { %11528 = vmatmul.mubr.msk.bf16.vlgmr.msra.gmra.mxu0 %vm1649_vm2, %v3916_v23  ;;  %v3908_v17 = vmul.f32 %v11763_v26, %v12827_v13 }
 0x90f   :  { %v11765_v47 = vpop.eup %11764  ;;  %11542 = vmatpush3.bf16.xpose.msra.mxu0 %v4797_v14  ;;  %11545 = vmatprep.mubr.msk.bf16.mxu0 %vm1520_vm1, %v4780_v61 }
 0x910   :  { %11635 = vmatprep.subr.msk.bf16.mxu0 %vm1520_vm1, %v4784_v56  ;;  %v3905_v51 = vmul.f32 %v11765_v47, %v12847_v10  ;;  %v3914_v46 = vpack.c.bf16 %v3908_v17, %v3907_v45 }
 0x911   :  { %v12881_v2 = vpop.permute.xlu1 %4852 }
 0x912   :  { %v3913_v9 = vpack.c.bf16 %v3906_v21, %v3905_v51 }
 0x914   :  { %11519 = vmatprep.mubr.msk.bf16.mxu1 %vm1649_vm2, %v3913_v9 }
 0x915   :  { %11520 = vmatmul.mubr.msk.bf16.vlgmr.msra.gmra.mxu1 %vm1649_vm2, %v3914_v46  ;;  %v4782_v25 = vpop.permute.xlu1 %4781 }
 0x916   :  { %11532 = vmatpush3.bf16.msra.mxu1 %v4706_v30 }
 0x917   :  { %11636 = vmatprep.subr.msk.bf16.mxu1 %vm1520_vm1, %v12874_v24  ;;  %11544 = vmatpush3.bf16.xpose.msra.mxu0 %v4794_v52 }
 0x91e   :  { %11546 = vmatmul.mubr.msk.bf16.vlgmr.msra.gmra.mxu0 %vm1520_vm1, %v4782_v25 }
 0x9ce   :  { %v11529_v13 = vpop.f32.mrf.mxu0 }
 0x9cf   :  { %v4310_v10 = vcombine.high %v11529_v13, %v11529_v13  ;;  %v4317_v58 = vrot.slane %v11529_v13, %v11949_v15 }
 0x9d0   :  { %v4028_v7 = vpop.f32.mrf.mxu0 }
 0x9d1   :  { %v4324_v20 = vrot.slane %v4310_v10, %v11949_v15  ;;  %v4325_v50 = vcombine.high %v4317_v58, %v4317_v58  ;;  %v4212_v29 = vcombine.high %v4028_v7, %v4028_v7  ;;  %v4219_v56 = vrot.slane %v4028_v7, %v11949_v15 }
 0x9d2   :  { %v12889_v62 = vpop.f32.mrf.mxu0  ;;  %v4333_v34 = vrot.slane %v4317_v58, %v11949_v15 }
 0x9d3   :  { %v4326_v12 = vcombine.high %v4324_v20, %v4324_v20  ;;  %v4340_v23 = vrot.slane %v4324_v20, %v11949_v15  ;;  %v4347_v22 = vrot.slane %v4325_v50, %v11949_v15  ;;  %v4226_v26 = vrot.slane %v4212_v29, %v11949_v15 }
 0x9d4   :  { %v4227_v14 = vcombine.high %v4219_v56, %v4219_v56  ;;  %v4031_v51 = vpop.f32.mrf.mxu0  ;;  %v4355_v21 = vcombine.high %v4333_v34, %v4333_v34  ;;  %v12898_v17 = vrot.slane %v4219_v56, %v11949_v15 }
 0x9d5   :  { %v4228_v61 = vcombine.high %v4226_v26, %v4226_v26  ;;  %v4242_v47 = vrot.slane %v4226_v26, %v11949_v15  ;;  %v12901_v9 = vrot.slane %v4326_v12, %v11949_v15  ;;  %v4356_v46 = vcombine.high %v4340_v23, %v4340_v23  ;;  %v11521_v58 = vpop.f32.mrf.mxu1 }
 0x9d6   :  { %v4249_v45 = vrot.slane %v4227_v14, %v11949_v15  ;;  %v4357_v30 = vcombine.high %v4347_v22, %v4347_v22  ;;  %v4261_v10 = vcombine.high %v4031_v51, %v4031_v51  ;;  %v12906_v20 = vcombine.low %v4347_v22, %v4355_v21 }
 0x9d7   :  { %v4256_v52 = vrot.slane %v4228_v61, %v11949_v15  ;;  %v4258_v25 = vcombine.high %v4242_v47, %v4242_v47  ;;  %v4257_v50 = vcombine.high %v12898_v17, %v12898_v17  ;;  %v4268_v29 = vrot.slane %v4031_v51, %v11949_v15  ;;  %v3965_v7 = vpop.f32.mrf.mxu1 }
 0x9d8   :  { %v4259_v13 = vcombine.high %v4249_v45, %v4249_v45  ;;  %v4275_v56 = vrot.slane %v4261_v10, %v11949_v15  ;;  %v4620_v12 = vcombine.low %v4357_v30, %v4340_v23  ;;  %v4621_v26 = vcombine.low %v12901_v9, %v4356_v46 }
 0x9d9   :  { %v4149_v14 = vcombine.high %v11521_v58, %v11521_v58  ;;  %v4156_v61 = vrot.slane %v11521_v58, %v11949_v15  ;;  %v4523_v8 = vcombine.low %v4256_v52, %v4258_v25  ;;  %v4276_v28 = vcombine.high %v4268_v29, %v4268_v29 }
 0x9da   :  { %v4522_v18 = vcombine.low %v4259_v13, %v4242_v47  ;;  %v4277_v27 = vcombine.high %v4275_v56, %v4275_v56  ;;  %v4260_v22 = vcombine.high %v4256_v52, %v4256_v52  ;;  %v4284_v21 = vrot.slane %v4268_v29, %v11949_v15 }
 0x9db   :  { %v4291_v42 = vrot.slane %v4275_v56, %v11949_v15  ;;  %v4163_v51 = vrot.slane %v4149_v14, %v11949_v15  ;;  %v12917_v0 = vcombine.low %v4249_v45, %v4257_v50  ;;  %v4298_v23 = vrot.slane %v4276_v28, %v11949_v15  ;;  %v11522_v14 = vpop.f32.mrf.mxu1 }
 0x9dc   :  { %v4305_v46 = vrot.slane %v4277_v27, %v11949_v15  ;;  %v4164_v30 = vcombine.high %v4156_v61, %v4156_v61  ;;  %v4642_v47 = vrot.slane %v4620_v12, %v11949_v15  ;;  %v4649_v25 = vrot.slane %v4621_v26, %v11949_v15 }
 0x9dd   :  { %v4307_v13 = vcombine.high %v4291_v42, %v4291_v42  ;;  %v4165_v10 = vcombine.high %v4163_v51, %v4163_v51  ;;  %v4544_v52 = vrot.slane %v4522_v18, %v11949_v15  ;;  %v4551_v58 = vrot.slane %v4523_v8, %v11949_v15  ;;  %v3968_v26 = vpop.f32.mrf.mxu1 }
 0x9de   :  { %v4308_v29 = vcombine.high %v4298_v23, %v4298_v23  ;;  %v4309_v56 = vcombine.high %v4305_v46, %v4305_v46  ;;  %v12925_v45 = vpop.f32.mrf.mxu0  ;;  %v4306_v50 = vcombine.high %v4284_v21, %v4284_v21  ;;  %v12927_v28 = vcombine.low %v4260_v22, %v4284_v21 }
 0x9df   :  { %v12929_v27 = vcombine.low %v4305_v46, %v4307_v13  ;;  %v4193_v12 = vrot.slane %v4165_v10, %v11949_v15  ;;  %v4179_v38 = vrot.slane %v4163_v51, %v11949_v15  ;;  %v4186_v18 = vrot.slane %v4164_v30, %v11949_v15 }
 0x9e0   :  { %v4051_v8 = vcombine.high %v3965_v7, %v3965_v7  ;;  %v4537_v41 = vrot.slane %v12917_v0, %v11949_v15  ;;  %v12940_v22 = vcombine.low %v4308_v29, %v4291_v42  ;;  %v12942_v21 = vcombine.low %v4309_v56, %v4333_v34  ;;  %v12949_v30 = vpop.f32.mrf.mxu0 }
 0x9e1   :  { %v12944_v46 = vcombine.low %v4642_v47, %v4649_v25  ;;  %v12946_v13 = vcombine.low %v4544_v52, %v4551_v58  ;;  %v4172_v10 = vrot.slane %v4156_v61, %v11949_v15  ;;  %v4473_v51 = vcombine.low %v4179_v38, %v4193_v12 }
 0x9e2   :  { %v12951_v35 = vcombine.low %v4298_v23, %v4306_v50  ;;  %v4600_v42 = vrot.slane %v12929_v27, %v11949_v15  ;;  %v4058_v34 = vrot.slane %v3965_v7, %v11949_v15  ;;  %v4065_v52 = vrot.slane %v4051_v8, %v11949_v15  ;;  %v12966_v0 = vpop.f32.mrf.mxu0 }
 0x9e3   :  { %v4471_v47 = vcombine.low %v4172_v10, %v4186_v18  ;;  %v11250_v25 = vcombine.high %v4172_v10, %v4186_v18  ;;  %v4204_v61 = vrot.slane %v11522_v14, %v11949_v15  ;;  %v4593_v58 = vrot.slane %v12940_v22, %v11949_v15 }
 0x9e4   :  { %v4628_v23 = vrot.slane %v12942_v21, %v11949_v15  ;;  %v4066_v29 = vcombine.high %v4058_v34, %v4058_v34  ;;  %v4100_v56 = vcombine.high %v3968_v26, %v3968_v26  ;;  %v11251_v50 = vcombine.high %v4179_v38, %v4193_v12  ;;  %v12979_v31 = vpop.f32.mrf.mxu0 }
 0x9e5   :  { %v4495_v36 = vrot.slane %v4473_v51, %v11949_v15  ;;  %v4067_v27 = vcombine.high %v4065_v52, %v4065_v52  ;;  %v4211_v7 = vrot.slane %v4204_v61, %v11949_v15  ;;  %v4074_v18 = vrot.slane %v4058_v34, %v11949_v15 }
 0x9e6   :  { %v4088_v14 = vrot.slane %v4066_v29, %v11949_v15  ;;  %v4107_v8 = vrot.slane %v3968_v26, %v11949_v15  ;;  %v4114_v22 = vrot.slane %v4100_v56, %v11949_v15  ;;  %v4081_v21 = vrot.slane %v4065_v52, %v11949_v15 }
 0x9e7   :  { %v4095_v10 = vrot.slane %v4067_v27, %v11949_v15  ;;  %v4520_v38 = vcombine.low %v4211_v7, %v12898_v17  ;;  %v4923_v12 = vsel %vm1649_vm2, %v12925_v45, -inf  ;;  %v4502_v34 = vrot.slane %v11251_v50, %v11949_v15 }
 0x9e8   :  { %v4373_v51 = vcombine.low %v4074_v18, %v4088_v14  ;;  %v11246_v61 = vcombine.high %v4074_v18, %v4088_v14  ;;  %v4115_v37 = vcombine.high %v4107_v8, %v4107_v8  ;;  %v4116_v32 = vcombine.high %v4114_v22, %v4114_v22  ;;  %4924 = vmax.xlane.f32.xlu0 %v4923_v12 }
 0x9e9   :  { %v4375_v29 = vcombine.low %v4081_v21, %v4095_v10  ;;  %v11247_v26 = vcombine.high %v4081_v21, %v4095_v10  ;;  %v4530_v56 = vrot.slane %v4520_v38, %v11949_v15  ;;  %v4481_v52 = vrot.slane %v4471_v47, %v11949_v15 }
 0x9ea   :  { %v4488_v17 = vrot.slane %v11250_v25, %v11949_v15  ;;  %v4383_v27 = vrot.slane %v4373_v51, %v11949_v15  ;;  %v4390_v7 = vrot.slane %v11246_v61, %v11949_v15  ;;  %v4123_v50 = vrot.slane %v4107_v8, %v11949_v15 }
 0x9eb   :  { %v4397_v18 = vrot.slane %v4375_v29, %v11949_v15  ;;  %v4404_v14 = vrot.slane %v11247_v26, %v11949_v15  ;;  %v4137_v21 = vrot.slane %v4115_v37, %v11949_v15  ;;  %v4130_v10 = vrot.slane %v4114_v22, %v11949_v15 }
 0x9ec   :  { %v4144_v38 = vrot.slane %v4116_v32, %v11949_v15  ;;  %v4917_v47 = vsel %vm1649_vm2, %v12949_v30, -inf  ;;  %v4920_v25 = vsel %vm1649_vm2, %v12979_v31, -inf  ;;  %v4504_v12 = vcombine.low %v4495_v36, %v4502_v34 }
 0x9ed   :  { %v4552_v51 = vcombine.low %v4530_v56, %v4537_v41  ;;  %v4422_v61 = vcombine.low %v4123_v50, %v4137_v21  ;;  %v11248_v29 = vcombine.high %v4123_v50, %v4137_v21  ;;  %4918 = vmax.xlane.f32.xlu0 %v4917_v47  ;;  %v4586_v8 = vrot.slane %v12951_v35, %v11949_v15 }
 0x9ee   :  { %v4406_v26 = vcombine.low %v4397_v18, %v4404_v14  ;;  %v4424_v37 = vcombine.low %v4130_v10, %v4144_v38  ;;  %v11249_v63 = vcombine.high %v4130_v10, %v4144_v38  ;;  %4921 = vmax.xlane.f32.xlu1 %v4920_v25  ;;  %v4503_v22 = vcombine.low %v4481_v52, %v4488_v17 }
 0x9ef   :  { %v4405_v32 = vcombine.low %v4383_v27, %v4390_v7  ;;  %v4432_v44 = vrot.slane %v4422_v61, %v11949_v15  ;;  %v4439_v43 = vrot.slane %v11248_v29, %v11949_v15  ;;  %v4602_v39 = vcombine.low %v4593_v58, %v4600_v42 }
 0x9f0   :  { %v4446_v36 = vrot.slane %v4424_v37, %v11949_v15  ;;  %v4453_v41 = vrot.slane %v11249_v63, %v11949_v15  ;;  %v4926_v34 = vsel %vm1659_vm3, %v12966_v0, -inf  ;;  %v4518_v35 = vrot.slane %v4504_v12, %v11949_v15 }
 0x9f1   :  { %v4560_v56 = vrot.slane %v4552_v51, %v11949_v15  ;;  %v4454_v18 = vcombine.low %v4432_v44, %v4439_v43  ;;  %4927 = vmax.xlane.f32.xlu0 %v4926_v34  ;;  %v15958_v52 = vrot.slane %v12906_v20, %v11949_v15  ;;  %v15959_v42 = vrot.slane %v12889_v62, %v11949_v15 }
 0x9f2   :  { %v15960_v63 = vrot.slane %v12927_v28, %v11949_v15  ;;  %v4455_v7 = vcombine.low %v4446_v36, %v4453_v41  ;;  %v4420_v14 = vrot.slane %v4406_v26, %v11949_v15  ;;  %v4567_v43 = vrot.slane %v12946_v13, %v11949_v15 }
 0x9f3   :  { %v4650_v17 = vcombine.low %v4628_v23, %v15958_v52  ;;  %v4372_v58 = vrot.slane %v15959_v42, %v11949_v15  ;;  %v4511_v44 = vrot.slane %v4503_v22, %v11949_v15  ;;  %v4413_v20 = vrot.slane %v4405_v32, %v11949_v15  ;;  %v4849_v32 = vpop.permute.xlu0 %4848 }
 0x9f4   :  { %v4601_v27 = vcombine.low %v15960_v63, %v4586_v8  ;;  %v4462_v50 = vrot.slane %v4454_v18, %v11949_v15  ;;  %v4469_v62 = vrot.slane %v4455_v7, %v11949_v15  ;;  %v4616_v21 = vrot.slane %v4602_v39, %v11949_v15 }
 0x9f5   :  { %v4658_v23 = vrot.slane %v4650_v17, %v11949_v15  ;;  %v4665_v28 = vrot.slane %v12944_v46, %v11949_v15  ;;  %v15961_v10 = vcombine.high %v12901_v9, %v12901_v9  ;;  %v4519_v13 = vcombine.low %v4511_v44, %v4518_v35 }
 0x9f6   :  { %v4568_v47 = vcombine.low %v4560_v56, %v4567_v43  ;;  %v4421_v25 = vcombine.low %v4413_v20, %v4420_v14  ;;  %v4470_v12 = vcombine.low %v4462_v50, %v4469_v62  ;;  %v4609_v51 = vrot.slane %v4601_v27, %v11949_v15 }
 0x9f7   :  { %v4667_v38 = vcombine.low %v15961_v10, %v4372_v58  ;;  %v4666_v61 = vcombine.low %v4658_v23, %v4665_v28  ;;  %v4866_v46 = vsel %vm1520_vm1, %v12874_v24, 0  ;;  %v4863_v36 = vsel %vm1520_vm1, %v12881_v2, 0  ;;  %v4851_v24 = vpop.permute.xlu1 %4850 }
 0x9f8   :  { %v4689_v29 = vpack.c.bf16 %v4470_v12, %v4421_v25  ;;  %v4617_v8 = vcombine.low %v4609_v51, %v4616_v21  ;;  %v4690_v37 = vpack.c.bf16 %v4568_v47, %v4519_v13  ;;  %v3666_v34 = vadd.f32 %v12775_v3, %v12787_v48 }
 0x9f9   :  { %v4674_v26 = vrot.slane %v4667_v38, %v11949_v15  ;;  %v3658_v18 = vadd.f32 %v12777_v60, %v12789_v49  ;;  %v3669_v17 = vadd.f32 %v12779_v5, %v12791_v54  ;;  %v3661_v3 = vadd.f32 %v12781_v11, %v12793_v53 }
 0x9fa   :  { %11533 = vmatprep.mubr.msk.bf16.mxu1 %vm1520_vm1, %v4689_v29  ;;  %v4691_v39 = vpack.c.bf16 %v4666_v61, %v4617_v8  ;;  %v3682_v49 = vadd.f32 %v12783_v6, %v12795_v16  ;;  %v3674_v44 = vadd.f32 %v12785_v40, %v12799_v33 }
 0x9fb   :  { %11534 = vmatmul.mubr.msk.bf16.vlgmr.msra.gmra.mxu1 %vm1520_vm1, %v4690_v37  ;;  %v4681_v9 = vrot.slane %v4674_v26, %v11949_v15 }
 0x9fc   :  { %11550 = vmatpush3.bf16.xpose.msra.mxu1 %v4866_v46  ;;  %11537 = vmatprep.mubr.msk.bf16.mxu1 %vm1520_vm1, %v4691_v39 }
 0x9fd   :  { %11637 = vmatprep.subr.msk.bf16.mxu1 %vm1520_vm1, %v12881_v2  ;;  %v4692_v22 = vpack.c.bf16 %v4681_v9, %v4681_v9 }
 0xa03   :  { %11538 = vmatmul.mubr.msk.bf16.gmra.mxu1 %vm1520_vm1, %v4692_v22 }
 0xa04   :  { %11552 = vmatpush3.bf16.xpose.msra.mxu1 %v4863_v36  ;;  %11553 = vmatprep.mubr.msk.bf16.mxu1 %vm1520_vm1, %v4849_v32 }
 0xa0b   :  { %11554 = vmatmul.mubr.msk.bf16.vlgmr.msra.gmra.mxu1 %vm1520_vm1, %v4851_v24 }
 0xa71   :  { %v4925_v41 = vpop.xlane.xlu0 %4924 }
 0xa72   :  { %v4943_v7 = vsub.f32 %v12925_v45, %v4925_v41 }
 0xa74   :  { %v4953_v11 = vmul.f32 1.442695, %v4943_v7 }
 0xa76   :  { %v4919_v35 = vpop.xlane.xlu0 %4918 }
 0xa77   :  { %v4941_v42 = vsub.f32 %v12949_v30, %v4919_v35  ;;  %v4922_v63 = vpop.xlane.xlu1 %4921 }
 0xa78   :  { %v4942_v5 = vsub.f32 %v12979_v31, %v4922_v63  ;;  %v3677_v31 = vadd.f32 %v12797_v19, %v12801_v55 }
 0xa79   :  { %v4949_v14 = vmul.f32 1.442695, %v4941_v42 }
 0xa7a   :  { %v4928_v30 = vpop.xlane.xlu0 %4927  ;;  %v4951_v45 = vmul.f32 1.442695, %v4942_v5 }
 0xa7b   :  { %11766 = vpow2.f32 %v4949_v14  ;;  %v4944_v23 = vsub.f32 %v12966_v0, %v4928_v30 }
 0xa7c   :  { %11768 = vpow2.f32 %v4953_v11 }
 0xa7d   :  { %11770 = vpow2.f32 %v4951_v45  ;;  %v4955_v62 = vmul.f32 1.442695, %v4944_v23 }
 0xa7f   :  { %11772 = vpow2.f32 %v4955_v62 }
 0xa88   :  { %v11767_v47 = vpop.eup %11766 }
 0xa89   :  { %v13079_v19 = vpop.eup %11768  ;;  %v4965_v55 = vsel %vm1649_vm2, %v11767_v47, 0.0 }
 0xa8a   :  { %v11771_v12 = vpop.eup %11770  ;;  %v4971_v51 = vsel %vm1649_vm2, %v13079_v19, 0.0 }
 0xa8b   :  { %v4968_v61 = vsel %vm1649_vm2, %v11771_v12, 0.0 }
 0xa8c   :  { %v13086_v29 = vpop.eup %11772 }
 0xa8d   :  { %v4974_v8 = vsel %vm1659_vm3, %v13086_v29, 0.0 }
 0xabb   :  { %v11535_v56 = vpop.f32.mrf.mxu1 }
 0xabc   :  { %v13048_v52 = vadd.f32 %v11535_v56, %v3666_v34 }
 0xabd   :  { %v4742_v2 = vpop.f32.mrf.mxu1 }
 0xabe   :  { %v13053_v58 = vadd.f32 %v4742_v2, %v3658_v18 }
 0xabf   :  { %v11536_v27 = vpop.f32.mrf.mxu1 }
 0xac0   :  { %v13057_v48 = vadd.f32 %v11536_v27, %v3669_v17 }
 0xac1   :  { %v4745_v60 = vpop.f32.mrf.mxu1 }
 0xac2   :  { %v13063_v54 = vadd.f32 %v4745_v60, %v3661_v3 }
 0xac3   :  { %v11539_v43 = vpop.f32.mrf.mxu1 }
 0xac4   :  { %v13067_v20 = vadd.f32 %v11539_v43, %v3682_v49 }
 0xac5   :  { %v4758_v53 = vpop.f32.mrf.mxu1 }
 0xac6   :  { %v13070_v50 = vadd.f32 %v4758_v53, %v3674_v44  ;;  %v15962_v53 = vld [vmem:[#allocation41_spill] sm:$0xff] }
 0xac7   :  { %v11540_v6 = vpop.f32.mrf.mxu1 }
 0xac9   :  { %v4761_v16 = vpop.f32.mrf.mxu1 }
 0xaca   :  { %v13074_v21 = vadd.f32 %v4761_v16, %v3677_v31 }
 0xacb   :  { %v11555_v40 = vpop.f32.mrf.mxu1 }
 0xacc   :  { %v4935_v38 = vsel %vm1649_vm2, %v11555_v40, -inf }
 0xacd   :  { %v4902_v33 = vpop.f32.mrf.mxu1 }
 0xace   :  { %v4929_v28 = vsel %vm1649_vm2, %v4902_v33, -inf }
 0xacf   :  { %4930 = vmax.xlane.f32.xlu1 %v4929_v28  ;;  %v11556_v10 = vpop.f32.mrf.mxu1 }
 0xad0   :  { %v4938_v25 = vsel %vm1659_vm3, %v11556_v10, -inf }
 0xad1   :  { %v4905_v0 = vpop.f32.mrf.mxu1 }
 0xad2   :  { %v4932_v13 = vsel %vm1649_vm2, %v4905_v0, -inf }
 0xad3   :  { %4936 = vmax.xlane.f32.xlu1 %v4935_v38  ;;  %4933 = vmax.xlane.f32.xlu0 %v4932_v13 }
 0xad7   :  { %4966 = vadd.xlane.f32.xlu1 %v4965_v55  ;;  %4939 = vmax.xlane.f32.xlu0 %v4938_v25 }
 0xadb   :  { %4972 = vadd.xlane.f32.xlu1 %v4971_v51  ;;  %4969 = vadd.xlane.f32.xlu0 %v4968_v61 }
 0xadf   :  { %4975 = vadd.xlane.f32.xlu0 %v4974_v8 }
 0xaec   :  { %5011 = vrot.lane.b32.xlu1 %v12245_v1, %s11852_s25 }
 0xb58   :  { %v4931_v26 = vpop.xlane.xlu1 %4930 }
 0xb59   :  { %v4945_v37 = vsub.f32 %v4902_v33, %v4931_v26 }
 0xb5b   :  { %v4957_v22 = vmul.f32 1.442695, %v4945_v37 }
 0xb5c   :  { %v4934_v39 = vpop.xlane.xlu0 %4933  ;;  %v4937_v46 = vpop.xlane.xlu1 %4936 }
 0xb5d   :  { %v4947_v9 = vsub.f32 %v11555_v40, %v4937_v46  ;;  %v4946_v32 = vsub.f32 %v4905_v0, %v4934_v39 }
 0xb5f   :  { %v4961_v36 = vmul.f32 1.442695, %v4947_v9  ;;  %v4959_v35 = vmul.f32 1.442695, %v4946_v32 }
 0xb60   :  { %v4940_v24 = vpop.xlane.xlu0 %4939  ;;  %v4967_v41 = vpop.xlane.xlu1 %4966 }
 0xb61   :  { %v4948_v34 = vsub.f32 %v11556_v10, %v4940_v24  ;;  %11774 = vpow2.f32 %v4961_v36 }
 0xb62   :  { %11776 = vpow2.f32 %v4957_v22 }
 0xb63   :  { %v4963_v56 = vmul.f32 1.442695, %v4948_v34  ;;  %11778 = vrcp.f32 %v4967_v41 }
 0xb64   :  { %v4970_v18 = vpop.xlane.xlu0 %4969  ;;  %v4973_v2 = vpop.xlane.xlu1 %4972 }
 0xb65   :  { %11780 = vpow2.f32 %v4963_v56 }
 0xb66   :  { %11782 = vrcp.f32 %v4970_v18 }
 0xb67   :  { %11784 = vpow2.f32 %v4959_v35 }
 0xb68   :  { %v5012_v1 = vpop.permute.xlu1 %5011  ;;  %v4976_v45 = vpop.xlane.xlu0 %4975 }
 0xb69   :  { %v5021_v17 = vand.u32 %v5012_v1, %v12337_v59  ;;  %11786 = vrcp.f32 %v4976_v45 }
 0xb6a   :  { %11788 = vrcp.f32 %v4973_v2 }
 0xb6b   :  { %11557 = vmatprep.subr.bf16.mxu0 %v5021_v17 }
 0xb6c   :  { %11558 = vmatpush3.bf16.msra.mxu0 %v5021_v17 }
 0xb6e   :  { %v11775_v42 = vpop.eup %11774 }
 0xb6f   :  { %v11777_v63 = vpop.eup %11776  ;;  %v4983_v27 = vsel %vm1649_vm2, %v11775_v42, 0.0 }
 0xb70   :  { %v11779_v3 = vpop.eup %11778  ;;  %4984 = vadd.xlane.f32.xlu1 %v4983_v27  ;;  %v4977_v5 = vsel %vm1649_vm2, %v11777_v63, 0.0 }
 0xb71   :  { %v4997_v30 = vmul.f32 %v11779_v3, %v11767_v47 }
 0xb72   :  { %v11781_v7 = vpop.eup %11780 }
 0xb73   :  { %v11783_v60 = vpop.eup %11782  ;;  %v4986_v49 = vsel %vm1659_vm3, %v11781_v7, 0.0 }
 0xb74   :  { %v11785_v14 = vpop.eup %11784  ;;  %4987 = vadd.xlane.f32.xlu0 %v4986_v49  ;;  %v4998_v43 = vmul.f32 %v11783_v60, %v11771_v12  ;;  %4978 = vadd.xlane.f32.xlu1 %v4977_v5 }
 0xb75   :  { %v4980_v11 = vsel %vm1649_vm2, %v11785_v14, 0.0 }
 0xb76   :  { %v5005_v44 = vpack.c.bf16 %v4998_v43, %v4997_v30  ;;  %v11787_v31 = vpop.eup %11786 }
 0xb77   :  { %v11789_v62 = vpop.eup %11788 }
 0xb78   :  { %11561 = vmatprep.mubr.msk.bf16.mxu0 %vm1649_vm2, %v5005_v44  ;;  %4981 = vadd.xlane.f32.xlu0 %v4980_v11 }
 0xb85   :  { %5009 = vrot.lane.b32.xlu1 %v12283_v57, %s11852_s25  ;;  %v5000_v57 = vmul.f32 %v11787_v31, %v13086_v29 }
 0xb89   :  { %5072 = vrot.lane.b32.xlu1 %v12306_v4, %s11852_s25  ;;  %v4999_v4 = vmul.f32 %v11789_v62, %v13079_v19 }
 0xb8b   :  { %v5006_v10 = vpack.c.bf16 %v5000_v57, %v4999_v4 }
 0xb8e   :  { %5074 = vrot.lane.b32.xlu0 %v15962_v53, %s11852_s25 }
 0xbf9   :  { %v4985_v23 = vpop.xlane.xlu1 %4984 }
 0xbfd   :  { %v4988_v6 = vpop.xlane.xlu0 %4987  ;;  %v4979_v16 = vpop.xlane.xlu1 %4978 }
 0xbfe   :  { %11790 = vrcp.f32 %v4988_v6 }
 0xbff   :  { %11792 = vrcp.f32 %v4979_v16 }
 0xc00   :  { %11794 = vrcp.f32 %v4985_v23 }
 0xc01   :  { %v4982_v40 = vpop.xlane.xlu0 %4981  ;;  %v5010_v33 = vpop.permute.xlu1 %5009 }
 0xc02   :  { %11796 = vrcp.f32 %v4982_v40  ;;  %11559 = vmatprep.subr.bf16.mxu0 %v5010_v33 }
 0xc03   :  { %11560 = vmatpush3.bf16.msra.mxu0 %v5010_v33 }
 0xc05   :  { %v5075_v28 = vpop.permute.xlu0 %5074  ;;  %v5073_v38 = vpop.permute.xlu1 %5072 }
 0xc06   :  { %v5084_v0 = vand.u32 %v5075_v28, %v12337_v59  ;;  %11562 = vmatmul.mubr.msk.bf16.vlgmr.msra.gmra.mxu0 %vm1649_vm2, %v5006_v10  ;;  %v1179_v59 = vld [vmem:[%s15694_s3 + $0xc] sm:$0xf] }
 0xc07   :  { %11638 = vmatprep.subr.msk.bf16.mxu0 %vm1754_vm4, %v1179_v59  ;;  %v5798_v26 = vsel %vm1754_vm4, %v1179_v59, 0 }
 0xc08   :  { %11565 = vmatprep.subr.bf16.mxu1 %v5084_v0  ;;  %11574 = vmatpush3.bf16.msra.mxu0 %v5798_v26 }
 0xc09   :  { %11566 = vmatpush3.bf16.msra.mxu1 %v5084_v0 }
 0xc0a   :  { %11567 = vmatprep.subr.bf16.mxu1 %v5073_v38 }
 0xc0b   :  { %v11791_v13 = vpop.eup %11790 }
 0xc0c   :  { %v11793_v47 = vpop.eup %11792  ;;  %v5004_v12 = vmul.f32 %v11791_v13, %v11781_v7 }
 0xc0d   :  { %11568 = vmatpush3.bf16.msra.mxu1 %v5073_v38  ;;  %v11795_v55 = vpop.eup %11794  ;;  %v5001_v51 = vmul.f32 %v11793_v47, %v11777_v63 }
 0xc0e   :  { %v5003_v19 = vmul.f32 %v11795_v55, %v11775_v42 }
 0xc0f   :  { %v11797_v25 = vpop.eup %11796 }
 0xc10   :  { %v5002_v61 = vmul.f32 %v11797_v25, %v11785_v14  ;;  %v5008_v8 = vpack.c.bf16 %v5004_v12, %v5003_v19 }
 0xc12   :  { %v5007_v29 = vpack.c.bf16 %v5002_v61, %v5001_v51 }
 0xc14   :  { %11569 = vmatprep.mubr.msk.bf16.mxu1 %vm1649_vm2, %v5007_v29 }
 0xc15   :  { %11570 = vmatmul.mubr.msk.bf16.vlgmr.msra.gmra.mxu1 %vm1649_vm2, %v5008_v8 }
 0xcc6   :  { %v11563_v37 = vpop.f32.mrf.mxu0 }
 0xcc7   :  { %v5241_v39 = vcombine.high %v11563_v37, %v11563_v37  ;;  %v5248_v46 = vrot.slane %v11563_v37, %v11949_v15 }
 0xcc8   :  { %v5057_v9 = vpop.f32.mrf.mxu0 }
 0xcc9   :  { %v5255_v22 = vrot.slane %v5241_v39, %v11949_v15  ;;  %v5256_v32 = vcombine.high %v5248_v46, %v5248_v46  ;;  %v5143_v36 = vcombine.high %v5057_v9, %v5057_v9  ;;  %v5150_v24 = vrot.slane %v5057_v9, %v11949_v15 }
 0xcca   :  { %v11564_v41 = vpop.f32.mrf.mxu0  ;;  %v5264_v35 = vrot.slane %v5248_v46, %v11949_v15 }
 0xccb   :  { %v5257_v34 = vcombine.high %v5255_v22, %v5255_v22  ;;  %v5278_v56 = vrot.slane %v5256_v32, %v11949_v15  ;;  %v5157_v18 = vrot.slane %v5143_v36, %v11949_v15  ;;  %v5271_v2 = vrot.slane %v5255_v22, %v11949_v15 }
 0xccc   :  { %v5158_v1 = vcombine.high %v5150_v24, %v5150_v24  ;;  %v5060_v17 = vpop.f32.mrf.mxu0  ;;  %v5166_v7 = vrot.slane %v5150_v24, %v11949_v15  ;;  %v5296_v57 = vrot.slane %v11564_v41, %v11949_v15 }
 0xccd   :  { %v5285_v42 = vrot.slane %v5257_v34, %v11949_v15  ;;  %v5563_v63 = vcombine.low %v5264_v35, %v5278_v56  ;;  %v11268_v27 = vcombine.high %v5264_v35, %v5278_v56  ;;  %v5159_v3 = vcombine.high %v5157_v18, %v5157_v18 }
 0xcce   :  { %v5173_v60 = vrot.slane %v5157_v18, %v11949_v15  ;;  %v5180_v49 = vrot.slane %v5158_v1, %v11949_v15  ;;  %v5192_v14 = vcombine.high %v5060_v17, %v5060_v17  ;;  %v5199_v23 = vrot.slane %v5060_v17, %v11949_v15 }
 0xccf   :  { %v5565_v5 = vcombine.low %v5271_v2, %v5285_v42  ;;  %v11269_v30 = vcombine.high %v5271_v2, %v5285_v42  ;;  %v5573_v43 = vrot.slane %v5563_v63, %v11949_v15  ;;  %v5580_v44 = vrot.slane %v11268_v27, %v11949_v15 }
 0xcd0   :  { %v5187_v11 = vrot.slane %v5159_v3, %v11949_v15  ;;  %v5465_v53 = vcombine.low %v5166_v7, %v5180_v49  ;;  %v11264_v45 = vcombine.high %v5166_v7, %v5180_v49  ;;  %v5206_v16 = vrot.slane %v5192_v14, %v11949_v15 }
 0xcd1   :  { %v5587_v6 = vrot.slane %v5565_v5, %v11949_v15  ;;  %v5594_v31 = vrot.slane %v11269_v30, %v11949_v15  ;;  %v5595_v33 = vcombine.low %v5573_v43, %v5580_v44  ;;  %v5207_v28 = vcombine.high %v5199_v23, %v5199_v23 }
 0xcd2   :  { %v5467_v62 = vcombine.low %v5173_v60, %v5187_v11  ;;  %v11265_v40 = vcombine.high %v5173_v60, %v5187_v11  ;;  %v5475_v4 = vrot.slane %v5465_v53, %v11949_v15  ;;  %v5208_v10 = vcombine.high %v5206_v16, %v5206_v16 }
 0xcd3   :  { %v5596_v0 = vcombine.low %v5587_v6, %v5594_v31  ;;  %v5482_v38 = vrot.slane %v11264_v45, %v11949_v15  ;;  %v5215_v25 = vrot.slane %v5199_v23, %v11949_v15  ;;  %v5222_v12 = vrot.slane %v5206_v16, %v11949_v15 }
 0xcd4   :  { %v13137_v13 = vrot.slane %v5467_v62, %v11949_v15  ;;  %v13140_v47 = vrot.slane %v11265_v40, %v11949_v15  ;;  %v5229_v51 = vrot.slane %v5207_v28, %v11949_v15  ;;  %v5236_v61 = vrot.slane %v5208_v10, %v11949_v15 }
 0xcd5   :  { %v11571_v55 = vpop.f32.mrf.mxu1  ;;  %v5303_v19 = vrot.slane %v5296_v57, %v11949_v15  ;;  %v13149_v26 = vrot.slane %v5595_v33, %v11949_v15  ;;  %v5497_v9 = vcombine.low %v5475_v4, %v5482_v38  ;;  %v13153_v24 = vrot.slane %v5596_v0, %v11949_v15 }
 0xcd6   :  { %v5402_v29 = vcombine.high %v11571_v55, %v11571_v55  ;;  %v5409_v8 = vrot.slane %v11571_v55, %v11949_v15  ;;  %v5514_v37 = vcombine.low %v5215_v25, %v5229_v51  ;;  %v11266_v39 = vcombine.high %v5215_v25, %v5229_v51 }
 0xcd7   :  { %v5120_v59 = vpop.f32.mrf.mxu1  ;;  %v5516_v46 = vcombine.low %v5222_v12, %v5236_v61  ;;  %v11267_v22 = vcombine.high %v5222_v12, %v5236_v61  ;;  %v5498_v41 = vcombine.low %v13137_v13, %v13140_v47  ;;  %v5611_v11 = vcombine.low %v13149_v26, %v13153_v24 }
 0xcd8   :  { %v5416_v32 = vrot.slane %v5402_v29, %v11949_v15  ;;  %v5417_v36 = vcombine.high %v5409_v8, %v5409_v8  ;;  %v13158_v34 = vrot.slane %v5409_v8, %v11949_v15  ;;  %v5304_v35 = vcombine.high %v5120_v59, %v5120_v59 }
 0xcd9   :  { %v5524_v56 = vrot.slane %v5514_v37, %v11949_v15  ;;  %v5531_v17 = vrot.slane %v11266_v39, %v11949_v15  ;;  %v5538_v42 = vrot.slane %v5516_v46, %v11949_v15  ;;  %v5311_v63 = vrot.slane %v5120_v59, %v11949_v15  ;;  %v11572_v3 = vpop.f32.mrf.mxu1 }
 0xcda   :  { %v5418_v18 = vcombine.high %v5416_v32, %v5416_v32  ;;  %v5432_v2 = vrot.slane %v5416_v32, %v11949_v15  ;;  %v5439_v1 = vrot.slane %v5417_v36, %v11949_v15  ;;  %v5318_v27 = vrot.slane %v5304_v35, %v11949_v15 }
 0xcdb   :  { %v5545_v7 = vrot.slane %v11267_v22, %v11949_v15  ;;  %v5447_v5 = vcombine.high %v13158_v34, %v13158_v34  ;;  %v5319_v30 = vcombine.high %v5311_v63, %v5311_v63  ;;  %v5327_v44 = vrot.slane %v5311_v63, %v11949_v15  ;;  %v5123_v40 = vpop.f32.mrf.mxu1 }
 0xcdc   :  { %v5446_v60 = vrot.slane %v5418_v18, %v11949_v15  ;;  %v5448_v49 = vcombine.high %v5432_v2, %v5432_v2  ;;  %v5449_v14 = vcombine.high %v5439_v1, %v5439_v1  ;;  %v5320_v43 = vcombine.high %v5318_v27, %v5318_v27 }
 0xcdd   :  { %v5334_v45 = vrot.slane %v5318_v27, %v11949_v15  ;;  %v5505_v23 = vrot.slane %v5497_v9, %v11949_v15  ;;  %v5546_v6 = vcombine.low %v5524_v56, %v5531_v17  ;;  %v5341_v31 = vrot.slane %v5319_v30, %v11949_v15 }
 0xcde   :  { %v13174_v53 = vcombine.low %v5449_v14, %v5432_v2  ;;  %v5348_v16 = vrot.slane %v5320_v43, %v11949_v15  ;;  %v5349_v62 = vcombine.high %v5327_v44, %v5327_v44  ;;  %v5547_v57 = vcombine.low %v5538_v42, %v5545_v7 }
 0xcdf   :  { %v5713_v33 = vcombine.low %v5446_v60, %v5448_v49  ;;  %v5350_v4 = vcombine.high %v5334_v45, %v5334_v45  ;;  %v5612_v28 = vcombine.low %v5303_v19, %v5327_v44  ;;  %v5711_v10 = vcombine.low %v5439_v1, %v5447_v5 }
 0xce0   :  { %v5351_v0 = vcombine.high %v5341_v31, %v5341_v31  ;;  %v5613_v38 = vcombine.low %v5341_v31, %v5349_v62  ;;  %v5457_v13 = vrot.slane %v11572_v3, %v11949_v15  ;;  %v5734_v47 = vrot.slane %v13174_v53, %v11949_v15 }
 0xce1   :  { %v5615_v55 = vcombine.low %v5348_v16, %v5350_v4  ;;  %v5450_v25 = vcombine.high %v5446_v60, %v5446_v60  ;;  %v5353_v12 = vcombine.high %v5123_v40, %v5123_v40  ;;  %v5622_v61 = vrot.slane %v5612_v28, %v11949_v15 }
 0xce2   :  { %v5614_v51 = vcombine.low %v5351_v0, %v5334_v45  ;;  %v5629_v29 = vrot.slane %v5613_v38, %v11949_v15  ;;  %v5360_v8 = vrot.slane %v5123_v40, %v11949_v15  ;;  %v5741_v19 = vrot.slane %v5713_v33, %v11949_v15 }
 0xce3   :  { %v5643_v59 = vrot.slane %v5615_v55, %v11949_v15  ;;  %v5352_v26 = vcombine.high %v5348_v16, %v5348_v16  ;;  %v5367_v37 = vrot.slane %v5353_v12, %v11949_v15  ;;  %v5464_v9 = vrot.slane %v5457_v13, %v11949_v15 }
 0xce4   :  { %v5636_v39 = vrot.slane %v5614_v51, %v11949_v15  ;;  %v5644_v46 = vcombine.low %v5622_v61, %v5629_v29  ;;  %v5368_v22 = vcombine.high %v5360_v8, %v5360_v8  ;;  %v5376_v36 = vrot.slane %v5360_v8, %v11949_v15  ;;  %v13220_v8 = vld [vmem:[%s15695_s4] ss:$0 sm:$0xff] }
 0xce5   :  { %v5369_v32 = vcombine.high %v5367_v37, %v5367_v37  ;;  %v5383_v24 = vrot.slane %v5367_v37, %v11949_v15  ;;  %v5512_v35 = vrot.slane %v5498_v41, %v11949_v15  ;;  %v5759_v18 = vcombine.low %v5450_v25, %v5464_v9  ;;  %v15965_v9 = vld [vmem:[#allocation14_spill] sm:$0xff] }
 0xce6   :  { %v5645_v56 = vcombine.low %v5636_v39, %v5643_v59  ;;  %v5390_v2 = vrot.slane %v5368_v22, %v11949_v15  ;;  %v5554_v1 = vrot.slane %v5546_v6, %v11949_v15  ;;  %v5398_v42 = vcombine.high %v5376_v36, %v5376_v36  ;;  %v15963_v59 = vld [vmem:[#allocation12_spill] sm:$0xff]  ;;  %v15964_v39 = vld [vmem:[#allocation13_spill] sm:$0xff] }
 0xce7   :  { %v5397_v17 = vrot.slane %v5369_v32, %v11949_v15  ;;  %v5399_v63 = vcombine.high %v5383_v24, %v5383_v24  ;;  %v5661_v27 = vcombine.low %v5352_v26, %v5376_v36  ;;  %v5652_v3 = vrot.slane %v5644_v46, %v11949_v15 }
 0xce8   :  { %v5659_v7 = vrot.slane %v5645_v56, %v11949_v15  ;;  %v5400_v60 = vcombine.high %v5390_v2, %v5390_v2  ;;  %v5561_v49 = vrot.slane %v5547_v57, %v11949_v15  ;;  %v5662_v41 = vcombine.low %v5390_v2, %v5398_v42  ;;  %v15967_v56 = vld [vmem:[#allocation5_spill] sm:$0xff] }
 0xce9   :  { %v5401_v14 = vcombine.high %v5397_v17, %v5397_v17  ;;  %v5664_v5 = vcombine.low %v5397_v17, %v5399_v63  ;;  %v5671_v30 = vrot.slane %v5661_v27, %v11949_v15  ;;  %v5513_v53 = vcombine.low %v5505_v23, %v5512_v35  ;;  %v15969_v17 = vld [vmem:[#allocation6_spill] sm:$0xff] }
 0xcea   :  { %v5660_v43 = vcombine.low %v5652_v3, %v5659_v7  ;;  %v5663_v44 = vcombine.low %v5400_v60, %v5383_v24  ;;  %v5562_v45 = vcombine.low %v5554_v1, %v5561_v49  ;;  %v5678_v6 = vrot.slane %v5662_v41, %v11949_v15  ;;  %v15966_v24 = vld [vmem:[#allocation4_spill] sm:$0xff]  ;;  %v15970_v7 = vld [vmem:[#allocation7_spill] sm:$0xff]  ;;  %v15971_v49 = vld [vmem:[#allocation10_spill] sm:$0xff] }
 0xceb   :  { %v5692_v31 = vrot.slane %v5664_v5, %v11949_v15  ;;  %v5710_v16 = vcombine.low %v5401_v14, %v13158_v34  ;;  %v5727_v57 = vrot.slane %v5711_v10, %v11949_v15  ;;  %v5743_v4 = vcombine.low %v5734_v47, %v5741_v19  ;;  %v15972_v5 = vld [vmem:[#allocation9_spill] sm:$0xff] }
 0xcec   :  { %v5685_v62 = vrot.slane %v5663_v44, %v11949_v15  ;;  %v5781_v40 = vpack.c.bf16 %v5562_v45, %v5513_v53  ;;  %v5782_v33 = vpack.c.bf16 %v5660_v43, %v5611_v11  ;;  %v5693_v28 = vcombine.low %v5671_v30, %v5678_v6  ;;  %v15973_v43 = vld [vmem:[#allocation15_spill] sm:$0xff] }
 0xced   :  { %v5720_v0 = vrot.slane %v5710_v16, %v11949_v15  ;;  %v5766_v38 = vrot.slane %v5759_v18, %v11949_v15  ;;  %v5757_v10 = vrot.slane %v5743_v4, %v11949_v15  ;;  %v204_v26 = vcombine.high %v15963_v59, %v15963_v59  ;;  %v15968_v18 = vld [vmem:[#allocation8_spill] sm:$0xff]  ;;  %v15994_v44 = vld [vmem:[#allocation27_spill] sm:$0xff] }
 0xcee   :  { %v5694_v23 = vcombine.low %v5685_v62, %v5692_v31  ;;  %11575 = vmatprep.mubr.msk.bf16.mxu0 %vm1520_vm1, %v5781_v40  ;;  %v5701_v55 = vrot.slane %v5693_v28, %v11949_v15  ;;  %v205_v46 = vcombine.high %v15964_v39, %v15964_v39  ;;  %v206_v22 = vcombine.high %v15965_v9, %v15965_v9  ;;  %v15974_v40 = vld [vmem:[#allocation11_spill] sm:$0xff] }
 0xcef   :  { %11576 = vmatmul.mubr.msk.bf16.vlgmr.msra.gmra.mxu0 %vm1520_vm1, %v5782_v33  ;;  %v5742_v13 = vcombine.low %v5720_v0, %v5727_v57  ;;  %v5773_v47 = vrot.slane %v5766_v38, %v11949_v15  ;;  %v106_v35 = vcombine.high %v15966_v24, %v15966_v24  ;;  %v108_v2 = vcombine.high %v15968_v18, %v15968_v18 }
 0xcf0   :  { %v5708_v34 = vrot.slane %v5694_v23, %v11949_v15  ;;  %v155_v42 = vcombine.high %v15969_v17, %v15969_v17  ;;  %v156_v60 = vcombine.high %v15970_v7, %v15970_v7  ;;  %v157_v14 = vcombine.high %v15971_v49, %v15971_v49 }
 0xcf1   :  { %v5750_v11 = vrot.slane %v5742_v13, %v11949_v15  ;;  %v5784_v61 = vpack.c.bf16 %v5773_v47, %v5773_v47  ;;  %v109_v30 = vcombine.high %v15972_v5, %v15972_v5  ;;  %v158_v33 = vcombine.high %v15974_v40, %v15974_v40 }
 0xcf2   :  { %v5709_v25 = vcombine.low %v5701_v55, %v5708_v34 }
 0xcf3   :  { %v5758_v12 = vcombine.low %v5750_v11, %v5757_v10 }
 0xcf5   :  { %v5783_v51 = vpack.c.bf16 %v5758_v12, %v5709_v25 }
 0xcf7   :  { %11579 = vmatprep.mubr.msk.bf16.mxu0 %vm1520_vm1, %v5783_v51 }
 0xcf8   :  { %11580 = vmatmul.mubr.msk.bf16.gmra.mxu0 %vm1520_vm1, %v5784_v61 }
 0xdaf   :  { %v11577_v29 = vpop.f32.mrf.mxu0 }
 0xdb0   :  { %v5866_v19 = vadd.f32 %v11577_v29, %v13048_v52  ;;  %v107_v52 = vcombine.high %v15967_v56, %v15967_v56 }
 0xdb1   :  { %v5834_v37 = vpop.f32.mrf.mxu0 }
 0xdb2   :  { %v5880_v32 = vadd.f32 %v13220_v8, %v5866_v19  ;;  %v5864_v36 = vadd.f32 %v5834_v37, %v13053_v58 }
 0xdb3   :  { %v11578_v1 = vpop.f32.mrf.mxu0 }
 0xdb4   :  { %v5990_v63 = vcombine.high %v5880_v32, %v5880_v32  ;;  %v5997_v27 = vrot.slane %v5880_v32, %v11949_v15  ;;  %v5878_v3 = vadd.f32 %v13220_v8, %v5864_v36  ;;  %v5867_v58 = vadd.f32 %v11578_v1, %v13057_v48 }
 0xdb5   :  { %v5837_v41 = vpop.f32.mrf.mxu0 }
 0xdb6   :  { %v6004_v53 = vrot.slane %v5990_v63, %v11949_v15  ;;  %v6005_v45 = vcombine.high %v5997_v27, %v5997_v27  ;;  %v6013_v6 = vrot.slane %v5997_v27, %v11949_v15  ;;  %v5892_v31 = vcombine.high %v5878_v3, %v5878_v3 }
 0xdb7   :  { %v5899_v48 = vrot.slane %v5878_v3, %v11949_v15  ;;  %v5881_v16 = vadd.f32 %v13220_v8, %v5867_v58  ;;  %v5865_v62 = vadd.f32 %v5837_v41, %v13063_v54 }
 0xdb8   :  { %v6006_v57 = vcombine.high %v6004_v53, %v6004_v53  ;;  %v6020_v4 = vrot.slane %v6004_v53, %v11949_v15  ;;  %v6027_v28 = vrot.slane %v6005_v45, %v11949_v15  ;;  %v6035_v0 = vcombine.high %v6013_v6, %v6013_v6  ;;  %v11581_v38 = vpop.f32.mrf.mxu0 }
 0xdb9   :  { %v13260_v23 = vadd.f32 %v6013_v6, %v15963_v59  ;;  %v5906_v13 = vrot.slane %v5892_v31, %v11949_v15  ;;  %v5907_v34 = vcombine.high %v5899_v48, %v5899_v48  ;;  %v5915_v55 = vrot.slane %v5899_v48, %v11949_v15 }
 0xdba   :  { %v13265_v54 = vrot.slane %v6006_v57, %v11949_v15  ;;  %v6036_v11 = vcombine.high %v6020_v4, %v6020_v4  ;;  %v6037_v10 = vcombine.high %v6027_v28, %v6027_v28  ;;  %v13268_v47 = vadd.f32 %v6027_v28, %v15965_v9  ;;  %v5850_v25 = vpop.f32.mrf.mxu0 }
 0xdbb   :  { %v13270_v12 = vadd.f32 %v6035_v0, %v204_v26  ;;  %v13273_v51 = vadd.f32 %v6020_v4, %v15964_v39  ;;  %v5908_v61 = vcombine.high %v5906_v13, %v5906_v13  ;;  %v5922_v29 = vrot.slane %v5906_v13, %v11949_v15  ;;  %v15991_v26 = vld [vmem:[#allocation26_spill] sm:$0xff] }
 0xdbc   :  { %v13278_v59 = vadd.f32 %v6037_v10, %v206_v22  ;;  %v13282_v37 = vadd.f32 %v13265_v54, %v15973_v43  ;;  %v13284_v9 = vadd.f32 %v6036_v11, %v205_v46  ;;  %v11582_v32 = vpop.f32.mrf.mxu0  ;;  %v5929_v39 = vrot.slane %v5907_v34, %v11949_v15  ;;  %v15977_v10 = vld [vmem:[#allocation22_spill] sm:$0xff] }
 0xdbd   :  { %v13290_v36 = vrot.slane %v5908_v61, %v11949_v15  ;;  %v5937_v1 = vcombine.high %v5915_v55, %v5915_v55  ;;  %v5938_v63 = vcombine.high %v5922_v29, %v5922_v29  ;;  %v13293_v22 = vadd.f32 %v5915_v55, %v15966_v24 }
 0xdbe   :  { %15975 = vst [vmem:[#allocation41_spill] sm:$0xff] %v13282_v37  ;;  %v13296_v27 = vadd.f32 %v5922_v29, %v15967_v56  ;;  %v6039_v3 = vcombine.high %v5881_v16, %v5881_v16  ;;  %v5939_v46 = vcombine.high %v5929_v39, %v5929_v39  ;;  %v13301_v41 = vadd.f32 %v5929_v39, %v15968_v18 }
 0xdbf   :  { %v5940_v58 = vcombine.high %v13290_v36, %v13290_v36  ;;  %v13303_v53 = vadd.f32 %v5937_v1, %v106_v35  ;;  %v13307_v45 = vadd.f32 %v13290_v36, %v15972_v5  ;;  %v13309_v6 = vadd.f32 %v5938_v63, %v107_v52  ;;  %v15979_v1 = vld [vmem:[#allocation18_spill] sm:$0xff] }
 0xdc0   :  { %v6046_v24 = vrot.slane %v5881_v16, %v11949_v15  ;;  %v6053_v56 = vrot.slane %v6039_v3, %v11949_v15  ;;  %v13313_v31 = vadd.f32 %v5939_v46, %v108_v2  ;;  %v6360_v48 = vcombine.low %v13293_v22, %v13301_v41  ;;  %v15980_v3 = vld [vmem:[#allocation17_spill] sm:$0xff] }
 0xdc1   :  { %v5879_v18 = vadd.f32 %v13220_v8, %v5865_v62  ;;  %v5870_v35 = vadd.f32 %v11581_v38, %v13067_v20  ;;  %v5868_v2 = vadd.f32 %v5850_v25, %v13070_v50  ;;  %v15976_v38 = vld [vmem:[#allocation3_spill] sm:$0xff]  ;;  %v15978_v25 = vld [vmem:[#allocation16_spill] sm:$0xff] }
 0xdc2   :  { %v6054_v57 = vcombine.high %v6046_v24, %v6046_v24  ;;  %v6055_v4 = vcombine.high %v6053_v56, %v6053_v56  ;;  %v6062_v28 = vrot.slane %v6046_v24, %v11949_v15  ;;  %v6069_v52 = vrot.slane %v6053_v56, %v11949_v15  ;;  %v15981_v24 = vld [vmem:[#allocation20_spill] sm:$0xff] }
 0xdc3   :  { %v5941_v0 = vcombine.high %v5879_v18, %v5879_v18  ;;  %v5948_v16 = vrot.slane %v5879_v18, %v11949_v15  ;;  %v5884_v13 = vadd.f32 %v13220_v8, %v5870_v35 }
 0xdc4   :  { %v6076_v34 = vrot.slane %v6054_v57, %v11949_v15  ;;  %v13326_v55 = vrot.slane %v6055_v4, %v11949_v15  ;;  %v6084_v62 = vcombine.high %v6062_v28, %v6062_v28  ;;  %v6085_v20 = vcombine.high %v6069_v52, %v6069_v52  ;;  %v15982_v57 = vld [vmem:[#allocation19_spill] sm:$0xff] }
 0xdc5   :  { %v13329_v11 = vadd.f32 %v6062_v28, %v15976_v38  ;;  %v13332_v61 = vadd.f32 %v6069_v52, %v15977_v10  ;;  %v5955_v29 = vrot.slane %v5941_v0, %v11949_v15  ;;  %v5956_v32 = vcombine.high %v5948_v16, %v5948_v16  ;;  %v15989_v28 = vld [vmem:[#allocation24_spill] sm:$0xff] }
 0xdc6   :  { %v6086_v39 = vcombine.high %v6076_v34, %v6076_v34  ;;  %v13338_v36 = vadd.f32 %v6076_v34, %v15978_v25  ;;  %v13341_v63 = vadd.f32 %v6084_v62, %v15979_v1  ;;  %v13345_v46 = vadd.f32 %v13326_v55, %v15980_v3  ;;  %v5853_v1 = vpop.f32.mrf.mxu0 }
 0xdc7   :  { %v13348_v56 = vadd.f32 %v6085_v20, %v15981_v24  ;;  %v5957_v18 = vcombine.high %v5955_v29, %v5955_v29  ;;  %v5964_v35 = vrot.slane %v5948_v16, %v11949_v15  ;;  %v5971_v52 = vrot.slane %v5955_v29, %v11949_v15 }
 0xdc8   :  { %v13352_v4 = vadd.f32 %v6086_v39, %v15982_v57  ;;  %v5978_v0 = vrot.slane %v5956_v32, %v11949_v15  ;;  %v6192_v20 = vrot.slane %v5884_v13, %v11949_v15  ;;  %v5882_v57 = vadd.f32 %v13220_v8, %v5868_v2 }
 0xdc9   :  { %v5985_v34 = vrot.slane %v5957_v18, %v11949_v15  ;;  %v5986_v62 = vcombine.high %v5964_v35, %v5964_v35  ;;  %v13360_v38 = vadd.f32 %v5964_v35, %v15969_v17  ;;  %v5987_v10 = vcombine.high %v5971_v52, %v5971_v52 }
 0xdca   :  { %v5988_v16 = vcombine.high %v5978_v0, %v5978_v0  ;;  %v13364_v39 = vadd.f32 %v5978_v0, %v15971_v49  ;;  %v13367_v25 = vadd.f32 %v5971_v52, %v15970_v7  ;;  %v6193_v24 = vcombine.high %v6192_v20, %v6192_v20  ;;  %v15986_v7 = vld [vmem:[#allocation39_spill] sm:$0xff] }
 0xdcb   :  { %v5989_v29 = vcombine.high %v5985_v34, %v5985_v34  ;;  %v13372_v32 = vadd.f32 %v5986_v62, %v155_v42  ;;  %v13375_v3 = vadd.f32 %v5985_v34, %v15974_v40  ;;  %v13385_v18 = vadd.f32 %v5987_v10, %v156_v60 }
 0xdcc   :  { %15983 = vst [vmem:[#allocation12_spill] sm:$0xff] %v13367_v25  ;;  %v13380_v13 = vadd.f32 %v5988_v16, %v157_v14  ;;  %v6200_v17 = vrot.slane %v6192_v20, %v11949_v15  ;;  %v13391_v42 = vrot.slane %v6193_v24, %v11949_v15  ;;  %v5869_v52 = vadd.f32 %v5853_v1, %v13074_v21 }
 0xdcd   :  { %15984 = vst [vmem:[#allocation13_spill] sm:$0xff] %v13375_v3  ;;  %v13398_v49 = vadd.f32 %v5940_v58, %v109_v30  ;;  %v6361_v14 = vcombine.low %v13303_v53, %v13313_v31  ;;  %v6362_v0 = vcombine.low %v13296_v27, %v13307_v45  ;;  %v6370_v34 = vrot.slane %v6360_v48, %v11949_v15 }
 0xdce   :  { %15985 = vst [vmem:[#allocation14_spill] sm:$0xff] %v13380_v13  ;;  %v13401_v60 = vadd.f32 %v6200_v17, %v15986_v7  ;;  %v6088_v62 = vcombine.high %v5882_v57, %v5882_v57  ;;  %v6095_v2 = vrot.slane %v5882_v57, %v11949_v15  ;;  %v5883_v21 = vadd.f32 %v13220_v8, %v5869_v52 }
 0xdcf   :  { %v6363_v5 = vcombine.low %v13309_v6, %v13398_v49  ;;  %v6377_v30 = vrot.slane %v6361_v14, %v11949_v15  ;;  %v6384_v58 = vrot.slane %v6362_v0, %v11949_v15  ;;  %v13417_v20 = vadd.f32 %v5989_v29, %v158_v33  ;;  %v15987_v14 = vld [vmem:[#allocation23_spill] sm:$0xff] }
 0xdd0   :  { %v6410_v48 = vcombine.low %v13372_v32, %v13380_v13  ;;  %v6102_v10 = vrot.slane %v6088_v62, %v11949_v15  ;;  %v6103_v16 = vcombine.high %v6095_v2, %v6095_v2  ;;  %v6111_v8 = vrot.slane %v6095_v2, %v11949_v15 }
 0xdd1   :  { %v6137_v1 = vcombine.high %v5883_v21, %v5883_v21  ;;  %v6144_v24 = vrot.slane %v5883_v21, %v11949_v15  ;;  %v6391_v17 = vrot.slane %v6363_v5, %v11949_v15  ;;  %v6392_v57 = vcombine.low %v6370_v34, %v6377_v30 }
 0xdd2   :  { %v6411_v52 = vcombine.low %v13367_v25, %v13375_v3  ;;  %v6104_v40 = vcombine.high %v6102_v10, %v6102_v10  ;;  %v6118_v33 = vrot.slane %v6102_v10, %v11949_v15  ;;  %v6125_v29 = vrot.slane %v6103_v16, %v11949_v15  ;;  %v15992_v16 = vld [vmem:[#allocation30_spill] sm:$0xff]  ;;  %v15997_v3 = vld [vmem:[#allocation28_spill] sm:$0xff] }
 0xdd3   :  { %v6133_v7 = vcombine.high %v6111_v8, %v6111_v8  ;;  %v13430_v0 = vadd.f32 %v6111_v8, %v15987_v14  ;;  %v6151_v62 = vrot.slane %v6137_v1, %v11949_v15  ;;  %v6152_v2 = vcombine.high %v6144_v24, %v6144_v24 }
 0xdd4   :  { %v6160_v21 = vrot.slane %v6144_v24, %v11949_v15  ;;  %v6132_v5 = vrot.slane %v6104_v40, %v11949_v15  ;;  %v6134_v34 = vcombine.high %v6118_v33, %v6118_v33  ;;  %v6135_v30 = vcombine.high %v6125_v29, %v6125_v29  ;;  %v15995_v24 = vld [vmem:[#allocation25_spill] sm:$0xff] }
 0xdd5   :  { %15988 = vst [vmem:[#allocation4_spill] sm:$0xff] %v13430_v0  ;;  %v13436_v50 = vadd.f32 %v6125_v29, %v15989_v28  ;;  %v13439_v10 = vadd.f32 %v6133_v7, %v15991_v26  ;;  %v13442_v19 = vadd.f32 %v6118_v33, %v15992_v16  ;;  %v6153_v8 = vcombine.high %v6151_v62, %v6151_v62 }
 0xdd6   :  { %v6167_v14 = vrot.slane %v6151_v62, %v11949_v15  ;;  %v6136_v1 = vcombine.high %v6132_v5, %v6132_v5  ;;  %v13446_v35 = vadd.f32 %v6135_v30, %v15994_v44  ;;  %v13449_v40 = vadd.f32 %v6132_v5, %v15995_v24  ;;  %v15998_v62 = vld [vmem:[#allocation34_spill] sm:$0xff] }
 0xdd7   :  { %15990 = vst [vmem:[#allocation5_spill] sm:$0xff] %v13436_v50  ;;  %15993 = vst [vmem:[#allocation8_spill] sm:$0xff] %v13442_v19  ;;  %v13452_v25 = vadd.f32 %v6134_v34, %v15997_v3  ;;  %v6556_v26 = vcombine.low %v13430_v0, %v13436_v50  ;;  %v6174_v28 = vrot.slane %v6152_v2, %v11949_v15  ;;  %v15999_v44 = vld [vmem:[#allocation38_spill] sm:$0xff]  ;;  %v16000_v34 = vld [vmem:[#allocation31_spill] sm:$0xff] }
 0xdd8   :  { %15996 = vst [vmem:[#allocation6_spill] sm:$0xff] %v13449_v40  ;;  %v13458_v33 = vrot.slane %v6153_v8, %v11949_v15  ;;  %v6182_v29 = vcombine.high %v6160_v21, %v6160_v21  ;;  %v6183_v7 = vcombine.high %v6167_v14, %v6167_v14  ;;  %v13461_v16 = vadd.f32 %v6160_v21, %v15998_v62  ;;  %v16001_v2 = vld [vmem:[#allocation33_spill] sm:$0xff]  ;;  %v16002_v8 = vld [vmem:[#allocation32_spill] sm:$0xff]  ;;  %v16004_v21 = vld [vmem:[#allocation35_spill] sm:$0xff] }
 0xdd9   :  { %v13464_v30 = vadd.f32 %v6167_v14, %v15999_v44  ;;  %v6393_v5 = vcombine.low %v6384_v58, %v6391_v17  ;;  %v6184_v24 = vcombine.high %v6174_v28, %v6174_v28  ;;  %v13469_v50 = vadd.f32 %v6174_v28, %v16000_v34  ;;  %v16006_v17 = vld [vmem:[#allocation36_spill] sm:$0xff] }
 0xdda   :  { %v6185_v3 = vcombine.high %v13458_v33, %v13458_v33  ;;  %v13472_v0 = vadd.f32 %v6182_v29, %v16001_v2  ;;  %v13476_v13 = vadd.f32 %v13458_v33, %v16002_v8  ;;  %v13479_v62 = vadd.f32 %v6183_v7, %v16004_v21 }
 0xddb   :  { %v6400_v14 = vrot.slane %v6392_v57, %v11949_v15  ;;  %v6407_v58 = vrot.slane %v6393_v5, %v11949_v15  ;;  %v13484_v44 = vadd.f32 %v6184_v24, %v16006_v17  ;;  %v6412_v29 = vcombine.low %v13385_v18, %v13417_v20 }
 0xddc   :  { %16003 = vst [vmem:[#allocation7_spill] sm:$0xff] %v13476_v13  ;;  %16005 = vst [vmem:[#allocation10_spill] sm:$0xff] %v13479_v62  ;;  %v16007_v33 = vcombine.low %v13360_v38, %v13364_v39  ;;  %v6426_v2 = vrot.slane %v6410_v48, %v11949_v15  ;;  %v6433_v57 = vrot.slane %v6411_v52, %v11949_v15 }
 0xddd   :  { %v6408_v7 = vcombine.low %v6400_v14, %v6407_v58  ;;  %v16008_v5 = vcombine.high %v15973_v43, %v15973_v43  ;;  %v16009_v24 = vcombine.high %v13265_v54, %v13265_v54  ;;  %v6440_v21 = vrot.slane %v6412_v29, %v11949_v15 }
 0xdde   :  { %v6419_v34 = vrot.slane %v16007_v33, %v11949_v15  ;;  %v6459_v17 = vcombine.low %v13270_v12, %v13278_v59  ;;  %v6460_v14 = vcombine.low %v13273_v51, %v13282_v37  ;;  %v16010_v48 = vcombine.low %v13260_v23, %v13268_v47  ;;  %v16011_v33 = vld [vmem:[#allocation29_spill] sm:$0xff] }
 0xddf   :  { %v13502_v8 = vadd.f32 %v16009_v24, %v16008_v5  ;;  %v6676_v43 = vsel %vm776_vm0, %v6408_v7, 0.0  ;;  %v13517_v5 = vadd.f32 %v6136_v1, %v16011_v33  ;;  %v6442_v29 = vcombine.low %v6433_v57, %v6440_v21  ;;  %v16013_v33 = vld [vmem:[#allocation21_spill] sm:$0xff] }
 0xde0   :  { %v6468_v52 = vrot.slane %v16010_v48, %v11949_v15  ;;  %v6441_v58 = vcombine.low %v6419_v34, %v6426_v2  ;;  %6677 = vadd.xlane.f32.xlu0 %v6676_v43  ;;  %v6475_v24 = vrot.slane %v6459_v17, %v11949_v15  ;;  %v6482_v28 = vrot.slane %v6460_v14, %v11949_v15 }
 0xde1   :  { %v6461_v54 = vcombine.low %v13284_v9, %v13502_v8  ;;  %16012 = vst [vmem:[#allocation9_spill] sm:$0xff] %v13517_v5  ;;  %v6557_v37 = vcombine.low %v13439_v10, %v13446_v35  ;;  %v6558_v34 = vcombine.low %v13442_v19, %v13449_v40  ;;  %v6559_v1 = vcombine.low %v13452_v25, %v13517_v5 }
 0xde2   :  { %v6449_v48 = vrot.slane %v6441_v58, %v11949_v15  ;;  %v6456_v2 = vrot.slane %v6442_v29, %v11949_v15  ;;  %v6490_v57 = vcombine.low %v6468_v52, %v6475_v24  ;;  %v6566_v21 = vrot.slane %v6556_v26, %v11949_v15 }
 0xde3   :  { %v6489_v7 = vrot.slane %v6461_v54, %v11949_v15  ;;  %v6573_v17 = vrot.slane %v6557_v37, %v11949_v15  ;;  %v6580_v43 = vrot.slane %v6558_v34, %v11949_v15  ;;  %v6587_v58 = vrot.slane %v6559_v1, %v11949_v15 }
 0xde4   :  { %v16014_v54 = vcombine.high %v13326_v55, %v13326_v55  ;;  %v6457_v19 = vcombine.low %v6449_v48, %v6456_v2  ;;  %v6498_v5 = vrot.slane %v6490_v57, %v11949_v15  ;;  %v6508_v26 = vcombine.low %v13341_v63, %v13352_v4 }
 0xde5   :  { %v6491_v14 = vcombine.low %v6482_v28, %v6489_v7  ;;  %v6588_v29 = vcombine.low %v6566_v21, %v6573_v17  ;;  %v6589_v28 = vcombine.low %v6580_v43, %v6587_v58  ;;  %v6509_v52 = vcombine.low %v13332_v61, %v13345_v46  ;;  %v16016_v43 = vld [vmem:[#allocation40_spill] sm:$0xff]  ;;  %v16017_v58 = vld [vmem:[#allocation37_spill] sm:$0xff] }
 0xde6   :  { %v13538_v40 = vadd.f32 %v16014_v54, %v16013_v33  ;;  %v6679_v55 = vsel %vm776_vm0, %v6457_v19, 0.0  ;;  %v16015_v48 = vcombine.low %v13329_v11, %v13338_v36  ;;  %v6524_v1 = vrot.slane %v6508_v26, %v11949_v15 }
 0xde7   :  { %v6505_v37 = vrot.slane %v6491_v14, %v11949_v15  ;;  %v6596_v7 = vrot.slane %v6588_v29, %v11949_v15  ;;  %6680 = vadd.xlane.f32.xlu1 %v6679_v55  ;;  %v6603_v57 = vrot.slane %v6589_v28, %v11949_v15  ;;  %v6531_v21 = vrot.slane %v6509_v52, %v11949_v15 }
 0xde8   :  { %v6510_v24 = vcombine.low %v13348_v56, %v13538_v40  ;;  %v6517_v34 = vrot.slane %v16015_v48, %v11949_v15  ;;  %v13560_v19 = vadd.f32 %v13391_v42, %v16016_v43  ;;  %v13563_v33 = vadd.f32 %v6185_v3, %v16017_v58 }
 0xde9   :  { %v6506_v2 = vcombine.low %v6498_v5, %v6505_v37  ;;  %v6606_v54 = vcombine.low %v13472_v0, %v13484_v44  ;;  %v6604_v5 = vcombine.low %v6596_v7, %v6603_v57  ;;  %v6607_v37 = vcombine.low %v13464_v30, %v13476_v13 }
 0xdea   :  { %v6538_v17 = vrot.slane %v6510_v24, %v11949_v15  ;;  %v6539_v14 = vcombine.low %v6517_v34, %v6524_v1  ;;  %16018 = vst [vmem:[#allocation15_spill] sm:$0xff] %v13563_v33  ;;  %v6654_v42 = vcombine.low %v13401_v60, %v13560_v19  ;;  %v6608_v3 = vcombine.low %v13479_v62, %v13563_v33 }
 0xdeb   :  { %v6682_v29 = vsel %vm776_vm0, %v6506_v2, 0.0  ;;  %v6688_v52 = vsel %vm776_vm0, %v6604_v5, 0.0  ;;  %v16019_v55 = vcombine.low %v13461_v16, %v13469_v50  ;;  %v6622_v48 = vrot.slane %v6606_v54, %v11949_v15 }
 0xdec   :  { %v6540_v26 = vcombine.low %v6531_v21, %v6538_v17  ;;  %6683 = vadd.xlane.f32.xlu0 %v6682_v29  ;;  %v6547_v28 = vrot.slane %v6539_v14, %v11949_v15  ;;  %6689 = vadd.xlane.f32.xlu1 %v6688_v52  ;;  %v6661_v34 = vrot.slane %v6654_v42, %v11949_v15 }
 0xded   :  { %v6615_v7 = vrot.slane %v16019_v55, %v11949_v15  ;;  %v6629_v1 = vrot.slane %v6607_v37, %v11949_v15  ;;  %v6636_v2 = vrot.slane %v6608_v3, %v11949_v15  ;;  %v16020_v37 = vld [vmem:[#allocation2_spill] sm:$0xff] }
 0xdee   :  { %v6554_v24 = vrot.slane %v6540_v26, %v11949_v15  ;;  %v6668_v17 = vrot.slane %v6661_v34, %v11949_v15  ;;  %v13595_v42 = vsub.s32 1, %v16020_v37  ;;  %v13598_v3 = vsub.s32 2, %v16020_v37 }
 0xdef   :  { %v6637_v21 = vcombine.low %v6615_v7, %v6622_v48  ;;  %v6638_v14 = vcombine.low %v6629_v1, %v6636_v2  ;;  %v13601_v52 = vsub.s32 3, %v16020_v37  ;;  %v13604_v55 = vsub.s32 4, %v16020_v37 }
 0xdf0   :  { %v6555_v57 = vcombine.low %v6547_v28, %v6554_v24  ;;  %v6695_v58 = vsel %vm6694_vm6, %v6668_v17, 0.0  ;;  %v13592_v28 = vsub.s32 0, %v16020_v37  ;;  %16022 = vst [vmem:[#allocation3_spill] sm:$0xff] %v13595_v42  ;;  %16023 = vst [vmem:[#allocation22_spill] sm:$0xff] %v13598_v3  ;;  %v13607_v7 = vsub.s32 5, %v16020_v37 }
 0xdf1   :  { %v6645_v54 = vrot.slane %v6637_v21, %v11949_v15  ;;  %v6652_v29 = vrot.slane %v6638_v14, %v11949_v15  ;;  %6696 = vadd.xlane.f32.xlu1 %v6695_v58  ;;  %16024 = vst [vmem:[#allocation16_spill] sm:$0xff] %v13601_v52  ;;  %16025 = vst [vmem:[#allocation18_spill] sm:$0xff] %v13604_v55  ;;  %v13610_v48 = vsub.s32 6, %v16020_v37  ;;  %v13613_v34 = vsub.s32 7, %v16020_v37 }
 0xdf2   :  { %v6685_v43 = vsel %vm776_vm0, %v6555_v57, 0.0  ;;  %16021 = vst [vmem:[#allocation11_spill] sm:$0xff] %v13592_v28  ;;  %16026 = vst [vmem:[#allocation17_spill] sm:$0xff] %v13607_v7 }
 0xdf3   :  { %6686 = vadd.xlane.f32.xlu0 %v6685_v43  ;;  %v6653_v5 = vcombine.low %v6645_v54, %v6652_v29  ;;  %16027 = vst [vmem:[#allocation20_spill] sm:$0xff] %v13610_v48  ;;  %16028 = vst [vmem:[#allocation19_spill] sm:$0xff] %v13613_v34 }
 0xdf5   :  { %v6691_v26 = vsel %vm776_vm0, %v6653_v5, 0.0 }
 0xdf7   :  { %6692 = vadd.xlane.f32.xlu0 %v6691_v26 }
 0xe69   :  { %v6678_v24 = vpop.xlane.xlu0 %6677 }
 0xe6a   :  { %v6699_v1 = vmul.f32 0.03125, %v6678_v24 }
 0xe6c   :  { %v6716_v2 = vrot.slane %v6699_v1, %v13592_v28  ;;  %v6720_v57 = vrot.slane %v6699_v1, %v13595_v42  ;;  %v6724_v21 = vrot.slane %v6699_v1, %v13598_v3  ;;  %v6728_v17 = vrot.slane %v6699_v1, %v13601_v52 }
 0xe6d   :  { %v6732_v14 = vrot.slane %v6699_v1, %v13604_v55  ;;  %v6736_v43 = vrot.slane %v6699_v1, %v13607_v7  ;;  %v6740_v58 = vrot.slane %v6699_v1, %v13610_v48  ;;  %v6744_v54 = vrot.slane %v6699_v1, %v13613_v34 }
 0xe6e   :  { %v13624_v29 = vsub.f32 %v13293_v22, %v6716_v2  ;;  %v13627_v5 = vsub.f32 %v13301_v41, %v6720_v57  ;;  %v13630_v26 = vsub.f32 %v13303_v53, %v6724_v21  ;;  %v13633_v37 = vsub.f32 %v13313_v31, %v6728_v17 }
 0xe6f   :  { %v13636_v24 = vsub.f32 %v13296_v27, %v6732_v14  ;;  %v13639_v33 = vsub.f32 %v13307_v45, %v6736_v43  ;;  %v13642_v1 = vsub.f32 %v13309_v6, %v6740_v58  ;;  %v13645_v22 = vsub.f32 %v13398_v49, %v6744_v54 }
 0xe70   :  { %16029 = vst [vmem:[#allocation39_spill] sm:$0xff] %v13624_v29  ;;  %16030 = vst [vmem:[#allocation23_spill] sm:$0xff] %v13627_v5  ;;  %v6681_v41 = vpop.xlane.xlu1 %6680  ;;  %v7013_v53 = vmul.f32 %v13624_v29, %v13624_v29  ;;  %v7014_v31 = vmul.f32 %v13627_v5, %v13627_v5  ;;  %v7015_v27 = vmul.f32 %v13630_v26, %v13630_v26  ;;  %v16037_v29 = vld [vmem:[#allocation14_spill] sm:$0xff] }
 0xe71   :  { %16031 = vst [vmem:[#allocation24_spill] sm:$0xff] %v13630_v26  ;;  %16032 = vst [vmem:[#allocation26_spill] sm:$0xff] %v13633_v37  ;;  %v7016_v45 = vmul.f32 %v13633_v37, %v13633_v37  ;;  %v6700_v2 = vmul.f32 0.03125, %v6681_v41  ;;  %v7017_v6 = vmul.f32 %v13636_v24, %v13636_v24  ;;  %v7018_v49 = vmul.f32 %v13639_v33, %v13639_v33 }
 0xe72   :  { %16033 = vst [vmem:[#allocation30_spill] sm:$0xff] %v13636_v24  ;;  %16034 = vst [vmem:[#allocation27_spill] sm:$0xff] %v13639_v33  ;;  %v7019_v57 = vmul.f32 %v13642_v1, %v13642_v1  ;;  %v7020_v21 = vmul.f32 %v13645_v22, %v13645_v22  ;;  %v7113_v17 = vcombine.low %v7013_v53, %v7014_v31 }
 0xe73   :  { %16035 = vst [vmem:[#allocation25_spill] sm:$0xff] %v13642_v1  ;;  %16036 = vst [vmem:[#allocation28_spill] sm:$0xff] %v13645_v22  ;;  %v7114_v14 = vcombine.low %v7015_v27, %v7016_v45  ;;  %v7115_v58 = vcombine.low %v7017_v6, %v7018_v49  ;;  %v6748_v54 = vrot.slane %v6700_v2, %v13592_v28 }
 0xe74   :  { %v6752_v41 = vrot.slane %v6700_v2, %v13595_v42  ;;  %v6756_v37 = vrot.slane %v6700_v2, %v13598_v3  ;;  %v7116_v26 = vcombine.low %v7019_v57, %v7020_v21  ;;  %v7123_v33 = vrot.slane %v7113_v17, %v11949_v15 }
 0xe75   :  { %v6684_v43 = vpop.xlane.xlu0 %6683  ;;  %v7130_v1 = vrot.slane %v7114_v14, %v11949_v15  ;;  %v6690_v5 = vpop.xlane.xlu1 %6689  ;;  %v7137_v22 = vrot.slane %v7115_v58, %v11949_v15  ;;  %v6760_v53 = vrot.slane %v6700_v2, %v13601_v52  ;;  %v6764_v31 = vrot.slane %v6700_v2, %v13604_v55 }
 0xe76   :  { %v13666_v24 = vmul.f32 0.03125, %v6684_v43  ;;  %v6768_v27 = vrot.slane %v6700_v2, %v13607_v7  ;;  %v13674_v45 = vmul.f32 0.03125, %v6690_v5  ;;  %v7144_v6 = vrot.slane %v7116_v26, %v11949_v15 }
 0xe77   :  { %v7145_v49 = vcombine.low %v7123_v33, %v7130_v1  ;;  %v6772_v57 = vrot.slane %v6700_v2, %v13610_v48  ;;  %v6776_v21 = vrot.slane %v6700_v2, %v13613_v34  ;;  %v13680_v17 = vsub.f32 %v13360_v38, %v6748_v54  ;;  %v16038_v33 = vld [vmem:[#allocation12_spill] sm:$0xff]  ;;  %v16040_v2 = vld [vmem:[#allocation13_spill] sm:$0xff] }
 0xe78   :  { %v13683_v14 = vsub.f32 %v13364_v39, %v6752_v41  ;;  %v13686_v43 = vsub.f32 %v13372_v32, %v6756_v37  ;;  %v7146_v58 = vcombine.low %v7137_v22, %v7144_v6  ;;  %v13690_v62 = vsub.f32 %v16037_v29, %v6760_v53 }
 0xe79   :  { %v7153_v5 = vrot.slane %v7145_v49, %v11949_v15  ;;  %v13693_v26 = vsub.f32 %v16038_v33, %v6764_v31  ;;  %v13696_v13 = vsub.f32 %v16040_v2, %v6768_v27  ;;  %v13699_v38 = vsub.f32 %v13385_v18, %v6772_v57 }
 0xe7a   :  { %v13702_v39 = vsub.f32 %v13417_v20, %v6776_v21  ;;  %v7021_v32 = vmul.f32 %v13680_v17, %v13680_v17  ;;  %v6697_v29 = vpop.xlane.xlu1 %6696  ;;  %v7160_v22 = vrot.slane %v7146_v58, %v11949_v15  ;;  %v7022_v54 = vmul.f32 %v13683_v14, %v13683_v14 }
 0xe7b   :  { %16039 = vst [vmem:[#allocation34_spill] sm:$0xff] %v13693_v26  ;;  %16041 = vst [vmem:[#allocation38_spill] sm:$0xff] %v13696_v13  ;;  %v7023_v41 = vmul.f32 %v13686_v43, %v13686_v43  ;;  %v6705_v53 = vmul.f32 0.03125, %v6697_v29  ;;  %v7024_v18 = vmul.f32 %v13690_v62, %v13690_v62  ;;  %v7025_v20 = vmul.f32 %v13693_v26, %v13693_v26 }
 0xe7c   :  { %v6687_v1 = vpop.xlane.xlu0 %6686  ;;  %v7026_v31 = vmul.f32 %v13696_v13, %v13696_v13  ;;  %v7161_v27 = vcombine.low %v7153_v5, %v7160_v22  ;;  %v7027_v6 = vmul.f32 %v13699_v38, %v13699_v38  ;;  %v7028_v49 = vmul.f32 %v13702_v39, %v13702_v39 }
 0xe7d   :  { %v13706_v37 = vmul.f32 0.03125, %v6687_v1  ;;  %v7162_v57 = vcombine.low %v7021_v32, %v7022_v54  ;;  %v6908_v21 = vrot.slane %v6705_v53, %v13592_v28  ;;  %v6912_v58 = vrot.slane %v6705_v53, %v13595_v42 }
 0xe7e   :  { %v7163_v33 = vcombine.low %v7023_v41, %v7024_v18  ;;  %v7164_v1 = vcombine.low %v7025_v20, %v7026_v31  ;;  %v7429_v29 = vsel %vm776_vm0, %v7161_v27, 0.0  ;;  %v7165_v26 = vcombine.low %v7027_v6, %v7028_v49 }
 0xe7f   :  { %v7172_v13 = vrot.slane %v7162_v57, %v11949_v15  ;;  %v6780_v5 = vrot.slane %v13666_v24, %v13592_v28  ;;  %v13730_v22 = vsub.f32 %v13401_v60, %v6908_v21  ;;  %v13733_v32 = vsub.f32 %v13560_v19, %v6912_v58  ;;  %7430 = vadd.xlane.f32.xlu0 %v7429_v29 }
 0xe80   :  { %v6693_v2 = vpop.xlane.xlu0 %6692  ;;  %v7179_v41 = vrot.slane %v7163_v33, %v11949_v15  ;;  %v7186_v53 = vrot.slane %v7164_v1, %v11949_v15  ;;  %v7193_v18 = vrot.slane %v7165_v26, %v11949_v15  ;;  %v6784_v20 = vrot.slane %v13666_v24, %v13595_v42 }
 0xe81   :  { %16042 = vst [vmem:[#allocation31_spill] sm:$0xff] %v13730_v22  ;;  %16043 = vst [vmem:[#allocation33_spill] sm:$0xff] %v13733_v32  ;;  %v13735_v54 = vmul.f32 0.03125, %v6693_v2  ;;  %v6788_v31 = vrot.slane %v13666_v24, %v13598_v3  ;;  %v13746_v60 = vmul.f32 %v13730_v22, %v13730_v22  ;;  %v13750_v19 = vmul.f32 %v13733_v32, %v13733_v32 }
 0xe82   :  { %v7194_v27 = vcombine.low %v7172_v13, %v7179_v41  ;;  %v6792_v6 = vrot.slane %v13666_v24, %v13601_v52  ;;  %v7195_v49 = vcombine.low %v7186_v53, %v7193_v18  ;;  %v6796_v26 = vrot.slane %v13666_v24, %v13604_v55  ;;  %v16044_v18 = vld [vmem:[#allocation41_spill] sm:$0xff] }
 0xe83   :  { %v6800_v57 = vrot.slane %v13666_v24, %v13607_v7  ;;  %v6804_v21 = vrot.slane %v13666_v24, %v13610_v48  ;;  %v6808_v33 = vrot.slane %v13666_v24, %v13613_v34  ;;  %v13764_v13 = vsub.f32 %v13260_v23, %v6780_v5 }
 0xe84   :  { %v7202_v58 = vrot.slane %v7194_v27, %v11949_v15  ;;  %v13767_v1 = vsub.f32 %v13268_v47, %v6784_v20  ;;  %v7209_v2 = vrot.slane %v7195_v49, %v11949_v15  ;;  %v13771_v29 = vsub.f32 %v13270_v12, %v6788_v31 }
 0xe85   :  { %v13774_v41 = vsub.f32 %v13278_v59, %v6792_v6  ;;  %v13777_v53 = vsub.f32 %v13273_v51, %v6796_v26  ;;  %v13780_v27 = vsub.f32 %v16044_v18, %v6800_v57  ;;  %v13783_v23 = vsub.f32 %v13284_v9, %v6804_v21 }
 0xe86   :  { %v13786_v47 = vsub.f32 %v13502_v8, %v6808_v33  ;;  %v7029_v24 = vmul.f32 %v13764_v13, %v13764_v13  ;;  %v7210_v12 = vcombine.low %v7202_v58, %v7209_v2  ;;  %v7030_v59 = vmul.f32 %v13767_v1, %v13767_v1 }
 0xe87   :  { %16045 = vst [vmem:[#allocation32_spill] sm:$0xff] %v13780_v27  ;;  %16046 = vst [vmem:[#allocation35_spill] sm:$0xff] %v13783_v23  ;;  %v7031_v51 = vmul.f32 %v13771_v29, %v13771_v29  ;;  %v7032_v5 = vmul.f32 %v13774_v41, %v13774_v41  ;;  %v7033_v9 = vmul.f32 %v13777_v53, %v13777_v53 }
 0xe88   :  { %16047 = vst [vmem:[#allocation36_spill] sm:$0xff] %v13786_v47  ;;  %v7034_v8 = vmul.f32 %v13780_v27, %v13780_v27  ;;  %v7035_v20 = vmul.f32 %v13783_v23, %v13783_v23  ;;  %v7036_v31 = vmul.f32 %v13786_v47, %v13786_v47  ;;  %v7432_v6 = vsel %vm776_vm0, %v7210_v12, 0.0  ;;  %v16054_v47 = vld [vmem:[#allocation8_spill] sm:$0xff] }
 0xe89   :  { %v7211_v49 = vcombine.low %v7029_v24, %v7030_v59  ;;  %v7212_v26 = vcombine.low %v7031_v51, %v7032_v5  ;;  %v6844_v57 = vrot.slane %v13674_v45, %v13592_v28  ;;  %7433 = vadd.xlane.f32.xlu1 %v7432_v6  ;;  %v6848_v33 = vrot.slane %v13674_v45, %v13595_v42 }
 0xe8a   :  { %v7213_v21 = vcombine.low %v7033_v9, %v7034_v8  ;;  %v7214_v58 = vcombine.low %v7035_v20, %v7036_v31  ;;  %v6852_v2 = vrot.slane %v13674_v45, %v13598_v3  ;;  %v6856_v24 = vrot.slane %v13674_v45, %v13601_v52  ;;  %v16048_v31 = vld [vmem:[#allocation4_spill] sm:$0xff] }
 0xe8b   :  { %v7221_v18 = vrot.slane %v7211_v49, %v11949_v15  ;;  %v7228_v32 = vrot.slane %v7212_v26, %v11949_v15  ;;  %v6860_v12 = vrot.slane %v13674_v45, %v13604_v55  ;;  %v6864_v5 = vrot.slane %v13674_v45, %v13607_v7  ;;  %v16050_v49 = vld [vmem:[#allocation5_spill] sm:$0xff] }
 0xe8c   :  { %v7235_v59 = vrot.slane %v7213_v21, %v11949_v15  ;;  %v7242_v51 = vrot.slane %v7214_v58, %v11949_v15  ;;  %v6868_v9 = vrot.slane %v13674_v45, %v13610_v48  ;;  %v6872_v20 = vrot.slane %v13674_v45, %v13613_v34 }
 0xe8d   :  { %v7243_v8 = vcombine.low %v7221_v18, %v7228_v32  ;;  %v13826_v6 = vsub.f32 %v16048_v31, %v6844_v57  ;;  %v13829_v26 = vsub.f32 %v16050_v49, %v6848_v33  ;;  %v13832_v21 = vsub.f32 %v13439_v10, %v6852_v2  ;;  %v16056_v18 = vld [vmem:[#allocation6_spill] sm:$0xff]  ;;  %v16059_v33 = vld [vmem:[#allocation9_spill] sm:$0xff] }
 0xe8e   :  { %v7244_v22 = vcombine.low %v7235_v59, %v7242_v51  ;;  %v13835_v58 = vsub.f32 %v13446_v35, %v6856_v24  ;;  %v13838_v23 = vsub.f32 %v16054_v47, %v6860_v12  ;;  %v13842_v45 = vsub.f32 %v16056_v18, %v6864_v5 }
 0xe8f   :  { %16049 = vst [vmem:[#allocation29_spill] sm:$0xff] %v13826_v6  ;;  %16051 = vst [vmem:[#allocation21_spill] sm:$0xff] %v13829_v26  ;;  %v7251_v32 = vrot.slane %v7243_v8, %v11949_v15  ;;  %v13845_v57 = vsub.f32 %v13452_v25, %v6868_v9  ;;  %v13848_v31 = vsub.f32 %v16059_v33, %v6872_v20 }
 0xe90   :  { %16052 = vst [vmem:[#allocation40_spill] sm:$0xff] %v13832_v21  ;;  %16053 = vst [vmem:[#allocation37_spill] sm:$0xff] %v13835_v58  ;;  %v7258_v10 = vrot.slane %v7244_v22, %v11949_v15  ;;  %v7045_v35 = vmul.f32 %v13826_v6, %v13826_v6  ;;  %v7046_v47 = vmul.f32 %v13829_v26, %v13829_v26 }
 0xe91   :  { %16055 = vst [vmem:[#allocation2_spill] sm:$0xff] %v13838_v23  ;;  %16057 = vst [vmem:[#allocation14_spill] sm:$0xff] %v13842_v45  ;;  %v7047_v2 = vmul.f32 %v13832_v21, %v13832_v21  ;;  %v7048_v24 = vmul.f32 %v13835_v58, %v13835_v58  ;;  %v7049_v25 = vmul.f32 %v13838_v23, %v13838_v23  ;;  %v16082_v23 = vld [vmem:[#allocation24_spill] sm:$0xff]  ;;  %v16083_v21 = vld [vmem:[#allocation26_spill] sm:$0xff] }
 0xe92   :  { %16058 = vst [vmem:[#allocation12_spill] sm:$0xff] %v13845_v57  ;;  %16060 = vst [vmem:[#allocation13_spill] sm:$0xff] %v13848_v31  ;;  %v7050_v12 = vmul.f32 %v13842_v45, %v13842_v45  ;;  %v7051_v22 = vmul.f32 %v13845_v57, %v13845_v57  ;;  %v7259_v59 = vcombine.low %v7251_v32, %v7258_v10 }
 0xe93   :  { %v7052_v51 = vmul.f32 %v13848_v31, %v13848_v31  ;;  %v7309_v5 = vcombine.low %v7045_v35, %v7046_v47  ;;  %v6812_v9 = vrot.slane %v13706_v37, %v13592_v28  ;;  %v7310_v8 = vcombine.low %v7047_v2, %v7048_v24 }
 0xe94   :  { %v7311_v20 = vcombine.low %v7049_v25, %v7050_v12  ;;  %v6816_v49 = vrot.slane %v13706_v37, %v13595_v42  ;;  %v6820_v18 = vrot.slane %v13706_v37, %v13598_v3  ;;  %v7435_v33 = vsel %vm776_vm0, %v7259_v59, 0.0 }
 0xe95   :  { %v7312_v45 = vcombine.low %v7051_v22, %v7052_v51  ;;  %v7319_v32 = vrot.slane %v7309_v5, %v11949_v15  ;;  %v6824_v10 = vrot.slane %v13706_v37, %v13601_v52  ;;  %7436 = vadd.xlane.f32.xlu0 %v7435_v33  ;;  %v7326_v35 = vrot.slane %v7310_v8, %v11949_v15 }
 0xe96   :  { %v7333_v47 = vrot.slane %v7311_v20, %v11949_v15  ;;  %v6828_v2 = vrot.slane %v13706_v37, %v13604_v55  ;;  %v6832_v24 = vrot.slane %v13706_v37, %v13607_v7  ;;  %v6836_v12 = vrot.slane %v13706_v37, %v13610_v48 }
 0xe97   :  { %v7340_v25 = vrot.slane %v7312_v45, %v11949_v15  ;;  %v6840_v22 = vrot.slane %v13706_v37, %v13613_v34  ;;  %v13889_v59 = vsub.f32 %v13329_v11, %v6812_v9  ;;  %v7341_v51 = vcombine.low %v7319_v32, %v7326_v35 }
 0xe98   :  { %v13892_v5 = vsub.f32 %v13338_v36, %v6816_v49  ;;  %v13895_v8 = vsub.f32 %v13341_v63, %v6820_v18  ;;  %v13898_v20 = vsub.f32 %v13352_v4, %v6824_v10  ;;  %v13901_v33 = vsub.f32 %v13332_v61, %v6828_v2 }
 0xe99   :  { %16061 = vst [vmem:[#allocation41_spill] sm:$0xff] %v13889_v59  ;;  %v7342_v45 = vcombine.low %v7333_v47, %v7340_v25  ;;  %v13904_v31 = vsub.f32 %v13345_v46, %v6832_v24  ;;  %v13907_v11 = vsub.f32 %v13348_v56, %v6836_v12  ;;  %v7349_v37 = vrot.slane %v7341_v51, %v11949_v15 }
 0xe9a   :  { %16062 = vst [vmem:[#allocation4_spill] sm:$0xff] %v13892_v5  ;;  %16063 = vst [vmem:[#allocation5_spill] sm:$0xff] %v13895_v8  ;;  %v13911_v36 = vsub.f32 %v13538_v40, %v6840_v22  ;;  %v7037_v63 = vmul.f32 %v13889_v59, %v13889_v59  ;;  %v7038_v4 = vmul.f32 %v13892_v5, %v13892_v5  ;;  %v16087_v5 = vld [vmem:[#allocation28_spill] sm:$0xff] }
 0xe9b   :  { %16064 = vst [vmem:[#allocation8_spill] sm:$0xff] %v13898_v20  ;;  %16065 = vst [vmem:[#allocation6_spill] sm:$0xff] %v13901_v33  ;;  %v7356_v61 = vrot.slane %v7342_v45, %v11949_v15  ;;  %v7039_v46 = vmul.f32 %v13895_v8, %v13895_v8  ;;  %v7040_v56 = vmul.f32 %v13898_v20, %v13898_v20  ;;  %v16086_v20 = vld [vmem:[#allocation25_spill] sm:$0xff] }
 0xe9c   :  { %16066 = vst [vmem:[#allocation9_spill] sm:$0xff] %v13904_v31  ;;  %16067 = vst [vmem:[#allocation42_spill] sm:$0xff] %v13907_v11  ;;  %v7041_v9 = vmul.f32 %v13901_v33, %v13901_v33  ;;  %v7042_v40 = vmul.f32 %v13904_v31, %v13904_v31  ;;  %v7043_v49 = vmul.f32 %v13907_v11, %v13907_v11  ;;  %v16085_v31 = vld [vmem:[#allocation27_spill] sm:$0xff] }
 0xe9d   :  { %16068 = vst [vmem:[#allocation43_spill] sm:$0xff] %v13911_v36  ;;  %v7044_v18 = vmul.f32 %v13911_v36, %v13911_v36  ;;  %v7260_v32 = vcombine.low %v7037_v63, %v7038_v4  ;;  %v7357_v10 = vcombine.low %v7349_v37, %v7356_v61  ;;  %v7261_v35 = vcombine.low %v7039_v46, %v7040_v56  ;;  %v16084_v36 = vld [vmem:[#allocation30_spill] sm:$0xff] }
 0xe9e   :  { %v7407_v47 = vcombine.low %v13746_v60, %v13750_v19  ;;  %v6876_v2 = vrot.slane %v13735_v54, %v13592_v28  ;;  %v7262_v24 = vcombine.low %v7041_v9, %v7042_v40  ;;  %v6880_v22 = vrot.slane %v13735_v54, %v13595_v42 }
 0xe9f   :  { %v7263_v25 = vcombine.low %v7043_v49, %v7044_v18  ;;  %v7270_v12 = vrot.slane %v7260_v32, %v11949_v15  ;;  %v7441_v51 = vsel %vm776_vm0, %v7357_v10, 0.0  ;;  %v7277_v45 = vrot.slane %v7261_v35, %v11949_v15 }
 0xea0   :  { %v7414_v37 = vrot.slane %v7407_v47, %v11949_v15  ;;  %v6884_v63 = vrot.slane %v13735_v54, %v13598_v3  ;;  %7442 = vadd.xlane.f32.xlu0 %v7441_v51  ;;  %v7284_v60 = vrot.slane %v7262_v24, %v11949_v15  ;;  %v6888_v4 = vrot.slane %v13735_v54, %v13601_v52  ;;  %v16078_v51 = vld [vmem:[#allocation15_spill] sm:$0xff] }
 0xea1   :  { %v7291_v19 = vrot.slane %v7263_v25, %v11949_v15  ;;  %v6892_v61 = vrot.slane %v13735_v54, %v13604_v55  ;;  %v7292_v46 = vcombine.low %v7270_v12, %v7277_v45  ;;  %v6896_v9 = vrot.slane %v13735_v54, %v13607_v7 }
 0xea2   :  { %v7421_v56 = vrot.slane %v7414_v37, %v11949_v15  ;;  %v6900_v40 = vrot.slane %v13735_v54, %v13610_v48  ;;  %v6904_v18 = vrot.slane %v13735_v54, %v13613_v34  ;;  %v13956_v32 = vsub.f32 %v13461_v16, %v6876_v2  ;;  %v16074_v16 = vld [vmem:[#allocation7_spill] sm:$0xff] }
 0xea3   :  { %v7293_v49 = vcombine.low %v7284_v60, %v7291_v19  ;;  %v13959_v10 = vsub.f32 %v13469_v50, %v6880_v22  ;;  %v7300_v35 = vrot.slane %v7292_v46, %v11949_v15  ;;  %v13964_v24 = vsub.f32 %v13472_v0, %v6884_v63  ;;  %v16076_v50 = vld [vmem:[#allocation10_spill] sm:$0xff] }
 0xea4   :  { %16069 = vst [vmem:[#allocation44_spill] sm:$0xff] %v13956_v32  ;;  %v7447_v47 = vsel %vm6694_vm6, %v7421_v56, 0.0  ;;  %v13967_v25 = vsub.f32 %v13484_v44, %v6888_v4  ;;  %v13971_v54 = vsub.f32 %v13464_v30, %v6892_v61  ;;  %v13974_v2 = vsub.f32 %v16074_v16, %v6896_v9 }
 0xea5   :  { %16070 = vst [vmem:[#allocation45_spill] sm:$0xff] %v13959_v10  ;;  %16071 = vst [vmem:[#allocation46_spill] sm:$0xff] %v13964_v24  ;;  %v7307_v12 = vrot.slane %v7293_v49, %v11949_v15  ;;  %7448 = vadd.xlane.f32.xlu0 %v7447_v47  ;;  %v13977_v22 = vsub.f32 %v16076_v50, %v6900_v40  ;;  %v13980_v45 = vsub.f32 %v16078_v51, %v6904_v18 }
 0xea6   :  { %16072 = vst [vmem:[#allocation47_spill] sm:$0xff] %v13967_v25  ;;  %16073 = vst [vmem:[#allocation48_spill] sm:$0xff] %v13971_v54  ;;  %v7053_v0 = vmul.f32 %v13956_v32, %v13956_v32  ;;  %v7054_v44 = vmul.f32 %v13959_v10, %v13959_v10  ;;  %v7055_v37 = vmul.f32 %v13964_v24, %v13964_v24  ;;  %v16080_v24 = vld [vmem:[#allocation39_spill] sm:$0xff] }
 0xea7   :  { %16075 = vst [vmem:[#allocation7_spill] sm:$0xff] %v13974_v2  ;;  %16077 = vst [vmem:[#allocation10_spill] sm:$0xff] %v13977_v22  ;;  %v7308_v30 = vcombine.low %v7300_v35, %v7307_v12  ;;  %v7056_v63 = vmul.f32 %v13967_v25, %v13967_v25  ;;  %v7057_v60 = vmul.f32 %v13971_v54, %v13971_v54  ;;  %v16081_v32 = vld [vmem:[#allocation23_spill] sm:$0xff] }
 0xea8   :  { %16079 = vst [vmem:[#allocation15_spill] sm:$0xff] %v13980_v45  ;;  %v7058_v19 = vmul.f32 %v13974_v2, %v13974_v2  ;;  %v7059_v4 = vmul.f32 %v13977_v22, %v13977_v22  ;;  %v7060_v61 = vmul.f32 %v13980_v45, %v13980_v45  ;;  %v7358_v46 = vcombine.low %v7053_v0, %v7054_v44 }
 0xea9   :  { %v7438_v56 = vsel %vm776_vm0, %v7308_v30, 0.0  ;;  %v7359_v9 = vcombine.low %v7055_v37, %v7056_v63  ;;  %v11660_v30 = vld [vmem:[%s15696_s7 + $0x8] sm:$0xff]   ;;  %v11661_v63 = vld [vmem:[%s15696_s7] sm:$0xff]  }
 0xeaa   :  { %v7360_v40 = vcombine.low %v7057_v60, %v7058_v19  ;;  %7439 = vadd.xlane.f32.xlu1 %v7438_v56  ;;  %v7361_v49 = vcombine.low %v7059_v4, %v7060_v61  ;;  %v7368_v18 = vrot.slane %v7358_v46, %v11949_v15  ;;  %11583 = vmatprep.subr.bf16.mxu1 %v11660_v30  ;;  %v11275_v60 = vld [vmem:[%s15697_s5] ss:$0 sm:$0xff] }
 0xeab   :  { %v7375_v35 = vrot.slane %v7359_v9, %v11949_v15  ;;  %11584 = vmatpush3.bf16.msra.mxu1 %v11660_v30  ;;  %v11276_v19 = vld [vmem:[%s15698_s6] ss:$0 sm:$0xff]  ;;  %v7783_v46 = vcombine.high %v11275_v60, %v11275_v60 }
 0xeac   :  { %v7382_v47 = vrot.slane %v7360_v40, %v11949_v15  ;;  %v7389_v12 = vrot.slane %v7361_v49, %v11949_v15  ;;  %11585 = vmatprep.subr.bf16.mxu1 %v11661_v63  ;;  %v7895_v56 = vcombine.high %v11276_v19, %v11276_v19  ;;  %v7790_v40 = vrot.slane %v11275_v60, %v11949_v15 }
 0xead   :  { %v7390_v16 = vcombine.low %v7368_v18, %v7375_v35  ;;  %v7797_v49 = vrot.slane %v7783_v46, %v11949_v15  ;;  %v7902_v18 = vrot.slane %v11276_v19, %v11949_v15 }
 0xeae   :  { %v7391_v50 = vcombine.low %v7382_v47, %v7389_v12  ;;  %v7909_v35 = vrot.slane %v7895_v56, %v11949_v15  ;;  %v7798_v47 = vcombine.high %v7790_v40, %v7790_v40 }
 0xeaf   :  { %v7398_v51 = vrot.slane %v7390_v16, %v11949_v15  ;;  %11586 = vmatpush3.bf16.msra.mxu1 %v11661_v63  ;;  %v7799_v12 = vcombine.high %v7797_v49, %v7797_v49  ;;  %v14026_v30 = vrot.slane %v7797_v49, %v11949_v15  ;;  %v14035_v19 = vrot.slane %v7902_v18, %v11949_v15 }
 0xeb0   :  { %v7405_v0 = vrot.slane %v7391_v50, %v11949_v15  ;;  %v7910_v50 = vcombine.high %v7902_v18, %v7902_v18  ;;  %v14029_v63 = vrot.slane %v7798_v47, %v11949_v15 }
 0xeb1   :  { %v14032_v60 = vrot.slane %v7799_v12, %v11949_v15 }
 0xeb2   :  { %v7406_v44 = vcombine.low %v7398_v51, %v7405_v0  ;;  %v7911_v51 = vcombine.high %v7909_v35, %v7909_v35 }
 0xeb3   :  { %v14060_v49 = vcombine.high %v14032_v60, %v14032_v60 }
 0xeb4   :  { %v7444_v37 = vsel %vm776_vm0, %v7406_v44, 0.0  ;;  %v14023_v44 = vrot.slane %v7790_v40, %v11949_v15  ;;  %v14044_v46 = vrot.slane %v7911_v51, %v11949_v15  ;;  %v14056_v40 = vcombine.high %v14029_v63, %v14029_v63 }
 0xeb5   :  { %7445 = vadd.xlane.f32.xlu1 %v7444_v37 }
 0xeb6   :  { %v14048_v56 = vcombine.high %v14023_v44, %v14023_v44 }
 0xf08   :  { %v7431_v4 = vpop.xlane.xlu0 %7430 }
 0xf09   :  { %v7450_v61 = vmul.f32 0.03125, %v7431_v4  ;;  %v14038_v4 = vrot.slane %v7909_v35, %v11949_v15  ;;  %v14064_v35 = vcombine.high %v14035_v19, %v14035_v19 }
 0xf0b   :  { %v7457_v9 = vadd.f32 1e-05, %v7450_v61  ;;  %v14041_v61 = vrot.slane %v7910_v50, %v11949_v15  ;;  %v14068_v47 = vcombine.high %v14038_v4, %v14038_v4 }
 0xf0d   :  { %11798 = vrsqrt.f32 %v7457_v9  ;;  %v14052_v9 = vcombine.high %v14026_v30, %v14026_v30  ;;  %v14072_v12 = vcombine.high %v14041_v61, %v14041_v61 }
 0xf12   :  { %v7434_v16 = vpop.xlane.xlu1 %7433 }
 0xf13   :  { %v7451_v0 = vmul.f32 0.03125, %v7434_v16  ;;  %v14076_v16 = vcombine.high %v14044_v46, %v14044_v46 }
 0xf15   :  { %v7458_v37 = vadd.f32 1e-05, %v7451_v0 }
 0xf17   :  { %11800 = vrsqrt.f32 %v7458_v37 }
 0xf1a   :  { %v11799_v18 = vpop.eup %11798 }
 0xf1b   :  { %v7481_v50 = vrot.slane %v11799_v18, %v13592_v28  ;;  %v7485_v51 = vrot.slane %v11799_v18, %v13595_v42  ;;  %v7489_v0 = vrot.slane %v11799_v18, %v13598_v3  ;;  %v7493_v37 = vrot.slane %v11799_v18, %v13601_v52 }
 0xf1c   :  { %v7497_v45 = vrot.slane %v11799_v18, %v13604_v55  ;;  %v7501_v22 = vrot.slane %v11799_v18, %v13607_v7  ;;  %v7505_v2 = vrot.slane %v11799_v18, %v13610_v48  ;;  %v7509_v54 = vrot.slane %v11799_v18, %v13613_v34 }
 0xf1d   :  { %v7728_v10 = vmul.f32 %v7481_v50, %v16080_v24  ;;  %v7729_v57 = vmul.f32 %v7485_v51, %v16081_v32  ;;  %v7730_v58 = vmul.f32 %v7489_v0, %v16082_v23  ;;  %v7731_v26 = vmul.f32 %v7493_v37, %v16083_v21 }
 0xf1e   :  { %v7437_v25 = vpop.xlane.xlu0 %7436  ;;  %v7732_v11 = vmul.f32 %v7497_v45, %v16084_v36  ;;  %v7733_v33 = vmul.f32 %v7501_v22, %v16085_v31  ;;  %v7734_v8 = vmul.f32 %v7505_v2, %v16086_v20  ;;  %v7735_v59 = vmul.f32 %v7509_v54, %v16087_v5 }
 0xf1f   :  { %v7452_v6 = vmul.f32 0.03125, %v7437_v25  ;;  %v7840_v18 = vmul.f32 %v14023_v44, %v7728_v10  ;;  %v7841_v27 = vmul.f32 %v14029_v63, %v7729_v57  ;;  %v7842_v24 = vmul.f32 %v14048_v56, %v7730_v58 }
 0xf20   :  { %v7843_v23 = vmul.f32 %v14056_v40, %v7731_v26  ;;  %v7844_v21 = vmul.f32 %v14026_v30, %v7732_v11  ;;  %v7845_v25 = vmul.f32 %v14032_v60, %v7733_v33  ;;  %v7846_v36 = vmul.f32 %v14052_v9, %v7734_v8 }
 0xf21   :  { %v7459_v32 = vadd.f32 1e-05, %v7452_v6  ;;  %v7847_v31 = vmul.f32 %v14060_v49, %v7735_v59  ;;  %v14103_v20 = vadd.f32 %v14035_v19, %v7840_v18  ;;  %v14106_v5 = vadd.f32 %v14041_v61, %v7841_v27 }
 0xf22   :  { %v14109_v58 = vadd.f32 %v14064_v35, %v7842_v24  ;;  %v14112_v6 = vadd.f32 %v14072_v12, %v7843_v23  ;;  %v14115_v26 = vadd.f32 %v14038_v4, %v7844_v21  ;;  %v14118_v57 = vadd.f32 %v14044_v46, %v7845_v25  ;;  %v16096_v25 = vld [vmem:[#allocation34_spill] sm:$0xff] }
 0xf23   :  { %16088 = vst [vmem:[#allocation39_spill] sm:$0xff] %v14103_v20  ;;  %16089 = vst [vmem:[#allocation23_spill] sm:$0xff] %v14106_v5  ;;  %11802 = vrsqrt.f32 %v7459_v32  ;;  %v14121_v8 = vadd.f32 %v14068_v47, %v7846_v36  ;;  %v14124_v27 = vadd.f32 %v14076_v16, %v7847_v31  ;;  %v8052_v33 = vcombine.low %v14103_v20, %v14106_v5  ;;  %v16097_v31 = vld [vmem:[#allocation38_spill] sm:$0xff] }
 0xf24   :  { %16090 = vst [vmem:[#allocation24_spill] sm:$0xff] %v14109_v58  ;;  %16091 = vst [vmem:[#allocation26_spill] sm:$0xff] %v14112_v6  ;;  %v11801_v59 = vpop.eup %11800  ;;  %v8053_v11 = vcombine.low %v14109_v58, %v14112_v6 }
 0xf25   :  { %16092 = vst [vmem:[#allocation30_spill] sm:$0xff] %v14115_v26  ;;  %16093 = vst [vmem:[#allocation27_spill] sm:$0xff] %v14118_v57  ;;  %v7513_v10 = vrot.slane %v11801_v59, %v13592_v28  ;;  %v7517_v54 = vrot.slane %v11801_v59, %v13595_v42  ;;  %v7521_v2 = vrot.slane %v11801_v59, %v13598_v3 }
 0xf26   :  { %16094 = vst [vmem:[#allocation25_spill] sm:$0xff] %v14121_v8  ;;  %16095 = vst [vmem:[#allocation28_spill] sm:$0xff] %v14124_v27  ;;  %v7525_v22 = vrot.slane %v11801_v59, %v13601_v52  ;;  %v7529_v45 = vrot.slane %v11801_v59, %v13604_v55  ;;  %v7533_v50 = vrot.slane %v11801_v59, %v13607_v7 }
 0xf27   :  { %v7537_v51 = vrot.slane %v11801_v59, %v13610_v48  ;;  %v7541_v0 = vrot.slane %v11801_v59, %v13613_v34  ;;  %v7736_v18 = vmul.f32 %v7513_v10, %v13680_v17  ;;  %v7737_v24 = vmul.f32 %v7517_v54, %v13683_v14 }
 0xf28   :  { %v7738_v32 = vmul.f32 %v7521_v2, %v13686_v43  ;;  %v7739_v23 = vmul.f32 %v7525_v22, %v13690_v62  ;;  %v7740_v36 = vmul.f32 %v7529_v45, %v16096_v25  ;;  %v7741_v6 = vmul.f32 %v7533_v50, %v16097_v31 }
 0xf29   :  { %v7443_v37 = vpop.xlane.xlu0 %7442  ;;  %v7742_v58 = vmul.f32 %v7537_v51, %v13699_v38  ;;  %v7743_v20 = vmul.f32 %v7541_v0, %v13702_v39  ;;  %v7848_v59 = vmul.f32 %v14023_v44, %v7736_v18  ;;  %v7849_v5 = vmul.f32 %v14029_v63, %v7737_v24 }
 0xf2a   :  { %v7454_v21 = vmul.f32 0.03125, %v7443_v37  ;;  %v7850_v17 = vmul.f32 %v14048_v56, %v7738_v32  ;;  %v7851_v43 = vmul.f32 %v14056_v40, %v7739_v23  ;;  %v7852_v62 = vmul.f32 %v14026_v30, %v7740_v36 }
 0xf2b   :  { %v7853_v10 = vmul.f32 %v14032_v60, %v7741_v6  ;;  %v7854_v2 = vmul.f32 %v14052_v9, %v7742_v58  ;;  %v7855_v38 = vmul.f32 %v14060_v49, %v7743_v20  ;;  %v14155_v39 = vadd.f32 %v14035_v19, %v7848_v59 }
 0xf2c   :  { %v7461_v14 = vadd.f32 1e-05, %v7454_v21  ;;  %v14158_v22 = vadd.f32 %v14041_v61, %v7849_v5  ;;  %v14161_v50 = vadd.f32 %v14064_v35, %v7850_v17  ;;  %v14164_v51 = vadd.f32 %v14072_v12, %v7851_v43 }
 0xf2d   :  { %16098 = vst [vmem:[#allocation34_spill] sm:$0xff] %v14155_v39  ;;  %v14167_v6 = vadd.f32 %v14038_v4, %v7852_v62  ;;  %v14170_v58 = vadd.f32 %v14044_v46, %v7853_v10  ;;  %v14173_v20 = vadd.f32 %v14068_v47, %v7854_v2  ;;  %v14176_v5 = vadd.f32 %v14076_v16, %v7855_v38 }
 0xf2e   :  { %v7449_v54 = vpop.xlane.xlu0 %7448  ;;  %16099 = vst [vmem:[#allocation38_spill] sm:$0xff] %v14158_v22  ;;  %11804 = vrsqrt.f32 %v7461_v14  ;;  %16100 = vst [vmem:[#allocation49_spill] sm:$0xff] %v14161_v50  ;;  %v8054_v37 = vcombine.low %v14115_v26, %v14118_v57  ;;  %v8055_v18 = vcombine.low %v14121_v8, %v14124_v27  ;;  %v8062_v24 = vrot.slane %v8052_v33, %v11949_v15  ;;  %v16121_v8 = vld [vmem:[#allocation42_spill] sm:$0xff]  ;;  %v16122_v26 = vld [vmem:[#allocation43_spill] sm:$0xff] }
 0xf2f   :  { %v7456_v45 = vmul.f32 0.03125, %v7449_v54  ;;  %16101 = vst [vmem:[#allocation50_spill] sm:$0xff] %v14164_v51  ;;  %16102 = vst [vmem:[#allocation51_spill] sm:$0xff] %v14167_v6  ;;  %v8069_v23 = vrot.slane %v8053_v11, %v11949_v15  ;;  %v8101_v21 = vcombine.low %v14155_v39, %v14158_v22  ;;  %v8102_v25 = vcombine.low %v14161_v50, %v14164_v51  ;;  %v16119_v50 = vld [vmem:[#allocation6_spill] sm:$0xff]  ;;  %v16120_v39 = vld [vmem:[#allocation9_spill] sm:$0xff] }
 0xf30   :  { %16103 = vst [vmem:[#allocation52_spill] sm:$0xff] %v14170_v58  ;;  %16104 = vst [vmem:[#allocation53_spill] sm:$0xff] %v14173_v20  ;;  %v11803_v32 = vpop.eup %11802  ;;  %v8103_v36 = vcombine.low %v14167_v6, %v14170_v58  ;;  %v8076_v59 = vrot.slane %v8054_v37, %v11949_v15  ;;  %v8083_v17 = vrot.slane %v8055_v18, %v11949_v15  ;;  %v16118_v6 = vld [vmem:[#allocation8_spill] sm:$0xff] }
 0xf31   :  { %16105 = vst [vmem:[#allocation54_spill] sm:$0xff] %v14176_v5  ;;  %v7463_v0 = vadd.f32 1e-05, %v7456_v45  ;;  %v8104_v33 = vcombine.low %v14173_v20, %v14176_v5  ;;  %v8084_v11 = vcombine.low %v8062_v24, %v8069_v23  ;;  %v8111_v43 = vrot.slane %v8101_v21, %v11949_v15  ;;  %v16108_v20 = vld [vmem:[#allocation36_spill] sm:$0xff] }
 0xf32   :  { %v8118_v62 = vrot.slane %v8102_v25, %v11949_v15  ;;  %v8085_v10 = vcombine.low %v8076_v59, %v8083_v17  ;;  %v8125_v54 = vrot.slane %v8103_v36, %v11949_v15  ;;  %v7545_v38 = vrot.slane %v11803_v32, %v13592_v28 }
 0xf33   :  { %v7440_v31 = vpop.xlane.xlu1 %7439  ;;  %11806 = vrsqrt.f32 %v7463_v0  ;;  %v8132_v2 = vrot.slane %v8104_v33, %v11949_v15  ;;  %v8092_v0 = vrot.slane %v8084_v11, %v11949_v15  ;;  %v7549_v18 = vrot.slane %v11803_v32, %v13595_v42 }
 0xf34   :  { %v7453_v14 = vmul.f32 0.03125, %v7440_v31  ;;  %v8133_v37 = vcombine.low %v8111_v43, %v8118_v62  ;;  %v8099_v31 = vrot.slane %v8085_v10, %v11949_v15  ;;  %v7553_v23 = vrot.slane %v11803_v32, %v13598_v3 }
 0xf35   :  { %v8134_v24 = vcombine.low %v8125_v54, %v8132_v2  ;;  %v7557_v21 = vrot.slane %v11803_v32, %v13601_v52  ;;  %v7561_v36 = vrot.slane %v11803_v32, %v13604_v55  ;;  %v7565_v59 = vrot.slane %v11803_v32, %v13607_v7 }
 0xf36   :  { %v7460_v45 = vadd.f32 1e-05, %v7453_v14  ;;  %v8141_v25 = vrot.slane %v8133_v37, %v11949_v15  ;;  %v8100_v17 = vcombine.low %v8092_v0, %v8099_v31  ;;  %v7569_v14 = vrot.slane %v11803_v32, %v13610_v48  ;;  %v16106_v37 = vld [vmem:[#allocation32_spill] sm:$0xff]  ;;  %v16107_v0 = vld [vmem:[#allocation35_spill] sm:$0xff] }
 0xf37   :  { %v8148_v33 = vrot.slane %v8134_v24, %v11949_v15  ;;  %v7573_v11 = vrot.slane %v11803_v32, %v13613_v34  ;;  %v7744_v43 = vmul.f32 %v7545_v38, %v13764_v13  ;;  %v7745_v62 = vmul.f32 %v7549_v18, %v13767_v1 }
 0xf38   :  { %11808 = vrsqrt.f32 %v7460_v45  ;;  %v7746_v10 = vmul.f32 %v7553_v23, %v13771_v29  ;;  %v7747_v54 = vmul.f32 %v7557_v21, %v13774_v41  ;;  %v7748_v45 = vmul.f32 %v7561_v36, %v13777_v53 }
 0xf39   :  { %v8149_v2 = vcombine.low %v8141_v25, %v8148_v33  ;;  %v7749_v5 = vmul.f32 %v7565_v59, %v16106_v37  ;;  %v7750_v31 = vmul.f32 %v7569_v14, %v16107_v0  ;;  %v7751_v58 = vmul.f32 %v7573_v11, %v16108_v20 }
 0xf3a   :  { %v7856_v32 = vmul.f32 %v14023_v44, %v7744_v43  ;;  %v7857_v13 = vmul.f32 %v14029_v63, %v7745_v62  ;;  %v7858_v1 = vmul.f32 %v14048_v56, %v7746_v10  ;;  %v7859_v41 = vmul.f32 %v14056_v40, %v7747_v54 }
 0xf3b   :  { %v14217_v24 = vpop.eup %11804  ;;  %v8368_v29 = vpack.c.bf16 %v8149_v2, %v8100_v17  ;;  %v7860_v38 = vmul.f32 %v14026_v30, %v7748_v45  ;;  %v7861_v53 = vmul.f32 %v14032_v60, %v7749_v5  ;;  %v7862_v23 = vmul.f32 %v14052_v9, %v7750_v31 }
 0xf3c   :  { %v7863_v21 = vmul.f32 %v14060_v49, %v7751_v58  ;;  %v14229_v20 = vadd.f32 %v14035_v19, %v7856_v32  ;;  %v14232_v25 = vadd.f32 %v14041_v61, %v7857_v13  ;;  %v14236_v59 = vadd.f32 %v14064_v35, %v7858_v1  ;;  %v16113_v32 = vld [vmem:[#allocation31_spill] sm:$0xff]  ;;  %v16114_v1 = vld [vmem:[#allocation33_spill] sm:$0xff] }
 0xf3d   :  { %11587 = vmatprep.mubr.msk.bf16.mxu1 %vm776_vm0, %v8368_v29  ;;  %v14239_v17 = vadd.f32 %v14072_v12, %v7859_v41  ;;  %v14242_v5 = vadd.f32 %v14038_v4, %v7860_v38  ;;  %v14245_v58 = vadd.f32 %v14044_v46, %v7861_v53  ;;  %v14248_v14 = vadd.f32 %v14068_v47, %v7862_v23  ;;  %v16117_v23 = vld [vmem:[#allocation5_spill] sm:$0xff] }
 0xf3e   :  { %v7446_v18 = vpop.xlane.xlu1 %7445  ;;  %v14251_v11 = vadd.f32 %v14076_v16, %v7863_v21  ;;  %v8150_v43 = vcombine.low %v14229_v20, %v14232_v25  ;;  %v7609_v31 = vrot.slane %v14217_v24, %v13592_v28 }
 0xf3f   :  { %v7455_v36 = vmul.f32 0.03125, %v7446_v18  ;;  %16109 = vst [vmem:[#allocation32_spill] sm:$0xff] %v14242_v5  ;;  %16110 = vst [vmem:[#allocation35_spill] sm:$0xff] %v14245_v58  ;;  %v8151_v2 = vcombine.low %v14236_v59, %v14239_v17  ;;  %v8152_v45 = vcombine.low %v14242_v5, %v14245_v58  ;;  %v16150_v5 = vld [vmem:[#allocation10_spill] sm:$0xff] }
 0xf40   :  { %v11807_v33 = vpop.eup %11806  ;;  %16111 = vst [vmem:[#allocation36_spill] sm:$0xff] %v14248_v14  ;;  %16112 = vst [vmem:[#allocation55_spill] sm:$0xff] %v14251_v11  ;;  %v8153_v37 = vcombine.low %v14248_v14, %v14251_v11  ;;  %v8160_v0 = vrot.slane %v8150_v43, %v11949_v15 }
 0xf41   :  { %v7462_v62 = vadd.f32 1e-05, %v7455_v36  ;;  %v7673_v10 = vrot.slane %v11807_v33, %v13592_v28  ;;  %v7677_v54 = vrot.slane %v11807_v33, %v13595_v42  ;;  %v8167_v41 = vrot.slane %v8151_v2, %v11949_v15  ;;  %v16116_v33 = vld [vmem:[#allocation4_spill] sm:$0xff] }
 0xf42   :  { %v8174_v38 = vrot.slane %v8152_v45, %v11949_v15  ;;  %v8181_v53 = vrot.slane %v8153_v37, %v11949_v15 }
 0xf43   :  { %11810 = vrsqrt.f32 %v7462_v62  ;;  %v14267_v13 = vmul.f32 %v7673_v10, %v16113_v32  ;;  %v14270_v29 = vmul.f32 %v7677_v54, %v16114_v1  ;;  %v8182_v36 = vcombine.low %v8160_v0, %v8167_v41  ;;  %v16115_v41 = vld [vmem:[#allocation41_spill] sm:$0xff] }
 0xf45   :  { %v11809_v21 = vpop.eup %11808 }
 0xf46   :  { %v7577_v10 = vrot.slane %v11809_v21, %v13592_v28  ;;  %v7581_v54 = vrot.slane %v11809_v21, %v13595_v42  ;;  %v7585_v2 = vrot.slane %v11809_v21, %v13598_v3  ;;  %v7589_v45 = vrot.slane %v11809_v21, %v13601_v52 }
 0xf47   :  { %v7593_v37 = vrot.slane %v11809_v21, %v13604_v55  ;;  %v7597_v0 = vrot.slane %v11809_v21, %v13607_v7  ;;  %v7601_v32 = vrot.slane %v11809_v21, %v13610_v48  ;;  %v7605_v1 = vrot.slane %v11809_v21, %v13613_v34 }
 0xf48   :  { %v7752_v43 = vmul.f32 %v7577_v10, %v16115_v41  ;;  %v7753_v62 = vmul.f32 %v7581_v54, %v16116_v33  ;;  %v7754_v18 = vmul.f32 %v7585_v2, %v16117_v23  ;;  %v7755_v51 = vmul.f32 %v7589_v45, %v16118_v6 }
 0xf49   :  { %v7756_v22 = vmul.f32 %v7593_v37, %v16119_v50  ;;  %v7757_v27 = vmul.f32 %v7597_v0, %v16120_v39  ;;  %v7758_v57 = vmul.f32 %v7601_v32, %v16121_v8  ;;  %v7759_v11 = vmul.f32 %v7605_v1, %v16122_v26  ;;  %v16131_v1 = vld [vmem:[#allocation29_spill] sm:$0xff] }
 0xf4a   :  { %v7864_v14 = vmul.f32 %v14023_v44, %v7752_v43  ;;  %v7865_v21 = vmul.f32 %v14029_v63, %v7753_v62  ;;  %v7866_v10 = vmul.f32 %v14048_v56, %v7754_v18  ;;  %v7867_v33 = vmul.f32 %v14056_v40, %v7755_v51 }
 0xf4b   :  { %v7868_v23 = vmul.f32 %v14026_v30, %v7756_v22  ;;  %v7869_v6 = vmul.f32 %v14032_v60, %v7757_v27  ;;  %v7870_v50 = vmul.f32 %v14052_v9, %v7758_v57  ;;  %v7871_v39 = vmul.f32 %v14060_v49, %v7759_v11 }
 0xf4c   :  { %v14310_v8 = vadd.f32 %v14035_v19, %v7864_v14  ;;  %v14313_v26 = vadd.f32 %v14041_v61, %v7865_v21  ;;  %v14316_v43 = vadd.f32 %v14064_v35, %v7866_v10  ;;  %v14319_v18 = vadd.f32 %v14072_v12, %v7867_v33 }
 0xf4d   :  { %v14322_v22 = vadd.f32 %v14038_v4, %v7868_v23  ;;  %v14325_v27 = vadd.f32 %v14044_v46, %v7869_v6  ;;  %v14328_v57 = vadd.f32 %v14068_v47, %v7870_v50  ;;  %v14331_v51 = vadd.f32 %v14076_v16, %v7871_v39 }
 0xf4e   :  { %16123 = vst [vmem:[#allocation31_spill] sm:$0xff] %v14310_v8  ;;  %16124 = vst [vmem:[#allocation33_spill] sm:$0xff] %v14313_v26  ;;  %v8183_v14 = vcombine.low %v8174_v38, %v8181_v53  ;;  %v8190_v11 = vrot.slane %v8182_v36, %v11949_v15  ;;  %v8199_v62 = vcombine.low %v14310_v8, %v14313_v26  ;;  %v16147_v26 = vld [vmem:[#allocation47_spill] sm:$0xff] }
 0xf4f   :  { %16125 = vst [vmem:[#allocation41_spill] sm:$0xff] %v14316_v43  ;;  %16126 = vst [vmem:[#allocation4_spill] sm:$0xff] %v14319_v18  ;;  %v8200_v54 = vcombine.low %v14316_v43, %v14319_v18  ;;  %v8201_v2 = vcombine.low %v14322_v22, %v14325_v27  ;;  %v8202_v45 = vcombine.low %v14328_v57, %v14331_v51  ;;  %v16140_v18 = vld [vmem:[#allocation14_spill] sm:$0xff]  ;;  %v16145_v43 = vld [vmem:[#allocation45_spill] sm:$0xff] }
 0xf50   :  { %16127 = vst [vmem:[#allocation5_spill] sm:$0xff] %v14322_v22  ;;  %16128 = vst [vmem:[#allocation8_spill] sm:$0xff] %v14325_v27  ;;  %v7633_v37 = vrot.slane %v14217_v24, %v13610_v48  ;;  %v7637_v38 = vrot.slane %v14217_v24, %v13613_v34  ;;  %v11811_v53 = vpop.eup %11810  ;;  %v8197_v36 = vrot.slane %v8183_v14, %v11949_v15 }
 0xf51   :  { %16129 = vst [vmem:[#allocation6_spill] sm:$0xff] %v14328_v57  ;;  %16130 = vst [vmem:[#allocation9_spill] sm:$0xff] %v14331_v51  ;;  %v8209_v0 = vrot.slane %v8199_v62, %v11949_v15  ;;  %v8216_v32 = vrot.slane %v8200_v54, %v11949_v15  ;;  %v7760_v41 = vmul.f32 %v7609_v31, %v16131_v1  ;;  %v16132_v1 = vld [vmem:[#allocation21_spill] sm:$0xff] }
 0xf52   :  { %v8223_v21 = vrot.slane %v8201_v2, %v11949_v15  ;;  %v8230_v10 = vrot.slane %v8202_v45, %v11949_v15  ;;  %v7641_v33 = vrot.slane %v11811_v53, %v13592_v28  ;;  %v7645_v23 = vrot.slane %v11811_v53, %v13595_v42  ;;  %v16136_v28 = vld [vmem:[#allocation37_spill] sm:$0xff] }
 0xf53   :  { %v8198_v6 = vcombine.low %v8190_v11, %v8197_v36  ;;  %v8231_v50 = vcombine.low %v8209_v0, %v8216_v32  ;;  %v7649_v39 = vrot.slane %v11811_v53, %v13598_v3  ;;  %v7653_v14 = vrot.slane %v11811_v53, %v13601_v52  ;;  %v16134_v0 = vld [vmem:[#allocation40_spill] sm:$0xff] }
 0xf54   :  { %v8232_v51 = vcombine.low %v8223_v21, %v8230_v10  ;;  %v7657_v62 = vrot.slane %v11811_v53, %v13604_v55  ;;  %v7661_v54 = vrot.slane %v11811_v53, %v13607_v7  ;;  %v7665_v31 = vrot.slane %v11811_v53, %v13610_v48 }
 0xf55   :  { %v8239_v2 = vrot.slane %v8231_v50, %v11949_v15  ;;  %v7669_v45 = vrot.slane %v11811_v53, %v13613_v34  ;;  %v16133_v11 = vrot.slane %v14217_v24, %v13595_v42  ;;  %v16135_v32 = vrot.slane %v14217_v24, %v13598_v3  ;;  %v16138_v50 = vld [vmem:[#allocation2_spill] sm:$0xff]  ;;  %v16142_v42 = vld [vmem:[#allocation12_spill] sm:$0xff] }
 0xf56   :  { %v8246_v10 = vrot.slane %v8232_v51, %v11949_v15  ;;  %v16137_v48 = vrot.slane %v14217_v24, %v13601_v52  ;;  %v16139_v53 = vrot.slane %v14217_v24, %v13604_v55  ;;  %v7766_v3 = vmul.f32 %v7633_v37, %v16142_v42  ;;  %v16144_v51 = vld [vmem:[#allocation44_spill] sm:$0xff] }
 0xf57   :  { %v7761_v36 = vmul.f32 %v16133_v11, %v16132_v1  ;;  %v7762_v21 = vmul.f32 %v16135_v32, %v16134_v0  ;;  %v16141_v1 = vrot.slane %v14217_v24, %v13607_v7  ;;  %v16143_v0 = vld [vmem:[#allocation13_spill] sm:$0xff]  ;;  %v7768_v27 = vmul.f32 %v7641_v33, %v16144_v51  ;;  %v16148_v55 = vld [vmem:[#allocation48_spill] sm:$0xff] }
 0xf58   :  { %v7763_v57 = vmul.f32 %v16137_v48, %v16136_v28  ;;  %v7764_v34 = vmul.f32 %v16139_v53, %v16138_v50  ;;  %v7767_v32 = vmul.f32 %v7637_v38, %v16143_v0  ;;  %v7769_v22 = vmul.f32 %v7645_v23, %v16145_v43  ;;  %v16146_v28 = vld [vmem:[#allocation46_spill] sm:$0xff]  ;;  %v16149_v53 = vld [vmem:[#allocation7_spill] sm:$0xff] }
 0xf59   :  { %v7765_v11 = vmul.f32 %v16141_v1, %v16140_v18  ;;  %v8247_v52 = vcombine.low %v8239_v2, %v8246_v10  ;;  %v7770_v48 = vmul.f32 %v7649_v39, %v16146_v28  ;;  %v7771_v8 = vmul.f32 %v7653_v14, %v16147_v26  ;;  %v16151_v18 = vld [vmem:[#allocation15_spill] sm:$0xff] }
 0xf5a   :  { %v7772_v50 = vmul.f32 %v7657_v62, %v16148_v55  ;;  %v7773_v58 = vmul.f32 %v7661_v54, %v16149_v53  ;;  %v7774_v24 = vmul.f32 %v7665_v31, %v16150_v5  ;;  %v7775_v1 = vmul.f32 %v7669_v45, %v16151_v18 }
 0xf5b   :  { %v7872_v42 = vmul.f32 %v14023_v44, %v7760_v41  ;;  %v8369_v37 = vpack.c.bf16 %v8247_v52, %v8198_v6  ;;  %v7873_v38 = vmul.f32 %v14029_v63, %v7761_v36  ;;  %v7874_v43 = vmul.f32 %v14048_v56, %v7762_v21 }
 0xf5c   :  { %v7875_v33 = vmul.f32 %v14056_v40, %v7763_v57  ;;  %v7876_v23 = vmul.f32 %v14026_v30, %v7764_v34  ;;  %v7877_v26 = vmul.f32 %v14032_v60, %v7765_v11  ;;  %v7878_v55 = vmul.f32 %v14052_v9, %v7766_v3 }
 0xf5d   :  { %v7879_v39 = vmul.f32 %v14060_v49, %v7767_v32  ;;  %11588 = vmatmul.mubr.msk.bf16.vlgmr.msra.gmra.mxu1 %vm776_vm0, %v8369_v37  ;;  %v7880_v5 = vmul.f32 %v14023_v44, %v7768_v27  ;;  %v7881_v52 = vmul.f32 %v14029_v63, %v7769_v22  ;;  %v7882_v41 = vmul.f32 %v14048_v56, %v7770_v48 }
 0xf5e   :  { %v7883_v6 = vmul.f32 %v14056_v40, %v7771_v8  ;;  %v7884_v57 = vmul.f32 %v14026_v30, %v7772_v50  ;;  %v7885_v34 = vmul.f32 %v14032_v60, %v7773_v58  ;;  %v7886_v14 = vmul.f32 %v14052_v9, %v7774_v24 }
 0xf5f   :  { %v7887_v3 = vmul.f32 %v14060_v49, %v7775_v1  ;;  %v14410_v62 = vadd.f32 %v14035_v19, %v7872_v42  ;;  %v14413_v54 = vadd.f32 %v14041_v61, %v7873_v38  ;;  %v14416_v22 = vadd.f32 %v14064_v35, %v7874_v43 }
 0xf60   :  { %v14419_v56 = vadd.f32 %v14072_v12, %v7875_v33  ;;  %v14422_v30 = vadd.f32 %v14038_v4, %v7876_v23  ;;  %v14425_v60 = vadd.f32 %v14044_v46, %v7877_v26  ;;  %v14428_v9 = vadd.f32 %v14068_v47, %v7878_v55 }
 0xf61   :  { %v14431_v40 = vadd.f32 %v14076_v16, %v7879_v39  ;;  %v14434_v49 = vadd.f32 %v14035_v19, %v7880_v5  ;;  %v14437_v58 = vadd.f32 %v14041_v61, %v7881_v52  ;;  %v14440_v8 = vadd.f32 %v14064_v35, %v7882_v41  ;;  %v11663_v41 = vld [vmem:[%s15699_s9 + $0x30] sm:$0xff]  }
 0xf62   :  { %v14443_v27 = vadd.f32 %v14072_v12, %v7883_v6  ;;  %v14446_v31 = vadd.f32 %v14038_v4, %v7884_v57  ;;  %v14449_v2 = vadd.f32 %v14044_v46, %v7885_v34  ;;  %v14452_v45 = vadd.f32 %v14068_v47, %v7886_v14  ;;  %v11664_v6 = vld [vmem:[%s15699_s9 + $0x28] sm:$0xff]   ;;  %v11665_v57 = vld [vmem:[%s15699_s9 + $0x20] sm:$0xff]   ;;  %v11666_v34 = vld [vmem:[%s15699_s9 + $0x18] sm:$0xff]  }
 0xf63   :  { %v14455_v36 = vadd.f32 %v14076_v16, %v7887_v3  ;;  %v8248_v21 = vcombine.low %v14410_v62, %v14413_v54  ;;  %v8249_v35 = vcombine.low %v14416_v22, %v14419_v56  ;;  %v8250_v12 = vcombine.low %v14422_v30, %v14425_v60  ;;  %v11667_v14 = vld [vmem:[%s15699_s9 + $0x10] sm:$0xff]   ;;  %v11668_v3 = vld [vmem:[%s15699_s9 + $0x8] sm:$0xff]  }
 0xf64   :  { %v8251_v4 = vcombine.low %v14428_v9, %v14431_v40  ;;  %v8297_v46 = vcombine.low %v14434_v49, %v14437_v58  ;;  %v8298_v47 = vcombine.low %v14440_v8, %v14443_v27  ;;  %v8299_v16 = vcombine.low %v14446_v31, %v14449_v2 }
 0xf65   :  { %v8300_v10 = vcombine.low %v14452_v45, %v14455_v36  ;;  %v8258_v11 = vrot.slane %v8248_v21, %v11949_v15  ;;  %v8265_v0 = vrot.slane %v8249_v35, %v11949_v15  ;;  %v8272_v32 = vrot.slane %v8250_v12, %v11949_v15  ;;  %v11669_v21 = vld [vmem:[%s15699_s9] sm:$0xff]  }
 0xf66   :  { %v8279_v51 = vrot.slane %v8251_v4, %v11949_v15  ;;  %v8307_v28 = vrot.slane %v8297_v46, %v11949_v15  ;;  %v8314_v48 = vrot.slane %v8298_v47, %v11949_v15  ;;  %v8321_v50 = vrot.slane %v8299_v16, %v11949_v15  ;;  %v11277_v35 = vld [vmem:[%s15700_s8] ss:$0 sm:$0xff] }
 0xf67   :  { %v8328_v53 = vrot.slane %v8300_v10, %v11949_v15  ;;  %v8280_v24 = vcombine.low %v8258_v11, %v8265_v0  ;;  %v7888_v1 = vmul.f32 %v14023_v44, %v14267_v13  ;;  %v7889_v42 = vmul.f32 %v14029_v63, %v14270_v29 }
 0xf68   :  { %v8281_v18 = vcombine.low %v8272_v32, %v8279_v51  ;;  %v8329_v37 = vcombine.low %v8307_v28, %v8314_v48 }
 0xf69   :  { %v8330_v38 = vcombine.low %v8321_v50, %v8328_v53  ;;  %v8288_v43 = vrot.slane %v8280_v24, %v11949_v15  ;;  %v14488_v23 = vadd.f32 %v14035_v19, %v7888_v1  ;;  %v14491_v26 = vadd.f32 %v14041_v61, %v7889_v42  ;;  %v11662_v61 = vld [vmem:[%s15699_s9 + $0x38] sm:$0xff]  }
 0xf6a   :  { %v8295_v33 = vrot.slane %v8281_v18, %v11949_v15  ;;  %v8337_v55 = vrot.slane %v8329_v37, %v11949_v15  ;;  %11595 = vmatprep.subr.bf16.mxu0 %v11662_v61 }
 0xf6b   :  { %v8344_v39 = vrot.slane %v8330_v38, %v11949_v15  ;;  %v8346_v44 = vcombine.low %v14488_v23, %v14491_v26  ;;  %11596 = vmatpush3.bf16.msra.mxu0 %v11662_v61 }
 0xf6c   :  { %v8296_v63 = vcombine.low %v8288_v43, %v8295_v33  ;;  %11597 = vmatprep.subr.bf16.mxu0 %v11663_v41 }
 0xf6d   :  { %v8345_v13 = vcombine.low %v8337_v55, %v8344_v39  ;;  %v8353_v29 = vrot.slane %v8346_v44, %v11949_v15 }
 0xf6f   :  { %v8370_v5 = vpack.c.bf16 %v8345_v13, %v8296_v63  ;;  %v8360_v52 = vrot.slane %v8353_v29, %v11949_v15  ;;  %11598 = vmatpush3.bf16.msra.mxu0 %v11663_v41 }
 0xf70   :  { %11599 = vmatprep.subr.bf16.mxu0 %v11664_v6 }
 0xf71   :  { %11591 = vmatprep.mubr.msk.bf16.mxu1 %vm776_vm0, %v8370_v5  ;;  %v8371_v19 = vpack.c.bf16 %v8360_v52, %v8360_v52 }
 0xf73   :  { %11592 = vmatmul.mubr.msk.bf16.gmra.mxu1 %vm776_vm0, %v8371_v19  ;;  %11600 = vmatpush3.bf16.msra.mxu0 %v11664_v6 }
 0xf74   :  { %11601 = vmatprep.subr.bf16.mxu0 %v11665_v57 }
 0xf77   :  { %11602 = vmatpush3.bf16.msra.mxu0 %v11665_v57 }
 0xf78   :  { %11603 = vmatprep.subr.bf16.mxu0 %v11666_v34 }
 0xf7b   :  { %11604 = vmatpush3.bf16.msra.mxu0 %v11666_v34 }
 0xf7c   :  { %11605 = vmatprep.subr.bf16.mxu0 %v11667_v14 }
 0xf7f   :  { %11606 = vmatpush3.bf16.msra.mxu0 %v11667_v14 }
 0xf80   :  { %11607 = vmatprep.subr.bf16.mxu0 %v11668_v3 }
 0xf83   :  { %11608 = vmatpush3.bf16.msra.mxu0 %v11668_v3 }
 0xf84   :  { %11609 = vmatprep.subr.bf16.mxu0 %v11669_v21 }
 0xf87   :  { %11610 = vmatpush3.bf16.msra.mxu0 %v11669_v21 }
0x101d   :  { %v11589_v12 = vpop.f32.mrf.mxu1 }
0x101e   :  { %v14528_v4 = vadd.f32 %v11589_v12, %v11277_v35 }
0x101f   :  { %v8441_v46 = vpop.f32.mrf.mxu1 }
0x1020   :  { %v8473_v47 = vmul.f32 %v14528_v4, %v14528_v4  ;;  %v14532_v16 = vadd.f32 %v11277_v35, %v8441_v46 }
0x1021   :  { %v11590_v10 = vpop.f32.mrf.mxu1 }
0x1022   :  { %v8480_v11 = vmul.f32 %v8473_v47, %v14528_v4  ;;  %v8471_v0 = vmul.f32 %v14532_v16, %v14532_v16  ;;  %v8453_v32 = vadd.f32 %v11590_v10, %v11277_v35 }
0x1023   :  { %v8444_v51 = vpop.f32.mrf.mxu1 }
0x1024   :  { %v8487_v28 = vmul.f32 0.044715, %v8480_v11  ;;  %v8478_v48 = vmul.f32 %v8471_v0, %v14532_v16  ;;  %v8474_v50 = vmul.f32 %v8453_v32, %v8453_v32  ;;  %v8445_v53 = vadd.f32 %v11277_v35, %v8444_v51 }
0x1026   :  { %v8494_v24 = vadd.f32 %v8487_v28, %v14528_v4  ;;  %v8485_v18 = vmul.f32 0.044715, %v8478_v48  ;;  %v8481_v1 = vmul.f32 %v8474_v50, %v8453_v32  ;;  %v8472_v42 = vmul.f32 %v8445_v53, %v8445_v53 }
0x1028   :  { %v8501_v37 = vmul.f32 0.7978846, %v8494_v24  ;;  %v8492_v38 = vadd.f32 %v8485_v18, %v14532_v16  ;;  %v8488_v43 = vmul.f32 0.044715, %v8481_v1  ;;  %v8479_v33 = vmul.f32 %v8472_v42, %v8445_v53 }
0x102a   :  { %v8499_v55 = vmul.f32 0.7978846, %v8492_v38  ;;  %v8495_v39 = vadd.f32 %v8488_v43, %v8453_v32  ;;  %v8486_v44 = vmul.f32 0.044715, %v8479_v33  ;;  %11812 = vtanh.f32 %v8501_v37 }
0x102c   :  { %11814 = vtanh.f32 %v8499_v55  ;;  %v8502_v63 = vmul.f32 0.7978846, %v8495_v39  ;;  %v8493_v13 = vadd.f32 %v8486_v44, %v8445_v53 }
0x102e   :  { %11816 = vtanh.f32 %v8502_v63  ;;  %v8500_v29 = vmul.f32 0.7978846, %v8493_v13 }
0x1030   :  { %11818 = vtanh.f32 %v8500_v29 }
0x1033   :  { %v11593_v5 = vpop.f32.mrf.mxu1 }
0x1034   :  { %v8466_v52 = vadd.f32 %v11593_v5, %v11277_v35 }
0x1035   :  { %v8457_v19 = vpop.f32.mrf.mxu1 }
0x1036   :  { %v8477_v61 = vmul.f32 %v8466_v52, %v8466_v52  ;;  %v8458_v41 = vadd.f32 %v11277_v35, %v8457_v19 }
0x1037   :  { %v11594_v6 = vpop.f32.mrf.mxu1  ;;  %v11813_v57 = vpop.eup %11812 }
0x1038   :  { %v8484_v34 = vmul.f32 %v8477_v61, %v8466_v52  ;;  %v8475_v14 = vmul.f32 %v8458_v41, %v8458_v41  ;;  %v8515_v11 = vadd.f32 1.0, %v11813_v57 }
0x1039   :  { %v11815_v3 = vpop.eup %11814  ;;  %v8460_v21 = vpop.f32.mrf.mxu1 }
0x103a   :  { %v8491_v12 = vmul.f32 0.044715, %v8484_v34  ;;  %v8482_v46 = vmul.f32 %v8475_v14, %v8458_v41  ;;  %v8461_v47 = vadd.f32 %v11277_v35, %v8460_v21  ;;  %v8513_v0 = vadd.f32 1.0, %v11815_v3 }
0x103b   :  { %v11817_v10 = vpop.eup %11816  ;;  %v8522_v43 = vmul.f32 0.5, %v8515_v11 }
0x103c   :  { %v8516_v51 = vadd.f32 1.0, %v11817_v10  ;;  %v8498_v28 = vadd.f32 %v8491_v12, %v8466_v52  ;;  %v8489_v48 = vmul.f32 0.044715, %v8482_v46  ;;  %v8476_v24 = vmul.f32 %v8461_v47, %v8461_v47 }
0x103d   :  { %v11819_v50 = vpop.eup %11818  ;;  %v8520_v18 = vmul.f32 0.5, %v8513_v0  ;;  %v8529_v29 = vmul.f32 %v8522_v43, %v14528_v4 }
0x103e   :  { %v8523_v1 = vmul.f32 0.5, %v8516_v51  ;;  %v8505_v42 = vmul.f32 0.7978846, %v8498_v28  ;;  %v8496_v37 = vadd.f32 %v8489_v48, %v8458_v41  ;;  %v8514_v38 = vadd.f32 1.0, %v11819_v50  ;;  %v14545_v51 = vld [vmem:[%s15701_s10] ss:$0 sm:$0xff] }
0x103f   :  { %v8483_v33 = vmul.f32 %v8476_v24, %v8461_v47  ;;  %v8527_v63 = vmul.f32 %v8520_v18, %v14532_v16 }
0x1040   :  { %11820 = vtanh.f32 %v8505_v42  ;;  %v8503_v55 = vmul.f32 0.7978846, %v8496_v37  ;;  %v8521_v39 = vmul.f32 0.5, %v8514_v38  ;;  %v8530_v44 = vmul.f32 %v8523_v1, %v8453_v32 }
0x1041   :  { %v8490_v35 = vmul.f32 0.044715, %v8483_v33 }
0x1042   :  { %11822 = vtanh.f32 %v8503_v55  ;;  %v8528_v13 = vmul.f32 %v8521_v39, %v8445_v53  ;;  %v8535_v61 = vpack.c.bf16 %v8530_v44, %v8529_v29 }
0x1043   :  { %v8497_v5 = vadd.f32 %v8490_v35, %v8461_v47 }
0x1044   :  { %v8534_v19 = vpack.c.bf16 %v8528_v13, %v8527_v63 }
0x1045   :  { %v8504_v6 = vmul.f32 0.7978846, %v8497_v5 }
0x1046   :  { %11611 = vmatprep.mubr.bf16.mxu0 %v8534_v19 }
0x1047   :  { %11824 = vtanh.f32 %v8504_v6  ;;  %11612 = vmatmul.mubr.bf16.vlgmr.msra.gmra.mxu0 %v8535_v61 }
0x104d   :  { %v11821_v57 = vpop.eup %11820 }
0x104e   :  { %v8519_v14 = vadd.f32 1.0, %v11821_v57 }
0x104f   :  { %v11823_v34 = vpop.eup %11822 }
0x1050   :  { %v8517_v3 = vadd.f32 1.0, %v11823_v34  ;;  %v8526_v32 = vmul.f32 0.5, %v8519_v14 }
0x1052   :  { %v8524_v46 = vmul.f32 0.5, %v8517_v3  ;;  %v8533_v16 = vmul.f32 %v8526_v32, %v8466_v52  ;;  %v16156_v32 = vld [vmem:[#allocation32_spill] sm:$0xff] }
0x1054   :  { %v11825_v21 = vpop.eup %11824  ;;  %v8531_v53 = vmul.f32 %v8524_v46, %v8458_v41  ;;  %v8537_v0 = vpack.c.bf16 %v8533_v16, %v8533_v16  ;;  %v16158_v46 = vld [vmem:[#allocation35_spill] sm:$0xff] }
0x1055   :  { %v8518_v12 = vadd.f32 1.0, %v11825_v21 }
0x1057   :  { %v8525_v10 = vmul.f32 0.5, %v8518_v12 }
0x1059   :  { %v8532_v11 = vmul.f32 %v8525_v10, %v8461_v47 }
0x105b   :  { %v8536_v4 = vpack.c.bf16 %v8532_v11, %v8531_v53  ;;  %v16162_v11 = vld [vmem:[#allocation55_spill] sm:$0xff] }
0x105d   :  { %11615 = vmatprep.mubr.bf16.mxu0 %v8536_v4 }
0x105e   :  { %11616 = vmatmul.mubr.bf16.gmra.mxu0 %v8537_v0 }
0x1107   :  { %v11613_v28 = vpop.f32.mrf.mxu0 }
0x1108   :  { %v8652_v48 = vadd.f32 %v11613_v28, %v14545_v51 }
0x1109   :  { %v8643_v50 = vpop.f32.mrf.mxu0 }
0x110a   :  { %v8778_v24 = vcombine.high %v8652_v48, %v8652_v48  ;;  %v8785_v18 = vrot.slane %v8652_v48, %v11949_v15  ;;  %v8644_v52 = vadd.f32 %v14545_v51, %v8643_v50 }
0x110b   :  { %v11614_v37 = vpop.f32.mrf.mxu0 }
0x110c   :  { %v8792_v41 = vrot.slane %v8778_v24, %v11949_v15  ;;  %v8793_v47 = vcombine.high %v8785_v18, %v8785_v18  ;;  %v8801_v1 = vrot.slane %v8785_v18, %v11949_v15  ;;  %v8680_v42 = vcombine.high %v8644_v52, %v8644_v52  ;;  %v16164_v18 = vld [vmem:[#allocation23_spill] sm:$0xff] }
0x110d   :  { %v8687_v38 = vrot.slane %v8644_v52, %v11949_v15  ;;  %v8655_v13 = vadd.f32 %v11614_v37, %v14545_v51 }
0x110e   :  { %v8794_v43 = vcombine.high %v8792_v41, %v8792_v41  ;;  %v8808_v33 = vrot.slane %v8792_v41, %v11949_v15  ;;  %v8815_v55 = vrot.slane %v8793_v47, %v11949_v15  ;;  %v8823_v39 = vcombine.high %v8801_v1, %v8801_v1  ;;  %v8646_v41 = vpop.f32.mrf.mxu0  ;;  %v16165_v47 = vld [vmem:[#allocation39_spill] sm:$0xff] }
0x110f   :  { %v8694_v44 = vrot.slane %v8680_v42, %v11949_v15  ;;  %v8695_v35 = vcombine.high %v8687_v38, %v8687_v38  ;;  %v8703_v63 = vrot.slane %v8687_v38, %v11949_v15  ;;  %v14563_v6 = vadd.f32 %v8801_v1, %v14229_v20  ;;  %v16166_v42 = vld [vmem:[#allocation24_spill] sm:$0xff]  ;;  %v16167_v38 = vld [vmem:[#allocation30_spill] sm:$0xff] }
0x1110   :  { %v8822_v29 = vrot.slane %v8794_v43, %v11949_v15  ;;  %v8824_v5 = vcombine.high %v8808_v33, %v8808_v33  ;;  %v8825_v19 = vcombine.high %v8815_v55, %v8815_v55  ;;  %v14560_v61 = vadd.f32 %v8815_v55, %v14232_v25  ;;  %v16160_v25 = vld [vmem:[#allocation36_spill] sm:$0xff] }
0x1111   :  { %16153 = vst [vmem:[#allocation43_spill] sm:$0xff] %v14563_v6  ;;  %v14566_v57 = vadd.f32 %v8823_v39, %v14236_v59  ;;  %v8696_v34 = vcombine.high %v8694_v44, %v8694_v44  ;;  %v8710_v14 = vrot.slane %v8694_v44, %v11949_v15  ;;  %v14573_v12 = vadd.f32 %v8808_v33, %v16156_v32  ;;  %v16168_v33 = vld [vmem:[#allocation27_spill] sm:$0xff]  ;;  %v16169_v39 = vld [vmem:[#allocation26_spill] sm:$0xff] }
0x1112   :  { %16152 = vst [vmem:[#allocation42_spill] sm:$0xff] %v14560_v61  ;;  %v8826_v3 = vcombine.high %v8822_v29, %v8822_v29  ;;  %v14570_v21 = vadd.f32 %v8825_v19, %v14239_v17  ;;  %v14576_v10 = vadd.f32 %v8822_v29, %v16158_v46  ;;  %v14579_v16 = vadd.f32 %v8824_v5, %v16160_v25  ;;  %v16171_v5 = vld [vmem:[#allocation28_spill] sm:$0xff]  ;;  %v16175_v46 = vld [vmem:[#allocation41_spill] sm:$0xff] }
0x1113   :  { %16154 = vst [vmem:[#allocation29_spill] sm:$0xff] %v14566_v57  ;;  %16157 = vst [vmem:[#allocation40_spill] sm:$0xff] %v14573_v12  ;;  %v8717_v20 = vrot.slane %v8695_v35, %v11949_v15  ;;  %v8724_v59 = vrot.slane %v8696_v34, %v11949_v15  ;;  %v8725_v53 = vcombine.high %v8703_v63, %v8703_v63  ;;  %v16170_v35 = vld [vmem:[#allocation25_spill] sm:$0xff]  ;;  %v16176_v34 = vld [vmem:[#allocation8_spill] sm:$0xff] }
0x1114   :  { %16155 = vst [vmem:[#allocation21_spill] sm:$0xff] %v14570_v21  ;;  %16159 = vst [vmem:[#allocation37_spill] sm:$0xff] %v14576_v10  ;;  %v14584_v4 = vadd.f32 %v8826_v3, %v16162_v11  ;;  %v9246_v17 = vcombine.low %v14563_v6, %v14560_v61  ;;  %v9247_v0 = vcombine.low %v14566_v57, %v14570_v21 }
0x1115   :  { %16161 = vst [vmem:[#allocation2_spill] sm:$0xff] %v14579_v16  ;;  %v8726_v28 = vcombine.high %v8710_v14, %v8710_v14  ;;  %v9248_v48 = vcombine.low %v14573_v12, %v14576_v10  ;;  %v8727_v50 = vcombine.high %v8717_v20, %v8717_v20  ;;  %v8728_v24 = vcombine.high %v8724_v59, %v8724_v59  ;;  %v16179_v10 = vld [vmem:[#allocation9_spill] sm:$0xff] }
0x1116   :  { %16163 = vst [vmem:[#allocation14_spill] sm:$0xff] %v14584_v4  ;;  %v14593_v52 = vadd.f32 %v8717_v20, %v16164_v18  ;;  %v14596_v1 = vadd.f32 %v8703_v63, %v16165_v47  ;;  %v14599_v37 = vadd.f32 %v8725_v53, %v16166_v42  ;;  %v14602_v43 = vadd.f32 %v8710_v14, %v16167_v38 }
0x1117   :  { %v14605_v55 = vadd.f32 %v8724_v59, %v16168_v33  ;;  %v14608_v44 = vadd.f32 %v8727_v50, %v16169_v39  ;;  %v14611_v29 = vadd.f32 %v8726_v28, %v16170_v35  ;;  %v14614_v19 = vadd.f32 %v8728_v24, %v16171_v5  ;;  %v16172_v35 = vld [vmem:[#allocation31_spill] sm:$0xff] }
0x1118   :  { %v8827_v63 = vcombine.high %v8655_v13, %v8655_v13  ;;  %v8834_v3 = vrot.slane %v8655_v13, %v11949_v15  ;;  %v8647_v14 = vadd.f32 %v14545_v51, %v8646_v41  ;;  %v9249_v32 = vcombine.low %v14579_v16, %v14584_v4  ;;  %v16178_v16 = vld [vmem:[#allocation6_spill] sm:$0xff] }
0x1119   :  { %v14628_v59 = vrot.slane %v9246_v17, %v11949_v15  ;;  %v14634_v18 = vrot.slane %v9247_v0, %v11949_v15  ;;  %v14637_v41 = vrot.slane %v9248_v48, %v11949_v15  ;;  %v16174_v48 = vld [vmem:[#allocation5_spill] sm:$0xff] }
0x111a   :  { %v8841_v20 = vrot.slane %v8827_v63, %v11949_v15  ;;  %v8842_v53 = vcombine.high %v8834_v3, %v8834_v3  ;;  %v8850_v11 = vrot.slane %v8834_v3, %v11949_v15  ;;  %v8729_v13 = vcombine.high %v8647_v14, %v8647_v14  ;;  %v16173_v3 = vld [vmem:[#allocation33_spill] sm:$0xff] }
0x111b   :  { %v8736_v28 = vrot.slane %v8647_v14, %v11949_v15  ;;  %v14642_v38 = vrot.slane %v9249_v32, %v11949_v15 }
0x111c   :  { %v8843_v50 = vcombine.high %v8841_v20, %v8841_v20  ;;  %v8857_v24 = vrot.slane %v8841_v20, %v11949_v15  ;;  %v8864_v47 = vrot.slane %v8842_v53, %v11949_v15  ;;  %v8872_v42 = vcombine.high %v8850_v11, %v8850_v11 }
0x111d   :  { %v8743_v17 = vrot.slane %v8729_v13, %v11949_v15  ;;  %v14646_v5 = vadd.f32 %v8850_v11, %v16172_v35  ;;  %v8744_v63 = vcombine.high %v8736_v28, %v8736_v28  ;;  %v8752_v11 = vrot.slane %v8736_v28, %v11949_v15  ;;  %v16177_v35 = vld [vmem:[#allocation4_spill] sm:$0xff] }
0x111e   :  { %v8871_v33 = vrot.slane %v8843_v50, %v11949_v15  ;;  %v8873_v39 = vcombine.high %v8857_v24, %v8857_v24  ;;  %v8874_v0 = vcombine.high %v8864_v47, %v8864_v47  ;;  %v14649_v14 = vadd.f32 %v8864_v47, %v16173_v3  ;;  %v11617_v25 = vpop.f32.mrf.mxu0 }
0x111f   :  { %v14652_v20 = vadd.f32 %v8857_v24, %v16174_v48  ;;  %v8745_v53 = vcombine.high %v8743_v17, %v8743_v17  ;;  %v14655_v32 = vadd.f32 %v8872_v42, %v16175_v46  ;;  %v8759_v24 = vrot.slane %v8743_v17, %v11949_v15  ;;  %v16184_v42 = vld [vmem:[#allocation51_spill] sm:$0xff] }
0x1120   :  { %v8875_v13 = vcombine.high %v8871_v33, %v8871_v33  ;;  %v14658_v50 = vadd.f32 %v8871_v33, %v16176_v34  ;;  %v14662_v4 = vadd.f32 %v8874_v0, %v16177_v35  ;;  %v14665_v47 = vadd.f32 %v8873_v39, %v16178_v16  ;;  %v8659_v48 = vpop.f32.mrf.mxu0  ;;  %v16180_v0 = vld [vmem:[#allocation34_spill] sm:$0xff]  ;;  %v16182_v34 = vld [vmem:[#allocation49_spill] sm:$0xff]  ;;  %v16185_v16 = vld [vmem:[#allocation52_spill] sm:$0xff] }
0x1121   :  { %v8766_v3 = vrot.slane %v8744_v63, %v11949_v15  ;;  %v8773_v46 = vrot.slane %v8745_v53, %v11949_v15  ;;  %v8774_v28 = vcombine.high %v8752_v11, %v8752_v11  ;;  %v8775_v33 = vcombine.high %v8759_v24, %v8759_v24  ;;  %v16183_v53 = vld [vmem:[#allocation50_spill] sm:$0xff] }
0x1122   :  { %v14670_v12 = vadd.f32 %v8875_v13, %v16179_v10  ;;  %v11618_v39 = vpop.f32.mrf.mxu0  ;;  %v14680_v35 = vadd.f32 %v8752_v11, %v16180_v0  ;;  %v16181_v10 = vld [vmem:[#allocation38_spill] sm:$0xff]  ;;  %v14692_v61 = vadd.f32 %v8759_v24, %v16184_v42  ;;  %v16186_v11 = vld [vmem:[#allocation53_spill] sm:$0xff] }
0x1123   :  { %v8776_v17 = vcombine.high %v8766_v3, %v8766_v3  ;;  %v8777_v63 = vcombine.high %v8773_v46, %v8773_v46  ;;  %v14683_v13 = vadd.f32 %v8766_v3, %v16181_v10  ;;  %v14686_v21 = vadd.f32 %v8774_v28, %v16182_v34  ;;  %v16187_v3 = vld [vmem:[#allocation54_spill] sm:$0xff] }
0x1124   :  { %v14695_v6 = vadd.f32 %v8773_v46, %v16185_v16  ;;  %v8668_v39 = vadd.f32 %v11617_v25, %v14545_v51  ;;  %v8662_v7 = vpop.f32.mrf.mxu0  ;;  %v14699_v0 = vadd.f32 %v8775_v33, %v16186_v11  ;;  %v8660_v34 = vadd.f32 %v14545_v51, %v8659_v48 }
0x1125   :  { %v14689_v57 = vadd.f32 %v8776_v17, %v16183_v53  ;;  %v14702_v10 = vadd.f32 %v8777_v63, %v16187_v3  ;;  %v8663_v28 = vadd.f32 %v14545_v51, %v8662_v7  ;;  %v9278_v25 = vcombine.low %v14628_v59, %v14634_v18 }
0x1126   :  { %v8980_v42 = vrot.slane %v8668_v39, %v11949_v15  ;;  %v8876_v16 = vcombine.high %v8660_v34, %v8660_v34  ;;  %v8883_v33 = vrot.slane %v8660_v34, %v11949_v15  ;;  %v9279_v53 = vcombine.low %v14637_v41, %v14642_v38 }
0x1127   :  { %v8925_v17 = vcombine.high %v8663_v28, %v8663_v28  ;;  %v8932_v63 = vrot.slane %v8663_v28, %v11949_v15  ;;  %v9286_v7 = vrot.slane %v9278_v25, %v11949_v15 }
0x1128   :  { %v8981_v51 = vcombine.high %v8980_v42, %v8980_v42  ;;  %v8988_v48 = vrot.slane %v8980_v42, %v11949_v15  ;;  %v8890_v39 = vrot.slane %v8876_v16, %v11949_v15  ;;  %v8891_v11 = vcombine.high %v8883_v33, %v8883_v33 }
0x1129   :  { %v8899_v59 = vrot.slane %v8883_v33, %v11949_v15  ;;  %v8939_v18 = vrot.slane %v8925_v17, %v11949_v15  ;;  %v8940_v28 = vcombine.high %v8932_v63, %v8932_v63  ;;  %v8948_v17 = vrot.slane %v8932_v63, %v11949_v15 }
0x112a   :  { %v8995_v3 = vrot.slane %v8981_v51, %v11949_v15  ;;  %v14725_v34 = vadd.f32 %v8988_v48, %v14488_v23  ;;  %v8892_v46 = vcombine.high %v8890_v39, %v8890_v39  ;;  %v8906_v42 = vrot.slane %v8890_v39, %v11949_v15 }
0x112b   :  { %v8913_v41 = vrot.slane %v8891_v11, %v11949_v15  ;;  %v8921_v38 = vcombine.high %v8899_v59, %v8899_v59  ;;  %v8941_v33 = vcombine.high %v8939_v18, %v8939_v18  ;;  %v8955_v51 = vrot.slane %v8939_v18, %v11949_v15 }
0x112c   :  { %v14731_v16 = vadd.f32 %v8995_v3, %v14491_v26  ;;  %v8920_v23 = vrot.slane %v8892_v46, %v11949_v15  ;;  %v8922_v48 = vcombine.high %v8906_v42, %v8906_v42  ;;  %v14740_v39 = vadd.f32 %v8899_v59, %v14410_v62 }
0x112d   :  { %v8923_v24 = vcombine.high %v8913_v41, %v8913_v41  ;;  %v14737_v25 = vadd.f32 %v8913_v41, %v14413_v54  ;;  %v14743_v11 = vadd.f32 %v8921_v38, %v14416_v22  ;;  %v8962_v26 = vrot.slane %v8940_v28, %v11949_v15 }
0x112e   :  { %v8969_v3 = vrot.slane %v8941_v33, %v11949_v15  ;;  %v8924_v63 = vcombine.high %v8920_v23, %v8920_v23  ;;  %v14751_v46 = vadd.f32 %v8906_v42, %v14422_v30  ;;  %v14754_v54 = vadd.f32 %v8920_v23, %v14425_v60 }
0x112f   :  { %v14748_v18 = vadd.f32 %v8923_v24, %v14419_v56  ;;  %v14757_v62 = vadd.f32 %v8922_v48, %v14428_v9  ;;  %v8970_v59 = vcombine.high %v8948_v17, %v8948_v17  ;;  %v8971_v22 = vcombine.high %v8955_v51, %v8955_v51 }
0x1130   :  { %16188 = vst [vmem:[#allocation12_spill] sm:$0xff] %v14754_v54  ;;  %v8972_v41 = vcombine.high %v8962_v26, %v8962_v26  ;;  %v14760_v28 = vadd.f32 %v8924_v63, %v14431_v40  ;;  %v9344_v38 = vcombine.low %v14740_v39, %v14737_v25  ;;  %v8973_v30 = vcombine.high %v8969_v3, %v8969_v3 }
0x1131   :  { %16189 = vst [vmem:[#allocation13_spill] sm:$0xff] %v14757_v62  ;;  %v9345_v56 = vcombine.low %v14743_v11, %v14748_v18  ;;  %v9346_v60 = vcombine.low %v14751_v46, %v14754_v54  ;;  %v14769_v24 = vadd.f32 %v8948_v17, %v14434_v49  ;;  %v14772_v9 = vadd.f32 %v8962_v26, %v14437_v58 }
0x1132   :  { %16190 = vst [vmem:[#allocation44_spill] sm:$0xff] %v14760_v28  ;;  %v14775_v42 = vadd.f32 %v8972_v41, %v14443_v27  ;;  %v14778_v40 = vadd.f32 %v8970_v59, %v14440_v8  ;;  %v14781_v33 = vadd.f32 %v8955_v51, %v14446_v31  ;;  %v14784_v23 = vadd.f32 %v8969_v3, %v14449_v2 }
0x1133   :  { %16191 = vst [vmem:[#allocation45_spill] sm:$0xff] %v14769_v24  ;;  %16192 = vst [vmem:[#allocation46_spill] sm:$0xff] %v14772_v9  ;;  %v14787_v48 = vadd.f32 %v8971_v22, %v14452_v45  ;;  %v14790_v49 = vadd.f32 %v8973_v30, %v14455_v36  ;;  %v9393_v58 = vcombine.low %v14769_v24, %v14772_v9 }
0x1134   :  { %16193 = vst [vmem:[#allocation47_spill] sm:$0xff] %v14775_v42  ;;  %16194 = vst [vmem:[#allocation48_spill] sm:$0xff] %v14778_v40  ;;  %v9293_v27 = vrot.slane %v9279_v53, %v11949_v15  ;;  %v9298_v8 = vcombine.low %v14665_v47, %v14670_v12  ;;  %v9394_v31 = vcombine.low %v14778_v40, %v14775_v42 }
0x1135   :  { %16195 = vst [vmem:[#allocation7_spill] sm:$0xff] %v14781_v33  ;;  %16196 = vst [vmem:[#allocation10_spill] sm:$0xff] %v14784_v23  ;;  %v16199_v2 = vcombine.low %v14646_v5, %v14649_v14  ;;  %v16200_v36 = vcombine.low %v14655_v32, %v14662_v4  ;;  %v16201_v53 = vcombine.low %v14652_v20, %v14658_v50 }
0x1136   :  { %16197 = vst [vmem:[#allocation15_spill] sm:$0xff] %v14787_v48  ;;  %16198 = vst [vmem:[#allocation32_spill] sm:$0xff] %v14790_v49  ;;  %v9294_v26 = vcombine.low %v9286_v7, %v9293_v27  ;;  %v9326_v3 = vrot.slane %v9298_v8, %v11949_v15  ;;  %v9151_v63 = vcombine.low %v14611_v29, %v14614_v19 }
0x1137   :  { %v9305_v45 = vrot.slane %v16199_v2, %v11949_v15  ;;  %v9312_v17 = vrot.slane %v16200_v36, %v11949_v15  ;;  %v9319_v51 = vrot.slane %v16201_v53, %v11949_v15  ;;  %v16202_v59 = vcombine.low %v14596_v1, %v14593_v52 }
0x1138   :  { %v16203_v30 = vcombine.low %v14599_v37, %v14608_v44  ;;  %v16204_v7 = vcombine.low %v14602_v43, %v14605_v55  ;;  %v9200_v8 = vcombine.low %v14699_v0, %v14702_v10  ;;  %v9470_v36 = vsel %vm776_vm0, %v9294_v26, 0.0 }
0x1139   :  { %v9158_v22 = vrot.slane %v16202_v59, %v11949_v15  ;;  %v9327_v41 = vcombine.low %v9305_v45, %v9312_v17  ;;  %v9328_v53 = vcombine.low %v9319_v51, %v9326_v3  ;;  %v9179_v42 = vrot.slane %v9151_v63, %v11949_v15  ;;  %9471 = vadd.xlane.f32.xlu1 %v9470_v36 }
0x113a   :  { %v9165_v2 = vrot.slane %v16203_v30, %v11949_v15  ;;  %v9172_v27 = vrot.slane %v16204_v7, %v11949_v15  ;;  %v16205_v45 = vcombine.low %v14680_v35, %v14683_v13  ;;  %v16206_v7 = vcombine.low %v14686_v21, %v14689_v57 }
0x113b   :  { %v9335_v59 = vrot.slane %v9327_v41, %v11949_v15  ;;  %v16207_v51 = vcombine.low %v14692_v61, %v14695_v6  ;;  %v9342_v3 = vrot.slane %v9328_v53, %v11949_v15  ;;  %v9228_v9 = vrot.slane %v9200_v8, %v11949_v15 }
0x113c   :  { %v9207_v17 = vrot.slane %v16205_v45, %v11949_v15  ;;  %v9180_v30 = vcombine.low %v9158_v22, %v9165_v2  ;;  %v9214_v40 = vrot.slane %v16206_v7, %v11949_v15  ;;  %v9181_v63 = vcombine.low %v9172_v27, %v9179_v42 }
0x113d   :  { %v9221_v26 = vrot.slane %v16207_v51, %v11949_v15  ;;  %v9347_v36 = vcombine.low %v14757_v62, %v14760_v28  ;;  %v9395_v22 = vcombine.low %v14781_v33, %v14784_v23  ;;  %v9354_v2 = vrot.slane %v9344_v38, %v11949_v15  ;;  %v16226_v23 = vld [vmem:[#allocation37_spill] sm:$0xff] }
0x113e   :  { %v9229_v41 = vcombine.low %v9207_v17, %v9214_v40  ;;  %v9361_v45 = vrot.slane %v9345_v56, %v11949_v15  ;;  %v9343_v7 = vcombine.low %v9335_v59, %v9342_v3  ;;  %v9188_v24 = vrot.slane %v9180_v30, %v11949_v15 }
0x113f   :  { %v9195_v51 = vrot.slane %v9181_v63, %v11949_v15  ;;  %v9230_v53 = vcombine.low %v9221_v26, %v9228_v9  ;;  %v9368_v42 = vrot.slane %v9346_v60, %v11949_v15  ;;  %v9375_v27 = vrot.slane %v9347_v36, %v11949_v15 }
0x1140   :  { %v9376_v8 = vcombine.low %v9354_v2, %v9361_v45  ;;  %v9396_v28 = vcombine.low %v14787_v48, %v14790_v49  ;;  %v9473_v40 = vsel %vm776_vm0, %v9343_v7, 0.0  ;;  %v9237_v38 = vrot.slane %v9229_v41, %v11949_v15  ;;  %v16224_v49 = vld [vmem:[#allocation40_spill] sm:$0xff] }
0x1141   :  { %v9196_v17 = vcombine.low %v9188_v24, %v9195_v51  ;;  %v9244_v56 = vrot.slane %v9230_v53, %v11949_v15  ;;  %9474 = vadd.xlane.f32.xlu0 %v9473_v40  ;;  %v9377_v59 = vcombine.low %v9368_v42, %v9375_v27  ;;  %v9403_v30 = vrot.slane %v9393_v58, %v11949_v15 }
0x1142   :  { %v9410_v9 = vrot.slane %v9394_v31, %v11949_v15  ;;  %v9417_v60 = vrot.slane %v9395_v22, %v11949_v15  ;;  %v9424_v63 = vrot.slane %v9396_v28, %v11949_v15  ;;  %v9442_v24 = vcombine.low %v14725_v34, %v14731_v16 }
0x1143   :  { %v9464_v26 = vsel %vm776_vm0, %v9196_v17, 0.0  ;;  %v9245_v3 = vcombine.low %v9237_v38, %v9244_v56  ;;  %v9384_v36 = vrot.slane %v9376_v8, %v11949_v15  ;;  %v9391_v41 = vrot.slane %v9377_v59, %v11949_v15  ;;  %v16208_v38 = vld [vmem:[#allocation11_spill] sm:$0xff] }
0x1144   :  { %9465 = vadd.xlane.f32.xlu1 %v9464_v26  ;;  %v9425_v2 = vcombine.low %v9403_v30, %v9410_v9  ;;  %v9426_v45 = vcombine.low %v9417_v60, %v9424_v63  ;;  %v9449_v31 = vrot.slane %v9442_v24, %v11949_v15  ;;  %v16209_v59 = vld [vmem:[#allocation3_spill] sm:$0xff]  ;;  %v16210_v9 = vld [vmem:[#allocation22_spill] sm:$0xff]  ;;  %v16211_v26 = vld [vmem:[#allocation16_spill] sm:$0xff] }
0x1145   :  { %v9467_v58 = vsel %vm776_vm0, %v9245_v3, 0.0  ;;  %v9392_v22 = vcombine.low %v9384_v36, %v9391_v41  ;;  %v16212_v63 = vld [vmem:[#allocation18_spill] sm:$0xff]  ;;  %v16213_v36 = vld [vmem:[#allocation17_spill] sm:$0xff] }
0x1146   :  { %9468 = vadd.xlane.f32.xlu0 %v9467_v58  ;;  %v9433_v7 = vrot.slane %v9425_v2, %v11949_v15  ;;  %v9440_v28 = vrot.slane %v9426_v45, %v11949_v15  ;;  %v9456_v53 = vrot.slane %v9449_v31, %v11949_v15  ;;  %v16214_v2 = vld [vmem:[#allocation20_spill] sm:$0xff]  ;;  %v16215_v45 = vld [vmem:[#allocation19_spill] sm:$0xff] }
0x1147   :  { %v9476_v51 = vsel %vm776_vm0, %v9392_v22, 0.0  ;;  %v16216_v22 = vld [vmem:[#allocation43_spill] sm:$0xff] }
0x1148   :  { %9477 = vadd.xlane.f32.xlu1 %v9476_v51  ;;  %v9441_v42 = vcombine.low %v9433_v7, %v9440_v28  ;;  %v9482_v8 = vsel %vm6694_vm6, %v9456_v53, 0.0  ;;  %v16218_v28 = vld [vmem:[#allocation42_spill] sm:$0xff]  ;;  %v16220_v53 = vld [vmem:[#allocation29_spill] sm:$0xff] }
0x114a   :  { %v9479_v27 = vsel %vm776_vm0, %v9441_v42, 0.0 }
0x114b   :  { %9480 = vadd.xlane.f32.xlu0 %v9479_v27  ;;  %v16222_v27 = vld [vmem:[#allocation21_spill] sm:$0xff] }
0x114c   :  { %9483 = vadd.xlane.f32.xlu1 %v9482_v8 }
0x11c2   :  { %v9472_v40 = vpop.xlane.xlu1 %9471 }
0x11c3   :  { %v9487_v17 = vmul.f32 0.03125, %v9472_v40 }
0x11c5   :  { %v9566_v56 = vrot.slane %v9487_v17, %v16208_v38  ;;  %v9570_v30 = vrot.slane %v9487_v17, %v16209_v59  ;;  %v9574_v60 = vrot.slane %v9487_v17, %v16210_v9  ;;  %v9578_v3 = vrot.slane %v9487_v17, %v16211_v26 }
0x11c6   :  { %v9582_v24 = vrot.slane %v9487_v17, %v16212_v63  ;;  %v9586_v41 = vrot.slane %v9487_v17, %v16213_v36  ;;  %v9590_v58 = vrot.slane %v9487_v17, %v16214_v2  ;;  %v9594_v31 = vrot.slane %v9487_v17, %v16215_v45  ;;  %v16228_v17 = vld [vmem:[#allocation2_spill] sm:$0xff] }
0x11c7   :  { %v14886_v7 = vsub.f32 %v16216_v22, %v9566_v56  ;;  %v14889_v51 = vsub.f32 %v16218_v28, %v9570_v30  ;;  %v14892_v42 = vsub.f32 %v16220_v53, %v9574_v60  ;;  %v14895_v8 = vsub.f32 %v16222_v27, %v9578_v3  ;;  %v16230_v56 = vld [vmem:[#allocation14_spill] sm:$0xff] }
0x11c8   :  { %v14898_v48 = vsub.f32 %v16224_v49, %v9582_v24  ;;  %v14901_v33 = vsub.f32 %v16226_v23, %v9586_v41  ;;  %v14904_v62 = vsub.f32 %v16228_v17, %v9590_v58  ;;  %v14907_v22 = vsub.f32 %v16230_v56, %v9594_v31 }
0x11c9   :  { %16217 = vst [vmem:[#allocation35_spill] sm:$0xff] %v14886_v7  ;;  %16219 = vst [vmem:[#allocation36_spill] sm:$0xff] %v14889_v51  ;;  %v9815_v60 = vmul.f32 %v14886_v7, %v14886_v7  ;;  %v9816_v3 = vmul.f32 %v14889_v51, %v14889_v51  ;;  %v9817_v49 = vmul.f32 %v14892_v42, %v14892_v42 }
0x11ca   :  { %16221 = vst [vmem:[#allocation55_spill] sm:$0xff] %v14892_v42  ;;  %16223 = vst [vmem:[#allocation23_spill] sm:$0xff] %v14895_v8  ;;  %v9475_v40 = vpop.xlane.xlu0 %9474  ;;  %v9818_v23 = vmul.f32 %v14895_v8, %v14895_v8  ;;  %v9819_v41 = vmul.f32 %v14898_v48, %v14898_v48  ;;  %v9820_v58 = vmul.f32 %v14901_v33, %v14901_v33 }
0x11cb   :  { %16225 = vst [vmem:[#allocation39_spill] sm:$0xff] %v14898_v48  ;;  %16227 = vst [vmem:[#allocation24_spill] sm:$0xff] %v14901_v33  ;;  %v14909_v30 = vmul.f32 0.03125, %v9475_v40  ;;  %v9821_v31 = vmul.f32 %v14904_v62, %v14904_v62  ;;  %v9822_v53 = vmul.f32 %v14907_v22, %v14907_v22  ;;  %v9997_v27 = vcombine.low %v9815_v60, %v9816_v3 }
0x11cc   :  { %16229 = vst [vmem:[#allocation30_spill] sm:$0xff] %v14904_v62  ;;  %16231 = vst [vmem:[#allocation27_spill] sm:$0xff] %v14907_v22  ;;  %v9998_v56 = vcombine.low %v9817_v49, %v9818_v23  ;;  %v9999_v8 = vcombine.low %v9819_v41, %v9820_v58 }
0x11cd   :  { %v9466_v24 = vpop.xlane.xlu1 %9465  ;;  %v10000_v62 = vcombine.low %v9821_v31, %v9822_v53 }
0x11ce   :  { %v9485_v28 = vmul.f32 0.03125, %v9466_v24  ;;  %v10007_v24 = vrot.slane %v9997_v27, %v11949_v15  ;;  %v10014_v60 = vrot.slane %v9998_v56, %v11949_v15  ;;  %v10021_v3 = vrot.slane %v9999_v8, %v11949_v15 }
0x11cf   :  { %v9469_v17 = vpop.xlane.xlu0 %9468  ;;  %v10028_v58 = vrot.slane %v10000_v62, %v11949_v15 }
0x11d0   :  { %v14933_v42 = vmul.f32 0.03125, %v9469_v17  ;;  %v9502_v22 = vrot.slane %v9485_v28, %v16208_v38  ;;  %v9506_v49 = vrot.slane %v9485_v28, %v16209_v59  ;;  %v9510_v23 = vrot.slane %v9485_v28, %v16210_v9 }
0x11d1   :  { %v9478_v41 = vpop.xlane.xlu1 %9477  ;;  %v9514_v33 = vrot.slane %v9485_v28, %v16211_v26  ;;  %v9518_v17 = vrot.slane %v9485_v28, %v16212_v63  ;;  %v9522_v31 = vrot.slane %v9485_v28, %v16213_v36  ;;  %v10029_v27 = vcombine.low %v10007_v24, %v10014_v60 }
0x11d2   :  { %v14945_v53 = vmul.f32 0.03125, %v9478_v41  ;;  %v9526_v56 = vrot.slane %v9485_v28, %v16214_v2  ;;  %v9530_v8 = vrot.slane %v9485_v28, %v16215_v45  ;;  %v10030_v48 = vcombine.low %v10021_v3, %v10028_v58 }
0x11d3   :  { %v14950_v40 = vsub.f32 %v14596_v1, %v9502_v22  ;;  %v14953_v51 = vsub.f32 %v14593_v52, %v9506_v49  ;;  %v14956_v62 = vsub.f32 %v14599_v37, %v9510_v23  ;;  %v10037_v54 = vrot.slane %v10029_v27, %v11949_v15 }
0x11d4   :  { %v9481_v7 = vpop.xlane.xlu0 %9480  ;;  %v14960_v41 = vsub.f32 %v14608_v44, %v9514_v33  ;;  %v14963_v24 = vsub.f32 %v14602_v43, %v9518_v17  ;;  %v14966_v28 = vsub.f32 %v14605_v55, %v9522_v31  ;;  %v10044_v52 = vrot.slane %v10030_v48, %v11949_v15 }
0x11d5   :  { %v9484_v1 = vpop.xlane.xlu1 %9483  ;;  %v14968_v22 = vmul.f32 0.03125, %v9481_v7  ;;  %v14972_v37 = vsub.f32 %v14611_v29, %v9526_v56  ;;  %v14975_v60 = vsub.f32 %v14614_v19, %v9530_v8  ;;  %v9799_v44 = vmul.f32 %v14950_v40, %v14950_v40 }
0x11d6   :  { %v9491_v3 = vmul.f32 0.03125, %v9484_v1  ;;  %v9800_v43 = vmul.f32 %v14953_v51, %v14953_v51  ;;  %v9801_v55 = vmul.f32 %v14956_v62, %v14956_v62  ;;  %v10045_v33 = vcombine.low %v10037_v54, %v10044_v52 }
0x11d7   :  { %16232 = vst [vmem:[#allocation26_spill] sm:$0xff] %v14975_v60  ;;  %v9802_v48 = vmul.f32 %v14960_v41, %v14960_v41  ;;  %v9803_v29 = vmul.f32 %v14963_v24, %v14963_v24  ;;  %v9804_v19 = vmul.f32 %v14966_v28, %v14966_v28  ;;  %v9805_v23 = vmul.f32 %v14972_v37, %v14972_v37 }
0x11d8   :  { %v9694_v7 = vrot.slane %v9491_v3, %v16208_v38  ;;  %v9698_v49 = vrot.slane %v9491_v3, %v16209_v59  ;;  %v9806_v58 = vmul.f32 %v14975_v60, %v14975_v60  ;;  %v10221_v54 = vsel %vm776_vm0, %v10045_v33, 0.0 }
0x11d9   :  { %v9899_v17 = vcombine.low %v9799_v44, %v9800_v43  ;;  %v9900_v31 = vcombine.low %v9801_v55, %v9802_v48  ;;  %v9901_v27 = vcombine.low %v9803_v29, %v9804_v19  ;;  %10222 = vadd.xlane.f32.xlu0 %v10221_v54  ;;  %v9610_v52 = vrot.slane %v14909_v30, %v16211_v26 }
0x11da   :  { %v14997_v56 = vsub.f32 %v14725_v34, %v9694_v7  ;;  %v15000_v8 = vsub.f32 %v14731_v16, %v9698_v49  ;;  %v9902_v1 = vcombine.low %v9805_v23, %v9806_v58  ;;  %v9614_v44 = vrot.slane %v14909_v30, %v16212_v63 }
0x11db   :  { %v9909_v3 = vrot.slane %v9899_v17, %v11949_v15  ;;  %v9916_v60 = vrot.slane %v9900_v31, %v11949_v15  ;;  %v9923_v33 = vrot.slane %v9901_v27, %v11949_v15  ;;  %v9618_v55 = vrot.slane %v14909_v30, %v16213_v36 }
0x11dc   :  { %16233 = vst [vmem:[#allocation25_spill] sm:$0xff] %v14997_v56  ;;  %16234 = vst [vmem:[#allocation28_spill] sm:$0xff] %v15000_v8  ;;  %v15011_v34 = vmul.f32 %v14997_v56, %v14997_v56  ;;  %v15015_v16 = vmul.f32 %v15000_v8, %v15000_v8  ;;  %v9930_v43 = vrot.slane %v9902_v1, %v11949_v15 }
0x11dd   :  { %v9931_v48 = vcombine.low %v9909_v3, %v9916_v60  ;;  %v9622_v29 = vrot.slane %v14909_v30, %v16214_v2  ;;  %v9626_v19 = vrot.slane %v14909_v30, %v16215_v45  ;;  %v16235_v7 = vrot.slane %v14909_v30, %v16208_v38 }
0x11de   :  { %v9932_v23 = vcombine.low %v9923_v33, %v9930_v43  ;;  %v16236_v58 = vrot.slane %v14909_v30, %v16209_v59  ;;  %v16237_v60 = vrot.slane %v14909_v30, %v16210_v9  ;;  %v15043_v31 = vsub.f32 %v14662_v4, %v9610_v52 }
0x11df   :  { %v15028_v49 = vsub.f32 %v14646_v5, %v16235_v7  ;;  %v9939_v27 = vrot.slane %v9931_v48, %v11949_v15  ;;  %v15047_v5 = vsub.f32 %v14652_v20, %v9614_v44  ;;  %v15050_v1 = vsub.f32 %v14658_v50, %v9618_v55 }
0x11e0   :  { %v15034_v54 = vsub.f32 %v14649_v14, %v16236_v58  ;;  %v15040_v17 = vsub.f32 %v14655_v32, %v16237_v60  ;;  %v15053_v14 = vsub.f32 %v14665_v47, %v9622_v29  ;;  %v9946_v3 = vrot.slane %v9932_v23, %v11949_v15 }
0x11e1   :  { %16238 = vst [vmem:[#allocation31_spill] sm:$0xff] %v15050_v1  ;;  %v15057_v30 = vsub.f32 %v14670_v12, %v9626_v19  ;;  %v9823_v4 = vmul.f32 %v15028_v49, %v15028_v49  ;;  %v9826_v50 = vmul.f32 %v15043_v31, %v15043_v31  ;;  %v9827_v47 = vmul.f32 %v15047_v5, %v15047_v5 }
0x11e2   :  { %16239 = vst [vmem:[#allocation33_spill] sm:$0xff] %v15053_v14  ;;  %v9824_v32 = vmul.f32 %v15034_v54, %v15034_v54  ;;  %v9825_v20 = vmul.f32 %v15040_v17, %v15040_v17  ;;  %v9828_v52 = vmul.f32 %v15050_v1, %v15050_v1  ;;  %v9947_v12 = vcombine.low %v9939_v27, %v9946_v3 }
0x11e3   :  { %16240 = vst [vmem:[#allocation5_spill] sm:$0xff] %v15057_v30  ;;  %v9829_v33 = vmul.f32 %v15053_v14, %v15053_v14  ;;  %v9830_v44 = vmul.f32 %v15057_v30, %v15057_v30  ;;  %v9534_v29 = vrot.slane %v14933_v42, %v16208_v38  ;;  %v9538_v19 = vrot.slane %v14933_v42, %v16209_v59 }
0x11e4   :  { %v10046_v43 = vcombine.low %v9823_v4, %v9824_v32  ;;  %v10047_v55 = vcombine.low %v9825_v20, %v9826_v50  ;;  %v10048_v48 = vcombine.low %v9827_v47, %v9828_v52  ;;  %v10215_v7 = vsel %vm776_vm0, %v9947_v12, 0.0 }
0x11e5   :  { %v10049_v23 = vcombine.low %v9829_v33, %v9830_v44  ;;  %v9542_v60 = vrot.slane %v14933_v42, %v16210_v9  ;;  %10216 = vadd.xlane.f32.xlu0 %v10215_v7  ;;  %v9546_v4 = vrot.slane %v14933_v42, %v16211_v26  ;;  %v9550_v32 = vrot.slane %v14933_v42, %v16212_v63 }
0x11e6   :  { %v10056_v58 = vrot.slane %v10046_v43, %v11949_v15  ;;  %v10063_v27 = vrot.slane %v10047_v55, %v11949_v15  ;;  %v10070_v3 = vrot.slane %v10048_v48, %v11949_v15  ;;  %v9554_v50 = vrot.slane %v14933_v42, %v16213_v36 }
0x11e7   :  { %v10077_v20 = vrot.slane %v10049_v23, %v11949_v15  ;;  %v9558_v47 = vrot.slane %v14933_v42, %v16214_v2  ;;  %v9562_v52 = vrot.slane %v14933_v42, %v16215_v45  ;;  %v15097_v33 = vsub.f32 %v14680_v35, %v9534_v29 }
0x11e8   :  { %v10078_v12 = vcombine.low %v10056_v58, %v10063_v27  ;;  %v15100_v44 = vsub.f32 %v14683_v13, %v9538_v19  ;;  %v15103_v43 = vsub.f32 %v14686_v21, %v9542_v60  ;;  %v15106_v48 = vsub.f32 %v14689_v57, %v9546_v4 }
0x11e9   :  { %16241 = vst [vmem:[#allocation41_spill] sm:$0xff] %v15097_v33  ;;  %v10079_v55 = vcombine.low %v10070_v3, %v10077_v20  ;;  %v15109_v7 = vsub.f32 %v14692_v61, %v9550_v32  ;;  %v15112_v23 = vsub.f32 %v14695_v6, %v9554_v50  ;;  %v15116_v35 = vsub.f32 %v14699_v0, %v9558_v47 }
0x11ea   :  { %16242 = vst [vmem:[#allocation8_spill] sm:$0xff] %v15100_v44  ;;  %16243 = vst [vmem:[#allocation4_spill] sm:$0xff] %v15103_v43  ;;  %v10086_v42 = vrot.slane %v10078_v12, %v11949_v15  ;;  %v15119_v13 = vsub.f32 %v14702_v10, %v9562_v52  ;;  %v9807_v21 = vmul.f32 %v15097_v33, %v15097_v33 }
0x11eb   :  { %16244 = vst [vmem:[#allocation6_spill] sm:$0xff] %v15106_v48  ;;  %16245 = vst [vmem:[#allocation9_spill] sm:$0xff] %v15109_v7  ;;  %v10093_v57 = vrot.slane %v10079_v55, %v11949_v15  ;;  %v9808_v61 = vmul.f32 %v15100_v44, %v15100_v44  ;;  %v9809_v6 = vmul.f32 %v15103_v43, %v15103_v43 }
0x11ec   :  { %16246 = vst [vmem:[#allocation34_spill] sm:$0xff] %v15112_v23  ;;  %16247 = vst [vmem:[#allocation38_spill] sm:$0xff] %v15116_v35  ;;  %v9810_v29 = vmul.f32 %v15106_v48, %v15106_v48  ;;  %v9811_v0 = vmul.f32 %v15109_v7, %v15109_v7  ;;  %v9812_v10 = vmul.f32 %v15112_v23, %v15112_v23 }
0x11ed   :  { %16248 = vst [vmem:[#allocation49_spill] sm:$0xff] %v15119_v13  ;;  %v9813_v19 = vmul.f32 %v15116_v35, %v15116_v35  ;;  %v9814_v58 = vmul.f32 %v15119_v13, %v15119_v13  ;;  %v10094_v60 = vcombine.low %v10086_v42, %v10093_v57  ;;  %v9948_v27 = vcombine.low %v9807_v21, %v9808_v61 }
0x11ee   :  { %v9949_v3 = vcombine.low %v9809_v6, %v9810_v29  ;;  %v9630_v4 = vrot.slane %v14945_v53, %v16208_v38  ;;  %v9950_v32 = vcombine.low %v9811_v0, %v9812_v10  ;;  %v9634_v50 = vrot.slane %v14945_v53, %v16209_v59 }
0x11ef   :  { %v9951_v20 = vcombine.low %v9813_v19, %v9814_v58  ;;  %v9638_v47 = vrot.slane %v14945_v53, %v16210_v9  ;;  %v10224_v52 = vsel %vm776_vm0, %v10094_v60, 0.0  ;;  %v9958_v12 = vrot.slane %v9948_v27, %v11949_v15 }
0x11f0   :  { %v9965_v55 = vrot.slane %v9949_v3, %v11949_v15  ;;  %v9642_v42 = vrot.slane %v14945_v53, %v16211_v26  ;;  %10225 = vadd.xlane.f32.xlu1 %v10224_v52  ;;  %v9972_v21 = vrot.slane %v9950_v32, %v11949_v15  ;;  %v9646_v61 = vrot.slane %v14945_v53, %v16212_v63  ;;  %v16254_v52 = vld [vmem:[#allocation12_spill] sm:$0xff] }
0x11f1   :  { %v9979_v57 = vrot.slane %v9951_v20, %v11949_v15  ;;  %v9650_v6 = vrot.slane %v14945_v53, %v16213_v36  ;;  %v9654_v0 = vrot.slane %v14945_v53, %v16214_v2  ;;  %v9658_v10 = vrot.slane %v14945_v53, %v16215_v45 }
0x11f2   :  { %v9980_v29 = vcombine.low %v9958_v12, %v9965_v55  ;;  %v15160_v19 = vsub.f32 %v14740_v39, %v9630_v4  ;;  %v15163_v60 = vsub.f32 %v14737_v25, %v9634_v50  ;;  %v15166_v27 = vsub.f32 %v14743_v11, %v9638_v47  ;;  %v16256_v39 = vld [vmem:[#allocation13_spill] sm:$0xff]  ;;  %v16258_v50 = vld [vmem:[#allocation44_spill] sm:$0xff] }
0x11f3   :  { %v9981_v58 = vcombine.low %v9972_v21, %v9979_v57  ;;  %v15169_v3 = vsub.f32 %v14748_v18, %v9642_v42  ;;  %v15173_v20 = vsub.f32 %v14751_v46, %v9646_v61  ;;  %v15176_v53 = vsub.f32 %v16254_v52, %v9650_v6 }
0x11f4   :  { %16249 = vst [vmem:[#allocation50_spill] sm:$0xff] %v15160_v19  ;;  %16250 = vst [vmem:[#allocation51_spill] sm:$0xff] %v15163_v60  ;;  %v9988_v32 = vrot.slane %v9980_v29, %v11949_v15  ;;  %v15179_v4 = vsub.f32 %v16256_v39, %v9654_v0  ;;  %v15183_v12 = vsub.f32 %v16258_v50, %v9658_v10 }
0x11f5   :  { %16251 = vst [vmem:[#allocation52_spill] sm:$0xff] %v15166_v27  ;;  %16252 = vst [vmem:[#allocation53_spill] sm:$0xff] %v15169_v3  ;;  %v9995_v25 = vrot.slane %v9981_v58, %v11949_v15  ;;  %v9831_v11 = vmul.f32 %v15160_v19, %v15160_v19  ;;  %v9832_v18 = vmul.f32 %v15163_v60, %v15163_v60 }
0x11f6   :  { %16253 = vst [vmem:[#allocation54_spill] sm:$0xff] %v15173_v20  ;;  %16255 = vst [vmem:[#allocation11_spill] sm:$0xff] %v15176_v53  ;;  %v9833_v46 = vmul.f32 %v15166_v27, %v15166_v27  ;;  %v9834_v47 = vmul.f32 %v15169_v3, %v15169_v3  ;;  %v9835_v55 = vmul.f32 %v15173_v20, %v15173_v20  ;;  %v16279_v3 = vld [vmem:[#allocation23_spill] sm:$0xff] }
0x11f7   :  { %16257 = vst [vmem:[#allocation3_spill] sm:$0xff] %v15179_v4  ;;  %16259 = vst [vmem:[#allocation22_spill] sm:$0xff] %v15183_v12  ;;  %v9836_v42 = vmul.f32 %v15176_v53, %v15176_v53  ;;  %v9996_v21 = vcombine.low %v9988_v32, %v9995_v25  ;;  %v9837_v57 = vmul.f32 %v15179_v4, %v15179_v4  ;;  %v16278_v53 = vld [vmem:[#allocation55_spill] sm:$0xff] }
0x11f8   :  { %v9838_v61 = vmul.f32 %v15183_v12, %v15183_v12  ;;  %v10095_v6 = vcombine.low %v9831_v11, %v9832_v18  ;;  %v10096_v29 = vcombine.low %v9833_v46, %v9834_v47  ;;  %v9662_v10 = vrot.slane %v14968_v22, %v16208_v38  ;;  %v16268_v12 = vld [vmem:[#allocation7_spill] sm:$0xff] }
0x11f9   :  { %v10097_v0 = vcombine.low %v9835_v55, %v9836_v42  ;;  %v10218_v58 = vsel %vm776_vm0, %v9996_v21, 0.0  ;;  %v9666_v32 = vrot.slane %v14968_v22, %v16209_v59  ;;  %v10193_v11 = vcombine.low %v15011_v34, %v15015_v16  ;;  %v16280_v27 = vld [vmem:[#allocation39_spill] sm:$0xff] }
0x11fa   :  { %v10098_v52 = vcombine.low %v9837_v57, %v9838_v61  ;;  %v10105_v39 = vrot.slane %v10095_v6, %v11949_v15  ;;  %10219 = vadd.xlane.f32.xlu1 %v10218_v58  ;;  %v10112_v25 = vrot.slane %v10096_v29, %v11949_v15  ;;  %v9670_v18 = vrot.slane %v14968_v22, %v16210_v9  ;;  %v16260_v61 = vld [vmem:[#allocation45_spill] sm:$0xff]  ;;  %v16262_v29 = vld [vmem:[#allocation46_spill] sm:$0xff]  ;;  %v16264_v58 = vld [vmem:[#allocation48_spill] sm:$0xff] }
0x11fb   :  { %v10119_v50 = vrot.slane %v10097_v0, %v11949_v15  ;;  %v9674_v47 = vrot.slane %v14968_v22, %v16211_v26  ;;  %v9678_v55 = vrot.slane %v14968_v22, %v16212_v63  ;;  %v9682_v42 = vrot.slane %v14968_v22, %v16213_v36 }
0x11fc   :  { %v10126_v46 = vrot.slane %v10098_v52, %v11949_v15  ;;  %v10127_v21 = vcombine.low %v10105_v39, %v10112_v25  ;;  %v9686_v57 = vrot.slane %v14968_v22, %v16214_v2  ;;  %v9690_v34 = vrot.slane %v14968_v22, %v16215_v45  ;;  %v16266_v25 = vld [vmem:[#allocation47_spill] sm:$0xff] }
0x11fd   :  { %v15225_v6 = vsub.f32 %v16260_v61, %v9662_v10  ;;  %v15228_v0 = vsub.f32 %v16262_v29, %v9666_v32  ;;  %v15231_v52 = vsub.f32 %v16264_v58, %v9670_v18  ;;  %v10200_v39 = vrot.slane %v10193_v11, %v11949_v15  ;;  %v16270_v10 = vld [vmem:[#allocation10_spill] sm:$0xff]  ;;  %v16272_v32 = vld [vmem:[#allocation15_spill] sm:$0xff]  ;;  %v16274_v18 = vld [vmem:[#allocation32_spill] sm:$0xff] }
0x11fe   :  { %v10128_v16 = vcombine.low %v10119_v50, %v10126_v46  ;;  %v10135_v8 = vrot.slane %v10127_v21, %v11949_v15  ;;  %v15236_v56 = vsub.f32 %v16266_v25, %v9674_v47  ;;  %v15239_v4 = vsub.f32 %v16268_v12, %v9678_v55 }
0x11ff   :  { %16261 = vst [vmem:[#allocation43_spill] sm:$0xff] %v15225_v6  ;;  %16263 = vst [vmem:[#allocation42_spill] sm:$0xff] %v15228_v0  ;;  %v15243_v50 = vsub.f32 %v16270_v10, %v9682_v42  ;;  %v15246_v46 = vsub.f32 %v16272_v32, %v9686_v57  ;;  %v15249_v61 = vsub.f32 %v16274_v18, %v9690_v34 }
0x1200   :  { %16265 = vst [vmem:[#allocation29_spill] sm:$0xff] %v15231_v52  ;;  %16267 = vst [vmem:[#allocation21_spill] sm:$0xff] %v15236_v56  ;;  %v10142_v22 = vrot.slane %v10128_v16, %v11949_v15  ;;  %v9839_v11 = vmul.f32 %v15225_v6, %v15225_v6  ;;  %v9840_v47 = vmul.f32 %v15228_v0, %v15228_v0  ;;  %v16277_v0 = vld [vmem:[#allocation36_spill] sm:$0xff] }
0x1201   :  { %16269 = vst [vmem:[#allocation40_spill] sm:$0xff] %v15239_v4  ;;  %16271 = vst [vmem:[#allocation37_spill] sm:$0xff] %v15243_v50  ;;  %v9841_v12 = vmul.f32 %v15231_v52, %v15231_v52  ;;  %v9842_v55 = vmul.f32 %v15236_v56, %v15236_v56  ;;  %v9843_v21 = vmul.f32 %v15239_v4, %v15239_v4  ;;  %v16276_v56 = vld [vmem:[#allocation35_spill] sm:$0xff] }
0x1202   :  { %16273 = vst [vmem:[#allocation2_spill] sm:$0xff] %v15246_v46  ;;  %16275 = vst [vmem:[#allocation14_spill] sm:$0xff] %v15249_v61  ;;  %v10143_v42 = vcombine.low %v10135_v8, %v10142_v22  ;;  %v9844_v57 = vmul.f32 %v15243_v50, %v15243_v50  ;;  %v9845_v34 = vmul.f32 %v15246_v46, %v15246_v46 }
0x1203   :  { %v9846_v16 = vmul.f32 %v15249_v61, %v15249_v61  ;;  %v10144_v29 = vcombine.low %v9839_v11, %v9840_v47  ;;  %v10145_v58 = vcombine.low %v9841_v12, %v9842_v55  ;;  %v10207_v10 = vrot.slane %v10200_v39, %v11949_v15 }
0x1204   :  { %v10227_v25 = vsel %vm776_vm0, %v10143_v42, 0.0  ;;  %v10146_v32 = vcombine.low %v9843_v21, %v9844_v57 }
0x1205   :  { %10228 = vadd.xlane.f32.xlu0 %v10227_v25  ;;  %v10147_v8 = vcombine.low %v9845_v34, %v9846_v16  ;;  %v10154_v22 = vrot.slane %v10144_v29, %v11949_v15  ;;  %v10161_v18 = vrot.slane %v10145_v58, %v11949_v15  ;;  %v10233_v61 = vsel %vm6694_vm6, %v10207_v10, 0.0  ;;  %v11293_v34 = vld [vmem:[%s15702_s11] ss:$0 sm:$0xff] }
0x1206   :  { %v10168_v50 = vrot.slane %v10146_v32, %v11949_v15 }
0x1207   :  { %v10175_v46 = vrot.slane %v10147_v8, %v11949_v15  ;;  %v10176_v4 = vcombine.low %v10154_v22, %v10161_v18 }
0x1209   :  { %10234 = vadd.xlane.f32.xlu0 %v10233_v61  ;;  %v10177_v11 = vcombine.low %v10168_v50, %v10175_v46  ;;  %v10184_v47 = vrot.slane %v10176_v4, %v11949_v15  ;;  %v11294_v4 = vld [vmem:[%s15703_s12] ss:$0 sm:$0xff]  ;;  %v10569_v50 = vcombine.high %v11293_v34, %v11293_v34  ;;  %v10576_v61 = vrot.slane %v11293_v34, %v11949_v15 }
0x120a   :  { %v10681_v58 = vcombine.high %v11294_v4, %v11294_v4  ;;  %v10688_v10 = vrot.slane %v11294_v4, %v11949_v15 }
0x120b   :  { %v10191_v39 = vrot.slane %v10177_v11, %v11949_v15  ;;  %v10583_v25 = vrot.slane %v10569_v50, %v11949_v15  ;;  %v10584_v8 = vcombine.high %v10576_v61, %v10576_v61 }
0x120c   :  { %v10695_v22 = vrot.slane %v10681_v58, %v11949_v15 }
0x120d   :  { %v10192_v12 = vcombine.low %v10184_v47, %v10191_v39  ;;  %v10585_v18 = vcombine.high %v10583_v25, %v10583_v25  ;;  %v15288_v47 = vrot.slane %v10576_v61, %v11949_v15  ;;  %v15297_v34 = vrot.slane %v10584_v8, %v11949_v15 }
0x120e   :  { %v15313_v8 = vrot.slane %v10695_v22, %v11949_v15 }
0x120f   :  { %v10230_v55 = vsel %vm776_vm0, %v10192_v12, 0.0  ;;  %v15307_v58 = vcombine.high %v15288_v47, %v15288_v47 }
0x1210   :  { %10231 = vadd.xlane.f32.xlu1 %v10230_v55  ;;  %v15292_v55 = vrot.slane %v10583_v25, %v11949_v15  ;;  %v15310_v25 = vrot.slane %v10688_v10, %v11949_v15 }
0x1262   :  { %v10223_v42 = vpop.xlane.xlu0 %10222 }
0x1263   :  { %v10238_v21 = vmul.f32 0.03125, %v10223_v42  ;;  %v10696_v42 = vcombine.high %v10688_v10, %v10688_v10 }
0x1265   :  { %v10245_v57 = vadd.f32 1e-05, %v10238_v21 }
0x1267   :  { %11826 = vrsqrt.f32 %v10245_v57 }
0x126e   :  { %v10217_v16 = vpop.xlane.xlu0 %10216 }
0x126f   :  { %v10236_v29 = vmul.f32 0.03125, %v10217_v16  ;;  %v10697_v16 = vcombine.high %v10695_v22, %v10695_v22 }
0x1271   :  { %v10243_v46 = vadd.f32 1e-05, %v10236_v29  ;;  %v15324_v10 = vrot.slane %v10697_v16, %v11949_v15 }
0x1273   :  { %11828 = vrsqrt.f32 %v10243_v46  ;;  %v15302_v46 = vrot.slane %v10585_v18, %v11949_v15  ;;  %v15319_v18 = vrot.slane %v10696_v42, %v11949_v15  ;;  %v16281_v42 = vld [vmem:[#allocation24_spill] sm:$0xff]  ;;  %v15360_v35 = vcombine.high %v15324_v10, %v15324_v10 }
0x1274   :  { %v11827_v32 = vpop.eup %11826 }
0x1275   :  { %v10331_v12 = vrot.slane %v11827_v32, %v16208_v38  ;;  %v10335_v21 = vrot.slane %v11827_v32, %v16209_v59  ;;  %v10339_v57 = vrot.slane %v11827_v32, %v16210_v9  ;;  %v10343_v4 = vrot.slane %v11827_v32, %v16211_v26 }
0x1276   :  { %v10347_v50 = vrot.slane %v11827_v32, %v16212_v63  ;;  %v10351_v61 = vrot.slane %v11827_v32, %v16213_v36 }
0x1277   :  { %v10530_v52 = vmul.f32 %v10331_v12, %v16276_v56  ;;  %v10531_v6 = vmul.f32 %v10335_v21, %v16277_v0  ;;  %v10532_v20 = vmul.f32 %v10339_v57, %v16278_v53  ;;  %v10533_v22 = vmul.f32 %v10343_v4, %v16279_v3  ;;  %v16282_v57 = vld [vmem:[#allocation30_spill] sm:$0xff] }
0x1278   :  { %v10534_v60 = vmul.f32 %v10347_v50, %v16280_v27  ;;  %v15334_v56 = vcombine.high %v15297_v34, %v15297_v34  ;;  %v10535_v0 = vmul.f32 %v10351_v61, %v16281_v42  ;;  %v15339_v53 = vcombine.high %v15302_v46, %v15302_v46 }
0x1279   :  { %v10226_v11 = vpop.xlane.xlu1 %10225  ;;  %v15343_v3 = vcombine.high %v15310_v25, %v15310_v25  ;;  %v15347_v27 = vcombine.high %v15313_v8, %v15313_v8  ;;  %v10642_v50 = vmul.f32 %v15288_v47, %v10530_v52  ;;  %v15354_v61 = vcombine.high %v15319_v18, %v15319_v18 }
0x127a   :  { %v10239_v39 = vmul.f32 0.03125, %v10226_v11  ;;  %v10355_v11 = vrot.slane %v11827_v32, %v16214_v2  ;;  %v10643_v19 = vmul.f32 %v15297_v34, %v10531_v6  ;;  %v10644_v13 = vmul.f32 %v15307_v58, %v10532_v20 }
0x127b   :  { %v10646_v52 = vmul.f32 %v15292_v55, %v10534_v60  ;;  %v10647_v6 = vmul.f32 %v15302_v46, %v10535_v0  ;;  %v10754_v43 = vadd.f32 %v15310_v25, %v10642_v50 }
0x127c   :  { %v10246_v29 = vadd.f32 1e-05, %v10239_v39  ;;  %v10359_v39 = vrot.slane %v11827_v32, %v16215_v45  ;;  %v15330_v32 = vcombine.high %v15292_v55, %v15292_v55  ;;  %v10536_v16 = vmul.f32 %v10355_v11, %v16282_v57 }
0x127d   :  { %v10755_v60 = vadd.f32 %v15319_v18, %v10643_v19  ;;  %v10758_v14 = vadd.f32 %v15313_v8, %v10646_v52  ;;  %v10759_v19 = vadd.f32 %v15324_v10, %v10647_v6 }
0x127e   :  { %11830 = vrsqrt.f32 %v10246_v29  ;;  %v16283_v29 = vld [vmem:[#allocation27_spill] sm:$0xff]  ;;  %v10648_v7 = vmul.f32 %v15330_v32, %v10536_v16 }
0x127f   :  { %v10537_v4 = vmul.f32 %v10359_v39, %v16283_v29  ;;  %v10645_v39 = vmul.f32 %v15334_v56, %v10533_v22 }
0x1280   :  { %v11829_v12 = vpop.eup %11828 }
0x1281   :  { %v10267_v23 = vrot.slane %v11829_v12, %v16208_v38  ;;  %v10271_v11 = vrot.slane %v11829_v12, %v16209_v59  ;;  %v10275_v29 = vrot.slane %v11829_v12, %v16210_v9  ;;  %v10283_v20 = vrot.slane %v11829_v12, %v16212_v63 }
0x1282   :  { %v10649_v48 = vmul.f32 %v15339_v53, %v10537_v4  ;;  %v10287_v44 = vrot.slane %v11829_v12, %v16213_v36  ;;  %v10291_v22 = vrot.slane %v11829_v12, %v16214_v2  ;;  %v10295_v33 = vrot.slane %v11829_v12, %v16215_v45 }
0x1283   :  { %v10220_v21 = vpop.xlane.xlu1 %10219  ;;  %v10514_v0 = vmul.f32 %v10267_v23, %v14950_v40  ;;  %v10515_v30 = vmul.f32 %v10271_v11, %v14953_v51  ;;  %v10516_v16 = vmul.f32 %v10275_v29, %v14956_v62  ;;  %v10757_v50 = vadd.f32 %v15354_v61, %v10645_v39 }
0x1284   :  { %v10237_v42 = vmul.f32 0.03125, %v10220_v21  ;;  %v10279_v21 = vrot.slane %v11829_v12, %v16211_v26  ;;  %v10518_v1 = vmul.f32 %v10283_v20, %v14963_v24  ;;  %v10761_v12 = vadd.f32 %v15360_v35, %v10649_v48 }
0x1285   :  { %v10519_v40 = vmul.f32 %v10287_v44, %v14966_v28  ;;  %v10936_v23 = vcombine.low %v10754_v43, %v10755_v60  ;;  %v10520_v62 = vmul.f32 %v10291_v22, %v14972_v37  ;;  %v10626_v39 = vmul.f32 %v15288_v47, %v10514_v0 }
0x1286   :  { %v10244_v57 = vadd.f32 1e-05, %v10237_v42  ;;  %v10756_v42 = vadd.f32 %v15343_v3, %v10644_v13  ;;  %v10517_v4 = vmul.f32 %v10279_v21, %v14960_v41  ;;  %v10760_v13 = vadd.f32 %v15347_v27, %v10648_v7  ;;  %v16284_v41 = vld [vmem:[#allocation26_spill] sm:$0xff] }
0x1287   :  { %v10627_v52 = vmul.f32 %v15297_v34, %v10515_v30  ;;  %v10628_v29 = vmul.f32 %v15307_v58, %v10516_v16  ;;  %v10630_v48 = vmul.f32 %v15292_v55, %v10518_v1  ;;  %v10938_v28 = vcombine.low %v10758_v14, %v10759_v19 }
0x1288   :  { %11832 = vrsqrt.f32 %v10244_v57  ;;  %v10521_v57 = vmul.f32 %v10295_v33, %v16284_v41  ;;  %v10629_v7 = vmul.f32 %v15334_v56, %v10517_v4  ;;  %v10937_v21 = vcombine.low %v10756_v42, %v10757_v50 }
0x1289   :  { %v10939_v44 = vcombine.low %v10760_v13, %v10761_v12  ;;  %v10631_v37 = vmul.f32 %v15302_v46, %v10519_v40  ;;  %v15399_v33 = vrot.slane %v10936_v23, %v11949_v15  ;;  %v10632_v30 = vmul.f32 %v15330_v32, %v10520_v62 }
0x128a   :  { %v10633_v20 = vmul.f32 %v15339_v53, %v10521_v57  ;;  %v15404_v22 = vadd.f32 %v15310_v25, %v10626_v39  ;;  %v15407_v1 = vadd.f32 %v15319_v18, %v10627_v52  ;;  %v15412_v42 = vadd.f32 %v15343_v3, %v10628_v29 }
0x128b   :  { %v11831_v51 = vpop.eup %11830  ;;  %16285 = vst [vmem:[#allocation12_spill] sm:$0xff] %v15399_v33  ;;  %v15415_v0 = vadd.f32 %v15354_v61, %v10629_v7  ;;  %v15420_v50 = vadd.f32 %v15313_v8, %v10630_v48  ;;  %v15427_v23 = vadd.f32 %v15324_v10, %v10631_v37  ;;  %v15436_v41 = vrot.slane %v10937_v21, %v11949_v15  ;;  %v16294_v37 = vld [vmem:[#allocation5_spill] sm:$0xff] }
0x128c   :  { %v10363_v6 = vrot.slane %v11831_v51, %v16208_v38  ;;  %16286 = vst [vmem:[#allocation13_spill] sm:$0xff] %v15407_v1  ;;  %v10367_v14 = vrot.slane %v11831_v51, %v16209_v59  ;;  %v10371_v60 = vrot.slane %v11831_v51, %v16210_v9  ;;  %16287 = vst [vmem:[#allocation44_spill] sm:$0xff] %v15412_v42  ;;  %v16301_v42 = vld [vmem:[#allocation38_spill] sm:$0xff] }
0x128d   :  { %16288 = vst [vmem:[#allocation45_spill] sm:$0xff] %v15415_v0  ;;  %v10375_v16 = vrot.slane %v11831_v51, %v16211_v26  ;;  %v10379_v4 = vrot.slane %v11831_v51, %v16212_v63  ;;  %v10383_v19 = vrot.slane %v11831_v51, %v16213_v36  ;;  %v10387_v13 = vrot.slane %v11831_v51, %v16214_v2 }
0x128e   :  { %v10229_v11 = vpop.xlane.xlu0 %10228  ;;  %v10391_v12 = vrot.slane %v11831_v51, %v16215_v45  ;;  %v10538_v40 = vmul.f32 %v10363_v6, %v15028_v49  ;;  %v15433_v62 = vadd.f32 %v15360_v35, %v10633_v20  ;;  %16289 = vst [vmem:[#allocation46_spill] sm:$0xff] %v15436_v41  ;;  %v10539_v39 = vmul.f32 %v10367_v14, %v15034_v54  ;;  %v16292_v54 = vld [vmem:[#allocation31_spill] sm:$0xff]  ;;  %v16295_v51 = vld [vmem:[#allocation41_spill] sm:$0xff]  ;;  %v16296_v49 = vld [vmem:[#allocation8_spill] sm:$0xff] }
0x128f   :  { %v10240_v24 = vmul.f32 0.03125, %v10229_v11  ;;  %v15430_v11 = vadd.f32 %v15347_v27, %v10632_v30  ;;  %v10540_v52 = vmul.f32 %v10371_v60, %v15040_v17  ;;  %v10542_v29 = vmul.f32 %v10379_v4, %v15047_v5  ;;  %v16293_v17 = vld [vmem:[#allocation33_spill] sm:$0xff] }
0x1290   :  { %v15447_v7 = vrot.slane %v10938_v28, %v11949_v15  ;;  %v15450_v48 = vrot.slane %v10939_v44, %v11949_v15  ;;  %v10544_v6 = vmul.f32 %v10387_v13, %v16293_v17  ;;  %v10545_v30 = vmul.f32 %v10391_v12, %v16294_v37  ;;  %v16299_v41 = vld [vmem:[#allocation9_spill] sm:$0xff] }
0x1291   :  { %v10247_v43 = vadd.f32 1e-05, %v10240_v24  ;;  %v10541_v24 = vmul.f32 %v10375_v16, %v15043_v31  ;;  %v10650_v20 = vmul.f32 %v15288_v47, %v10538_v40  ;;  %v10651_v16 = vmul.f32 %v15297_v34, %v10539_v39 }
0x1292   :  { %16290 = vst [vmem:[#allocation48_spill] sm:$0xff] %v15447_v7  ;;  %16291 = vst [vmem:[#allocation47_spill] sm:$0xff] %v15450_v48  ;;  %v10652_v4 = vmul.f32 %v15307_v58, %v10540_v52  ;;  %v10656_v37 = vmul.f32 %v15330_v32, %v10544_v6  ;;  %v16298_v48 = vld [vmem:[#allocation6_spill] sm:$0xff] }
0x1293   :  { %11834 = vrsqrt.f32 %v10247_v43  ;;  %v10543_v43 = vmul.f32 %v10383_v19, %v16292_v54  ;;  %v10654_v54 = vmul.f32 %v15292_v55, %v10542_v29  ;;  %v16300_v29 = vld [vmem:[#allocation34_spill] sm:$0xff] }
0x1295   :  { %v11833_v57 = vpop.eup %11832  ;;  %v10655_v17 = vmul.f32 %v15302_v46, %v10543_v43 }
0x1296   :  { %v10299_v31 = vrot.slane %v11833_v57, %v16208_v38  ;;  %v10303_v5 = vrot.slane %v11833_v57, %v16209_v59  ;;  %v10307_v28 = vrot.slane %v11833_v57, %v16210_v9  ;;  %v10311_v60 = vrot.slane %v11833_v57, %v16211_v26 }
0x1297   :  { %v10315_v44 = vrot.slane %v11833_v57, %v16212_v63  ;;  %v10319_v13 = vrot.slane %v11833_v57, %v16213_v36  ;;  %v10323_v12 = vrot.slane %v11833_v57, %v16214_v2  ;;  %v10327_v40 = vrot.slane %v11833_v57, %v16215_v45 }
0x1298   :  { %v10522_v39 = vmul.f32 %v10299_v31, %v16295_v51  ;;  %v10523_v52 = vmul.f32 %v10303_v5, %v16296_v49  ;;  %v10525_v33 = vmul.f32 %v10311_v60, %v16298_v48  ;;  %v10657_v57 = vmul.f32 %v15339_v53, %v10545_v30 }
0x1299   :  { %v10232_v21 = vpop.xlane.xlu1 %10231  ;;  %v10526_v0 = vmul.f32 %v10315_v44, %v16299_v41  ;;  %v10527_v43 = vmul.f32 %v10319_v13, %v16300_v29  ;;  %v10528_v6 = vmul.f32 %v10323_v12, %v16301_v42  ;;  %v15483_v51 = vadd.f32 %v15319_v18, %v10651_v16 }
0x129a   :  { %v10241_v14 = vmul.f32 0.03125, %v10232_v21  ;;  %v10653_v21 = vmul.f32 %v15334_v56, %v10541_v24  ;;  %v15477_v24 = vadd.f32 %v15310_v25, %v10650_v20  ;;  %v15486_v31 = vadd.f32 %v15343_v3, %v10652_v4 }
0x129b   :  { %v15492_v48 = vadd.f32 %v15313_v8, %v10654_v54  ;;  %v15495_v30 = vadd.f32 %v15324_v10, %v10655_v17  ;;  %v10634_v42 = vmul.f32 %v15288_v47, %v10522_v39  ;;  %v10635_v20 = vmul.f32 %v15297_v34, %v10523_v52 }
0x129c   :  { %v10248_v19 = vadd.f32 1e-05, %v10241_v14  ;;  %v16297_v14 = vld [vmem:[#allocation4_spill] sm:$0xff]  ;;  %v15489_v41 = vadd.f32 %v15354_v61, %v10653_v21  ;;  %v10637_v60 = vmul.f32 %v15334_v56, %v10525_v33  ;;  %v10638_v44 = vmul.f32 %v15292_v55, %v10526_v0 }
0x129d   :  { %v10524_v7 = vmul.f32 %v10307_v28, %v16297_v14  ;;  %v15501_v28 = vadd.f32 %v15347_v27, %v10656_v37  ;;  %v15506_v16 = vadd.f32 %v15360_v35, %v10657_v57  ;;  %v10840_v4 = vcombine.low %v15420_v50, %v15427_v23  ;;  %v16303_v57 = vld [vmem:[#allocation50_spill] sm:$0xff] }
0x129e   :  { %11836 = vrsqrt.f32 %v10248_v19  ;;  %v16302_v19 = vld [vmem:[#allocation49_spill] sm:$0xff]  ;;  %v10639_v12 = vmul.f32 %v15302_v46, %v10527_v43  ;;  %v10746_v50 = vadd.f32 %v15310_v25, %v10634_v42  ;;  %v10747_v23 = vadd.f32 %v15319_v18, %v10635_v20  ;;  %v16304_v42 = vld [vmem:[#allocation51_spill] sm:$0xff] }
0x129f   :  { %v10529_v1 = vmul.f32 %v10327_v40, %v16302_v19  ;;  %v10636_v5 = vmul.f32 %v15307_v58, %v10524_v7  ;;  %v10640_v40 = vmul.f32 %v15330_v32, %v10528_v6  ;;  %v10749_v52 = vadd.f32 %v15354_v61, %v10637_v60  ;;  %v16308_v60 = vld [vmem:[#allocation11_spill] sm:$0xff] }
0x12a0   :  { %v11835_v49 = vpop.eup %11834  ;;  %v10750_v14 = vadd.f32 %v15313_v8, %v10638_v44  ;;  %v10751_v43 = vadd.f32 %v15324_v10, %v10639_v12  ;;  %v10841_v19 = vcombine.low %v15430_v11, %v15433_v62  ;;  %v16312_v11 = vld [vmem:[#allocation45_spill] sm:$0xff] }
0x12a1   :  { %v10395_v13 = vrot.slane %v11835_v49, %v16208_v38  ;;  %v10641_v7 = vmul.f32 %v15339_v53, %v10529_v1  ;;  %v10399_v21 = vrot.slane %v11835_v49, %v16209_v59  ;;  %v10403_v33 = vrot.slane %v11835_v49, %v16210_v9 }
0x12a2   :  { %v10407_v0 = vrot.slane %v11835_v49, %v16211_v26  ;;  %v10411_v54 = vrot.slane %v11835_v49, %v16212_v63  ;;  %v10415_v17 = vrot.slane %v11835_v49, %v16213_v36  ;;  %v10748_v37 = vadd.f32 %v15343_v3, %v10636_v5  ;;  %v16305_v5 = vld [vmem:[#allocation52_spill] sm:$0xff] }
0x12a3   :  { %v10419_v39 = vrot.slane %v11835_v49, %v16214_v2  ;;  %v10423_v1 = vrot.slane %v11835_v49, %v16215_v45  ;;  %v10546_v29 = vmul.f32 %v10395_v13, %v16303_v57  ;;  %v10752_v6 = vadd.f32 %v15347_v27, %v10640_v40  ;;  %v16306_v2 = vld [vmem:[#allocation53_spill] sm:$0xff]  ;;  %v16307_v49 = vld [vmem:[#allocation54_spill] sm:$0xff]  ;;  %v16311_v57 = vld [vmem:[#allocation44_spill] sm:$0xff] }
0x12a4   :  { %v10547_v20 = vmul.f32 %v10399_v21, %v16304_v42  ;;  %v10548_v36 = vmul.f32 %v10403_v33, %v16305_v5  ;;  %v10549_v63 = vmul.f32 %v10407_v0, %v16306_v2  ;;  %v10550_v45 = vmul.f32 %v10411_v54, %v16307_v49  ;;  %v16309_v13 = vld [vmem:[#allocation13_spill] sm:$0xff]  ;;  %v16314_v33 = vld [vmem:[#allocation3_spill] sm:$0xff]  ;;  %v16315_v0 = vld [vmem:[#allocation22_spill] sm:$0xff] }
0x12a5   :  { %v10551_v26 = vmul.f32 %v10415_v17, %v16308_v60  ;;  %v10753_v44 = vadd.f32 %v15360_v35, %v10641_v7  ;;  %v16310_v12 = vcombine.low %v15404_v22, %v16309_v13  ;;  %v16313_v62 = vcombine.low %v16311_v57, %v16312_v11 }
0x12a6   :  { %v10552_v2 = vmul.f32 %v10419_v39, %v16314_v33  ;;  %v10553_v54 = vmul.f32 %v10423_v1, %v16315_v0  ;;  %v10862_v17 = vrot.slane %v10840_v4, %v11949_v15  ;;  %v10887_v5 = vcombine.low %v10746_v50, %v10747_v23  ;;  %v16316_v1 = vld [vmem:[#allocation43_spill] sm:$0xff] }
0x12a7   :  { %v10848_v40 = vrot.slane %v16310_v12, %v11949_v15  ;;  %v10855_v21 = vrot.slane %v16313_v62, %v11949_v15  ;;  %v10658_v22 = vmul.f32 %v15288_v47, %v10546_v29  ;;  %v10869_v49 = vrot.slane %v10841_v19, %v11949_v15  ;;  %v16318_v62 = vld [vmem:[#allocation12_spill] sm:$0xff] }
0x12a8   :  { %v10888_v60 = vcombine.low %v10748_v37, %v10749_v52  ;;  %v10659_v13 = vmul.f32 %v15297_v34, %v10547_v20  ;;  %v10660_v12 = vmul.f32 %v15307_v58, %v10548_v36  ;;  %v10661_v57 = vmul.f32 %v15334_v56, %v10549_v63 }
0x12a9   :  { %v10662_v39 = vmul.f32 %v15292_v55, %v10550_v45  ;;  %v10663_v4 = vmul.f32 %v15302_v46, %v10551_v26  ;;  %v10870_v50 = vcombine.low %v10848_v40, %v10855_v21  ;;  %v10889_v23 = vcombine.low %v10750_v14, %v10751_v43  ;;  %v16317_v45 = vld [vmem:[#allocation46_spill] sm:$0xff]  ;;  %v16319_v40 = vld [vmem:[#allocation47_spill] sm:$0xff]  ;;  %v16320_v21 = vld [vmem:[#allocation48_spill] sm:$0xff] }
0x12aa   :  { %v10664_v29 = vmul.f32 %v15330_v32, %v10552_v2  ;;  %v10665_v19 = vmul.f32 %v15339_v53, %v10553_v54  ;;  %v10890_v37 = vcombine.low %v10752_v6, %v10753_v44  ;;  %v10897_v52 = vrot.slane %v10887_v5, %v11949_v15 }
0x12ab   :  { %v15545_v42 = vpop.eup %11836  ;;  %v10871_v20 = vcombine.low %v10862_v17, %v10869_v49  ;;  %v10904_v63 = vrot.slane %v10888_v60, %v11949_v15  ;;  %v10968_v33 = vcombine.low %v16318_v62, %v16317_v45  ;;  %v10770_v26 = vadd.f32 %v15310_v25, %v10658_v22  ;;  %v10235_v62 = vpop.xlane.xlu0 %10234 }
0x12ac   :  { %v10427_v7 = vrot.slane %v15545_v42, %v16208_v38  ;;  %v10771_v14 = vadd.f32 %v15319_v18, %v10659_v13  ;;  %v10772_v43 = vadd.f32 %v15343_v3, %v10660_v12  ;;  %v10969_v2 = vcombine.low %v16320_v21, %v16319_v40 }
0x12ad   :  { %v10773_v6 = vadd.f32 %v15354_v61, %v10661_v57  ;;  %v10774_v44 = vadd.f32 %v15313_v8, %v10662_v39  ;;  %v10878_v0 = vrot.slane %v10870_v50, %v11949_v15  ;;  %v10911_v54 = vrot.slane %v10889_v23, %v11949_v15 }
0x12ae   :  { %v10554_v11 = vmul.f32 %v10427_v7, %v16316_v1  ;;  %v10775_v17 = vadd.f32 %v15324_v10, %v10663_v4  ;;  %v10776_v5 = vadd.f32 %v15347_v27, %v10664_v29  ;;  %v10777_v7 = vadd.f32 %v15360_v35, %v10665_v19 }
0x12af   :  { %v10885_v49 = vrot.slane %v10871_v20, %v11949_v15  ;;  %v10918_v60 = vrot.slane %v10890_v37, %v11949_v15  ;;  %v10919_v13 = vcombine.low %v10897_v52, %v10904_v63  ;;  %v10976_v12 = vrot.slane %v10968_v33, %v11949_v15 }
0x12b0   :  { %v10666_v36 = vmul.f32 %v15288_v47, %v10554_v11  ;;  %v10983_v57 = vrot.slane %v10969_v2, %v11949_v15  ;;  %v10991_v39 = vrot.slane %v15477_v24, %v11949_v15  ;;  %v10999_v1 = vcombine.low %v15483_v51, %v15486_v31 }
0x12b1   :  { %v11000_v11 = vcombine.low %v15489_v41, %v15492_v48  ;;  %v10886_v4 = vcombine.low %v10878_v0, %v10885_v49  ;;  %v10920_v50 = vcombine.low %v10911_v54, %v10918_v60  ;;  %v10927_v23 = vrot.slane %v10919_v13, %v11949_v15 }
0x12b2   :  { %v10778_v22 = vadd.f32 %v15310_v25, %v10666_v36  ;;  %v11001_v29 = vcombine.low %v15495_v30, %v15501_v28  ;;  %v10984_v19 = vcombine.low %v10976_v12, %v10983_v57  ;;  %v10998_v37 = vrot.slane %v10991_v39, %v11949_v15 }
0x12b3   :  { %v11002_v52 = vcombine.low %v15506_v16, %v10770_v26  ;;  %v11009_v24 = vrot.slane %v10999_v1, %v11949_v15  ;;  %v10934_v36 = vrot.slane %v10920_v50, %v11949_v15  ;;  %v11016_v51 = vrot.slane %v11000_v11, %v11949_v15  ;;  %11168 = vst.msk [vmem:[%s15704_s13] sm:$0xff] %vm776_vm0, %v10886_v4  ;;  %v16324_v1 = vld [vmem:[#allocation20_spill] sm:$0xff]  ;;  %v16325_v4 = vld [vmem:[#allocation42_spill] sm:$0xff] }
0x12b4   :  { %v11023_v31 = vrot.slane %v11001_v29, %v11949_v15  ;;  %v11048_v41 = vcombine.low %v10771_v14, %v10772_v43  ;;  %v11049_v30 = vcombine.low %v10773_v6, %v10774_v44  ;;  %v11050_v28 = vcombine.low %v10775_v17, %v10776_v5  ;;  %11170 = vst.msk [vmem:[%s15704_s13 + $0x10] sm:$0xff] %vm776_vm0, %v10984_v19  ;;  %v16321_v17 = vld [vmem:[#allocation16_spill] sm:$0xff]  ;;  %v16327_v19 = vld [vmem:[#allocation21_spill] sm:$0xff] }
0x12b5   :  { %v11030_v48 = vrot.slane %v11002_v52, %v11949_v15  ;;  %v11051_v20 = vcombine.low %v10777_v7, %v10778_v22  ;;  %11172 = vst.msk [vmem:[%s15704_s13 + $0x18] sm:$0x1] %vm11171_vm7, %v10998_v37  ;;  %v10935_v16 = vcombine.low %v10927_v23, %v10934_v36  ;;  %v11031_v63 = vcombine.low %v11009_v24, %v11016_v51  ;;  %v16322_v7 = vld [vmem:[#allocation18_spill] sm:$0xff]  ;;  %v16326_v23 = vld [vmem:[#allocation29_spill] sm:$0xff]  ;;  %v16328_v52 = vld [vmem:[#allocation40_spill] sm:$0xff] }
0x12b6   :  { %v11058_v45 = vrot.slane %v11048_v41, %v11949_v15  ;;  %v11065_v26 = vrot.slane %v11049_v30, %v11949_v15  ;;  %v11072_v14 = vrot.slane %v11050_v28, %v11949_v15  ;;  %v10242_v44 = vmul.f32 0.03125, %v10235_v62  ;;  %v16329_v36 = vld [vmem:[#allocation19_spill] sm:$0xff] }
0x12b7   :  { %v11032_v33 = vcombine.low %v11023_v31, %v11030_v48  ;;  %v11079_v43 = vrot.slane %v11051_v20, %v11949_v15  ;;  %v11039_v40 = vrot.slane %v11031_v63, %v11949_v15  ;;  %11169 = vst.msk [vmem:[%s15704_s13 + $0x8] sm:$0xff] %vm776_vm0, %v10935_v16  ;;  %v10431_v0 = vrot.slane %v15545_v42, %v16209_v59  ;;  %v16330_v31 = vld [vmem:[#allocation37_spill] sm:$0xff]  ;;  %v16331_v48 = vld [vmem:[#allocation2_spill] sm:$0xff] }
0x12b8   :  { %v11080_v2 = vcombine.low %v11058_v45, %v11065_v26  ;;  %v10435_v54 = vrot.slane %v15545_v42, %v16210_v9  ;;  %v10439_v5 = vrot.slane %v15545_v42, %v16321_v17  ;;  %v10443_v22 = vrot.slane %v15545_v42, %v16322_v7  ;;  %v16323_v9 = vld [vmem:[#allocation17_spill] sm:$0xff]  ;;  %v16332_v45 = vld [vmem:[#allocation14_spill] sm:$0xff] }
0x12b9   :  { %v11046_v21 = vrot.slane %v11032_v33, %v11949_v15  ;;  %v11081_v6 = vcombine.low %v11072_v14, %v11079_v43  ;;  %v10249_v12 = vadd.f32 1e-05, %v10242_v44  ;;  %v10447_v39 = vrot.slane %v15545_v42, %v16323_v9  ;;  %v16333_v44 = vld [vmem:[#allocation25_spill] sm:$0xff] }
0x12ba   :  { %v11088_v60 = vrot.slane %v11080_v2, %v11949_v15  ;;  %v10451_v11 = vrot.slane %v15545_v42, %v16324_v1  ;;  %v10555_v50 = vmul.f32 %v10431_v0, %v16325_v4  ;;  %v10556_v29 = vmul.f32 %v10435_v54, %v16326_v23 }
0x12bb   :  { %v11047_v49 = vcombine.low %v11039_v40, %v11046_v21  ;;  %v11095_v13 = vrot.slane %v11081_v6, %v11949_v15  ;;  %11838 = vrsqrt.f32 %v10249_v12  ;;  %v10557_v37 = vmul.f32 %v10439_v5, %v16327_v19 }
0x12bc   :  { %v10558_v24 = vmul.f32 %v10443_v22, %v16328_v52  ;;  %v10455_v51 = vrot.slane %v15545_v42, %v16329_v36  ;;  %v10559_v41 = vmul.f32 %v10447_v39, %v16330_v31  ;;  %v10560_v30 = vmul.f32 %v10451_v11, %v16331_v48 }
0x12bd   :  { %v11096_v57 = vcombine.low %v11088_v60, %v11095_v13  ;;  %11173 = vst.msk [vmem:[%s15704_s13 + $0x20] sm:$0xff] %vm776_vm0, %v11047_v49  ;;  %v10667_v28 = vmul.f32 %v15297_v34, %v10555_v50  ;;  %v10668_v20 = vmul.f32 %v15307_v58, %v10556_v29  ;;  %v10669_v16 = vmul.f32 %v15334_v56, %v10557_v37 }
0x12be   :  { %v10670_v63 = vmul.f32 %v15292_v55, %v10558_v24  ;;  %v10561_v62 = vmul.f32 %v10455_v51, %v16332_v45  ;;  %v10671_v33 = vmul.f32 %v15302_v46, %v10559_v41  ;;  %v10672_v26 = vmul.f32 %v15330_v32, %v10560_v30 }
0x12bf   :  { %11174 = vst.msk [vmem:[%s15704_s13 + $0x28] sm:$0xff] %vm776_vm0, %v11096_v57  ;;  %v10779_v42 = vadd.f32 %v15319_v18, %v10667_v28  ;;  %v10780_v14 = vadd.f32 %v15343_v3, %v10668_v20  ;;  %v10781_v43 = vadd.f32 %v15354_v61, %v10669_v16  ;;  %v16334_v3 = vld [vmem:[#allocation28_spill] sm:$0xff] }
0x12c0   :  { %v10782_v40 = vadd.f32 %v15313_v8, %v10670_v63  ;;  %v10673_v58 = vmul.f32 %v15339_v53, %v10561_v62  ;;  %v10783_v56 = vadd.f32 %v15324_v10, %v10671_v33  ;;  %v10784_v55 = vadd.f32 %v15347_v27, %v10672_v26 }
0x12c1   :  { %v11097_v2 = vcombine.low %v10779_v42, %v10780_v14 }
0x12c2   :  { %v11098_v6 = vcombine.low %v10781_v43, %v10782_v40  ;;  %v10785_v61 = vadd.f32 %v15360_v35, %v10673_v58  ;;  %v11099_v8 = vcombine.low %v10783_v56, %v10784_v55 }
0x12c3   :  { %v11107_v17 = vrot.slane %v11097_v2, %v11949_v15 }
0x12c4   :  { %v11114_v53 = vrot.slane %v11098_v6, %v11949_v15 }
0x12c6   :  { %v11129_v7 = vcombine.low %v11107_v17, %v11114_v53 }
0x12c8   :  { %v11839_v21 = vpop.eup %11838  ;;  %v11137_v13 = vrot.slane %v11129_v7, %v11949_v15 }
0x12c9   :  { %v10459_v46 = vrot.slane %v11839_v21, %v16208_v38  ;;  %v10463_v32 = vrot.slane %v11839_v21, %v16209_v59  ;;  %v11121_v59 = vrot.slane %v11099_v8, %v11949_v15 }
0x12cb   :  { %v10562_v0 = vmul.f32 %v10459_v46, %v16333_v44  ;;  %v10563_v54 = vmul.f32 %v10463_v32, %v16334_v3 }
0x12cd   :  { %v10674_v10 = vmul.f32 %v15288_v47, %v10562_v0  ;;  %v10675_v27 = vmul.f32 %v15297_v34, %v10563_v54 }
0x12cf   :  { %v10786_v5 = vadd.f32 %v15310_v25, %v10674_v10  ;;  %v10787_v38 = vadd.f32 %v15319_v18, %v10675_v27 }
0x12d1   :  { %v11100_v22 = vcombine.low %v10785_v61, %v10786_v5  ;;  %v11152_v49 = vrot.slane %v10787_v38, %v11949_v15 }
0x12d3   :  { %v11128_v35 = vrot.slane %v11100_v22, %v11949_v15  ;;  %v11159_v60 = vrot.slane %v11152_v49, %v11949_v15 }
0x12d5   :  { %v11130_v12 = vcombine.low %v11121_v59, %v11128_v35  ;;  %11176 = vst.msk [vmem:[%s15704_s13 + $0x38] sm:$0x1] %vm11171_vm7, %v11159_v60 }
0x12d7   :  { %v11144_v47 = vrot.slane %v11130_v12, %v11949_v15 }
0x12d9   :  { %v11145_v34 = vcombine.low %v11137_v13, %v11144_v47 }
0x12db   :  { %11175 = vst.msk [vmem:[%s15704_s13 + $0x30] sm:$0xff] %vm776_vm0, %v11145_v34 }

</bundles_post_ra>
